<compile_context>
chip_gen: v5e
topology: v5e:2x2
jax: 0.10.0
libtpu: 0.0.40
codegen_flags: <defaults>
</compile_context>

<pallas_src>
import jax
import jax.numpy as jnp
import numpy as np
from jax.experimental import pallas as pl
from jax.experimental.pallas import tpu as pltpu


def _round_up(v, m):
    return -(-v // m) * m


# ---------------------------------------------------------------- kernel ----

def _make_kernel(ci, co, offs, A, c0a, L, Sbuf, HpWp, Do, HoWo, Np_pad):
    def kernel(x_ref, w1_ref, w2_ref, ws_ref, m_ref, pool_ref, o_ref,
               h2_ref, t_ref, col_ref):
        # x_ref   : (1, ci, Sbuf) bf16 -- zero-padded input, flat padded volume at [A, A+S)
        # w1_ref  : (ci, 27*ci) bf16   -- conv1 im2col weight slab
        # w2_ref  : (co, 27*ci) bf16   -- conv2 im2col weight slab
        # ws_ref  : (co, ci)   bf16    -- 1x1x1 skip conv
        # m_ref   : (1, L)     f32     -- interior mask over the lane-aligned window
        # pool_ref: (3*HpWp, HoWo) bf16 {0,1} -- H/W pool+subsample matrix (x3 depth taps)
        # o_ref   : (1, co, Np_pad) f32
        # h2_ref  : (ci, Sbuf) bf16 scratch (relu(conv1) in padded layout)
        # t_ref   : (co, Sbuf) bf16 scratch (conv2 + skip in padded layout)
        # col_ref : (27*ci, L) bf16 scratch (shared im2col slab)
        m = m_ref[...]                                          # (1, L) f32

        # ---- conv #1 (ci -> ci): relu fused into the im2col gather, then one
        #      MXU matmul with contraction K = 27*ci.
        for k, off in enumerate(offs):
            col_ref[k * ci:(k + 1) * ci, :] = jnp.maximum(
                x_ref[0, :, A + off:A + off + L], 0)
        acc1 = jnp.dot(w1_ref[...], col_ref[...],
                       preferred_element_type=jnp.float32)      # (ci, L) f32

        # relu + interior mask back into the padded layout (zero halo required by
        # conv #2's taps). Only the two lane-aligned margins are re-zeroed.
        h2_ref[:, 0:c0a] = jnp.zeros((ci, c0a), h2_ref.dtype)
        h2_ref[:, c0a + L:Sbuf] = jnp.zeros((ci, Sbuf - c0a - L), h2_ref.dtype)
        h2_ref[:, c0a:c0a + L] = (jnp.maximum(acc1, 0.0) * m).astype(h2_ref.dtype)

        # ---- conv #2 (ci -> co): im2col gather from the padded hidden activation,
        #      one matmul (same shared slab, now safely overwritten).
        for k, off in enumerate(offs):
            col_ref[k * ci:(k + 1) * ci, :] = h2_ref[:, A + off:A + off + L]
        acc2 = jnp.dot(w2_ref[...], col_ref[...],
                       preferred_element_type=jnp.float32)      # (co, L) f32

        # ---- skip path: 1x1x1 conv over the lane-aligned interior window.
        skip = jnp.dot(ws_ref[...], x_ref[0, :, c0a:c0a + L],
                       preferred_element_type=jnp.float32)      # (co, L) f32

        # ---- residual sum, masked, into padded layout for the pool.
        t_ref[:, 0:c0a] = jnp.zeros((co, c0a), t_ref.dtype)
        t_ref[:, c0a + L:Sbuf] = jnp.zeros((co, Sbuf - c0a - L), t_ref.dtype)
        t_ref[:, c0a:c0a + L] = ((acc2 + skip) * m).astype(t_ref.dtype)

        # ---- AvgPool3d(3, 2, 1), count_include_pad: separable over depth.
        # Each output-depth slab is one contiguous 3-plane slice of the padded
        # volume; H/W pooling + stride-2 subsample is one tiny {0,1} matmul.
        o_ref[0] = jnp.zeros((co, Np_pad), jnp.float32)         # also clears lane pad
        pmat = pool_ref[...]                                    # (3*HpWp, HoWo)
        for do in range(Do):
            b0 = A + 2 * do * HpWp
            piece = jnp.dot(t_ref[:, b0:b0 + 3 * HpWp], pmat,
                            preferred_element_type=jnp.float32)  # (co, HoWo)
            o_ref[0, :, do * HoWo:(do + 1) * HoWo] = piece * (1.0 / 27.0)

    return kernel


# ----------------------------------------------------------------- wrapper ----

def resblock_down_pallas(x_ncdhw, w1k, w2k, wsk):
    """x_ncdhw: (N, Cin, D, H, W) f32.
       w1k: (27, Cin, Cin), w2k: (27, Cout, Cin), wsk: (Cout, Cin),
       tap index k = (kd*3 + kh)*3 + kw, weight layout [tap, c_out, c_in]."""
    N, Cin, D, H, W = x_ncdhw.shape
    Cout = wsk.shape[0]
    Dp, Hp, Wp = D + 2, H + 2, W + 2
    HpWp = Hp * Wp
    S = Dp * HpWp
    c0 = HpWp + Wp + 1                          # flat offset of padded voxel (1,1,1)
    L0 = S - 2 * c0                             # span covering every interior voxel
    Do, Ho, Wo = (D - 1) // 2 + 1, (H - 1) // 2 + 1, (W - 1) // 2 + 1
    HoWo, Np = Ho * Wo, Do * Ho * Wo

    # lane-aligned flat layout: interior-window start (A + c0), window length L,
    # and the total buffer length are all multiples of 128.
    A = _round_up(c0, 128) - c0
    L = _round_up(L0, 128)
    c0a = A + c0
    Sbuf = _round_up(A + S + (L - L0), 128)
    Np_pad = max(128, _round_up(Np, 128))

    # channel padding: multiples of 16 (bf16 sublane packing; zero channels inert).
    ci_p = max(16, _round_up(Cin, 16))
    co_p = max(16, _round_up(Cout, 16))

    offs = [kd * HpWp + kh * Wp + kw
            for kd in range(3) for kh in range(3) for kw in range(3)]

    # interior mask over the (lane-padded) window.
    mask = np.zeros((1, L), np.float32)
    q = np.arange(c0, c0 + L0)
    pd, ph, pw = q // HpWp, (q // Wp) % Hp, q % Wp
    mask[0, :L0] = ((pd >= 1) & (pd <= D) & (ph >= 1) & (ph <= H)
                    & (pw >= 1) & (pw <= W)).astype(np.float32)

    # {0,1} H/W pool + stride-2 subsample matrix, tiled x3 for the 3 depth taps of
    # each output-depth slab (AvgPool3d(3,2,1), count_include_pad=True; /27 in kernel).
    phw = np.zeros((HpWp, HoWo), np.float32)
    for ho in range(Ho):
        for wo in range(Wo):
            j = ho * Wo + wo
            for kh in range(3):
                for kw in range(3):
                    phw[(2 * ho + kh) * Wp + (2 * wo + kw), j] = 1.0
    pool_mat = np.concatenate([phw, phw, phw], axis=0)          # (3*HpWp, HoWo)

    # im2col weight slabs (c_out, 27*c_in); bf16 storage, f32 accumulation on MXU.
    w1p = jnp.zeros((27, ci_p, ci_p), jnp.float32).at[:, :Cin, :Cin].set(w1k)
    w2p = jnp.zeros((27, co_p, ci_p), jnp.float32).at[:, :Cout, :Cin].set(w2k)
    w1big = jnp.transpose(w1p, (1, 0, 2)).reshape(ci_p, 27 * ci_p).astype(jnp.bfloat16)
    w2big = jnp.transpose(w2p, (1, 0, 2)).reshape(co_p, 27 * ci_p).astype(jnp.bfloat16)
    wsp = (jnp.zeros((co_p, ci_p), jnp.float32).at[:Cout, :Cin].set(wsk)
           ).astype(jnp.bfloat16)

    # single fused pad (channel + spatial halo + lane-alignment margins), free reshape.
    # TODO(synk): for production volumes (D>=16, C>=128) tile D across the grid with
    # halo DMA and batch-pack several samples per step so the working set fits v7x's
    # 64 MiB VMEM; the current whole-volume-per-step layout targets small volumes.
    xflat = jnp.pad(x_ncdhw, ((0, 0), (0, ci_p - Cin), (1, 1), (1, 1), (1, 1))
                    ).reshape(N, ci_p, S)
    xbuf = jnp.pad(xflat, ((0, 0), (0, 0), (A, Sbuf - S - A))).astype(jnp.bfloat16)

    kernel = _make_kernel(ci_p, co_p, offs, A, c0a, L, Sbuf, HpWp, Do, HoWo, Np_pad)

    flops = int(N * (2 * ci_p * 27 * ci_p * L                  # conv1
                     + 2 * co_p * 27 * ci_p * L                # conv2
                     + 2 * co_p * ci_p * L                     # 1x1x1 skip
                     + Do * 2 * co_p * 3 * HpWp * HoWo))       # separable pool
    bytes_accessed = int(xbuf.size * 2 + w1big.size * 2 + w2big.size * 2
                         + wsp.size * 2 + mask.size * 4 + pool_mat.size * 2
                         + N * co_p * Np_pad * 4)

    # vmem budget from the actual working set (double-buffered blocks + scratches),
    # with headroom, capped so it also fits v7x's 64 MiB physical VMEM.
    scratch_bytes = (ci_p * Sbuf + co_p * Sbuf + 27 * ci_p * L) * 2
    block_bytes = (2 * (ci_p * Sbuf * 2 + co_p * Np_pad * 4)
                   + w1big.size * 2 + w2big.size * 2 + wsp.size * 2
                   + mask.size * 4 + pool_mat.size * 2)
    vmem_limit = int(min(max(2 * (scratch_bytes + block_bytes), 32 * 1024 * 1024),
                         48 * 1024 * 1024))

    out = pl.pallas_call(
        kernel,
        out_shape=jax.ShapeDtypeStruct((N, co_p, Np_pad), jnp.float32),
        grid_spec=pltpu.PrefetchScalarGridSpec(
            num_scalar_prefetch=0,
            grid=(N,),
            in_specs=[
                pl.BlockSpec((1, ci_p, Sbuf), lambda b: (b, 0, 0)),
                pl.BlockSpec((ci_p, 27 * ci_p), lambda b: (0, 0)),
                pl.BlockSpec((co_p, 27 * ci_p), lambda b: (0, 0)),
                pl.BlockSpec((co_p, ci_p), lambda b: (0, 0)),
                pl.BlockSpec((1, L), lambda b: (0, 0)),
                pl.BlockSpec((3 * HpWp, HoWo), lambda b: (0, 0)),
            ],
            out_specs=pl.BlockSpec((1, co_p, Np_pad), lambda b: (b, 0, 0)),
            scratch_shapes=[
                pltpu.VMEM((ci_p, Sbuf), jnp.bfloat16),    # relu(conv1), padded layout
                pltpu.VMEM((co_p, Sbuf), jnp.bfloat16),    # conv2 + skip, padded layout
                pltpu.VMEM((27 * ci_p, L), jnp.bfloat16),  # shared im2col slab
            ],
        ),
        compiler_params=pltpu.CompilerParams(
            dimension_semantics=("parallel",),
            vmem_limit_bytes=vmem_limit,
        ),
        cost_estimate=pl.CostEstimate(flops=flops, transcendentals=0,
                                      bytes_accessed=bytes_accessed),
    )(xbuf, w1big, w2big, wsp, jnp.asarray(mask),
      jnp.asarray(pool_mat, dtype=jnp.bfloat16))

    return out[:, :Cout, :Np].reshape(N, Cout, Do, Ho, Wo)


# ---------------- parameter setup (plain JAX glue) ----------------

def _l2_normalize(v, eps=1e-12):
    return v / (jnp.sqrt(jnp.sum(v * v)) + eps)


def spectral_norm_weight(w, key, n_power_iterations=1):
    """w: PyTorch-layout conv weight (Cout, Cin, kD, kH, kW). Returns w / sigma."""
    cout = w.shape[0]
    wm = w.reshape(cout, -1)
    u = _l2_normalize(jax.random.normal(key, (cout,), dtype=w.dtype))
    v = None
    for _ in range(n_power_iterations):
        v = _l2_normalize(wm.T @ u)
        u = _l2_normalize(wm @ v)
    sigma = u @ (wm @ v)
    return w / sigma


def init_conv(key, cout, cin, ksz):
    fan_in = cin * ksz ** 3
    bound = 1.0 / np.sqrt(fan_in)
    return jax.random.uniform(key, (cout, cin, ksz, ksz, ksz),
                              minval=-bound, maxval=bound, dtype=jnp.float32)


# ---------------- pure-JAX reference (NCDHW, like PyTorch) ----------------

def ref_forward_ncdhw(x, w1, w2, ws):
    dn = ('NCDHW', 'OIDHW', 'NCDHW')

    def conv(a, w):
        return jax.lax.conv_general_dilated(
            a, w, window_strides=(1, 1, 1), padding='SAME',
            dimension_numbers=dn, precision=jax.lax.Precision.HIGHEST)

    def avgpool(a):
        s = jax.lax.reduce_window(a, 0.0, jax.lax.add,
                                  (1, 1, 3, 3, 3), (1, 1, 2, 2, 2),
                                  [(0, 0), (0, 0), (1, 1), (1, 1), (1, 1)])
        return s / 27.0

    skip = avgpool(conv(x, ws))
    base = avgpool(conv(jax.nn.relu(conv(jax.nn.relu(x), w1)), w2))
    return skip + base


if __name__ == "__main__":
    N, Cin, Cout, D, H, W = 2, 4, 8, 8, 8, 8
    key = jax.random.PRNGKey(0)
    k_x, k_w1, k_w2, k_ws, k_u1, k_u2, k_us = jax.random.split(key, 7)

    # input in PyTorch NCDHW convention
    x_ncdhw = jax.random.normal(k_x, (N, Cin, D, H, W), dtype=jnp.float32)

    # spectral-normalized conv weights (PyTorch OIDHW layout)
    w1_t = spectral_norm_weight(init_conv(k_w1, Cin, Cin, 3), k_u1)
    w2_t = spectral_norm_weight(init_conv(k_w2, Cout, Cin, 3), k_u2)
    ws_t = spectral_norm_weight(init_conv(k_ws, Cout, Cin, 1), k_us)

    # kernel weight layout: [tap, c_out, c_in] with tap = (kd*3 + kh)*3 + kw
    w1_k = jnp.transpose(w1_t, (2, 3, 4, 0, 1)).reshape(27, Cin, Cin)
    w2_k = jnp.transpose(w2_t, (2, 3, 4, 0, 1)).reshape(27, Cout, Cin)
    ws_k = ws_t[:, :, 0, 0, 0]                          # (Cout, Cin)

    out = resblock_down_pallas(x_ncdhw, w1_k, w2_k, ws_k)
    out = jax.block_until_ready(out)

    ref = ref_forward_ncdhw(x_ncdhw, w1_t, w2_t, ws_t)
    # bf16 activation/weight storage (f32 accumulation) -> loosened tolerance
    np.testing.assert_allclose(np.asarray(out), np.asarray(ref),
                               rtol=5e-2, atol=5e-2)
    print("KERNEL_OK")
</pallas_src>

<mosaic_0001>
module attributes {stable_mosaic.version = 11 : i64} {
  func.func @kernel(%arg0: i32, %arg1: memref<1x16x1152xbf16, #tpu.memory_space<vmem>>, %arg2: memref<16x432xbf16, #tpu.memory_space<vmem>>, %arg3: memref<16x432xbf16, #tpu.memory_space<vmem>>, %arg4: memref<16x16xbf16, #tpu.memory_space<vmem>>, %arg5: memref<1x896xf32, #tpu.memory_space<vmem>>, %arg6: memref<300x16xbf16, #tpu.memory_space<vmem>>, %arg7: memref<1x16x128xf32, #tpu.memory_space<vmem>>, %arg8: memref<16x1152xbf16, #tpu.memory_space<vmem>>, %arg9: memref<16x1152xbf16, #tpu.memory_space<vmem>>, %arg10: memref<432x896xbf16, #tpu.memory_space<vmem>>) attributes {dimension_semantics = [#tpu.dimension_semantics<parallel>], iteration_bounds = array<i64: 2>, scalar_prefetch = 0 : i64, scratch_operands = 3 : i64, tpu.core_type = #tpu.core_type<tc>, window_params = [{transform_indices = @transform_0, window_bounds = array<i64: 1, 16, 1152>}, {pipeline_mode = #tpu.pipeline_mode<synchronous>, transform_indices = @transform_1, window_bounds = array<i64: 16, 432>}, {pipeline_mode = #tpu.pipeline_mode<synchronous>, transform_indices = @transform_2, window_bounds = array<i64: 16, 432>}, {pipeline_mode = #tpu.pipeline_mode<synchronous>, transform_indices = @transform_3, window_bounds = array<i64: 16, 16>}, {pipeline_mode = #tpu.pipeline_mode<synchronous>, transform_indices = @transform_4, window_bounds = array<i64: 1, 896>}, {pipeline_mode = #tpu.pipeline_mode<synchronous>, transform_indices = @transform_5, window_bounds = array<i64: 300, 16>}, {transform_indices = @transform_6, window_bounds = array<i64: 1, 16, 128>}]} {
    %c0 = arith.constant 0 : index
    %c0_0 = arith.constant 0 : index
    %0 = vector.load %arg5[%c0, %c0_0] : memref<1x896xf32, #tpu.memory_space<vmem>>, vector<1x896xf32>
    %c0_1 = arith.constant 0 : index
    %c0_2 = arith.constant 0 : index
    %c17 = arith.constant 17 : index
    %1 = vector.load %arg1[%c0_1, %c0_2, %c17] : memref<1x16x1152xbf16, #tpu.memory_space<vmem>>, vector<1x16x896xbf16>
    %2 = vector.shape_cast %1 : vector<1x16x896xbf16> to vector<16x896xbf16>
    %cst = arith.constant 0.000000e+00 : bf16
    %3 = vector.broadcast %cst : bf16 to vector<16x896xbf16>
    %4 = arith.maximumf %2, %3 : vector<16x896xbf16>
    %c0_3 = arith.constant 0 : index
    %c0_4 = arith.constant 0 : index
    %5 = vector.load %arg10[%c0_3, %c0_4] : memref<432x896xbf16, #tpu.memory_space<vmem>>, vector<16x896xbf16>
    tpu.vector_store %arg10[%c0_3, %c0_4], %4 {strides = array<i32>} : memref<432x896xbf16, #tpu.memory_space<vmem>>, vector<16x896xbf16>,
    %c0_5 = arith.constant 0 : index
    %c0_6 = arith.constant 0 : index
    %c18 = arith.constant 18 : index
    %6 = vector.load %arg1[%c0_5, %c0_6, %c18] : memref<1x16x1152xbf16, #tpu.memory_space<vmem>>, vector<1x16x896xbf16>
    %7 = vector.shape_cast %6 : vector<1x16x896xbf16> to vector<16x896xbf16>
    %cst_7 = arith.constant 0.000000e+00 : bf16
    %8 = vector.broadcast %cst_7 : bf16 to vector<16x896xbf16>
    %9 = arith.maximumf %7, %8 : vector<16x896xbf16>
    %c16 = arith.constant 16 : index
    %c0_8 = arith.constant 0 : index
    %10 = vector.load %arg10[%c16, %c0_8] : memref<432x896xbf16, #tpu.memory_space<vmem>>, vector<16x896xbf16>
    tpu.vector_store %arg10[%c16, %c0_8], %9 {strides = array<i32>} : memref<432x896xbf16, #tpu.memory_space<vmem>>, vector<16x896xbf16>,
    %c0_9 = arith.constant 0 : index
    %c0_10 = arith.constant 0 : index
    %c19 = arith.constant 19 : index
    %11 = vector.load %arg1[%c0_9, %c0_10, %c19] : memref<1x16x1152xbf16, #tpu.memory_space<vmem>>, vector<1x16x896xbf16>
    %12 = vector.shape_cast %11 : vector<1x16x896xbf16> to vector<16x896xbf16>
    %cst_11 = arith.constant 0.000000e+00 : bf16
    %13 = vector.broadcast %cst_11 : bf16 to vector<16x896xbf16>
    %14 = arith.maximumf %12, %13 : vector<16x896xbf16>
    %c32 = arith.constant 32 : index
    %c0_12 = arith.constant 0 : index
    %15 = vector.load %arg10[%c32, %c0_12] : memref<432x896xbf16, #tpu.memory_space<vmem>>, vector<16x896xbf16>
    tpu.vector_store %arg10[%c32, %c0_12], %14 {strides = array<i32>} : memref<432x896xbf16, #tpu.memory_space<vmem>>, vector<16x896xbf16>,
    %c0_13 = arith.constant 0 : index
    %c0_14 = arith.constant 0 : index
    %c27 = arith.constant 27 : index
    %16 = vector.load %arg1[%c0_13, %c0_14, %c27] : memref<1x16x1152xbf16, #tpu.memory_space<vmem>>, vector<1x16x896xbf16>
    %17 = vector.shape_cast %16 : vector<1x16x896xbf16> to vector<16x896xbf16>
    %cst_15 = arith.constant 0.000000e+00 : bf16
    %18 = vector.broadcast %cst_15 : bf16 to vector<16x896xbf16>
    %19 = arith.maximumf %17, %18 : vector<16x896xbf16>
    %c48 = arith.constant 48 : index
    %c0_16 = arith.constant 0 : index
    %20 = vector.load %arg10[%c48, %c0_16] : memref<432x896xbf16, #tpu.memory_space<vmem>>, vector<16x896xbf16>
    tpu.vector_store %arg10[%c48, %c0_16], %19 {strides = array<i32>} : memref<432x896xbf16, #tpu.memory_space<vmem>>, vector<16x896xbf16>,
    %c0_17 = arith.constant 0 : index
    %c0_18 = arith.constant 0 : index
    %c28 = arith.constant 28 : index
    %21 = vector.load %arg1[%c0_17, %c0_18, %c28] : memref<1x16x1152xbf16, #tpu.memory_space<vmem>>, vector<1x16x896xbf16>
    %22 = vector.shape_cast %21 : vector<1x16x896xbf16> to vector<16x896xbf16>
    %cst_19 = arith.constant 0.000000e+00 : bf16
    %23 = vector.broadcast %cst_19 : bf16 to vector<16x896xbf16>
    %24 = arith.maximumf %22, %23 : vector<16x896xbf16>
    %c64 = arith.constant 64 : index
    %c0_20 = arith.constant 0 : index
    %25 = vector.load %arg10[%c64, %c0_20] : memref<432x896xbf16, #tpu.memory_space<vmem>>, vector<16x896xbf16>
    tpu.vector_store %arg10[%c64, %c0_20], %24 {strides = array<i32>} : memref<432x896xbf16, #tpu.memory_space<vmem>>, vector<16x896xbf16>,
    %c0_21 = arith.constant 0 : index
    %c0_22 = arith.constant 0 : index
    %c29 = arith.constant 29 : index
    %26 = vector.load %arg1[%c0_21, %c0_22, %c29] : memref<1x16x1152xbf16, #tpu.memory_space<vmem>>, vector<1x16x896xbf16>
    %27 = vector.shape_cast %26 : vector<1x16x896xbf16> to vector<16x896xbf16>
    %cst_23 = arith.constant 0.000000e+00 : bf16
    %28 = vector.broadcast %cst_23 : bf16 to vector<16x896xbf16>
    %29 = arith.maximumf %27, %28 : vector<16x896xbf16>
    %c80 = arith.constant 80 : index
    %c0_24 = arith.constant 0 : index
    %30 = vector.load %arg10[%c80, %c0_24] : memref<432x896xbf16, #tpu.memory_space<vmem>>, vector<16x896xbf16>
    tpu.vector_store %arg10[%c80, %c0_24], %29 {strides = array<i32>} : memref<432x896xbf16, #tpu.memory_space<vmem>>, vector<16x896xbf16>,
    %c0_25 = arith.constant 0 : index
    %c0_26 = arith.constant 0 : index
    %c37 = arith.constant 37 : index
    %31 = vector.load %arg1[%c0_25, %c0_26, %c37] : memref<1x16x1152xbf16, #tpu.memory_space<vmem>>, vector<1x16x896xbf16>
    %32 = vector.shape_cast %31 : vector<1x16x896xbf16> to vector<16x896xbf16>
    %cst_27 = arith.constant 0.000000e+00 : bf16
    %33 = vector.broadcast %cst_27 : bf16 to vector<16x896xbf16>
    %34 = arith.maximumf %32, %33 : vector<16x896xbf16>
    %c96 = arith.constant 96 : index
    %c0_28 = arith.constant 0 : index
    %35 = vector.load %arg10[%c96, %c0_28] : memref<432x896xbf16, #tpu.memory_space<vmem>>, vector<16x896xbf16>
    tpu.vector_store %arg10[%c96, %c0_28], %34 {strides = array<i32>} : memref<432x896xbf16, #tpu.memory_space<vmem>>, vector<16x896xbf16>,
    %c0_29 = arith.constant 0 : index
    %c0_30 = arith.constant 0 : index
    %c38 = arith.constant 38 : index
    %36 = vector.load %arg1[%c0_29, %c0_30, %c38] : memref<1x16x1152xbf16, #tpu.memory_space<vmem>>, vector<1x16x896xbf16>
    %37 = vector.shape_cast %36 : vector<1x16x896xbf16> to vector<16x896xbf16>
    %cst_31 = arith.constant 0.000000e+00 : bf16
    %38 = vector.broadcast %cst_31 : bf16 to vector<16x896xbf16>
    %39 = arith.maximumf %37, %38 : vector<16x896xbf16>
    %c112 = arith.constant 112 : index
    %c0_32 = arith.constant 0 : index
    %40 = vector.load %arg10[%c112, %c0_32] : memref<432x896xbf16, #tpu.memory_space<vmem>>, vector<16x896xbf16>
    tpu.vector_store %arg10[%c112, %c0_32], %39 {strides = array<i32>} : memref<432x896xbf16, #tpu.memory_space<vmem>>, vector<16x896xbf16>,
    %c0_33 = arith.constant 0 : index
    %c0_34 = arith.constant 0 : index
    %c39 = arith.constant 39 : index
    %41 = vector.load %arg1[%c0_33, %c0_34, %c39] : memref<1x16x1152xbf16, #tpu.memory_space<vmem>>, vector<1x16x896xbf16>
    %42 = vector.shape_cast %41 : vector<1x16x896xbf16> to vector<16x896xbf16>
    %cst_35 = arith.constant 0.000000e+00 : bf16
    %43 = vector.broadcast %cst_35 : bf16 to vector<16x896xbf16>
    %44 = arith.maximumf %42, %43 : vector<16x896xbf16>
    %c128 = arith.constant 128 : index
    %c0_36 = arith.constant 0 : index
    %45 = vector.load %arg10[%c128, %c0_36] : memref<432x896xbf16, #tpu.memory_space<vmem>>, vector<16x896xbf16>
    tpu.vector_store %arg10[%c128, %c0_36], %44 {strides = array<i32>} : memref<432x896xbf16, #tpu.memory_space<vmem>>, vector<16x896xbf16>,
    %c0_37 = arith.constant 0 : index
    %c0_38 = arith.constant 0 : index
    %c117 = arith.constant 117 : index
    %46 = vector.load %arg1[%c0_37, %c0_38, %c117] : memref<1x16x1152xbf16, #tpu.memory_space<vmem>>, vector<1x16x896xbf16>
    %47 = vector.shape_cast %46 : vector<1x16x896xbf16> to vector<16x896xbf16>
    %cst_39 = arith.constant 0.000000e+00 : bf16
    %48 = vector.broadcast %cst_39 : bf16 to vector<16x896xbf16>
    %49 = arith.maximumf %47, %48 : vector<16x896xbf16>
    %c144 = arith.constant 144 : index
    %c0_40 = arith.constant 0 : index
    %50 = vector.load %arg10[%c144, %c0_40] : memref<432x896xbf16, #tpu.memory_space<vmem>>, vector<16x896xbf16>
    tpu.vector_store %arg10[%c144, %c0_40], %49 {strides = array<i32>} : memref<432x896xbf16, #tpu.memory_space<vmem>>, vector<16x896xbf16>,
    %c0_41 = arith.constant 0 : index
    %c0_42 = arith.constant 0 : index
    %c118 = arith.constant 118 : index
    %51 = vector.load %arg1[%c0_41, %c0_42, %c118] : memref<1x16x1152xbf16, #tpu.memory_space<vmem>>, vector<1x16x896xbf16>
    %52 = vector.shape_cast %51 : vector<1x16x896xbf16> to vector<16x896xbf16>
    %cst_43 = arith.constant 0.000000e+00 : bf16
    %53 = vector.broadcast %cst_43 : bf16 to vector<16x896xbf16>
    %54 = arith.maximumf %52, %53 : vector<16x896xbf16>
    %c160 = arith.constant 160 : index
    %c0_44 = arith.constant 0 : index
    %55 = vector.load %arg10[%c160, %c0_44] : memref<432x896xbf16, #tpu.memory_space<vmem>>, vector<16x896xbf16>
    tpu.vector_store %arg10[%c160, %c0_44], %54 {strides = array<i32>} : memref<432x896xbf16, #tpu.memory_space<vmem>>, vector<16x896xbf16>,
    %c0_45 = arith.constant 0 : index
    %c0_46 = arith.constant 0 : index
    %c119 = arith.constant 119 : index
    %56 = vector.load %arg1[%c0_45, %c0_46, %c119] : memref<1x16x1152xbf16, #tpu.memory_space<vmem>>, vector<1x16x896xbf16>
    %57 = vector.shape_cast %56 : vector<1x16x896xbf16> to vector<16x896xbf16>
    %cst_47 = arith.constant 0.000000e+00 : bf16
    %58 = vector.broadcast %cst_47 : bf16 to vector<16x896xbf16>
    %59 = arith.maximumf %57, %58 : vector<16x896xbf16>
    %c176 = arith.constant 176 : index
    %c0_48 = arith.constant 0 : index
    %60 = vector.load %arg10[%c176, %c0_48] : memref<432x896xbf16, #tpu.memory_space<vmem>>, vector<16x896xbf16>
    tpu.vector_store %arg10[%c176, %c0_48], %59 {strides = array<i32>} : memref<432x896xbf16, #tpu.memory_space<vmem>>, vector<16x896xbf16>,
    %c0_49 = arith.constant 0 : index
    %c0_50 = arith.constant 0 : index
    %c127 = arith.constant 127 : index
    %61 = vector.load %arg1[%c0_49, %c0_50, %c127] : memref<1x16x1152xbf16, #tpu.memory_space<vmem>>, vector<1x16x896xbf16>
    %62 = vector.shape_cast %61 : vector<1x16x896xbf16> to vector<16x896xbf16>
    %cst_51 = arith.constant 0.000000e+00 : bf16
    %63 = vector.broadcast %cst_51 : bf16 to vector<16x896xbf16>
    %64 = arith.maximumf %62, %63 : vector<16x896xbf16>
    %c192 = arith.constant 192 : index
    %c0_52 = arith.constant 0 : index
    %65 = vector.load %arg10[%c192, %c0_52] : memref<432x896xbf16, #tpu.memory_space<vmem>>, vector<16x896xbf16>
    tpu.vector_store %arg10[%c192, %c0_52], %64 {strides = array<i32>} : memref<432x896xbf16, #tpu.memory_space<vmem>>, vector<16x896xbf16>,
    %c0_53 = arith.constant 0 : index
    %c0_54 = arith.constant 0 : index
    %c128_55 = arith.constant 128 : index
    %66 = vector.load %arg1[%c0_53, %c0_54, %c128_55] : memref<1x16x1152xbf16, #tpu.memory_space<vmem>>, vector<1x16x896xbf16>
    %67 = vector.shape_cast %66 : vector<1x16x896xbf16> to vector<16x896xbf16>
    %cst_56 = arith.constant 0.000000e+00 : bf16
    %68 = vector.broadcast %cst_56 : bf16 to vector<16x896xbf16>
    %69 = arith.maximumf %67, %68 : vector<16x896xbf16>
    %c208 = arith.constant 208 : index
    %c0_57 = arith.constant 0 : index
    %70 = vector.load %arg10[%c208, %c0_57] : memref<432x896xbf16, #tpu.memory_space<vmem>>, vector<16x896xbf16>
    tpu.vector_store %arg10[%c208, %c0_57], %69 {strides = array<i32>} : memref<432x896xbf16, #tpu.memory_space<vmem>>, vector<16x896xbf16>,
    %c0_58 = arith.constant 0 : index
    %c0_59 = arith.constant 0 : index
    %c129 = arith.constant 129 : index
    %71 = vector.load %arg1[%c0_58, %c0_59, %c129] : memref<1x16x1152xbf16, #tpu.memory_space<vmem>>, vector<1x16x896xbf16>
    %72 = vector.shape_cast %71 : vector<1x16x896xbf16> to vector<16x896xbf16>
    %cst_60 = arith.constant 0.000000e+00 : bf16
    %73 = vector.broadcast %cst_60 : bf16 to vector<16x896xbf16>
    %74 = arith.maximumf %72, %73 : vector<16x896xbf16>
    %c224 = arith.constant 224 : index
    %c0_61 = arith.constant 0 : index
    %75 = vector.load %arg10[%c224, %c0_61] : memref<432x896xbf16, #tpu.memory_space<vmem>>, vector<16x896xbf16>
    tpu.vector_store %arg10[%c224, %c0_61], %74 {strides = array<i32>} : memref<432x896xbf16, #tpu.memory_space<vmem>>, vector<16x896xbf16>,
    %c0_62 = arith.constant 0 : index
    %c0_63 = arith.constant 0 : index
    %c137 = arith.constant 137 : index
    %76 = vector.load %arg1[%c0_62, %c0_63, %c137] : memref<1x16x1152xbf16, #tpu.memory_space<vmem>>, vector<1x16x896xbf16>
    %77 = vector.shape_cast %76 : vector<1x16x896xbf16> to vector<16x896xbf16>
    %cst_64 = arith.constant 0.000000e+00 : bf16
    %78 = vector.broadcast %cst_64 : bf16 to vector<16x896xbf16>
    %79 = arith.maximumf %77, %78 : vector<16x896xbf16>
    %c240 = arith.constant 240 : index
    %c0_65 = arith.constant 0 : index
    %80 = vector.load %arg10[%c240, %c0_65] : memref<432x896xbf16, #tpu.memory_space<vmem>>, vector<16x896xbf16>
    tpu.vector_store %arg10[%c240, %c0_65], %79 {strides = array<i32>} : memref<432x896xbf16, #tpu.memory_space<vmem>>, vector<16x896xbf16>,
    %c0_66 = arith.constant 0 : index
    %c0_67 = arith.constant 0 : index
    %c138 = arith.constant 138 : index
    %81 = vector.load %arg1[%c0_66, %c0_67, %c138] : memref<1x16x1152xbf16, #tpu.memory_space<vmem>>, vector<1x16x896xbf16>
    %82 = vector.shape_cast %81 : vector<1x16x896xbf16> to vector<16x896xbf16>
    %cst_68 = arith.constant 0.000000e+00 : bf16
    %83 = vector.broadcast %cst_68 : bf16 to vector<16x896xbf16>
    %84 = arith.maximumf %82, %83 : vector<16x896xbf16>
    %c256 = arith.constant 256 : index
    %c0_69 = arith.constant 0 : index
    %85 = vector.load %arg10[%c256, %c0_69] : memref<432x896xbf16, #tpu.memory_space<vmem>>, vector<16x896xbf16>
    tpu.vector_store %arg10[%c256, %c0_69], %84 {strides = array<i32>} : memref<432x896xbf16, #tpu.memory_space<vmem>>, vector<16x896xbf16>,
    %c0_70 = arith.constant 0 : index
    %c0_71 = arith.constant 0 : index
    %c139 = arith.constant 139 : index
    %86 = vector.load %arg1[%c0_70, %c0_71, %c139] : memref<1x16x1152xbf16, #tpu.memory_space<vmem>>, vector<1x16x896xbf16>
    %87 = vector.shape_cast %86 : vector<1x16x896xbf16> to vector<16x896xbf16>
    %cst_72 = arith.constant 0.000000e+00 : bf16
    %88 = vector.broadcast %cst_72 : bf16 to vector<16x896xbf16>
    %89 = arith.maximumf %87, %88 : vector<16x896xbf16>
    %c272 = arith.constant 272 : index
    %c0_73 = arith.constant 0 : index
    %90 = vector.load %arg10[%c272, %c0_73] : memref<432x896xbf16, #tpu.memory_space<vmem>>, vector<16x896xbf16>
    tpu.vector_store %arg10[%c272, %c0_73], %89 {strides = array<i32>} : memref<432x896xbf16, #tpu.memory_space<vmem>>, vector<16x896xbf16>,
    %c0_74 = arith.constant 0 : index
    %c0_75 = arith.constant 0 : index
    %c217 = arith.constant 217 : index
    %91 = vector.load %arg1[%c0_74, %c0_75, %c217] : memref<1x16x1152xbf16, #tpu.memory_space<vmem>>, vector<1x16x896xbf16>
    %92 = vector.shape_cast %91 : vector<1x16x896xbf16> to vector<16x896xbf16>
    %cst_76 = arith.constant 0.000000e+00 : bf16
    %93 = vector.broadcast %cst_76 : bf16 to vector<16x896xbf16>
    %94 = arith.maximumf %92, %93 : vector<16x896xbf16>
    %c288 = arith.constant 288 : index
    %c0_77 = arith.constant 0 : index
    %95 = vector.load %arg10[%c288, %c0_77] : memref<432x896xbf16, #tpu.memory_space<vmem>>, vector<16x896xbf16>
    tpu.vector_store %arg10[%c288, %c0_77], %94 {strides = array<i32>} : memref<432x896xbf16, #tpu.memory_space<vmem>>, vector<16x896xbf16>,
    %c0_78 = arith.constant 0 : index
    %c0_79 = arith.constant 0 : index
    %c218 = arith.constant 218 : index
    %96 = vector.load %arg1[%c0_78, %c0_79, %c218] : memref<1x16x1152xbf16, #tpu.memory_space<vmem>>, vector<1x16x896xbf16>
    %97 = vector.shape_cast %96 : vector<1x16x896xbf16> to vector<16x896xbf16>
    %cst_80 = arith.constant 0.000000e+00 : bf16
    %98 = vector.broadcast %cst_80 : bf16 to vector<16x896xbf16>
    %99 = arith.maximumf %97, %98 : vector<16x896xbf16>
    %c304 = arith.constant 304 : index
    %c0_81 = arith.constant 0 : index
    %100 = vector.load %arg10[%c304, %c0_81] : memref<432x896xbf16, #tpu.memory_space<vmem>>, vector<16x896xbf16>
    tpu.vector_store %arg10[%c304, %c0_81], %99 {strides = array<i32>} : memref<432x896xbf16, #tpu.memory_space<vmem>>, vector<16x896xbf16>,
    %c0_82 = arith.constant 0 : index
    %c0_83 = arith.constant 0 : index
    %c219 = arith.constant 219 : index
    %101 = vector.load %arg1[%c0_82, %c0_83, %c219] : memref<1x16x1152xbf16, #tpu.memory_space<vmem>>, vector<1x16x896xbf16>
    %102 = vector.shape_cast %101 : vector<1x16x896xbf16> to vector<16x896xbf16>
    %cst_84 = arith.constant 0.000000e+00 : bf16
    %103 = vector.broadcast %cst_84 : bf16 to vector<16x896xbf16>
    %104 = arith.maximumf %102, %103 : vector<16x896xbf16>
    %c320 = arith.constant 320 : index
    %c0_85 = arith.constant 0 : index
    %105 = vector.load %arg10[%c320, %c0_85] : memref<432x896xbf16, #tpu.memory_space<vmem>>, vector<16x896xbf16>
    tpu.vector_store %arg10[%c320, %c0_85], %104 {strides = array<i32>} : memref<432x896xbf16, #tpu.memory_space<vmem>>, vector<16x896xbf16>,
    %c0_86 = arith.constant 0 : index
    %c0_87 = arith.constant 0 : index
    %c227 = arith.constant 227 : index
    %106 = vector.load %arg1[%c0_86, %c0_87, %c227] : memref<1x16x1152xbf16, #tpu.memory_space<vmem>>, vector<1x16x896xbf16>
    %107 = vector.shape_cast %106 : vector<1x16x896xbf16> to vector<16x896xbf16>
    %cst_88 = arith.constant 0.000000e+00 : bf16
    %108 = vector.broadcast %cst_88 : bf16 to vector<16x896xbf16>
    %109 = arith.maximumf %107, %108 : vector<16x896xbf16>
    %c336 = arith.constant 336 : index
    %c0_89 = arith.constant 0 : index
    %110 = vector.load %arg10[%c336, %c0_89] : memref<432x896xbf16, #tpu.memory_space<vmem>>, vector<16x896xbf16>
    tpu.vector_store %arg10[%c336, %c0_89], %109 {strides = array<i32>} : memref<432x896xbf16, #tpu.memory_space<vmem>>, vector<16x896xbf16>,
    %c0_90 = arith.constant 0 : index
    %c0_91 = arith.constant 0 : index
    %c228 = arith.constant 228 : index
    %111 = vector.load %arg1[%c0_90, %c0_91, %c228] : memref<1x16x1152xbf16, #tpu.memory_space<vmem>>, vector<1x16x896xbf16>
    %112 = vector.shape_cast %111 : vector<1x16x896xbf16> to vector<16x896xbf16>
    %cst_92 = arith.constant 0.000000e+00 : bf16
    %113 = vector.broadcast %cst_92 : bf16 to vector<16x896xbf16>
    %114 = arith.maximumf %112, %113 : vector<16x896xbf16>
    %c352 = arith.constant 352 : index
    %c0_93 = arith.constant 0 : index
    %115 = vector.load %arg10[%c352, %c0_93] : memref<432x896xbf16, #tpu.memory_space<vmem>>, vector<16x896xbf16>
    tpu.vector_store %arg10[%c352, %c0_93], %114 {strides = array<i32>} : memref<432x896xbf16, #tpu.memory_space<vmem>>, vector<16x896xbf16>,
    %c0_94 = arith.constant 0 : index
    %c0_95 = arith.constant 0 : index
    %c229 = arith.constant 229 : index
    %116 = vector.load %arg1[%c0_94, %c0_95, %c229] : memref<1x16x1152xbf16, #tpu.memory_space<vmem>>, vector<1x16x896xbf16>
    %117 = vector.shape_cast %116 : vector<1x16x896xbf16> to vector<16x896xbf16>
    %cst_96 = arith.constant 0.000000e+00 : bf16
    %118 = vector.broadcast %cst_96 : bf16 to vector<16x896xbf16>
    %119 = arith.maximumf %117, %118 : vector<16x896xbf16>
    %c368 = arith.constant 368 : index
    %c0_97 = arith.constant 0 : index
    %120 = vector.load %arg10[%c368, %c0_97] : memref<432x896xbf16, #tpu.memory_space<vmem>>, vector<16x896xbf16>
    tpu.vector_store %arg10[%c368, %c0_97], %119 {strides = array<i32>} : memref<432x896xbf16, #tpu.memory_space<vmem>>, vector<16x896xbf16>,
    %c0_98 = arith.constant 0 : index
    %c0_99 = arith.constant 0 : index
    %c237 = arith.constant 237 : index
    %121 = vector.load %arg1[%c0_98, %c0_99, %c237] : memref<1x16x1152xbf16, #tpu.memory_space<vmem>>, vector<1x16x896xbf16>
    %122 = vector.shape_cast %121 : vector<1x16x896xbf16> to vector<16x896xbf16>
    %cst_100 = arith.constant 0.000000e+00 : bf16
    %123 = vector.broadcast %cst_100 : bf16 to vector<16x896xbf16>
    %124 = arith.maximumf %122, %123 : vector<16x896xbf16>
    %c384 = arith.constant 384 : index
    %c0_101 = arith.constant 0 : index
    %125 = vector.load %arg10[%c384, %c0_101] : memref<432x896xbf16, #tpu.memory_space<vmem>>, vector<16x896xbf16>
    tpu.vector_store %arg10[%c384, %c0_101], %124 {strides = array<i32>} : memref<432x896xbf16, #tpu.memory_space<vmem>>, vector<16x896xbf16>,
    %c0_102 = arith.constant 0 : index
    %c0_103 = arith.constant 0 : index
    %c238 = arith.constant 238 : index
    %126 = vector.load %arg1[%c0_102, %c0_103, %c238] : memref<1x16x1152xbf16, #tpu.memory_space<vmem>>, vector<1x16x896xbf16>
    %127 = vector.shape_cast %126 : vector<1x16x896xbf16> to vector<16x896xbf16>
    %cst_104 = arith.constant 0.000000e+00 : bf16
    %128 = vector.broadcast %cst_104 : bf16 to vector<16x896xbf16>
    %129 = arith.maximumf %127, %128 : vector<16x896xbf16>
    %c400 = arith.constant 400 : index
    %c0_105 = arith.constant 0 : index
    %130 = vector.load %arg10[%c400, %c0_105] : memref<432x896xbf16, #tpu.memory_space<vmem>>, vector<16x896xbf16>
    tpu.vector_store %arg10[%c400, %c0_105], %129 {strides = array<i32>} : memref<432x896xbf16, #tpu.memory_space<vmem>>, vector<16x896xbf16>,
    %c0_106 = arith.constant 0 : index
    %c0_107 = arith.constant 0 : index
    %c239 = arith.constant 239 : index
    %131 = vector.load %arg1[%c0_106, %c0_107, %c239] : memref<1x16x1152xbf16, #tpu.memory_space<vmem>>, vector<1x16x896xbf16>
    %132 = vector.shape_cast %131 : vector<1x16x896xbf16> to vector<16x896xbf16>
    %cst_108 = arith.constant 0.000000e+00 : bf16
    %133 = vector.broadcast %cst_108 : bf16 to vector<16x896xbf16>
    %134 = arith.maximumf %132, %133 : vector<16x896xbf16>
    %c416 = arith.constant 416 : index
    %c0_109 = arith.constant 0 : index
    %135 = vector.load %arg10[%c416, %c0_109] : memref<432x896xbf16, #tpu.memory_space<vmem>>, vector<16x896xbf16>
    tpu.vector_store %arg10[%c416, %c0_109], %134 {strides = array<i32>} : memref<432x896xbf16, #tpu.memory_space<vmem>>, vector<16x896xbf16>,
    %c0_110 = arith.constant 0 : index
    %c0_111 = arith.constant 0 : index
    %136 = vector.load %arg2[%c0_110, %c0_111] : memref<16x432xbf16, #tpu.memory_space<vmem>>, vector<16x432xbf16>
    %c0_112 = arith.constant 0 : index
    %c0_113 = arith.constant 0 : index
    %137 = vector.load %arg10[%c0_112, %c0_113] : memref<432x896xbf16, #tpu.memory_space<vmem>>, vector<432x896xbf16>
    %cst_114 = arith.constant dense<0.000000e+00> : vector<16x896xf32>
    %138 = tpu.matmul %136, %137, %cst_114 {dimension_numbers = #tpu.dot_dimension_numbers<[1], [0], [0], [1], [0, 0, 1, 1], [], []>} : vector<16x432xbf16>, vector<432x896xbf16>, vector<16x896xf32> -> vector<16x896xf32>
    %cst_115 = arith.constant 0.000000e+00 : bf16
    %139 = vector.broadcast %cst_115 : bf16 to vector<16x128xbf16>
    %c0_116 = arith.constant 0 : index
    %c0_117 = arith.constant 0 : index
    %140 = vector.load %arg8[%c0_116, %c0_117] : memref<16x1152xbf16, #tpu.memory_space<vmem>>, vector<16x128xbf16>
    tpu.vector_store %arg8[%c0_116, %c0_117], %139 {strides = array<i32>} : memref<16x1152xbf16, #tpu.memory_space<vmem>>, vector<16x128xbf16>,
    %cst_118 = arith.constant 0.000000e+00 : bf16
    %141 = vector.broadcast %cst_118 : bf16 to vector<16x128xbf16>
    %c0_119 = arith.constant 0 : index
    %c1024 = arith.constant 1024 : index
    %142 = vector.load %arg8[%c0_119, %c1024] : memref<16x1152xbf16, #tpu.memory_space<vmem>>, vector<16x128xbf16>
    tpu.vector_store %arg8[%c0_119, %c1024], %141 {strides = array<i32>} : memref<16x1152xbf16, #tpu.memory_space<vmem>>, vector<16x128xbf16>,
    %cst_120 = arith.constant 0.000000e+00 : f32
    %143 = vector.broadcast %cst_120 : f32 to vector<16x896xf32>
    %144 = arith.maximumf %138, %143 : vector<16x896xf32>
    %145 = vector.broadcast %0 : vector<1x896xf32> to vector<16x896xf32>
    %146 = arith.mulf %144, %145 : vector<16x896xf32>
    %147 = arith.truncf %146 : vector<16x896xf32> to vector<16x896xbf16>
    %c0_121 = arith.constant 0 : index
    %c128_122 = arith.constant 128 : index
    %148 = vector.load %arg8[%c0_121, %c128_122] : memref<16x1152xbf16, #tpu.memory_space<vmem>>, vector<16x896xbf16>
    tpu.vector_store %arg8[%c0_121, %c128_122], %147 {strides = array<i32>} : memref<16x1152xbf16, #tpu.memory_space<vmem>>, vector<16x896xbf16>,
    %c0_123 = arith.constant 0 : index
    %c17_124 = arith.constant 17 : index
    %149 = vector.load %arg8[%c0_123, %c17_124] : memref<16x1152xbf16, #tpu.memory_space<vmem>>, vector<16x896xbf16>
    %c0_125 = arith.constant 0 : index
    %c0_126 = arith.constant 0 : index
    %150 = vector.load %arg10[%c0_125, %c0_126] : memref<432x896xbf16, #tpu.memory_space<vmem>>, vector<16x896xbf16>
    tpu.vector_store %arg10[%c0_125, %c0_126], %149 {strides = array<i32>} : memref<432x896xbf16, #tpu.memory_space<vmem>>, vector<16x896xbf16>,
    %c0_127 = arith.constant 0 : index
    %c18_128 = arith.constant 18 : index
    %151 = vector.load %arg8[%c0_127, %c18_128] : memref<16x1152xbf16, #tpu.memory_space<vmem>>, vector<16x896xbf16>
    %c16_129 = arith.constant 16 : index
    %c0_130 = arith.constant 0 : index
    %152 = vector.load %arg10[%c16_129, %c0_130] : memref<432x896xbf16, #tpu.memory_space<vmem>>, vector<16x896xbf16>
    tpu.vector_store %arg10[%c16_129, %c0_130], %151 {strides = array<i32>} : memref<432x896xbf16, #tpu.memory_space<vmem>>, vector<16x896xbf16>,
    %c0_131 = arith.constant 0 : index
    %c19_132 = arith.constant 19 : index
    %153 = vector.load %arg8[%c0_131, %c19_132] : memref<16x1152xbf16, #tpu.memory_space<vmem>>, vector<16x896xbf16>
    %c32_133 = arith.constant 32 : index
    %c0_134 = arith.constant 0 : index
    %154 = vector.load %arg10[%c32_133, %c0_134] : memref<432x896xbf16, #tpu.memory_space<vmem>>, vector<16x896xbf16>
    tpu.vector_store %arg10[%c32_133, %c0_134], %153 {strides = array<i32>} : memref<432x896xbf16, #tpu.memory_space<vmem>>, vector<16x896xbf16>,
    %c0_135 = arith.constant 0 : index
    %c27_136 = arith.constant 27 : index
    %155 = vector.load %arg8[%c0_135, %c27_136] : memref<16x1152xbf16, #tpu.memory_space<vmem>>, vector<16x896xbf16>
    %c48_137 = arith.constant 48 : index
    %c0_138 = arith.constant 0 : index
    %156 = vector.load %arg10[%c48_137, %c0_138] : memref<432x896xbf16, #tpu.memory_space<vmem>>, vector<16x896xbf16>
    tpu.vector_store %arg10[%c48_137, %c0_138], %155 {strides = array<i32>} : memref<432x896xbf16, #tpu.memory_space<vmem>>, vector<16x896xbf16>,
    %c0_139 = arith.constant 0 : index
    %c28_140 = arith.constant 28 : index
    %157 = vector.load %arg8[%c0_139, %c28_140] : memref<16x1152xbf16, #tpu.memory_space<vmem>>, vector<16x896xbf16>
    %c64_141 = arith.constant 64 : index
    %c0_142 = arith.constant 0 : index
    %158 = vector.load %arg10[%c64_141, %c0_142] : memref<432x896xbf16, #tpu.memory_space<vmem>>, vector<16x896xbf16>
    tpu.vector_store %arg10[%c64_141, %c0_142], %157 {strides = array<i32>} : memref<432x896xbf16, #tpu.memory_space<vmem>>, vector<16x896xbf16>,
    %c0_143 = arith.constant 0 : index
    %c29_144 = arith.constant 29 : index
    %159 = vector.load %arg8[%c0_143, %c29_144] : memref<16x1152xbf16, #tpu.memory_space<vmem>>, vector<16x896xbf16>
    %c80_145 = arith.constant 80 : index
    %c0_146 = arith.constant 0 : index
    %160 = vector.load %arg10[%c80_145, %c0_146] : memref<432x896xbf16, #tpu.memory_space<vmem>>, vector<16x896xbf16>
    tpu.vector_store %arg10[%c80_145, %c0_146], %159 {strides = array<i32>} : memref<432x896xbf16, #tpu.memory_space<vmem>>, vector<16x896xbf16>,
    %c0_147 = arith.constant 0 : index
    %c37_148 = arith.constant 37 : index
    %161 = vector.load %arg8[%c0_147, %c37_148] : memref<16x1152xbf16, #tpu.memory_space<vmem>>, vector<16x896xbf16>
    %c96_149 = arith.constant 96 : index
    %c0_150 = arith.constant 0 : index
    %162 = vector.load %arg10[%c96_149, %c0_150] : memref<432x896xbf16, #tpu.memory_space<vmem>>, vector<16x896xbf16>
    tpu.vector_store %arg10[%c96_149, %c0_150], %161 {strides = array<i32>} : memref<432x896xbf16, #tpu.memory_space<vmem>>, vector<16x896xbf16>,
    %c0_151 = arith.constant 0 : index
    %c38_152 = arith.constant 38 : index
    %163 = vector.load %arg8[%c0_151, %c38_152] : memref<16x1152xbf16, #tpu.memory_space<vmem>>, vector<16x896xbf16>
    %c112_153 = arith.constant 112 : index
    %c0_154 = arith.constant 0 : index
    %164 = vector.load %arg10[%c112_153, %c0_154] : memref<432x896xbf16, #tpu.memory_space<vmem>>, vector<16x896xbf16>
    tpu.vector_store %arg10[%c112_153, %c0_154], %163 {strides = array<i32>} : memref<432x896xbf16, #tpu.memory_space<vmem>>, vector<16x896xbf16>,
    %c0_155 = arith.constant 0 : index
    %c39_156 = arith.constant 39 : index
    %165 = vector.load %arg8[%c0_155, %c39_156] : memref<16x1152xbf16, #tpu.memory_space<vmem>>, vector<16x896xbf16>
    %c128_157 = arith.constant 128 : index
    %c0_158 = arith.constant 0 : index
    %166 = vector.load %arg10[%c128_157, %c0_158] : memref<432x896xbf16, #tpu.memory_space<vmem>>, vector<16x896xbf16>
    tpu.vector_store %arg10[%c128_157, %c0_158], %165 {strides = array<i32>} : memref<432x896xbf16, #tpu.memory_space<vmem>>, vector<16x896xbf16>,
    %c0_159 = arith.constant 0 : index
    %c117_160 = arith.constant 117 : index
    %167 = vector.load %arg8[%c0_159, %c117_160] : memref<16x1152xbf16, #tpu.memory_space<vmem>>, vector<16x896xbf16>
    %c144_161 = arith.constant 144 : index
    %c0_162 = arith.constant 0 : index
    %168 = vector.load %arg10[%c144_161, %c0_162] : memref<432x896xbf16, #tpu.memory_space<vmem>>, vector<16x896xbf16>
    tpu.vector_store %arg10[%c144_161, %c0_162], %167 {strides = array<i32>} : memref<432x896xbf16, #tpu.memory_space<vmem>>, vector<16x896xbf16>,
    %c0_163 = arith.constant 0 : index
    %c118_164 = arith.constant 118 : index
    %169 = vector.load %arg8[%c0_163, %c118_164] : memref<16x1152xbf16, #tpu.memory_space<vmem>>, vector<16x896xbf16>
    %c160_165 = arith.constant 160 : index
    %c0_166 = arith.constant 0 : index
    %170 = vector.load %arg10[%c160_165, %c0_166] : memref<432x896xbf16, #tpu.memory_space<vmem>>, vector<16x896xbf16>
    tpu.vector_store %arg10[%c160_165, %c0_166], %169 {strides = array<i32>} : memref<432x896xbf16, #tpu.memory_space<vmem>>, vector<16x896xbf16>,
    %c0_167 = arith.constant 0 : index
    %c119_168 = arith.constant 119 : index
    %171 = vector.load %arg8[%c0_167, %c119_168] : memref<16x1152xbf16, #tpu.memory_space<vmem>>, vector<16x896xbf16>
    %c176_169 = arith.constant 176 : index
    %c0_170 = arith.constant 0 : index
    %172 = vector.load %arg10[%c176_169, %c0_170] : memref<432x896xbf16, #tpu.memory_space<vmem>>, vector<16x896xbf16>
    tpu.vector_store %arg10[%c176_169, %c0_170], %171 {strides = array<i32>} : memref<432x896xbf16, #tpu.memory_space<vmem>>, vector<16x896xbf16>,
    %c0_171 = arith.constant 0 : index
    %c127_172 = arith.constant 127 : index
    %173 = vector.load %arg8[%c0_171, %c127_172] : memref<16x1152xbf16, #tpu.memory_space<vmem>>, vector<16x896xbf16>
    %c192_173 = arith.constant 192 : index
    %c0_174 = arith.constant 0 : index
    %174 = vector.load %arg10[%c192_173, %c0_174] : memref<432x896xbf16, #tpu.memory_space<vmem>>, vector<16x896xbf16>
    tpu.vector_store %arg10[%c192_173, %c0_174], %173 {strides = array<i32>} : memref<432x896xbf16, #tpu.memory_space<vmem>>, vector<16x896xbf16>,
    %c0_175 = arith.constant 0 : index
    %c128_176 = arith.constant 128 : index
    %175 = vector.load %arg8[%c0_175, %c128_176] : memref<16x1152xbf16, #tpu.memory_space<vmem>>, vector<16x896xbf16>
    %c208_177 = arith.constant 208 : index
    %c0_178 = arith.constant 0 : index
    %176 = vector.load %arg10[%c208_177, %c0_178] : memref<432x896xbf16, #tpu.memory_space<vmem>>, vector<16x896xbf16>
    tpu.vector_store %arg10[%c208_177, %c0_178], %175 {strides = array<i32>} : memref<432x896xbf16, #tpu.memory_space<vmem>>, vector<16x896xbf16>,
    %c0_179 = arith.constant 0 : index
    %c129_180 = arith.constant 129 : index
    %177 = vector.load %arg8[%c0_179, %c129_180] : memref<16x1152xbf16, #tpu.memory_space<vmem>>, vector<16x896xbf16>
    %c224_181 = arith.constant 224 : index
    %c0_182 = arith.constant 0 : index
    %178 = vector.load %arg10[%c224_181, %c0_182] : memref<432x896xbf16, #tpu.memory_space<vmem>>, vector<16x896xbf16>
    tpu.vector_store %arg10[%c224_181, %c0_182], %177 {strides = array<i32>} : memref<432x896xbf16, #tpu.memory_space<vmem>>, vector<16x896xbf16>,
    %c0_183 = arith.constant 0 : index
    %c137_184 = arith.constant 137 : index
    %179 = vector.load %arg8[%c0_183, %c137_184] : memref<16x1152xbf16, #tpu.memory_space<vmem>>, vector<16x896xbf16>
    %c240_185 = arith.constant 240 : index
    %c0_186 = arith.constant 0 : index
    %180 = vector.load %arg10[%c240_185, %c0_186] : memref<432x896xbf16, #tpu.memory_space<vmem>>, vector<16x896xbf16>
    tpu.vector_store %arg10[%c240_185, %c0_186], %179 {strides = array<i32>} : memref<432x896xbf16, #tpu.memory_space<vmem>>, vector<16x896xbf16>,
    %c0_187 = arith.constant 0 : index
    %c138_188 = arith.constant 138 : index
    %181 = vector.load %arg8[%c0_187, %c138_188] : memref<16x1152xbf16, #tpu.memory_space<vmem>>, vector<16x896xbf16>
    %c256_189 = arith.constant 256 : index
    %c0_190 = arith.constant 0 : index
    %182 = vector.load %arg10[%c256_189, %c0_190] : memref<432x896xbf16, #tpu.memory_space<vmem>>, vector<16x896xbf16>
    tpu.vector_store %arg10[%c256_189, %c0_190], %181 {strides = array<i32>} : memref<432x896xbf16, #tpu.memory_space<vmem>>, vector<16x896xbf16>,
    %c0_191 = arith.constant 0 : index
    %c139_192 = arith.constant 139 : index
    %183 = vector.load %arg8[%c0_191, %c139_192] : memref<16x1152xbf16, #tpu.memory_space<vmem>>, vector<16x896xbf16>
    %c272_193 = arith.constant 272 : index
    %c0_194 = arith.constant 0 : index
    %184 = vector.load %arg10[%c272_193, %c0_194] : memref<432x896xbf16, #tpu.memory_space<vmem>>, vector<16x896xbf16>
    tpu.vector_store %arg10[%c272_193, %c0_194], %183 {strides = array<i32>} : memref<432x896xbf16, #tpu.memory_space<vmem>>, vector<16x896xbf16>,
    %c0_195 = arith.constant 0 : index
    %c217_196 = arith.constant 217 : index
    %185 = vector.load %arg8[%c0_195, %c217_196] : memref<16x1152xbf16, #tpu.memory_space<vmem>>, vector<16x896xbf16>
    %c288_197 = arith.constant 288 : index
    %c0_198 = arith.constant 0 : index
    %186 = vector.load %arg10[%c288_197, %c0_198] : memref<432x896xbf16, #tpu.memory_space<vmem>>, vector<16x896xbf16>
    tpu.vector_store %arg10[%c288_197, %c0_198], %185 {strides = array<i32>} : memref<432x896xbf16, #tpu.memory_space<vmem>>, vector<16x896xbf16>,
    %c0_199 = arith.constant 0 : index
    %c218_200 = arith.constant 218 : index
    %187 = vector.load %arg8[%c0_199, %c218_200] : memref<16x1152xbf16, #tpu.memory_space<vmem>>, vector<16x896xbf16>
    %c304_201 = arith.constant 304 : index
    %c0_202 = arith.constant 0 : index
    %188 = vector.load %arg10[%c304_201, %c0_202] : memref<432x896xbf16, #tpu.memory_space<vmem>>, vector<16x896xbf16>
    tpu.vector_store %arg10[%c304_201, %c0_202], %187 {strides = array<i32>} : memref<432x896xbf16, #tpu.memory_space<vmem>>, vector<16x896xbf16>,
    %c0_203 = arith.constant 0 : index
    %c219_204 = arith.constant 219 : index
    %189 = vector.load %arg8[%c0_203, %c219_204] : memref<16x1152xbf16, #tpu.memory_space<vmem>>, vector<16x896xbf16>
    %c320_205 = arith.constant 320 : index
    %c0_206 = arith.constant 0 : index
    %190 = vector.load %arg10[%c320_205, %c0_206] : memref<432x896xbf16, #tpu.memory_space<vmem>>, vector<16x896xbf16>
    tpu.vector_store %arg10[%c320_205, %c0_206], %189 {strides = array<i32>} : memref<432x896xbf16, #tpu.memory_space<vmem>>, vector<16x896xbf16>,
    %c0_207 = arith.constant 0 : index
    %c227_208 = arith.constant 227 : index
    %191 = vector.load %arg8[%c0_207, %c227_208] : memref<16x1152xbf16, #tpu.memory_space<vmem>>, vector<16x896xbf16>
    %c336_209 = arith.constant 336 : index
    %c0_210 = arith.constant 0 : index
    %192 = vector.load %arg10[%c336_209, %c0_210] : memref<432x896xbf16, #tpu.memory_space<vmem>>, vector<16x896xbf16>
    tpu.vector_store %arg10[%c336_209, %c0_210], %191 {strides = array<i32>} : memref<432x896xbf16, #tpu.memory_space<vmem>>, vector<16x896xbf16>,
    %c0_211 = arith.constant 0 : index
    %c228_212 = arith.constant 228 : index
    %193 = vector.load %arg8[%c0_211, %c228_212] : memref<16x1152xbf16, #tpu.memory_space<vmem>>, vector<16x896xbf16>
    %c352_213 = arith.constant 352 : index
    %c0_214 = arith.constant 0 : index
    %194 = vector.load %arg10[%c352_213, %c0_214] : memref<432x896xbf16, #tpu.memory_space<vmem>>, vector<16x896xbf16>
    tpu.vector_store %arg10[%c352_213, %c0_214], %193 {strides = array<i32>} : memref<432x896xbf16, #tpu.memory_space<vmem>>, vector<16x896xbf16>,
    %c0_215 = arith.constant 0 : index
    %c229_216 = arith.constant 229 : index
    %195 = vector.load %arg8[%c0_215, %c229_216] : memref<16x1152xbf16, #tpu.memory_space<vmem>>, vector<16x896xbf16>
    %c368_217 = arith.constant 368 : index
    %c0_218 = arith.constant 0 : index
    %196 = vector.load %arg10[%c368_217, %c0_218] : memref<432x896xbf16, #tpu.memory_space<vmem>>, vector<16x896xbf16>
    tpu.vector_store %arg10[%c368_217, %c0_218], %195 {strides = array<i32>} : memref<432x896xbf16, #tpu.memory_space<vmem>>, vector<16x896xbf16>,
    %c0_219 = arith.constant 0 : index
    %c237_220 = arith.constant 237 : index
    %197 = vector.load %arg8[%c0_219, %c237_220] : memref<16x1152xbf16, #tpu.memory_space<vmem>>, vector<16x896xbf16>
    %c384_221 = arith.constant 384 : index
    %c0_222 = arith.constant 0 : index
    %198 = vector.load %arg10[%c384_221, %c0_222] : memref<432x896xbf16, #tpu.memory_space<vmem>>, vector<16x896xbf16>
    tpu.vector_store %arg10[%c384_221, %c0_222], %197 {strides = array<i32>} : memref<432x896xbf16, #tpu.memory_space<vmem>>, vector<16x896xbf16>,
    %c0_223 = arith.constant 0 : index
    %c238_224 = arith.constant 238 : index
    %199 = vector.load %arg8[%c0_223, %c238_224] : memref<16x1152xbf16, #tpu.memory_space<vmem>>, vector<16x896xbf16>
    %c400_225 = arith.constant 400 : index
    %c0_226 = arith.constant 0 : index
    %200 = vector.load %arg10[%c400_225, %c0_226] : memref<432x896xbf16, #tpu.memory_space<vmem>>, vector<16x896xbf16>
    tpu.vector_store %arg10[%c400_225, %c0_226], %199 {strides = array<i32>} : memref<432x896xbf16, #tpu.memory_space<vmem>>, vector<16x896xbf16>,
    %c0_227 = arith.constant 0 : index
    %c239_228 = arith.constant 239 : index
    %201 = vector.load %arg8[%c0_227, %c239_228] : memref<16x1152xbf16, #tpu.memory_space<vmem>>, vector<16x896xbf16>
    %c416_229 = arith.constant 416 : index
    %c0_230 = arith.constant 0 : index
    %202 = vector.load %arg10[%c416_229, %c0_230] : memref<432x896xbf16, #tpu.memory_space<vmem>>, vector<16x896xbf16>
    tpu.vector_store %arg10[%c416_229, %c0_230], %201 {strides = array<i32>} : memref<432x896xbf16, #tpu.memory_space<vmem>>, vector<16x896xbf16>,
    %c0_231 = arith.constant 0 : index
    %c0_232 = arith.constant 0 : index
    %203 = vector.load %arg3[%c0_231, %c0_232] : memref<16x432xbf16, #tpu.memory_space<vmem>>, vector<16x432xbf16>
    %c0_233 = arith.constant 0 : index
    %c0_234 = arith.constant 0 : index
    %204 = vector.load %arg10[%c0_233, %c0_234] : memref<432x896xbf16, #tpu.memory_space<vmem>>, vector<432x896xbf16>
    %cst_235 = arith.constant dense<0.000000e+00> : vector<16x896xf32>
    %205 = tpu.matmul %203, %204, %cst_235 {dimension_numbers = #tpu.dot_dimension_numbers<[1], [0], [0], [1], [0, 0, 1, 1], [], []>} : vector<16x432xbf16>, vector<432x896xbf16>, vector<16x896xf32> -> vector<16x896xf32>
    %c0_236 = arith.constant 0 : index
    %c0_237 = arith.constant 0 : index
    %206 = vector.load %arg4[%c0_236, %c0_237] : memref<16x16xbf16, #tpu.memory_space<vmem>>, vector<16x16xbf16>
    %c0_238 = arith.constant 0 : index
    %c0_239 = arith.constant 0 : index
    %c128_240 = arith.constant 128 : index
    %207 = vector.load %arg1[%c0_238, %c0_239, %c128_240] : memref<1x16x1152xbf16, #tpu.memory_space<vmem>>, vector<1x16x896xbf16>
    %208 = vector.shape_cast %207 : vector<1x16x896xbf16> to vector<16x896xbf16>
    %cst_241 = arith.constant dense<0.000000e+00> : vector<16x896xf32>
    %209 = tpu.matmul %206, %208, %cst_241 {dimension_numbers = #tpu.dot_dimension_numbers<[1], [0], [0], [1], [0, 0, 1, 1], [], []>} : vector<16x16xbf16>, vector<16x896xbf16>, vector<16x896xf32> -> vector<16x896xf32>
    %cst_242 = arith.constant 0.000000e+00 : bf16
    %210 = vector.broadcast %cst_242 : bf16 to vector<16x128xbf16>
    %c0_243 = arith.constant 0 : index
    %c0_244 = arith.constant 0 : index
    %211 = vector.load %arg9[%c0_243, %c0_244] : memref<16x1152xbf16, #tpu.memory_space<vmem>>, vector<16x128xbf16>
    tpu.vector_store %arg9[%c0_243, %c0_244], %210 {strides = array<i32>} : memref<16x1152xbf16, #tpu.memory_space<vmem>>, vector<16x128xbf16>,
    %cst_245 = arith.constant 0.000000e+00 : bf16
    %212 = vector.broadcast %cst_245 : bf16 to vector<16x128xbf16>
    %c0_246 = arith.constant 0 : index
    %c1024_247 = arith.constant 1024 : index
    %213 = vector.load %arg9[%c0_246, %c1024_247] : memref<16x1152xbf16, #tpu.memory_space<vmem>>, vector<16x128xbf16>
    tpu.vector_store %arg9[%c0_246, %c1024_247], %212 {strides = array<i32>} : memref<16x1152xbf16, #tpu.memory_space<vmem>>, vector<16x128xbf16>,
    %214 = arith.addf %205, %209 : vector<16x896xf32>
    %215 = vector.broadcast %0 : vector<1x896xf32> to vector<16x896xf32>
    %216 = arith.mulf %214, %215 : vector<16x896xf32>
    %217 = arith.truncf %216 : vector<16x896xf32> to vector<16x896xbf16>
    %c0_248 = arith.constant 0 : index
    %c128_249 = arith.constant 128 : index
    %218 = vector.load %arg9[%c0_248, %c128_249] : memref<16x1152xbf16, #tpu.memory_space<vmem>>, vector<16x896xbf16>
    tpu.vector_store %arg9[%c0_248, %c128_249], %217 {strides = array<i32>} : memref<16x1152xbf16, #tpu.memory_space<vmem>>, vector<16x896xbf16>,
    %cst_250 = arith.constant 0.000000e+00 : f32
    %219 = vector.broadcast %cst_250 : f32 to vector<16x128xf32>
    %c0_251 = arith.constant 0 : index
    %c0_252 = arith.constant 0 : index
    %c0_253 = arith.constant 0 : index
    %220 = vector.load %arg7[%c0_251, %c0_252, %c0_253] : memref<1x16x128xf32, #tpu.memory_space<vmem>>, vector<1x16x128xf32>
    %221 = vector.shape_cast %220 : vector<1x16x128xf32> to vector<16x128xf32>
    %222 = vector.shape_cast %219 : vector<16x128xf32> to vector<1x16x128xf32>
    tpu.vector_store %arg7[%c0_251, %c0_252, %c0_253], %222 {strides = array<i32>} : memref<1x16x128xf32, #tpu.memory_space<vmem>>, vector<1x16x128xf32>,
    %c0_254 = arith.constant 0 : index
    %c0_255 = arith.constant 0 : index
    %223 = vector.load %arg6[%c0_254, %c0_255] : memref<300x16xbf16, #tpu.memory_space<vmem>>, vector<300x16xbf16>
    %c0_256 = arith.constant 0 : index
    %c17_257 = arith.constant 17 : index
    %224 = vector.load %arg9[%c0_256, %c17_257] : memref<16x1152xbf16, #tpu.memory_space<vmem>>, vector<16x300xbf16>
    %cst_258 = arith.constant dense<0.000000e+00> : vector<16x16xf32>
    %225 = tpu.matmul %224, %223, %cst_258 {dimension_numbers = #tpu.dot_dimension_numbers<[1], [0], [0], [1], [0, 0, 1, 1], [], []>} : vector<16x300xbf16>, vector<300x16xbf16>, vector<16x16xf32> -> vector<16x16xf32>
    %cst_259 = arith.constant 0.0370370373 : f32
    %226 = vector.broadcast %cst_259 : f32 to vector<16x16xf32>
    %227 = arith.mulf %225, %226 : vector<16x16xf32>
    %c0_260 = arith.constant 0 : index
    %c0_261 = arith.constant 0 : index
    %c0_262 = arith.constant 0 : index
    %228 = vector.load %arg7[%c0_260, %c0_261, %c0_262] : memref<1x16x128xf32, #tpu.memory_space<vmem>>, vector<1x16x16xf32>
    %229 = vector.shape_cast %228 : vector<1x16x16xf32> to vector<16x16xf32>
    %230 = vector.shape_cast %227 : vector<16x16xf32> to vector<1x16x16xf32>
    tpu.vector_store %arg7[%c0_260, %c0_261, %c0_262], %230 {strides = array<i32>} : memref<1x16x128xf32, #tpu.memory_space<vmem>>, vector<1x16x16xf32>,
    %c0_263 = arith.constant 0 : index
    %c217_264 = arith.constant 217 : index
    %231 = vector.load %arg9[%c0_263, %c217_264] : memref<16x1152xbf16, #tpu.memory_space<vmem>>, vector<16x300xbf16>
    %cst_265 = arith.constant dense<0.000000e+00> : vector<16x16xf32>
    %232 = tpu.matmul %231, %223, %cst_265 {dimension_numbers = #tpu.dot_dimension_numbers<[1], [0], [0], [1], [0, 0, 1, 1], [], []>} : vector<16x300xbf16>, vector<300x16xbf16>, vector<16x16xf32> -> vector<16x16xf32>
    %cst_266 = arith.constant 0.0370370373 : f32
    %233 = vector.broadcast %cst_266 : f32 to vector<16x16xf32>
    %234 = arith.mulf %232, %233 : vector<16x16xf32>
    %c0_267 = arith.constant 0 : index
    %c0_268 = arith.constant 0 : index
    %c16_269 = arith.constant 16 : index
    %235 = vector.load %arg7[%c0_267, %c0_268, %c16_269] : memref<1x16x128xf32, #tpu.memory_space<vmem>>, vector<1x16x16xf32>
    %236 = vector.shape_cast %235 : vector<1x16x16xf32> to vector<16x16xf32>
    %237 = vector.shape_cast %234 : vector<16x16xf32> to vector<1x16x16xf32>
    tpu.vector_store %arg7[%c0_267, %c0_268, %c16_269], %237 {strides = array<i32>} : memref<1x16x128xf32, #tpu.memory_space<vmem>>, vector<1x16x16xf32>,
    %c0_270 = arith.constant 0 : index
    %c417 = arith.constant 417 : index
    %238 = vector.load %arg9[%c0_270, %c417] : memref<16x1152xbf16, #tpu.memory_space<vmem>>, vector<16x300xbf16>
    %cst_271 = arith.constant dense<0.000000e+00> : vector<16x16xf32>
    %239 = tpu.matmul %238, %223, %cst_271 {dimension_numbers = #tpu.dot_dimension_numbers<[1], [0], [0], [1], [0, 0, 1, 1], [], []>} : vector<16x300xbf16>, vector<300x16xbf16>, vector<16x16xf32> -> vector<16x16xf32>
    %cst_272 = arith.constant 0.0370370373 : f32
    %240 = vector.broadcast %cst_272 : f32 to vector<16x16xf32>
    %241 = arith.mulf %239, %240 : vector<16x16xf32>
    %c0_273 = arith.constant 0 : index
    %c0_274 = arith.constant 0 : index
    %c32_275 = arith.constant 32 : index
    %242 = vector.load %arg7[%c0_273, %c0_274, %c32_275] : memref<1x16x128xf32, #tpu.memory_space<vmem>>, vector<1x16x16xf32>
    %243 = vector.shape_cast %242 : vector<1x16x16xf32> to vector<16x16xf32>
    %244 = vector.shape_cast %241 : vector<16x16xf32> to vector<1x16x16xf32>
    tpu.vector_store %arg7[%c0_273, %c0_274, %c32_275], %244 {strides = array<i32>} : memref<1x16x128xf32, #tpu.memory_space<vmem>>, vector<1x16x16xf32>,
    %c0_276 = arith.constant 0 : index
    %c617 = arith.constant 617 : index
    %245 = vector.load %arg9[%c0_276, %c617] : memref<16x1152xbf16, #tpu.memory_space<vmem>>, vector<16x300xbf16>
    %cst_277 = arith.constant dense<0.000000e+00> : vector<16x16xf32>
    %246 = tpu.matmul %245, %223, %cst_277 {dimension_numbers = #tpu.dot_dimension_numbers<[1], [0], [0], [1], [0, 0, 1, 1], [], []>} : vector<16x300xbf16>, vector<300x16xbf16>, vector<16x16xf32> -> vector<16x16xf32>
    %cst_278 = arith.constant 0.0370370373 : f32
    %247 = vector.broadcast %cst_278 : f32 to vector<16x16xf32>
    %248 = arith.mulf %246, %247 : vector<16x16xf32>
    %c0_279 = arith.constant 0 : index
    %c0_280 = arith.constant 0 : index
    %c48_281 = arith.constant 48 : index
    %249 = vector.load %arg7[%c0_279, %c0_280, %c48_281] : memref<1x16x128xf32, #tpu.memory_space<vmem>>, vector<1x16x16xf32>
    %250 = vector.shape_cast %249 : vector<1x16x16xf32> to vector<16x16xf32>
    %251 = vector.shape_cast %248 : vector<16x16xf32> to vector<1x16x16xf32>
    tpu.vector_store %arg7[%c0_279, %c0_280, %c48_281], %251 {strides = array<i32>} : memref<1x16x128xf32, #tpu.memory_space<vmem>>, vector<1x16x16xf32>,
    return
  }
  func.func @transform_0(%arg0: i32) -> (i32, i32, i32) {
    %c0_i32 = arith.constant 0 : i32
    %c0_i32_0 = arith.constant 0 : i32
    %c0_i32_1 = arith.constant 0 : i32
    return %arg0, %c0_i32, %c0_i32_0 : i32, i32, i32
  }
  func.func @transform_1(%arg0: i32) -> (i32, i32) {
    %c0_i32 = arith.constant 0 : i32
    %c0_i32_0 = arith.constant 0 : i32
    %c0_i32_1 = arith.constant 0 : i32
    return %c0_i32, %c0_i32_0 : i32, i32
  }
  func.func @transform_2(%arg0: i32) -> (i32, i32) {
    %c0_i32 = arith.constant 0 : i32
    %c0_i32_0 = arith.constant 0 : i32
    %c0_i32_1 = arith.constant 0 : i32
    return %c0_i32, %c0_i32_0 : i32, i32
  }
  func.func @transform_3(%arg0: i32) -> (i32, i32) {
    %c0_i32 = arith.constant 0 : i32
    %c0_i32_0 = arith.constant 0 : i32
    %c0_i32_1 = arith.constant 0 : i32
    return %c0_i32, %c0_i32_0 : i32, i32
  }
  func.func @transform_4(%arg0: i32) -> (i32, i32) {
    %c0_i32 = arith.constant 0 : i32
    %c0_i32_0 = arith.constant 0 : i32
    %c0_i32_1 = arith.constant 0 : i32
    return %c0_i32, %c0_i32_0 : i32, i32
  }
  func.func @transform_5(%arg0: i32) -> (i32, i32) {
    %c0_i32 = arith.constant 0 : i32
    %c0_i32_0 = arith.constant 0 : i32
    %c0_i32_1 = arith.constant 0 : i32
    return %c0_i32, %c0_i32_0 : i32, i32
  }
  func.func @transform_6(%arg0: i32) -> (i32, i32, i32) {
    %c0_i32 = arith.constant 0 : i32
    %c0_i32_0 = arith.constant 0 : i32
    %c0_i32_1 = arith.constant 0 : i32
    return %arg0, %c0_i32, %c0_i32_0 : i32, i32, i32
  }
}

</mosaic_0001>

<bundles_post_ra>
// kernel: tpu_custom_call.1
= control target key start
LH: loop header
LB: loop body
LE: loop exit
PB: predicated region body
PF: predicated region fallthrough
CT: control target
= control target key end

     0   :  { %s15156_s0 = inlined_call_operand.vmem [shape: bf16[2,16,1152], index: 0, kind: input, shape index: {}]   ;;  %s15157_s1 = inlined_call_operand.vmem [shape: bf16[16,432], index: 1, kind: input, shape index: {}]   ;;  %s15158_s2 = inlined_call_operand.hbm [shape: bf16[16,432], index: 2, kind: input, shape index: {}]   ;;  %s15159_s3 = inlined_call_operand.hbm [shape: bf16[16,16], index: 3, kind: input, shape index: {}]   ;;  %s15160_s4 = inlined_call_operand.hbm [shape: f32[1,896], index: 4, kind: input, shape index: {}]   ;;  %s15161_s5 = inlined_call_operand.vmem [shape: bf16[300,16], index: 5, kind: input, shape index: {}]   ;;  %s15162_s6 = inlined_call_operand.hbm [shape: f32[2,16,128], index: 6, kind: output, shape index: {}]  }
   0x1   :  { %15319 = sst [smem:[#allocation29_spill]] %s15156_s0 }
   0x2   :  { %15320 = sst [smem:[#allocation30_spill]] %s15157_s1 }
   0x3   :  { %15321 = sst [smem:[#allocation31_spill]] %s15158_s2 }
   0x4   :  { %15322 = sst [smem:[#allocation32_spill]] %s15159_s3 }
   0x5   :  { %15323 = sst [smem:[#allocation33_spill]] %s15160_s4 }
   0x6   :  { %11 = vsyncpa [#allocation6], 0 }
   0x7   :  { %12 = vsyncpa [#allocation9], 0 }
   0x8   :  { %13 = vsyncpa [#allocation7], 0 }
   0x9   :  { %15 = vsyncpa [#allocation7 + $0x1], 0  ;;  %s11677_s21 = smov 0   ;;  %s11679_s22 = smov 0  }
   0xa   :  { %s11681_s23 = smov 0   ;;  %s11683_s24 = smov 0  }
   0xb LB: > { %s11698_s25 = sadd.s32 4294967295, %s11598_s24   ;;  %s9150_s26 = sadd.s32 4294967294, %s11598_s24   ;;  %s11598_s24 = sphi %s11683_s24, %s15557_s24   ;;  %s11594_s23 = sphi %s11681_s23, %s15556_s23   ;;  %s11590_s22 = sphi %s11679_s22, %s15555_s22   ;;  %s11586_s21 = sphi %s11677_s21, %s15554_s21  }
   0xc   : > { %s11702_s27 = sadd.s32 1, %s11598_s24   ;;  %s159_s28 = sadd.s32 1, %s11594_s23 }
   0xd   : > { %s156_s29 = ssub.s32 %s11598_s24, %s11702_s27  ;;  %p169_p0 = scmp.ne.s32.totalorder %s11594_s23, %s11590_s22 }
   0xe   : > { %p157_p1 = scmp.eq.s32.totalorder %s156_s29, 0  ;;  %p170_p2 = scmp.eq.s32.totalorder %s11698_s25, 1 }
   0xf   : > { %p175_p3 = scmp.ne.s32.totalorder %s11590_s22, %s11586_s21  ;;  %p176_p4 = scmp.eq.s32.totalorder %s9150_s26, 1 }
  0x10   : > { %s11713_s30 = scalar_select %p157_p1, %s11594_s23, %s159_s28  }
  0x11   : > { %p11715_p5 = por %p170_p2, %p169_p0  ;;  %p11719_p6 = por %p176_p4, %p175_p3 }
  0x12   : > { %15324 = sst [smem:[#allocation15_spill]] %s11713_s30  ;;  %p9151_p7 = scmp.ge.s32.totalorder %s11598_s24, 1 }
  0x13   : > { %p183_p8 = scmp.lt.s32.totalorder %s11598_s24, 3  ;;  %p11357_p9 = scmp.eq.s32.totalorder %s11698_s25, 0 }
  0x14   : > { %s15328_s3 = sld [smem:[#allocation32_spill]]  ;;  %s11600_s13 = smov [#allocation8]  }
  0x15   : > { %p11726_p10 = pnand %p9151_p7, %p183_p8  ;;  %s213_s14 = sshll.u32 %s11600_s13, 4  ;;  %s214_s14 = int_to_ptr.vmem [resolvable:$true] %s213_s14 }
  0x16   : > { %s15330_s2 = sld [smem:[#allocation31_spill]]  ;;  %s11601_s19 = smov 64  }
  0x17   : > { %p11343_p11 = pneg %p11726_p10  ;;  %s11602_s20 = smov 4  }
  0x18   : > { %s11603_s26 = smov [#allocation5]   ;;  %s11604_s29 = smov 256  }
  0x19   : > { %p11737_p12 = pnand %p11357_p9, %p11343_p11  ;;  %s199_s28 = sshll.u32 %s11603_s26, 4  ;;  %s200_s28 = int_to_ptr.vmem [resolvable:$true] %s199_s28 }
  0x1a   : > { %s211_s12 = sshll.u32 %s15328_s3, 4  ;;  %s11605_s10 = smov 16   ;;  %s212_s12 = int_to_ptr.hbm [resolvable:$true] %s211_s12 }
  0x1b   : > { %11349 = dma.hbm_to_vmem [thread:$0]  (!%p11737_p12), %s212_s12, 128, %s214_s14, [#allocation9], %s11601_s19, %s11601_s19, %s11602_s20  }
  0x1c   : > { %s197_s18 = sshll.u32 %s15330_s2, 4  ;;  %s15331_s4 = sld [smem:[#allocation33_spill]]  ;;  %s198_s18 = int_to_ptr.hbm [resolvable:$true] %s197_s18 }
  0x1d   : > { %11346 = dma.hbm_to_vmem [thread:$0]  (!%p11737_p12), %s198_s18, 512, %s200_s28, [#allocation6], %s11604_s29, %s11604_s29, %s11605_s10  }
  0x1e   : > { %s11606_s17 = smov [#allocation10]  }
  0x1f   : > { %s228_s2 = sshll.u32 %s11606_s17, 4  ;;  %252 = sbr.rel (%p11726_p10) target bundleno = 2268 (0x8dc), region = 44  ;;  %s229_s2 = int_to_ptr.vmem [resolvable:$true] %s228_s2 }
  0x22   : > { %s226_s16 = sshll.u32 %s15331_s4, 4  ;;  %s227_s16 = int_to_ptr.hbm [resolvable:$true] %s226_s16 }
  0x23   : > { %11352 = dma.hbm_to_vmem [thread:$0]  (!%p11737_p12), %s227_s16, 112, %s229_s2, [#allocation9]  }
  0x24   : > { %11573 = dma.done.wait (%p11357_p9), [#allocation6], 512  }
  0x25   : > { %11575 = vsyncadd (%p11357_p9), [#allocation6], 4294966784 }
  0x26   : > { %11577 = dma.done.wait (%p11357_p9), [#allocation9], 240  }
  0x27   : > { %11579 = vsyncadd (%p11357_p9), [#allocation9], 4294967056  ;;  %p293_p13 = scmp.lt.s32.totalorder %s11698_s25, 1  ;;  %s15332_s0 = sld [smem:[#allocation29_spill]]  ;;  %vm380_vm0 = vcmask 1043456   ;;  %vm382_vm1 = vcmask 908288  }
  0x28   : > { %s15205_s18 = smov 111   ;;  %s11608_s19 = smov 110   ;;  %vm493_vm2 = vcmask 900096   ;;  %vm604_vm3 = vcmask 891904   ;;  %vm826_vm4 = vcmask 818176   ;;  %vm715_vm5 = vcmask 826368  }
  0x29   : > { %s294_s12 = scalar_select %p293_p13, %s11698_s25, 1  ;;  %vm937_vm6 = vcmask 809984   ;;  %vm15204_vm7 = vcmask 736256   ;;  %vm1048_vm8 = vcmask 744448   ;;  %vm15179_vm9 = vcmask 728064  }
  0x2a   : > { %s11609_s20 = smov 109   ;;  %s11610_s26 = smov 101   ;;  %vm15189_vm10 = vcmask 80896   ;;  %vm15180_vm11 = vcmask 89088   ;;  %vm15191_vm12 = vcmask 72704   ;;  %vm15194_vm13 = vcmask 1039360  }
  0x2b   : > { %s11328_s2 = smul.u32 72, %s294_s12  ;;  %s11611_s28 = smov 100   ;;  %vm15193_vm14 = vcmask 7168   ;;  %vm15203_vm15 = vcmask 973824  }
  0x2c   : > { %s15207_s29 = smov 99   ;;  %s15211_s10 = smov 91  }
  0x2d   : > { %s11768_s15 = scalar_lea.vmem %s15332_s0, %s11328_s2  ;;  %s15209_s11 = smov 90  }
  0x2e   : > { %v304_v0 = vld [vmem:[%s11768_s15 + $0x24] sm:$0xff]  ;;  %v302_v1 = vld [vmem:[%s11768_s15 + $0x10] sm:$0xff]  ;;  %v303_v12 = vld [vmem:[%s11768_s15 + $0x18] sm:$0xff]  ;;  %s15163_s13 = smov 89   ;;  %s15165_s16 = smov 11  }
  0x2f   : > { %v300_v2 = vld [vmem:[%s11768_s15] sm:$0xff]  ;;  %v316_v3 = vunpack.c.l.bf16 %v304_v0  ;;  %v317_v4 = vunpack.c.h.bf16 %v304_v0  ;;  %v312_v5 = vunpack.c.l.bf16 %v302_v1  ;;  %v313_v6 = vunpack.c.h.bf16 %v302_v1  ;;  %v305_v7 = vld [vmem:[%s11768_s15 + $0x2c] sm:$0xff]  ;;  %v306_v34 = vld [vmem:[%s11768_s15 + $0x34] sm:$0xff]  ;;  %s15171_s17 = smov 10   ;;  %s15175_s12 = smov 9  }
  0x30   : > { %v308_v8 = vunpack.c.l.bf16 %v300_v2  ;;  %v309_v9 = vunpack.c.h.bf16 %v300_v2  ;;  %v318_v10 = vunpack.c.l.bf16 %v305_v7  ;;  %v319_v11 = vunpack.c.h.bf16 %v305_v7  ;;  %v301_v17 = vld [vmem:[%s11768_s15 + $0x8] sm:$0xff]  ;;  %v307_v33 = vld [vmem:[%s11768_s15 + $0x3c] sm:$0xff]  ;;  %s15181_s2 = smov 1   ;;  %s15183_s14 = smov 127  }
  0x31   : > { %v332_v13 = vmax.f32 %v316_v3, 0.0  ;;  %v333_v14 = vmax.f32 %v317_v4, 0.0  ;;  %v328_v15 = vmax.f32 %v312_v5, 0.0  ;;  %v329_v16 = vmax.f32 %v313_v6, 0.0  ;;  %s15185_s9 = smov 119   ;;  %s15333_s1 = sld [smem:[#allocation30_spill]] }
  0x32   : > { %v324_v18 = vmax.f32 %v308_v8, 0.0  ;;  %v325_v19 = vmax.f32 %v309_v9, 0.0  ;;  %v314_v22 = vunpack.c.l.bf16 %v303_v12  ;;  %v315_v23 = vunpack.c.h.bf16 %v303_v12  ;;  %s15365_s0 = smov 29   ;;  %s15370_s3 = smov 90  }
  0x33   : > { %v11776_v20 = vpack.c.bf16 %v333_v14, %v332_v13  ;;  %v11778_v21 = vpack.c.bf16 %v329_v16, %v328_v15  ;;  %v310_v25 = vunpack.c.l.bf16 %v301_v17  ;;  %v311_v26 = vunpack.c.h.bf16 %v301_v17  ;;  %s15371_s4 = smov 99   ;;  %s15389_s30 = smov 27  }
  0x34   : > { %v11780_v24 = vpack.c.bf16 %v325_v19, %v324_v18  ;;  %v334_v27 = vmax.f32 %v318_v10, 0.0  ;;  %v335_v28 = vmax.f32 %v319_v11, 0.0  ;;  %v330_v29 = vmax.f32 %v314_v22, 0.0 }
  0x35   : > { %364 = vrot.lane.b32.xlu2 %v11776_v20, %s15205_s18  ;;  %360 = vrot.lane.b32.xlu1 %v11778_v21, %s15205_s18  ;;  %v331_v30 = vmax.f32 %v315_v23, 0.0  ;;  %v326_v31 = vmax.f32 %v310_v25, 0.0  ;;  %v327_v32 = vmax.f32 %v311_v26, 0.0  ;;  %v322_v37 = vunpack.c.l.bf16 %v307_v33 }
  0x36   : > { %356 = vrot.lane.b32.xlu0 %v11780_v24, %s15205_s18  ;;  %v11790_v35 = vpack.c.bf16 %v335_v28, %v334_v27  ;;  %v323_v38 = vunpack.c.h.bf16 %v307_v33  ;;  %v320_v40 = vunpack.c.l.bf16 %v306_v34  ;;  %v321_v41 = vunpack.c.h.bf16 %v306_v34 }
  0x37   : > { %v11792_v36 = vpack.c.bf16 %v331_v30, %v330_v29  ;;  %v11794_v39 = vpack.c.bf16 %v327_v32, %v326_v31  ;;  %v338_v42 = vmax.f32 %v322_v37, 0.0 }
  0x38   : > { %v339_v43 = vmax.f32 %v323_v38, 0.0  ;;  %v336_v44 = vmax.f32 %v320_v40, 0.0  ;;  %v337_v45 = vmax.f32 %v321_v41, 0.0  ;;  %v1082_v40 = vld [vmem:[%s11768_s15 + $0x24] sm:$0xff] }
  0x3a   : > { %v11802_v46 = vpack.c.bf16 %v339_v43, %v338_v42  ;;  %v11804_v47 = vpack.c.bf16 %v337_v45, %v336_v44 }
  0x3d   : > { %366 = vrot.lane.b32.xlu2 %v11790_v35, %s15205_s18  ;;  %362 = vrot.lane.b32.xlu1 %v11792_v36, %s15205_s18 }
  0x3e   : > { %358 = vrot.lane.b32.xlu0 %v11794_v39, %s15205_s18 }
  0x45   : > { %468 = vrot.lane.b32.xlu2 %v11780_v24, %s11608_s19  ;;  %370 = vrot.lane.b32.xlu1 %v11802_v46, %s15205_s18 }
  0x46   : > { %368 = vrot.lane.b32.xlu0 %v11804_v47, %s15205_s18 }
  0x4d   : > { %474 = vrot.lane.b32.xlu2 %v11792_v36, %s11608_s19  ;;  %472 = vrot.lane.b32.xlu1 %v11778_v21, %s11608_s19 }
  0x4e   : > { %470 = vrot.lane.b32.xlu0 %v11794_v39, %s11608_s19 }
  0x55   : > { %480 = vrot.lane.b32.xlu2 %v11804_v47, %s11608_s19  ;;  %478 = vrot.lane.b32.xlu1 %v11790_v35, %s11608_s19 }
  0x56   : > { %476 = vrot.lane.b32.xlu0 %v11776_v20, %s11608_s19 }
  0x5d   : > { %581 = vrot.lane.b32.xlu2 %v11794_v39, %s11609_s20  ;;  %579 = vrot.lane.b32.xlu1 %v11780_v24, %s11609_s20 }
  0x5e   : > { %482 = vrot.lane.b32.xlu0 %v11802_v46, %s11608_s19 }
  0x65   : > { %587 = vrot.lane.b32.xlu2 %v11776_v20, %s11609_s20  ;;  %585 = vrot.lane.b32.xlu1 %v11792_v36, %s11609_s20 }
  0x66   : > { %583 = vrot.lane.b32.xlu0 %v11778_v21, %s11609_s20 }
  0x6d   : > { %593 = vrot.lane.b32.xlu2 %v11802_v46, %s11609_s20  ;;  %591 = vrot.lane.b32.xlu1 %v11804_v47, %s11609_s20 }
  0x6e   : > { %589 = vrot.lane.b32.xlu0 %v11790_v35, %s11609_s20 }
  0x75   : > { %694 = vrot.lane.b32.xlu2 %v11778_v21, %s11610_s26  ;;  %692 = vrot.lane.b32.xlu1 %v11794_v39, %s11610_s26 }
  0x76   : > { %690 = vrot.lane.b32.xlu0 %v11780_v24, %s11610_s26 }
  0x7d   : > { %700 = vrot.lane.b32.xlu2 %v11790_v35, %s11610_s26  ;;  %698 = vrot.lane.b32.xlu1 %v11776_v20, %s11610_s26 }
  0x7e   : > { %696 = vrot.lane.b32.xlu0 %v11792_v36, %s11610_s26 }
  0x85   : > { %801 = vrot.lane.b32.xlu2 %v11780_v24, %s11611_s28  ;;  %704 = vrot.lane.b32.xlu1 %v11802_v46, %s11610_s26 }
  0x86   : > { %702 = vrot.lane.b32.xlu0 %v11804_v47, %s11610_s26 }
  0x8d   : > { %807 = vrot.lane.b32.xlu2 %v11792_v36, %s11611_s28  ;;  %805 = vrot.lane.b32.xlu1 %v11778_v21, %s11611_s28 }
  0x8e   : > { %803 = vrot.lane.b32.xlu0 %v11794_v39, %s11611_s28 }
  0x8f   : > { %v365_v48 = vpop.permute.xlu2 %364 }
  0x90   : > { %v376_v49 = vrot.slane %v365_v48, 4 }
  0x95   : > { %813 = vrot.lane.b32.xlu2 %v11804_v47, %s11611_s28  ;;  %811 = vrot.lane.b32.xlu1 %v11790_v35, %s11611_s28 }
  0x96   : > { %809 = vrot.lane.b32.xlu0 %v11776_v20, %s11611_s28 }
  0x97   : > { %v367_v50 = vpop.permute.xlu2 %366 }
  0x98   : > { %v377_v51 = vrot.slane %v367_v50, 4 }
  0x9a   : > { %v389_v52 = vsel %vm380_vm0, %v376_v49, %v377_v51 }
  0x9b   : > { %v390_v53 = vsel %vm382_vm1, %v365_v48, %v389_v52  ;;  %v1095_v48 = vunpack.c.h.bf16 %v1082_v40  ;;  %v1190_v52 = vld [vmem:[%s11768_s15 + $0x8] sm:$0xff] }
  0x9c   : > { %408 = vst [vmem:[#allocation4 + $0x1c] sm:$0xff] %v390_v53 }
  0x9d   : > { %914 = vrot.lane.b32.xlu2 %v11794_v39, %s15207_s29  ;;  %912 = vrot.lane.b32.xlu1 %v11780_v24, %s15207_s29 }
  0x9e   : > { %815 = vrot.lane.b32.xlu0 %v11802_v46, %s11611_s28 }
  0x9f   : > { %v11880_v54 = vpop.permute.xlu2 %468 }
  0xa0   : > { %v484_v27 = vrot.slane %v11880_v54, 4 }
  0xa5   : > { %920 = vrot.lane.b32.xlu2 %v11776_v20, %s15207_s29  ;;  %918 = vrot.lane.b32.xlu1 %v11792_v36, %s15207_s29 }
  0xa6   : > { %916 = vrot.lane.b32.xlu0 %v11778_v21, %s15207_s29 }
  0xa7   : > { %v475_v55 = vpop.permute.xlu2 %474  ;;  %v361_v56 = vpop.permute.xlu1 %360 }
  0xa8   : > { %v487_v57 = vrot.slane %v475_v55, 4  ;;  %v357_v58 = vpop.permute.xlu0 %356  ;;  %v374_v62 = vrot.slane %v361_v56, 4 }
  0xa9   : > { %v372_v1 = vrot.slane %v357_v58, 4 }
  0xaa   : > { %v499_v59 = vsel %vm493_vm2, %v475_v55, %v487_v57  ;;  %v1111_v55 = vmax.f32 %v1095_v48, 0.0 }
  0xab   : > { %518 = vst [vmem:[#allocation4 + $0x50] sm:$0xf] %v499_v59  ;;  %v1085_v59 = vld [vmem:[%s11768_s15 + $0x3c] sm:$0xff] }
  0xad   : > { %926 = vrot.lane.b32.xlu2 %v11802_v46, %s15207_s29  ;;  %924 = vrot.lane.b32.xlu1 %v11804_v47, %s15207_s29 }
  0xae   : > { %922 = vrot.lane.b32.xlu0 %v11790_v35, %s15207_s29 }
  0xaf   : > { %v11895_v60 = vpop.permute.xlu2 %480  ;;  %v363_v61 = vpop.permute.xlu1 %362 }
  0xb0   : > { %v375_v63 = vrot.slane %v363_v61, 4  ;;  %v359_v0 = vpop.permute.xlu0 %358  ;;  %v490_v34 = vrot.slane %v11895_v60, 4 }
  0xb1   : > { %v373_v2 = vrot.slane %v359_v0, 4 }
  0xb2   : > { %v386_v3 = vsel %vm380_vm0, %v374_v62, %v375_v63  ;;  %v388_v4 = vsel %vm382_vm1, %v363_v61, %v375_v63  ;;  %v1199_v63 = vunpack.c.l.bf16 %v1190_v52 }
  0xb3   : > { %v387_v5 = vsel %vm382_vm1, %v361_v56, %v386_v3  ;;  %407 = vst [vmem:[#allocation4 + $0x18] sm:$0xf] %v388_v4  ;;  %v381_v6 = vsel %vm380_vm0, %v372_v1, %v373_v2  ;;  %v384_v7 = vsel %vm380_vm0, %v373_v2, %v374_v62  ;;  %v1189_v56 = vld [vmem:[%s11768_s15] sm:$0xff]  ;;  %v1100_v4 = vunpack.c.l.bf16 %v1085_v59 }
  0xb4   : > { %406 = vst [vmem:[#allocation4 + $0x10] sm:$0xff] %v387_v5  ;;  %v383_v8 = vsel %vm382_vm1, %v357_v58, %v381_v6  ;;  %v385_v9 = vsel %vm382_vm1, %v359_v0, %v384_v7  ;;  %v1197_v1 = vunpack.c.l.bf16 %v1189_v56 }
  0xb5   : > { %404 = vst [vmem:[#allocation4] sm:$0xff] %v383_v8  ;;  %1027 = vrot.lane.b32.xlu2 %v11778_v21, %s15211_s10  ;;  %1025 = vrot.lane.b32.xlu1 %v11794_v39, %s15211_s10 }
  0xb6   : > { %405 = vst [vmem:[#allocation4 + $0x8] sm:$0xff] %v385_v9  ;;  %1023 = vrot.lane.b32.xlu0 %v11780_v24, %s15211_s10  ;;  %v1215_v9 = vmax.f32 %v1199_v63, 0.0 }
  0xb7   : > { %v11910_v10 = vpop.permute.xlu2 %581  ;;  %v371_v11 = vpop.permute.xlu1 %370 }
  0xb8   : > { %v379_v12 = vrot.slane %v371_v11, 4  ;;  %v369_v13 = vpop.permute.xlu0 %368  ;;  %v596_v53 = vrot.slane %v11910_v10, 4 }
  0xb9   : > { %v378_v14 = vrot.slane %v369_v13, 4 }
  0xba   : > { %v395_v15 = vsel %vm382_vm1, %v371_v11, %v379_v12 }
  0xbb   : > { %411 = vst [vmem:[#allocation4 + $0x34] sm:$0xf] %v395_v15  ;;  %v391_v16 = vsel %vm380_vm0, %v377_v51, %v378_v14  ;;  %v393_v17 = vsel %vm380_vm0, %v378_v14, %v379_v12  ;;  %v1213_v12 = vmax.f32 %v1197_v1, 0.0  ;;  %v1116_v14 = vmax.f32 %v1100_v4, 0.0 }
  0xbc   : > { %v392_v18 = vsel %vm382_vm1, %v367_v50, %v391_v16  ;;  %v394_v19 = vsel %vm382_vm1, %v369_v13, %v393_v17  ;;  %v1192_v16 = vld [vmem:[%s11768_s15 + $0x18] sm:$0xff] }
  0xbd   : > { %409 = vst [vmem:[#allocation4 + $0x24] sm:$0xff] %v392_v18  ;;  %1033 = vrot.lane.b32.xlu2 %v11790_v35, %s15211_s10  ;;  %1031 = vrot.lane.b32.xlu1 %v11776_v20, %s15211_s10  ;;  %v1191_v18 = vld [vmem:[%s11768_s15 + $0x10] sm:$0xff] }
  0xbe   : > { %410 = vst [vmem:[#allocation4 + $0x2c] sm:$0xff] %v394_v19  ;;  %1029 = vrot.lane.b32.xlu0 %v11792_v36, %s15211_s10 }
  0xbf   : > { %v11923_v22 = vpop.permute.xlu2 %587  ;;  %v473_v23 = vpop.permute.xlu1 %472 }
  0xc0   : > { %v486_v25 = vrot.slane %v473_v23, 4  ;;  %v471_v26 = vpop.permute.xlu0 %470 }
  0xc1   : > { %v485_v28 = vrot.slane %v471_v26, 4 }
  0xc2   : > { %v497_v29 = vsel %vm380_vm0, %v486_v25, %v487_v57 }
  0xc3   : > { %v498_v30 = vsel %vm493_vm2, %v473_v23, %v497_v29  ;;  %v492_v31 = vsel %vm380_vm0, %v484_v27, %v485_v28  ;;  %v495_v20 = vsel %vm380_vm0, %v485_v28, %v486_v25  ;;  %v1204_v27 = vunpack.c.h.bf16 %v1192_v16 }
  0xc4   : > { %517 = vst [vmem:[#allocation4 + $0x48] sm:$0xff] %v498_v30  ;;  %v494_v32 = vsel %vm493_vm2, %v11880_v54, %v492_v31  ;;  %v496_v33 = vsel %vm493_vm2, %v471_v26, %v495_v20  ;;  %v1201_v30 = vunpack.c.l.bf16 %v1191_v18  ;;  %v1202_v31 = vunpack.c.h.bf16 %v1191_v18 }
  0xc5   : > { %515 = vst [vmem:[#allocation4 + $0x38] sm:$0xff] %v494_v32  ;;  %1134 = vrot.lane.b32.xlu2 %v11780_v24, %s15209_s11  ;;  %1037 = vrot.lane.b32.xlu1 %v11802_v46, %s15211_s10  ;;  %v1094_v46 = vunpack.c.l.bf16 %v1082_v40  ;;  %v1220_v40 = vmax.f32 %v1204_v27, 0.0 }
  0xc6   : > { %516 = vst [vmem:[#allocation4 + $0x40] sm:$0xff] %v496_v33  ;;  %1035 = vrot.lane.b32.xlu0 %v11804_v47, %s15211_s10 }
  0xc7   : > { %v11940_v37 = vpop.permute.xlu2 %593  ;;  %v479_v38 = vpop.permute.xlu1 %478  ;;  %v1110_v54 = vmax.f32 %v1094_v46, 0.0  ;;  %v599_v46 = vrot.slane %v11923_v22, 4 }
  0xc8   : > { %v602_v41 = vrot.slane %v11940_v37, 4  ;;  %v489_v42 = vrot.slane %v479_v38, 4  ;;  %v477_v43 = vpop.permute.xlu0 %476 }
  0xc9   : > { %v488_v24 = vrot.slane %v477_v43, 4  ;;  %v11965_v3 = vpack.c.bf16 %v1111_v55, %v1110_v54 }
  0xca   : > { %v617_v44 = vsel %vm604_vm3, %v11940_v37, %v602_v41  ;;  %v502_v45 = vsel %vm380_vm0, %v489_v42, %v490_v34 }
  0xcb   : > { %633 = vst [vmem:[#allocation4 + $0xa4] sm:$0xf] %v617_v44  ;;  %v503_v49 = vsel %vm493_vm2, %v479_v38, %v502_v45  ;;  %v500_v50 = vsel %vm380_vm0, %v488_v24, %v489_v42  ;;  %v1217_v42 = vmax.f32 %v1201_v30, 0.0  ;;  %v1195_v24 = vld [vmem:[%s11768_s15 + $0x34] sm:$0xff]  ;;  %v1194_v45 = vld [vmem:[%s11768_s15 + $0x2c] sm:$0xff] }
  0xcc   : > { %520 = vst [vmem:[#allocation4 + $0x5c] sm:$0xff] %v503_v49  ;;  %v501_v51 = vsel %vm493_vm2, %v477_v43, %v500_v50  ;;  %v1218_v43 = vmax.f32 %v1202_v31, 0.0 }
  0xcd   : > { %519 = vst [vmem:[#allocation4 + $0x54] sm:$0xff] %v501_v51  ;;  %1140 = vrot.lane.b32.xlu2 %v11792_v36, %s15209_s11  ;;  %1138 = vrot.lane.b32.xlu1 %v11778_v21, %s15209_s11  ;;  %v1200_v36 = vunpack.c.h.bf16 %v1190_v52  ;;  %v1198_v21 = vunpack.c.h.bf16 %v1189_v56  ;;  %v1209_v52 = vunpack.c.l.bf16 %v1195_v24  ;;  %v1207_v56 = vunpack.c.l.bf16 %v1194_v45 }
  0xce   : > { %1136 = vrot.lane.b32.xlu0 %v11794_v39, %s15209_s11  ;;  %v1101_v39 = vunpack.c.h.bf16 %v1085_v59  ;;  %v12010_v55 = vpack.c.bf16 %v1218_v43, %v1217_v42 }
  0xcf   : > { %v11961_v57 = vpop.permute.xlu2 %694  ;;  %v580_v58 = vpop.permute.xlu1 %579  ;;  %v1216_v11 = vmax.f32 %v1200_v36, 0.0  ;;  %v1214_v13 = vmax.f32 %v1198_v21, 0.0  ;;  %v1225_v37 = vmax.f32 %v1209_v52, 0.0  ;;  %v1223_v1 = vmax.f32 %v1207_v56, 0.0 }
  0xd0   : > { %v595_v61 = vrot.slane %v580_v58, 4  ;;  %v483_v62 = vpop.permute.xlu0 %482  ;;  %v1117_v15 = vmax.f32 %v1101_v39, 0.0 }
  0xd1   : > { %v491_v0 = vrot.slane %v483_v62, 4  ;;  %v11982_v25 = vpack.c.bf16 %v1216_v11, %v1215_v9  ;;  %v11984_v26 = vpack.c.bf16 %v1214_v13, %v1213_v12 }
  0xd2   : > { %v603_v2 = vsel %vm380_vm0, %v595_v61, %v596_v53  ;;  %v11987_v29 = vpack.c.bf16 %v1117_v15, %v1116_v14 }
  0xd3   : > { %v605_v5 = vsel %vm604_vm3, %v580_v58, %v603_v2  ;;  %v504_v6 = vsel %vm380_vm0, %v490_v34, %v491_v0  ;;  %v506_v7 = vsel %vm493_vm2, %v483_v62, %v491_v0  ;;  %v1208_v58 = vunpack.c.h.bf16 %v1194_v45 }
  0xd4   : > { %626 = vst [vmem:[#allocation4 + $0x70] sm:$0xff] %v605_v5  ;;  %v505_v8 = vsel %vm493_vm2, %v11895_v60, %v504_v6  ;;  %v708_v0 = vrot.slane %v11961_v57, 4 }
  0xd5   : > { %521 = vst [vmem:[#allocation4 + $0x64] sm:$0xff] %v505_v8  ;;  %1146 = vrot.lane.b32.xlu2 %v11804_v47, %s15209_s11  ;;  %1144 = vrot.lane.b32.xlu1 %v11790_v35, %s15209_s11  ;;  %v1203_v35 = vunpack.c.l.bf16 %v1192_v16  ;;  %v1224_v21 = vmax.f32 %v1208_v58, 0.0 }
  0xd6   : > { %522 = vst [vmem:[#allocation4 + $0x6c] sm:$0xf] %v506_v7  ;;  %1142 = vrot.lane.b32.xlu0 %v11965_v3, %s15209_s11 }
  0xd7   : > { %v11979_v17 = vpop.permute.xlu2 %700  ;;  %v586_v60 = vpop.permute.xlu1 %585  ;;  %v1219_v38 = vmax.f32 %v1203_v35, 0.0  ;;  %v12029_v11 = vpack.c.bf16 %v1224_v21, %v1223_v1 }
  0xd8   : > { %v598_v19 = vrot.slane %v586_v60, 4  ;;  %v584_v23 = vpop.permute.xlu0 %583  ;;  %v711_v15 = vrot.slane %v11979_v17, 4 }
  0xd9   : > { %v597_v47 = vrot.slane %v584_v23, 4  ;;  %v12005_v51 = vpack.c.bf16 %v1220_v40, %v1219_v38 }
  0xda   : > { %v610_v28 = vsel %vm604_vm3, %v586_v60, %v598_v19 }
  0xdb   : > { %629 = vst [vmem:[#allocation4 + $0x88] sm:$0xf] %v610_v28  ;;  %v606_v20 = vsel %vm380_vm0, %v596_v53, %v597_v47  ;;  %v608_v32 = vsel %vm380_vm0, %v597_v47, %v598_v19  ;;  %v1210_v53 = vunpack.c.h.bf16 %v1195_v24 }
  0xdc   : > { %v607_v33 = vsel %vm604_vm3, %v11910_v10, %v606_v20  ;;  %v609_v34 = vsel %vm604_vm3, %v584_v23, %v608_v32 }
  0xdd   : > { %627 = vst [vmem:[#allocation4 + $0x78] sm:$0xff] %v607_v33  ;;  %1247 = vrot.lane.b32.xlu2 %v11982_v25, %s15163_s13  ;;  %1245 = vrot.lane.b32.xlu1 %v11984_v26, %s15163_s13 }
  0xde   : > { %628 = vst [vmem:[#allocation4 + $0x80] sm:$0xff] %v609_v34  ;;  %1148 = vrot.lane.b32.xlu0 %v11987_v29, %s15209_s11 }
  0xdf   : > { %v12001_v10 = vpop.permute.xlu2 %801  ;;  %v592_v44 = vpop.permute.xlu1 %591 }
  0xe0   : > { %v601_v48 = vrot.slane %v592_v44, 4  ;;  %v590_v49 = vpop.permute.xlu0 %589 }
  0xe1   : > { %v600_v50 = vrot.slane %v590_v49, 4 }
  0xe2   : > { %v615_v54 = vsel %vm380_vm0, %v601_v48, %v602_v41  ;;  %v1226_v41 = vmax.f32 %v1210_v53, 0.0 }
  0xe3   : > { %v616_v59 = vsel %vm604_vm3, %v592_v44, %v615_v54  ;;  %v611_v61 = vsel %vm380_vm0, %v599_v46, %v600_v50  ;;  %v613_v62 = vsel %vm380_vm0, %v600_v50, %v601_v48 }
  0xe4   : > { %632 = vst [vmem:[#allocation4 + $0x9c] sm:$0xff] %v616_v59  ;;  %v612_v63 = vsel %vm604_vm3, %v11923_v22, %v611_v61  ;;  %v614_v36 = vsel %vm604_vm3, %v590_v49, %v613_v62  ;;  %v12025_v7 = vpack.c.bf16 %v1226_v41, %v1225_v37 }
  0xe5   : > { %630 = vst [vmem:[#allocation4 + $0x8c] sm:$0xff] %v612_v63  ;;  %1253 = vrot.lane.b32.xlu2 %v11965_v3, %s15163_s13  ;;  %1251 = vrot.lane.b32.xlu1 %v12005_v51, %s15163_s13 }
  0xe6   : > { %631 = vst [vmem:[#allocation4 + $0x94] sm:$0xff] %v614_v36  ;;  %1249 = vrot.lane.b32.xlu0 %v12010_v55, %s15163_s13 }
  0xe7   : > { %v808_v22 = vpop.permute.xlu2 %807  ;;  %v693_v2 = vpop.permute.xlu1 %692 }
  0xe8   : > { %v820_v4 = vrot.slane %v808_v22, 4  ;;  %v707_v39 = vrot.slane %v693_v2, 4  ;;  %v691_v5 = vpop.permute.xlu0 %690 }
  0xe9   : > { %v706_v6 = vrot.slane %v691_v5, 4 }
  0xea   : > { %v832_v8 = vsel %vm826_vm4, %v808_v22, %v820_v4  ;;  %v717_v9 = vsel %vm380_vm0, %v707_v39, %v708_v0 }
  0xeb   : > { %851 = vst [vmem:[#allocation4 + $0xf8] sm:$0xf] %v832_v8  ;;  %v718_v12 = vsel %vm715_vm5, %v693_v2, %v717_v9  ;;  %v714_v13 = vsel %vm380_vm0, %v706_v6, %v707_v39 }
  0xec   : > { %738 = vst [vmem:[#allocation4 + $0xb0] sm:$0xff] %v718_v12  ;;  %v716_v14 = vsel %vm715_vm5, %v691_v5, %v714_v13 }
  0xed   : > { %737 = vst [vmem:[#allocation4 + $0xa8] sm:$0xff] %v716_v14  ;;  %1259 = vrot.lane.b32.xlu2 %v11987_v29, %s15163_s13  ;;  %1257 = vrot.lane.b32.xlu1 %v12025_v7, %s15163_s13 }
  0xee   : > { %1255 = vrot.lane.b32.xlu0 %v12029_v11, %s15163_s13  ;;  %s15167_s13 = smov 118  }
  0xef   : > { %v12041_v16 = vpop.permute.xlu2 %813  ;;  %v699_v60 = vpop.permute.xlu1 %698 }
  0xf0   : > { %v710_v18 = vrot.slane %v699_v60, 4  ;;  %v697_v19 = vpop.permute.xlu0 %696  ;;  %v823_v58 = vrot.slane %v12041_v16, 4 }
  0xf1   : > { %v709_v23 = vrot.slane %v697_v19, 4 }
  0xf2   : > { %v722_v47 = vsel %vm380_vm0, %v710_v18, %v711_v15 }
  0xf3   : > { %v723_v35 = vsel %vm715_vm5, %v699_v60, %v722_v47  ;;  %v719_v27 = vsel %vm380_vm0, %v708_v0, %v709_v23  ;;  %v721_v28 = vsel %vm715_vm5, %v697_v19, %v709_v23 }
  0xf4   : > { %741 = vst [vmem:[#allocation4 + $0xc4] sm:$0xff] %v723_v35  ;;  %v720_v30 = vsel %vm715_vm5, %v11961_v57, %v719_v27 }
  0xf5   : > { %739 = vst [vmem:[#allocation4 + $0xb8] sm:$0xff] %v720_v30  ;;  %1360 = vrot.lane.b32.xlu2 %v12010_v55, %s15165_s16  ;;  %1358 = vrot.lane.b32.xlu1 %v11982_v25, %s15165_s16 }
  0xf6   : > { %740 = vst [vmem:[#allocation4 + $0xc0] sm:$0xf] %v721_v28  ;;  %1356 = vrot.lane.b32.xlu0 %v11984_v26, %s15165_s16 }
  0xf7   : > { %v12055_v31 = vpop.permute.xlu2 %914  ;;  %v705_v20 = vpop.permute.xlu1 %704 }
  0xf8   : > { %v713_v32 = vrot.slane %v705_v20, 4  ;;  %v703_v33 = vpop.permute.xlu0 %702  ;;  %v929_v22 = vrot.slane %v12055_v31, 4 }
  0xf9   : > { %v712_v34 = vrot.slane %v703_v33, 4 }
  0xfa   : > { %v728_v57 = vsel %vm715_vm5, %v705_v20, %v713_v32 }
  0xfb   : > { %744 = vst [vmem:[#allocation4 + $0xdc] sm:$0xf] %v728_v57  ;;  %v724_v38 = vsel %vm380_vm0, %v711_v15, %v712_v34  ;;  %v726_v40 = vsel %vm380_vm0, %v712_v34, %v713_v32 }
  0xfc   : > { %v725_v42 = vsel %vm715_vm5, %v11979_v17, %v724_v38  ;;  %v727_v43 = vsel %vm715_vm5, %v703_v33, %v726_v40  ;;  %v817_v17 = vrot.slane %v12001_v10, 4 }
  0xfd   : > { %742 = vst [vmem:[#allocation4 + $0xcc] sm:$0xff] %v725_v42  ;;  %1366 = vrot.lane.b32.xlu2 %v12029_v11, %s15165_s16  ;;  %1364 = vrot.lane.b32.xlu1 %v11965_v3, %s15165_s16 }
  0xfe   : > { %743 = vst [vmem:[#allocation4 + $0xd4] sm:$0xff] %v727_v43  ;;  %1362 = vrot.lane.b32.xlu0 %v12005_v51, %s15165_s16 }
  0xff   : > { %v12069_v24 = vpop.permute.xlu2 %920  ;;  %v806_v44 = vpop.permute.xlu1 %805 }
 0x100   : > { %v819_v45 = vrot.slane %v806_v44, 4  ;;  %v804_v46 = vpop.permute.xlu0 %803 }
 0x101   : > { %v818_v48 = vrot.slane %v804_v46, 4 }
 0x102   : > { %v830_v49 = vsel %vm380_vm0, %v819_v45, %v820_v4 }
 0x103   : > { %v831_v50 = vsel %vm826_vm4, %v806_v44, %v830_v49  ;;  %v825_v52 = vsel %vm380_vm0, %v817_v17, %v818_v48  ;;  %v828_v53 = vsel %vm380_vm0, %v818_v48, %v819_v45 }
 0x104   : > { %850 = vst [vmem:[#allocation4 + $0xf0] sm:$0xff] %v831_v50  ;;  %v827_v54 = vsel %vm826_vm4, %v12001_v10, %v825_v52  ;;  %v829_v56 = vsel %vm826_vm4, %v804_v46, %v828_v53 }
 0x105   : > { %848 = vst [vmem:[#allocation4 + $0xe0] sm:$0xff] %v827_v54  ;;  %1467 = vrot.lane.b32.xlu2 %v11984_v26, %s15171_s17  ;;  %1370 = vrot.lane.b32.xlu1 %v11987_v29, %s15165_s16 }
 0x106   : > { %849 = vst [vmem:[#allocation4 + $0xe8] sm:$0xff] %v829_v56  ;;  %1368 = vrot.lane.b32.xlu0 %v12025_v7, %s15165_s16  ;;  %s15169_s16 = smov 117  }
 0x107   : > { %v927_v59 = vpop.permute.xlu2 %926  ;;  %v812_v61 = vpop.permute.xlu1 %811 }
 0x108   : > { %v935_v62 = vrot.slane %v927_v59, 4  ;;  %v822_v10 = vrot.slane %v812_v61, 4  ;;  %v810_v63 = vpop.permute.xlu0 %809 }
 0x109   : > { %v821_v36 = vrot.slane %v810_v63, 4 }
 0x10a   : > { %v950_v37 = vsel %vm937_vm6, %v927_v59, %v935_v62  ;;  %v835_v41 = vsel %vm380_vm0, %v822_v10, %v823_v58 }
 0x10b   : > { %966 = vst [vmem:[#allocation4 + $0x14c] sm:$0xf] %v950_v37  ;;  %v836_v0 = vsel %vm826_vm4, %v812_v61, %v835_v41  ;;  %v833_v1 = vsel %vm380_vm0, %v821_v36, %v822_v10 }
 0x10c   : > { %853 = vst [vmem:[#allocation4 + $0x104] sm:$0xff] %v836_v0  ;;  %v834_v21 = vsel %vm826_vm4, %v810_v63, %v833_v1 }
 0x10d   : > { %852 = vst [vmem:[#allocation4 + $0xfc] sm:$0xff] %v834_v21  ;;  %1473 = vrot.lane.b32.xlu2 %v12005_v51, %s15171_s17  ;;  %1471 = vrot.lane.b32.xlu1 %v12010_v55, %s15171_s17 }
 0x10e   : > { %1469 = vrot.lane.b32.xlu0 %v11982_v25, %s15171_s17 }
 0x10f   : > { %v12098_v2 = vpop.permute.xlu2 %1027  ;;  %v913_v4 = vpop.permute.xlu1 %912 }
 0x110   : > { %v928_v39 = vrot.slane %v913_v4, 4  ;;  %v816_v5 = vpop.permute.xlu0 %815  ;;  %v1041_v45 = vrot.slane %v12098_v2, 4 }
 0x111   : > { %v824_v6 = vrot.slane %v816_v5, 4 }
 0x112   : > { %v936_v8 = vsel %vm380_vm0, %v928_v39, %v929_v22 }
 0x113   : > { %v938_v9 = vsel %vm937_vm6, %v913_v4, %v936_v8  ;;  %v837_v12 = vsel %vm380_vm0, %v823_v58, %v824_v6  ;;  %v839_v13 = vsel %vm826_vm4, %v816_v5, %v824_v6 }
 0x114   : > { %959 = vst [vmem:[#allocation4 + $0x118] sm:$0xff] %v938_v9  ;;  %v838_v14 = vsel %vm826_vm4, %v12041_v16, %v837_v12 }
 0x115   : > { %854 = vst [vmem:[#allocation4 + $0x10c] sm:$0xff] %v838_v14  ;;  %1479 = vrot.lane.b32.xlu2 %v12025_v7, %s15171_s17  ;;  %1477 = vrot.lane.b32.xlu1 %v12029_v11, %s15171_s17  ;;  %v1798_v14 = vld [vmem:[%s11768_s15 + $0x14] sm:$0xff] }
 0x116   : > { %855 = vst [vmem:[#allocation4 + $0x114] sm:$0xf] %v839_v13  ;;  %1475 = vrot.lane.b32.xlu0 %v11965_v3, %s15171_s17  ;;  %v1799_v13 = vld [vmem:[%s11768_s15 + $0x1c] sm:$0xff] }
 0x117   : > { %v12112_v15 = vpop.permute.xlu2 %1033  ;;  %v919_v60 = vpop.permute.xlu1 %918 }
 0x118   : > { %v931_v18 = vrot.slane %v919_v60, 4  ;;  %v917_v19 = vpop.permute.xlu0 %916  ;;  %v1044_v59 = vrot.slane %v12112_v15, 4 }
 0x119   : > { %v930_v23 = vrot.slane %v917_v19, 4 }
 0x11a   : > { %v943_v47 = vsel %vm937_vm6, %v919_v60, %v931_v18 }
 0x11b   : > { %962 = vst [vmem:[#allocation4 + $0x130] sm:$0xf] %v943_v47  ;;  %v939_v16 = vsel %vm380_vm0, %v929_v22, %v930_v23  ;;  %v941_v35 = vsel %vm380_vm0, %v930_v23, %v931_v18  ;;  %v1796_v22 = vld [vmem:[%s11768_s15 + $0x4] sm:$0xff]  ;;  %v1797_v23 = vld [vmem:[%s11768_s15 + $0xc] sm:$0xff]  ;;  %v1810_v47 = vunpack.c.l.bf16 %v1799_v13 }
 0x11c   : > { %v940_v27 = vsel %vm937_vm6, %v12055_v31, %v939_v16  ;;  %v942_v28 = vsel %vm937_vm6, %v917_v19, %v941_v35  ;;  %v932_v31 = vrot.slane %v12069_v24, 4  ;;  %v1804_v8 = vunpack.c.l.bf16 %v1796_v22 }
 0x11d   : > { %960 = vst [vmem:[#allocation4 + $0x120] sm:$0xff] %v940_v27  ;;  %1580 = vrot.lane.b32.xlu2 %v11982_v25, %s15175_s12  ;;  %1578 = vrot.lane.b32.xlu1 %v11984_v26, %s15175_s12  ;;  %v1805_v9 = vunpack.c.h.bf16 %v1796_v22  ;;  %v1811_v16 = vunpack.c.h.bf16 %v1799_v13  ;;  %v1808_v35 = vunpack.c.l.bf16 %v1798_v14 }
 0x11e   : > { %961 = vst [vmem:[#allocation4 + $0x128] sm:$0xff] %v942_v28  ;;  %1481 = vrot.lane.b32.xlu0 %v11987_v29, %s15171_s17  ;;  %v1820_v18 = vmax.f32 %v1804_v8, 0.0  ;;  %v1809_v28 = vunpack.c.h.bf16 %v1798_v14  ;;  %s15224_s17 = smov 27  }
 0x11f   : > { %v12126_v30 = vpop.permute.xlu2 %1134  ;;  %v925_v20 = vpop.permute.xlu1 %924  ;;  %v1821_v19 = vmax.f32 %v1805_v9, 0.0 }
 0x120   : > { %v934_v32 = vrot.slane %v925_v20, 4  ;;  %v923_v33 = vpop.permute.xlu0 %922 }
 0x121   : > { %v933_v34 = vrot.slane %v923_v33, 4 }
 0x122   : > { %v948_v57 = vsel %vm380_vm0, %v934_v32, %v935_v62 }
 0x123   : > { %v949_v38 = vsel %vm937_vm6, %v925_v20, %v948_v57  ;;  %v944_v40 = vsel %vm380_vm0, %v932_v31, %v933_v34  ;;  %v946_v42 = vsel %vm380_vm0, %v933_v34, %v934_v32  ;;  %v12196_v34 = vpack.c.bf16 %v1821_v19, %v1820_v18 }
 0x124   : > { %965 = vst [vmem:[#allocation4 + $0x144] sm:$0xff] %v949_v38  ;;  %v945_v43 = vsel %vm937_vm6, %v12069_v24, %v944_v40  ;;  %v947_v44 = vsel %vm937_vm6, %v923_v33, %v946_v42  ;;  %v1807_v33 = vunpack.c.h.bf16 %v1797_v23  ;;  %v1826_v57 = vmax.f32 %v1810_v47, 0.0 }
 0x125   : > { %963 = vst [vmem:[#allocation4 + $0x134] sm:$0xff] %v945_v43  ;;  %1586 = vrot.lane.b32.xlu2 %v11965_v3, %s15175_s12  ;;  %1584 = vrot.lane.b32.xlu1 %v12005_v51, %s15175_s12  ;;  %v1827_v38 = vmax.f32 %v1811_v16, 0.0  ;;  %v1824_v40 = vmax.f32 %v1808_v35, 0.0 }
 0x126   : > { %964 = vst [vmem:[#allocation4 + $0x13c] sm:$0xff] %v947_v44  ;;  %1582 = vrot.lane.b32.xlu0 %v12010_v55, %s15175_s12 }
 0x127   : > { %v12143_v46 = vpop.permute.xlu2 %1140  ;;  %v1026_v17 = vpop.permute.xlu1 %1025 }
 0x128   : > { %v1153_v24 = vrot.slane %v12143_v46, 4  ;;  %v1040_v48 = vrot.slane %v1026_v17, 4  ;;  %v1024_v49 = vpop.permute.xlu0 %1023 }
 0x129   : > { %v1039_v50 = vrot.slane %v1024_v49, 4 }
 0x12a   : > { %v1165_v52 = vsel %vm15204_vm7, %v12143_v46, %v1153_v24  ;;  %v1050_v53 = vsel %vm380_vm0, %v1040_v48, %v1041_v45 }
 0x12b   : > { %1184 = vst [vmem:[#allocation4 + $0x1a0] sm:$0xf] %v1165_v52  ;;  %v1051_v54 = vsel %vm1048_vm8, %v1026_v17, %v1050_v53  ;;  %v1047_v56 = vsel %vm380_vm0, %v1039_v50, %v1040_v48 }
 0x12c   : > { %1071 = vst [vmem:[#allocation4 + $0x158] sm:$0xff] %v1051_v54  ;;  %v1049_v58 = vsel %vm1048_vm8, %v1024_v49, %v1047_v56  ;;  %v1802_v49 = vld [vmem:[%s11768_s15 + $0x38] sm:$0xff]  ;;  %v12218_v54 = vpack.c.bf16 %v1827_v38, %v1826_v57 }
 0x12d   : > { %1070 = vst [vmem:[#allocation4 + $0x150] sm:$0xff] %v1049_v58  ;;  %1592 = vrot.lane.b32.xlu2 %v11987_v29, %s15175_s12  ;;  %1590 = vrot.lane.b32.xlu1 %v12025_v7, %s15175_s12  ;;  %v1800_v58 = vld [vmem:[%s11768_s15 + $0x28] sm:$0xff] }
 0x12e   : > { %1588 = vrot.lane.b32.xlu0 %v12029_v11, %s15175_s12  ;;  %v1813_v22 = vunpack.c.h.bf16 %v1800_v58  ;;  %s15199_s12 = smov 17  }
 0x12f   : > { %v12161_v61 = vpop.permute.xlu2 %1146  ;;  %v1032_v62 = vpop.permute.xlu1 %1031 }
 0x130   : > { %v1043_v10 = vrot.slane %v1032_v62, 4  ;;  %v1030_v63 = vpop.permute.xlu0 %1029  ;;  %v1156_v50 = vrot.slane %v12161_v61, 4  ;;  %v1829_v13 = vmax.f32 %v1813_v22, 0.0 }
 0x131   : > { %v1042_v36 = vrot.slane %v1030_v63, 4 }
 0x132   : > { %v1055_v37 = vsel %vm380_vm0, %v1043_v10, %v1044_v59 }
 0x133   : > { %v1056_v41 = vsel %vm1048_vm8, %v1032_v62, %v1055_v37  ;;  %v1052_v0 = vsel %vm380_vm0, %v1041_v45, %v1042_v36  ;;  %v1054_v1 = vsel %vm1048_vm8, %v1030_v63, %v1042_v36  ;;  %v1825_v45 = vmax.f32 %v1809_v28, 0.0 }
 0x134   : > { %1074 = vst [vmem:[#allocation4 + $0x16c] sm:$0xff] %v1056_v41  ;;  %v1053_v21 = vsel %vm1048_vm8, %v12098_v2, %v1052_v0  ;;  %v1816_v63 = vunpack.c.l.bf16 %v1802_v49  ;;  %v1817_v37 = vunpack.c.h.bf16 %v1802_v49 }
 0x135   : > { %1072 = vst [vmem:[#allocation4 + $0x160] sm:$0xff] %v1053_v21  ;;  %1693 = vrot.lane.b32.xlu2 %v12010_v55, %s15181_s2  ;;  %1691 = vrot.lane.b32.xlu1 %v11982_v25, %s15181_s2  ;;  %v12220_v56 = vpack.c.bf16 %v1825_v45, %v1824_v40  ;;  %v1812_v21 = vunpack.c.l.bf16 %v1800_v58 }
 0x136   : > { %1073 = vst [vmem:[#allocation4 + $0x168] sm:$0xf] %v1054_v1  ;;  %1689 = vrot.lane.b32.xlu0 %v11984_v26, %s15181_s2  ;;  %v1833_v8 = vmax.f32 %v1817_v37, 0.0 }
 0x137   : > { %v12176_v4 = vpop.permute.xlu2 %1247  ;;  %v1038_v39 = vpop.permute.xlu1 %1037 }
 0x138   : > { %v1046_v5 = vrot.slane %v1038_v39, 4  ;;  %v1036_v2 = vpop.permute.xlu0 %1035 }
 0x139   : > { %v1045_v6 = vrot.slane %v1036_v2, 4 }
 0x13a   : > { %v1061_v55 = vsel %vm1048_vm8, %v1038_v39, %v1046_v5 }
 0x13b   : > { %1077 = vst [vmem:[#allocation4 + $0x184] sm:$0xf] %v1061_v55  ;;  %v1057_v25 = vsel %vm380_vm0, %v1044_v59, %v1045_v6  ;;  %v1059_v12 = vsel %vm380_vm0, %v1045_v6, %v1046_v5  ;;  %v1832_v6 = vmax.f32 %v1816_v63, 0.0  ;;  %v10949_v38 = vld [vmem:[#allocation4 + $0x168] sm:$0xf0] }
 0x13c   : > { %v1058_v26 = vsel %vm1048_vm8, %v12112_v15, %v1057_v25  ;;  %v1060_v60 = vsel %vm1048_vm8, %v1036_v2, %v1059_v12  ;;  %v1262_v25 = vrot.slane %v12176_v4, 4  ;;  %v1828_v12 = vmax.f32 %v1812_v21, 0.0 }
 0x13d   : > { %1075 = vst [vmem:[#allocation4 + $0x174] sm:$0xff] %v1058_v26  ;;  %1699 = vrot.lane.b32.xlu2 %v12029_v11, %s15181_s2  ;;  %1697 = vrot.lane.b32.xlu1 %v11965_v3, %s15181_s2  ;;  %v1806_v11 = vunpack.c.l.bf16 %v1797_v23  ;;  %v1150_v3 = vrot.slane %v12126_v30, 4  ;;  %v12244_v47 = vpack.c.bf16 %v1833_v8, %v1832_v6 }
 0x13e   : > { %1076 = vst [vmem:[#allocation4 + $0x17c] sm:$0xff] %v1060_v60  ;;  %1695 = vrot.lane.b32.xlu0 %v12005_v51, %s15181_s2  ;;  %v1803_v60 = vld [vmem:[%s11768_s15 + $0x40] sm:$0xff] }
 0x13f   : > { %v12193_v15 = vpop.permute.xlu2 %1253  ;;  %v1139_v27 = vpop.permute.xlu1 %1138  ;;  %v1822_v48 = vmax.f32 %v1806_v11, 0.0  ;;  %v1818_v28 = vunpack.c.l.bf16 %v1803_v60 }
 0x140   : > { %v1152_v20 = vrot.slane %v1139_v27, 4  ;;  %v1137_v32 = vpop.permute.xlu0 %1136 }
 0x141   : > { %v1151_v31 = vrot.slane %v1137_v32, 4  ;;  %v1834_v40 = vmax.f32 %v1818_v28, 0.0 }
 0x142   : > { %v1163_v51 = vsel %vm380_vm0, %v1152_v20, %v1153_v24  ;;  %v1823_v24 = vmax.f32 %v1807_v33, 0.0 }
 0x143   : > { %v1164_v42 = vsel %vm15204_vm7, %v1139_v27, %v1163_v51  ;;  %v1158_v43 = vsel %vm380_vm0, %v1150_v3, %v1151_v31  ;;  %v1161_v44 = vsel %vm380_vm0, %v1151_v31, %v1152_v20  ;;  %v12249_v27 = vpack.c.bf16 %v1829_v13, %v1828_v12  ;;  %v10921_v12 = vld [vmem:[#allocation4 + $0x88] sm:$0xf0] }
 0x144   : > { %1183 = vst [vmem:[#allocation4 + $0x198] sm:$0xff] %v1164_v42  ;;  %v1160_v17 = vsel %vm15204_vm7, %v12126_v30, %v1158_v43  ;;  %v1162_v46 = vsel %vm15204_vm7, %v1137_v32, %v1161_v44  ;;  %v1801_v30 = vld [vmem:[%s11768_s15 + $0x30] sm:$0xff]  ;;  %v12224_v10 = vpack.c.bf16 %v1823_v24, %v1822_v48  ;;  %v1819_v20 = vunpack.c.h.bf16 %v1803_v60 }
 0x145   : > { %1181 = vst [vmem:[#allocation4 + $0x188] sm:$0xff] %v1160_v17  ;;  %1852 = vrot.lane.b32.xlu2 %v12196_v34, %s15183_s14  ;;  %1703 = vrot.lane.b32.xlu1 %v11987_v29, %s15181_s2  ;;  %v1815_v41 = vunpack.c.h.bf16 %v1801_v30  ;;  %v9348_v17 = vld [vmem:[#allocation4 + $0x150] sm:$0xf] }
 0x146   : > { %1182 = vst [vmem:[#allocation4 + $0x190] sm:$0xff] %v1162_v46  ;;  %1701 = vrot.lane.b32.xlu0 %v12025_v7, %s15181_s2  ;;  %v1814_v7 = vunpack.c.l.bf16 %v1801_v30  ;;  %v1835_v42 = vmax.f32 %v1819_v20, 0.0  ;;  %v9349_v48 = vor.u32 %v10949_v38, %v9348_v17  ;;  %v9180_v38 = vld [vmem:[#allocation4] sm:$0xf]  ;;  %s15197_s2 = smov 18  }
 0x147   : > { %v12216_v52 = vpop.permute.xlu2 %1259  ;;  %v1145_v53 = vpop.permute.xlu1 %1144  ;;  %v1831_v55 = vmax.f32 %v1815_v41, 0.0 }
 0x148   : > { %v1268_v59 = vrot.slane %v12216_v52, 4  ;;  %v1155_v29 = vrot.slane %v1145_v53, 4  ;;  %v1143_v62 = vpop.permute.xlu0 %1142  ;;  %v1830_v9 = vmax.f32 %v1814_v7, 0.0  ;;  %v12265_v49 = vpack.c.bf16 %v1835_v42, %v1834_v40 }
 0x149   : > { %v1154_v36 = vrot.slane %v1143_v62, 4 }
 0x14a   : > { %v1283_v0 = vsel %vm15179_vm9, %v12216_v52, %v1268_v59  ;;  %v1168_v1 = vsel %vm380_vm0, %v1155_v29, %v1156_v50  ;;  %v12246_v16 = vpack.c.bf16 %v1831_v55, %v1830_v9 }
 0x14b   : > { %1299 = vst [vmem:[#allocation4 + $0x1f4] sm:$0xf] %v1283_v0  ;;  %v1169_v39 = vsel %vm15204_vm7, %v1145_v53, %v1168_v1  ;;  %v1166_v5 = vsel %vm380_vm0, %v1154_v36, %v1155_v29  ;;  %v10935_v36 = vld [vmem:[#allocation4 + $0xf8] sm:$0xf0]  ;;  %v9292_v0 = vld [vmem:[#allocation4 + $0xe0] sm:$0xf] }
 0x14c   : > { %1186 = vst [vmem:[#allocation4 + $0x1ac] sm:$0xff] %v1169_v39  ;;  %v1167_v2 = vsel %vm15204_vm7, %v1143_v62, %v1166_v5  ;;  %v9376_v31 = vld [vmem:[#allocation4 + $0x188] sm:$0xf]  ;;  %v9320_v62 = vld [vmem:[#allocation4 + $0x118] sm:$0xf]  ;;  %v1265_v1 = vrot.slane %v12193_v15, 4  ;;  %v9293_v22 = vor.u32 %v10935_v36, %v9292_v0 }
 0x14d   : > { %1185 = vst [vmem:[#allocation4 + $0x1a4] sm:$0xff] %v1167_v2  ;;  %1858 = vrot.lane.b32.xlu2 %v12218_v54, %s15183_s14  ;;  %1856 = vrot.lane.b32.xlu1 %v12220_v56, %s15183_s14  ;;  %v10928_v5 = vld [vmem:[#allocation4 + $0xc0] sm:$0xf0] }
 0x14e   : > { %1854 = vrot.lane.b32.xlu0 %v12224_v10, %s15183_s14 }
 0x14f   : > { %v12241_v14 = vpop.permute.xlu2 %1360  ;;  %v1246_v26 = vpop.permute.xlu1 %1245 }
 0x150   : > { %v1261_v18 = vrot.slane %v1246_v26, 4  ;;  %v1149_v19 = vpop.permute.xlu0 %1148 }
 0x151   : > { %v1157_v23 = vrot.slane %v1149_v19, 4 }
 0x152   : > { %v1269_v35 = vsel %vm380_vm0, %v1261_v18, %v1262_v25 }
 0x153   : > { %v1271_v32 = vsel %vm15179_vm9, %v1246_v26, %v1269_v35  ;;  %v1170_v11 = vsel %vm380_vm0, %v1156_v50, %v1157_v23  ;;  %v1172_v33 = vsel %vm15204_vm7, %v1149_v19, %v1157_v23  ;;  %v10942_v50 = vld [vmem:[#allocation4 + $0x130] sm:$0xf0]  ;;  %v9236_v19 = vld [vmem:[#allocation4 + $0x70] sm:$0xf] }
 0x154   : > { %1292 = vst [vmem:[#allocation4 + $0x1c0] sm:$0xff] %v1271_v32  ;;  %v1171_v3 = vsel %vm15204_vm7, %v12161_v61, %v1170_v11  ;;  %v10956_v51 = vld [vmem:[#allocation4 + $0x1a0] sm:$0xf0]  ;;  %v9321_v63 = vor.u32 %v10942_v50, %v9320_v62  ;;  %v9237_v35 = vor.u32 %v10921_v12, %v9236_v19  ;;  %v10914_v32 = vld [vmem:[#allocation4 + $0x50] sm:$0xf0]  ;;  %vm4450_vm7 = vcmask 392192  }
 0x155   : > { %1187 = vst [vmem:[#allocation4 + $0x1b4] sm:$0xff] %v1171_v3  ;;  %1864 = vrot.lane.b32.xlu2 %v12244_v47, %s15183_s14  ;;  %1862 = vrot.lane.b32.xlu1 %v12246_v16, %s15183_s14  ;;  %v9377_v57 = vor.u32 %v10956_v51, %v9376_v31  ;;  %v9208_v31 = vld [vmem:[#allocation4 + $0x38] sm:$0xf] }
 0x156   : > { %1188 = vst [vmem:[#allocation4 + $0x1bc] sm:$0xf] %v1172_v33  ;;  %1860 = vrot.lane.b32.xlu0 %v12249_v27, %s15183_s14  ;;  %v9209_v51 = vor.u32 %v10914_v32, %v9208_v31  ;;  %v2351_v31 = vld [vmem:[%s11768_s15 + $0x4] sm:$0xff] }
 0x157   : > { %4454 = vmatpush.bf16.msra.mxu0 %v9377_v57  ;;  %v12262_v43 = vpop.permute.xlu2 %1366  ;;  %v1252_v61 = vpop.permute.xlu1 %1251 }
 0x158   : > { %v1264_v44 = vrot.slane %v1252_v61, 4  ;;  %v1250_v45 = vpop.permute.xlu0 %1249  ;;  %v1377_v57 = vrot.slane %v12262_v43, 4 }
 0x159   : > { %v1263_v46 = vrot.slane %v1250_v45, 4 }
 0x15a   : > { %v1276_v24 = vsel %vm15179_vm9, %v1252_v61, %v1264_v44 }
 0x15b   : > { %1295 = vst [vmem:[#allocation4 + $0x1d8] sm:$0xf] %v1276_v24  ;;  %v1272_v30 = vsel %vm380_vm0, %v1262_v25, %v1263_v46  ;;  %v1274_v53 = vsel %vm380_vm0, %v1263_v46, %v1264_v44  ;;  %4455 = vmatpush.bf16.msra.mxu0 %v9349_v48  ;;  %v9264_v25 = vld [vmem:[#allocation4 + $0xa8] sm:$0xf] }
 0x15c   : > { %v1273_v58 = vsel %vm15179_vm9, %v12176_v4, %v1272_v30  ;;  %v1275_v29 = vsel %vm15179_vm9, %v1250_v45, %v1274_v53  ;;  %v9265_v52 = vor.u32 %v10928_v5, %v9264_v25  ;;  %v10907_v45 = vld [vmem:[#allocation4 + $0x18] sm:$0xf0] }
 0x15d   : > { %1293 = vst [vmem:[#allocation4 + $0x1c8] sm:$0xff] %v1273_v58  ;;  %1965 = vrot.lane.b32.xlu2 %v12224_v10, %s15185_s9  ;;  %1963 = vrot.lane.b32.xlu1 %v12196_v34, %s15185_s9  ;;  %v9181_v46 = vor.u32 %v10907_v45, %v9180_v38  ;;  %v2360_v38 = vunpack.c.h.bf16 %v2351_v31 }
 0x15e   : > { %1294 = vst [vmem:[#allocation4 + $0x1d0] sm:$0xff] %v1275_v29  ;;  %1866 = vrot.lane.b32.xlu0 %v12265_v49, %s15183_s14  ;;  %s15201_s14 = smov 37  }
 0x15f   : > { %4456 = vmatpush.bf16.msra.mxu0 %v9321_v63  ;;  %v12278_v37 = vpop.permute.xlu2 %1467  ;;  %v1258_v4 = vpop.permute.xlu1 %1257 }
 0x160   : > { %v1267_v7 = vrot.slane %v1258_v4, 4  ;;  %v1256_v41 = vpop.permute.xlu0 %1255 }
 0x161   : > { %v1266_v21 = vrot.slane %v1256_v41, 4 }
 0x162   : > { %v1281_v39 = vsel %vm380_vm0, %v1267_v7, %v1268_v59  ;;  %v1374_v59 = vrot.slane %v12241_v14, 4 }
 0x163   : > { %v1282_v2 = vsel %vm15179_vm9, %v1258_v4, %v1281_v39  ;;  %v1277_v6 = vsel %vm380_vm0, %v1265_v1, %v1266_v21  ;;  %v1279_v8 = vsel %vm380_vm0, %v1266_v21, %v1267_v7  ;;  %4457 = vmatpush.bf16.msra.mxu0 %v9293_v22 }
 0x164   : > { %1298 = vst [vmem:[#allocation4 + $0x1ec] sm:$0xff] %v1282_v2  ;;  %v1278_v9 = vsel %vm15179_vm9, %v12193_v15, %v1277_v6  ;;  %v1280_v55 = vsel %vm15179_vm9, %v1256_v41, %v1279_v8  ;;  %vm15188_vm9 = vcmask 957440  }
 0x165   : > { %1296 = vst [vmem:[#allocation4 + $0x1dc] sm:$0xff] %v1278_v9  ;;  %1971 = vrot.lane.b32.xlu2 %v12249_v27, %s15185_s9  ;;  %1969 = vrot.lane.b32.xlu1 %v12218_v54, %s15185_s9 }
 0x166   : > { %1297 = vst [vmem:[#allocation4 + $0x1e4] sm:$0xff] %v1280_v55  ;;  %1967 = vrot.lane.b32.xlu0 %v12220_v56, %s15185_s9 }
 0x167   : > { %4458 = vmatpush.bf16.msra.mxu0 %v9265_v52  ;;  %v12297_v15 = vpop.permute.xlu2 %1473  ;;  %v1359_v13 = vpop.permute.xlu1 %1358 }
 0x168   : > { %v1486_v26 = vrot.slane %v12297_v15, 4  ;;  %v1373_v60 = vrot.slane %v1359_v13, 4  ;;  %v1357_v18 = vpop.permute.xlu0 %1356 }
 0x169   : > { %v1372_v23 = vrot.slane %v1357_v18, 4 }
 0x16a   : > { %v1498_v28 = vsel %vm15189_vm10, %v12297_v15, %v1486_v26  ;;  %v1383_v20 = vsel %vm380_vm0, %v1373_v60, %v1374_v59 }
 0x16b   : > { %1517 = vst [vmem:[#allocation4 + $0x248] sm:$0xf] %v1498_v28  ;;  %v1384_v11 = vsel %vm15180_vm11, %v1359_v13, %v1383_v20  ;;  %v1380_v33 = vsel %vm380_vm0, %v1372_v23, %v1373_v60  ;;  %4459 = vmatpush.bf16.msra.mxu0 %v9237_v35 }
 0x16c   : > { %1404 = vst [vmem:[#allocation4 + $0x200] sm:$0xff] %v1384_v11  ;;  %v1382_v3 = vsel %vm15180_vm11, %v1357_v18, %v1380_v33 }
 0x16d   : > { %1403 = vst [vmem:[#allocation4 + $0x1f8] sm:$0xff] %v1382_v3  ;;  %1977 = vrot.lane.b32.xlu2 %v12265_v49, %s15185_s9  ;;  %1975 = vrot.lane.b32.xlu1 %v12244_v47, %s15185_s9 }
 0x16e   : > { %1973 = vrot.lane.b32.xlu0 %v12246_v16, %s15185_s9  ;;  %s15195_s9 = smov 19  }
 0x16f   : > { %4460 = vmatpush.bf16.msra.mxu0 %v9209_v51  ;;  %v12315_v40 = vpop.permute.xlu2 %1479  ;;  %v1365_v42 = vpop.permute.xlu1 %1364 }
 0x170   : > { %v1376_v61 = vrot.slane %v1365_v42, 4  ;;  %v1363_v44 = vpop.permute.xlu0 %1362  ;;  %v1489_v52 = vrot.slane %v12315_v40, 4 }
 0x171   : > { %v1375_v17 = vrot.slane %v1363_v44, 4 }
 0x172   : > { %v1388_v48 = vsel %vm380_vm0, %v1376_v61, %v1377_v57 }
 0x173   : > { %v1389_v24 = vsel %vm15180_vm11, %v1365_v42, %v1388_v48  ;;  %v1385_v50 = vsel %vm380_vm0, %v1374_v59, %v1375_v17  ;;  %v1387_v30 = vsel %vm15180_vm11, %v1363_v44, %v1375_v17  ;;  %4461 = vmatpush.bf16.msra.mxu0 %v9181_v46  ;;  %v2376_v46 = vmax.f32 %v2360_v38, 0.0 }
 0x174   : > { %1407 = vst [vmem:[#allocation4 + $0x214] sm:$0xff] %v1389_v24  ;;  %v1386_v53 = vsel %vm15180_vm11, %v12241_v14, %v1385_v50 }
 0x175   : > { %1405 = vst [vmem:[#allocation4 + $0x208] sm:$0xff] %v1386_v53  ;;  %2078 = vrot.lane.b32.xlu2 %v12220_v56, %s15167_s13  ;;  %2076 = vrot.lane.b32.xlu1 %v12224_v10, %s15167_s13 }
 0x176   : > { %1406 = vst [vmem:[#allocation4 + $0x210] sm:$0xf] %v1387_v30  ;;  %2074 = vrot.lane.b32.xlu0 %v12196_v34, %s15167_s13 }
 0x177   : > { %v12329_v58 = vpop.permute.xlu2 %1580  ;;  %v1371_v29 = vpop.permute.xlu1 %1370 }
 0x178   : > { %v1379_v62 = vrot.slane %v1371_v29, 4  ;;  %v1369_v63 = vpop.permute.xlu0 %1368  ;;  %v1595_v28 = vrot.slane %v12329_v58, 4 }
 0x179   : > { %v1378_v36 = vrot.slane %v1369_v63, 4 }
 0x17a   : > { %v1394_v14 = vsel %vm15180_vm11, %v1371_v29, %v1379_v62 }
 0x17b   : > { %1410 = vst [vmem:[#allocation4 + $0x22c] sm:$0xf] %v1394_v14  ;;  %v1390_v4 = vsel %vm380_vm0, %v1377_v57, %v1378_v36  ;;  %v1392_v7 = vsel %vm380_vm0, %v1378_v36, %v1379_v62  ;;  %v2359_v57 = vunpack.c.l.bf16 %v2351_v31 }
 0x17c   : > { %v1391_v41 = vsel %vm15180_vm11, %v12262_v43, %v1390_v4  ;;  %v1393_v0 = vsel %vm15180_vm11, %v1369_v63, %v1392_v7  ;;  %v1483_v43 = vrot.slane %v12278_v37, 4  ;;  %vm15187_vm11 = vcmask 965632  }
 0x17d   : > { %1408 = vst [vmem:[#allocation4 + $0x21c] sm:$0xff] %v1391_v41  ;;  %2084 = vrot.lane.b32.xlu2 %v12246_v16, %s15167_s13  ;;  %2082 = vrot.lane.b32.xlu1 %v12249_v27, %s15167_s13  ;;  %v2375_v17 = vmax.f32 %v2359_v57, 0.0 }
 0x17e   : > { %1409 = vst [vmem:[#allocation4 + $0x224] sm:$0xff] %v1393_v0  ;;  %2080 = vrot.lane.b32.xlu0 %v12218_v54, %s15167_s13 }
 0x17f   : > { %v12343_v1 = vpop.permute.xlu2 %1586  ;;  %v1472_v21 = vpop.permute.xlu1 %1471  ;;  %v12395_v48 = vpack.c.bf16 %v2376_v46, %v2375_v17 }
 0x180   : > { %v1485_v22 = vrot.slane %v1472_v21, 4  ;;  %v1470_v39 = vpop.permute.xlu0 %1469 }
 0x181   : > { %v1484_v5 = vrot.slane %v1470_v39, 4  ;;  %1788 = vst [vmem:[#allocation4 + $0x2d8] sm:$0xff] %v12395_v48 }
 0x182   : > { %v1496_v2 = vsel %vm380_vm0, %v1485_v22, %v1486_v26 }
 0x183   : > { %v1497_v6 = vsel %vm15189_vm10, %v1472_v21, %v1496_v2  ;;  %v1491_v8 = vsel %vm380_vm0, %v1483_v43, %v1484_v5  ;;  %v1494_v9 = vsel %vm380_vm0, %v1484_v5, %v1485_v22 }
 0x184   : > { %1516 = vst [vmem:[#allocation4 + $0x240] sm:$0xff] %v1497_v6  ;;  %v1493_v55 = vsel %vm15189_vm10, %v12278_v37, %v1491_v8  ;;  %v1495_v25 = vsel %vm15189_vm10, %v1470_v39, %v1494_v9 }
 0x185   : > { %1514 = vst [vmem:[#allocation4 + $0x230] sm:$0xff] %v1493_v55  ;;  %2185 = vrot.lane.b32.xlu2 %v12196_v34, %s15169_s16  ;;  %2088 = vrot.lane.b32.xlu1 %v12265_v49, %s15167_s13 }
 0x186   : > { %1515 = vst [vmem:[#allocation4 + $0x238] sm:$0xff] %v1495_v25  ;;  %2086 = vrot.lane.b32.xlu0 %v12244_v47, %s15167_s13  ;;  %s15173_s13 = smov 39  }
 0x187   : > { %v12362_v59 = vpop.permute.xlu2 %1592  ;;  %v1478_v12 = vpop.permute.xlu1 %1477 }
 0x188   : > { %v1601_v37 = vrot.slane %v12362_v59, 4  ;;  %v1488_v15 = vrot.slane %v1478_v12, 4  ;;  %v1476_v13 = vpop.permute.xlu0 %1475 }
 0x189   : > { %v1487_v26 = vrot.slane %v1476_v13, 4 }
 0x18a   : > { %v1616_v60 = vsel %vm15191_vm12, %v12362_v59, %v1601_v37  ;;  %v1501_v18 = vsel %vm380_vm0, %v1488_v15, %v1489_v52  ;;  %v2799_v59 = vld [vmem:[%s11768_s15 + $0x28] sm:$0xff] }
 0x18b   : > { %1632 = vst [vmem:[#allocation4 + $0x29c] sm:$0xf] %v1616_v60  ;;  %v1502_v19 = vsel %vm15189_vm10, %v1478_v12, %v1501_v18  ;;  %v1499_v23 = vsel %vm380_vm0, %v1487_v26, %v1488_v15  ;;  %v2812_v26 = vunpack.c.h.bf16 %v2799_v59 }
 0x18c   : > { %1519 = vst [vmem:[#allocation4 + $0x254] sm:$0xff] %v1502_v19  ;;  %v1500_v35 = vsel %vm15189_vm10, %v1476_v13, %v1499_v23  ;;  %v2811_v13 = vunpack.c.l.bf16 %v2799_v59 }
 0x18d   : > { %1518 = vst [vmem:[#allocation4 + $0x24c] sm:$0xff] %v1500_v35  ;;  %2191 = vrot.lane.b32.xlu2 %v12218_v54, %s15169_s16  ;;  %2189 = vrot.lane.b32.xlu1 %v12220_v56, %s15169_s16  ;;  %v2828_v19 = vmax.f32 %v2812_v26, 0.0 }
 0x18e   : > { %2187 = vrot.lane.b32.xlu0 %v12224_v10, %s15169_s16  ;;  %v2827_v18 = vmax.f32 %v2811_v13, 0.0 }
 0x18f   : > { %v12380_v20 = vpop.permute.xlu2 %1693  ;;  %v1579_v32 = vpop.permute.xlu1 %1578 }
 0x190   : > { %v1594_v11 = vrot.slane %v1579_v32, 4  ;;  %v1482_v33 = vpop.permute.xlu0 %1481  ;;  %v1707_v6 = vrot.slane %v12380_v20, 4 }
 0x191   : > { %v1490_v3 = vrot.slane %v1482_v33, 4 }
 0x192   : > { %v1602_v51 = vsel %vm380_vm0, %v1594_v11, %v1595_v28  ;;  %v12453_v11 = vpack.c.bf16 %v2828_v19, %v2827_v18 }
 0x193   : > { %v1604_v42 = vsel %vm15191_vm12, %v1579_v32, %v1602_v51  ;;  %v1503_v61 = vsel %vm380_vm0, %v1489_v52, %v1490_v3  ;;  %v1505_v44 = vsel %vm15189_vm10, %v1482_v33, %v1490_v3  ;;  %v2354_v32 = vld [vmem:[%s11768_s15 + $0x1c] sm:$0xff] }
 0x194   : > { %1625 = vst [vmem:[#allocation4 + $0x268] sm:$0xff] %v1604_v42  ;;  %v1504_v45 = vsel %vm15189_vm10, %v12315_v40, %v1503_v61  ;;  %v2365_v51 = vunpack.c.l.bf16 %v2354_v32  ;;  %v2366_v57 = vunpack.c.h.bf16 %v2354_v32  ;;  %vm2876_vm10 = vcmask 220160  }
 0x195   : > { %1520 = vst [vmem:[#allocation4 + $0x25c] sm:$0xff] %v1504_v45  ;;  %2197 = vrot.lane.b32.xlu2 %v12244_v47, %s15169_s16  ;;  %2195 = vrot.lane.b32.xlu1 %v12246_v16, %s15169_s16 }
 0x196   : > { %1521 = vst [vmem:[#allocation4 + $0x264] sm:$0xf] %v1505_v44  ;;  %2193 = vrot.lane.b32.xlu0 %v12249_v27, %s15169_s16  ;;  %v2381_v45 = vmax.f32 %v2365_v51, 0.0  ;;  %v2382_v17 = vmax.f32 %v2366_v57, 0.0 }
 0x197   : > { %v12397_v24 = vpop.permute.xlu2 %1699  ;;  %v1585_v50 = vpop.permute.xlu1 %1584  ;;  %1792 = vst [vmem:[#allocation4 + $0x2f4] sm:$0xff] %v12453_v11 }
 0x198   : > { %v1597_v30 = vrot.slane %v1585_v50, 4  ;;  %v1583_v40 = vpop.permute.xlu0 %1582  ;;  %v1710_v23 = vrot.slane %v12397_v24, 4 }
 0x199   : > { %v1596_v53 = vrot.slane %v1583_v40, 4 }
 0x19a   : > { %v1609_v29 = vsel %vm15191_vm12, %v1585_v50, %v1597_v30 }
 0x19b   : > { %1628 = vst [vmem:[#allocation4 + $0x280] sm:$0xf] %v1609_v29  ;;  %v1605_v62 = vsel %vm380_vm0, %v1595_v28, %v1596_v53  ;;  %v1607_v63 = vsel %vm380_vm0, %v1596_v53, %v1597_v30  ;;  %v2357_v30 = vld [vmem:[%s11768_s15 + $0x38] sm:$0xff] }
 0x19c   : > { %v1606_v36 = vsel %vm15191_vm12, %v12329_v58, %v1605_v62  ;;  %v1608_v14 = vsel %vm15191_vm12, %v1583_v40, %v1607_v63  ;;  %v1598_v58 = vrot.slane %v12343_v1, 4  ;;  %v2371_v62 = vunpack.c.l.bf16 %v2357_v30 }
 0x19d   : > { %1626 = vst [vmem:[#allocation4 + $0x270] sm:$0xff] %v1606_v36  ;;  %2298 = vrot.lane.b32.xlu2 %v12224_v10, %s15173_s13  ;;  %2296 = vrot.lane.b32.xlu1 %v12196_v34, %s15173_s13  ;;  %v2372_v63 = vunpack.c.h.bf16 %v2357_v30 }
 0x19e   : > { %1627 = vst [vmem:[#allocation4 + $0x278] sm:$0xff] %v1608_v14  ;;  %2199 = vrot.lane.b32.xlu0 %v12265_v49, %s15169_s16  ;;  %s15177_s16 = smov 38  }
 0x19f   : > { %v12412_v4 = vpop.permute.xlu2 %1852  ;;  %v1591_v7 = vpop.permute.xlu1 %1590 }
 0x1a0   : > { %v1600_v41 = vrot.slane %v1591_v7, 4  ;;  %v1589_v0 = vpop.permute.xlu0 %1588 }
 0x1a1   : > { %v1599_v21 = vrot.slane %v1589_v0, 4 }
 0x1a2   : > { %v1614_v22 = vsel %vm380_vm0, %v1600_v41, %v1601_v37 }
 0x1a3   : > { %v1615_v39 = vsel %vm15191_vm12, %v1591_v7, %v1614_v22  ;;  %v1610_v34 = vsel %vm380_vm0, %v1598_v58, %v1599_v21  ;;  %v1612_v43 = vsel %vm380_vm0, %v1599_v21, %v1600_v41  ;;  %v2387_v41 = vmax.f32 %v2371_v62, 0.0  ;;  %v2800_v58 = vld [vmem:[%s11768_s15 + $0x30] sm:$0xff] }
 0x1a4   : > { %1631 = vst [vmem:[#allocation4 + $0x294] sm:$0xff] %v1615_v39  ;;  %v1611_v5 = vsel %vm15191_vm12, %v12343_v1, %v1610_v34  ;;  %v1613_v2 = vsel %vm15191_vm12, %v1589_v0, %v1612_v43  ;;  %v2388_v0 = vmax.f32 %v2372_v63, 0.0  ;;  %v2796_v39 = vld [vmem:[%s11768_s15 + $0xc] sm:$0xff]  ;;  %v1868_v43 = vrot.slane %v12412_v4, 4 }
 0x1a5   : > { %1629 = vst [vmem:[#allocation4 + $0x284] sm:$0xff] %v1611_v5  ;;  %2304 = vrot.lane.b32.xlu2 %v12249_v27, %s15173_s13  ;;  %2302 = vrot.lane.b32.xlu1 %v12218_v54, %s15173_s13  ;;  %vm3209_vm12 = vcmask 138240  }
 0x1a6   : > { %1630 = vst [vmem:[#allocation4 + $0x28c] sm:$0xff] %v1613_v2  ;;  %2300 = vrot.lane.b32.xlu0 %v12220_v56, %s15173_s13  ;;  %v2813_v2 = vunpack.c.l.bf16 %v2800_v58 }
 0x1a7   : > { %v12431_v8 = vpop.permute.xlu2 %1858  ;;  %v1692_v1 = vpop.permute.xlu1 %1691 }
 0x1a8   : > { %v1871_v9 = vrot.slane %v12431_v8, 4  ;;  %v1706_v55 = vrot.slane %v1692_v1, 4  ;;  %v1690_v25 = vpop.permute.xlu0 %1689 }
 0x1a9   : > { %v1705_v52 = vrot.slane %v1690_v25, 4 }
 0x1aa   : > { %v1883_v54 = vsel %vm15194_vm13, %v12431_v8, %v1871_v9  ;;  %v1716_v12 = vsel %vm380_vm0, %v1706_v55, %v1707_v6  ;;  %v2829_v8 = vmax.f32 %v2813_v2, 0.0 }
 0x1ab   : > { %1902 = vst [vmem:[#allocation4 + $0x328] sm:$0xf] %v1883_v54  ;;  %v1717_v37 = vsel %vm15193_vm14, %v1692_v1, %v1716_v12  ;;  %v1713_v15 = vsel %vm380_vm0, %v1705_v52, %v1706_v55  ;;  %v2805_v1 = vunpack.c.l.bf16 %v2796_v39  ;;  %v2806_v55 = vunpack.c.h.bf16 %v2796_v39 }
 0x1ac   : > { %1737 = vst [vmem:[#allocation4 + $0x2a8] sm:$0xff] %v1717_v37  ;;  %v1715_v60 = vsel %vm15193_vm14, %v1690_v25, %v1713_v15 }
 0x1ad   : > { %1736 = vst [vmem:[#allocation4 + $0x2a0] sm:$0xff] %v1715_v60  ;;  %2310 = vrot.lane.b32.xlu2 %v12265_v49, %s15173_s13  ;;  %2308 = vrot.lane.b32.xlu1 %v12244_v47, %s15173_s13  ;;  %v2821_v15 = vmax.f32 %v2805_v1, 0.0 }
 0x1ae   : > { %2306 = vrot.lane.b32.xlu0 %v12246_v16, %s15173_s13  ;;  %s15222_s13 = smov 28  }
 0x1af   : > { %v12450_v35 = vpop.permute.xlu2 %1864  ;;  %v1698_v28 = vpop.permute.xlu1 %1697 }
 0x1b0   : > { %v1709_v33 = vrot.slane %v1698_v28, 4  ;;  %v1696_v3 = vpop.permute.xlu0 %1695  ;;  %v1874_v37 = vrot.slane %v12450_v35, 4 }
 0x1b1   : > { %v1708_v31 = vrot.slane %v1696_v3, 4 }
 0x1b2   : > { %v1721_v47 = vsel %vm380_vm0, %v1709_v33, %v1710_v23 }
 0x1b3   : > { %v1722_v38 = vsel %vm15193_vm14, %v1698_v28, %v1721_v47  ;;  %v1718_v42 = vsel %vm380_vm0, %v1707_v6, %v1708_v31  ;;  %v1720_v61 = vsel %vm15193_vm14, %v1696_v3, %v1708_v31  ;;  %v12490_v6 = vpack.c.bf16 %v2388_v0, %v2387_v41 }
 0x1b4   : > { %1740 = vst [vmem:[#allocation4 + $0x2bc] sm:$0xff] %v1722_v38  ;;  %v1719_v44 = vsel %vm15193_vm14, %v12380_v20, %v1718_v42 }
 0x1b5   : > { %1738 = vst [vmem:[#allocation4 + $0x2b0] sm:$0xff] %v1719_v44  ;;  %2411 = vrot.lane.b32.xlu2 %v12220_v56, %s15177_s16  ;;  %2409 = vrot.lane.b32.xlu1 %v12224_v10, %s15177_s16  ;;  %v2394_v56 = vpack.c.bf16 %v2382_v17, %v2381_v45 }
 0x1b6   : > { %1739 = vst [vmem:[#allocation4 + $0x2b8] sm:$0xf] %v1720_v61  ;;  %2407 = vrot.lane.b32.xlu0 %v12395_v48, %s15177_s16 }
 0x1b7   : > { %v12468_v46 = vpop.permute.xlu2 %1965  ;;  %v1704_v50 = vpop.permute.xlu1 %1703 }
 0x1b8   : > { %v1712_v40 = vrot.slane %v1704_v50, 4  ;;  %v1702_v20 = vpop.permute.xlu0 %1701  ;;  %v1980_v51 = vrot.slane %v12468_v46, 4 }
 0x1b9   : > { %v1711_v53 = vrot.slane %v1702_v20, 4 }
 0x1ba   : > { %v1727_v29 = vsel %vm15193_vm14, %v1704_v50, %v1712_v40 }
 0x1bb   : > { %1743 = vst [vmem:[#allocation4 + $0x2d4] sm:$0xf] %v1727_v29  ;;  %v1723_v10 = vsel %vm380_vm0, %v1710_v23, %v1711_v53  ;;  %v1725_v36 = vsel %vm380_vm0, %v1711_v53, %v1712_v40 }
 0x1bc   : > { %v1724_v14 = vsel %vm15193_vm14, %v12397_v24, %v1723_v10  ;;  %v1726_v7 = vsel %vm15193_vm14, %v1702_v20, %v1725_v36  ;;  %vm3098_vm14 = vcmask 146432  }
 0x1bd   : > { %1741 = vst [vmem:[#allocation4 + $0x2c4] sm:$0xff] %v1724_v14  ;;  %2417 = vrot.lane.b32.xlu2 %v12246_v16, %s15177_s16  ;;  %2415 = vrot.lane.b32.xlu1 %v12249_v27, %s15177_s16  ;;  %v2814_v16 = vunpack.c.h.bf16 %v2800_v58 }
 0x1be   : > { %1742 = vst [vmem:[#allocation4 + $0x2cc] sm:$0xff] %v1726_v7  ;;  %2413 = vrot.lane.b32.xlu0 %v2394_v56, %s15177_s16 }
 0x1bf   : > { %v12483_v21 = vpop.permute.xlu2 %1971  ;;  %v1857_v22 = vpop.permute.xlu1 %1856 }
 0x1c0   : > { %v1870_v24 = vrot.slane %v1857_v22, 4  ;;  %v1855_v34 = vpop.permute.xlu0 %1854 }
 0x1c1   : > { %v1869_v5 = vrot.slane %v1855_v34, 4 }
 0x1c2   : > { %v1881_v27 = vsel %vm380_vm0, %v1870_v24, %v1871_v9  ;;  %v2830_v9 = vmax.f32 %v2814_v16, 0.0 }
 0x1c3   : > { %v1882_v25 = vsel %vm15194_vm13, %v1857_v22, %v1881_v27  ;;  %v1876_v52 = vsel %vm380_vm0, %v1868_v43, %v1869_v5  ;;  %v1879_v59 = vsel %vm380_vm0, %v1869_v5, %v1870_v24 }
 0x1c4   : > { %1901 = vst [vmem:[#allocation4 + $0x320] sm:$0xff] %v1882_v25  ;;  %v1878_v54 = vsel %vm15194_vm13, %v12412_v4, %v1876_v52  ;;  %v1880_v12 = vsel %vm15194_vm13, %v1855_v34, %v1879_v59  ;;  %v2822_v4 = vmax.f32 %v2806_v55, 0.0 }
 0x1c5   : > { %1899 = vst [vmem:[#allocation4 + $0x310] sm:$0xff] %v1878_v54  ;;  %2851 = vrot.lane.b32.xlu2 %v12395_v48, %s15224_s17  ;;  %2421 = vrot.lane.b32.xlu1 %v12265_v49, %s15177_s16  ;;  %v12508_v49 = vpack.c.bf16 %v2830_v9, %v2829_v8 }
 0x1c6   : > { %1900 = vst [vmem:[#allocation4 + $0x318] sm:$0xff] %v1880_v12  ;;  %2419 = vrot.lane.b32.xlu0 %v12490_v6, %s15177_s16  ;;  %v12513_v33 = vpack.c.bf16 %v2822_v4, %v2821_v15  ;;  %s15213_s16 = smov 29  }
 0x1c7   : > { %v12505_v13 = vpop.permute.xlu2 %1977  ;;  %v1863_v26 = vpop.permute.xlu1 %1862 }
 0x1c8   : > { %v1986_v60 = vrot.slane %v12505_v13, 4  ;;  %v1873_v18 = vrot.slane %v1863_v26, 4  ;;  %v1861_v19 = vpop.permute.xlu0 %1860 }
 0x1c9   : > { %v1872_v23 = vrot.slane %v1861_v19, 4 }
 0x1ca   : > { %v2001_v28 = vsel %vm15203_vm15, %v12505_v13, %v1986_v60  ;;  %v1886_v32 = vsel %vm380_vm0, %v1873_v18, %v1874_v37 }
 0x1cb   : > { %2017 = vst [vmem:[#allocation4 + $0x37c] sm:$0xf] %v2001_v28  ;;  %v1887_v3 = vsel %vm15194_vm13, %v1863_v26, %v1886_v32  ;;  %v1884_v31 = vsel %vm380_vm0, %v1872_v23, %v1873_v18  ;;  %v9544_v28 = vld [vmem:[#allocation4 + $0x2d8] sm:$0xf] }
 0x1cc   : > { %1904 = vst [vmem:[#allocation4 + $0x334] sm:$0xff] %v1887_v3  ;;  %v1885_v47 = vsel %vm15194_vm13, %v1861_v19, %v1884_v31  ;;  %v10998_v31 = vld [vmem:[#allocation4 + $0x2f0] sm:$0xf0] }
 0x1cd   : > { %1903 = vst [vmem:[#allocation4 + $0x32c] sm:$0xff] %v1885_v47  ;;  %2861 = vrot.lane.b32.xlu2 %v12508_v49, %s15224_s17  ;;  %2859 = vrot.lane.b32.xlu1 %v12453_v11, %s15224_s17  ;;  %v10995_v47 = vld [vmem:[#allocation4 + $0x2dc] sm:$0xf] }
 0x1ce   : > { %2853 = vrot.lane.b32.xlu0 %v12513_v33, %s15224_s17 }
 0x1cf   : > { %v12525_v57 = vpop.permute.xlu2 %2078  ;;  %v1964_v38 = vpop.permute.xlu1 %1963 }
 0x1d0   : > { %v1979_v42 = vrot.slane %v1964_v38, 4  ;;  %v1867_v61 = vpop.permute.xlu0 %1866  ;;  %v2092_v16 = vrot.slane %v12525_v57, 4 }
 0x1d1   : > { %v1875_v44 = vrot.slane %v1867_v61, 4 }
 0x1d2   : > { %v1987_v45 = vsel %vm380_vm0, %v1979_v42, %v1980_v51 }
 0x1d3   : > { %v1989_v17 = vsel %vm15203_vm15, %v1964_v38, %v1987_v45  ;;  %v1888_v50 = vsel %vm380_vm0, %v1874_v37, %v1875_v44  ;;  %v1890_v30 = vsel %vm15194_vm13, %v1867_v61, %v1875_v44  ;;  %v9572_v61 = vld [vmem:[#allocation4 + $0x310] sm:$0xf]  ;;  %v11002_v44 = vld [vmem:[#allocation4 + $0x314] sm:$0xf] }
 0x1d4   : > { %2010 = vst [vmem:[#allocation4 + $0x348] sm:$0xff] %v1989_v17  ;;  %v1889_v40 = vsel %vm15194_vm13, %v12450_v35, %v1888_v50  ;;  %v11005_v18 = vld [vmem:[#allocation4 + $0x328] sm:$0xf0]  ;;  %v9574_v23 = vld [vmem:[#allocation4 + $0x32c] sm:$0xf0]  ;;  %vm2543_vm13 = vcmask 302080  }
 0x1d5   : > { %1905 = vst [vmem:[#allocation4 + $0x33c] sm:$0xff] %v1889_v40  ;;  %2748 = vrot.lane.b32.xlu2 %v12453_v11, %s15222_s13  ;;  %2742 = vrot.lane.b32.xlu1 %v12513_v33, %s15222_s13  ;;  %v9573_v17 = vor.u32 %v11005_v18, %v9572_v61  ;;  %v9577_v50 = vor.u32 %v11002_v44, %v9574_v23  ;;  %v10970_v23 = vld [vmem:[#allocation4 + $0x210] sm:$0xf0]  ;;  %v10963_v44 = vld [vmem:[#allocation4 + $0x1d8] sm:$0xf0] }
 0x1d6   : > { %1906 = vst [vmem:[#allocation4 + $0x344] sm:$0xf] %v1890_v30  ;;  %2740 = vrot.lane.b32.xlu0 %v12395_v48, %s15222_s13  ;;  %v9545_v40 = vor.u32 %v10998_v31, %v9544_v28  ;;  %v9434_v28 = vld [vmem:[#allocation4 + $0x214] sm:$0xf0] }
 0x1d7   : > { %v12539_v20 = vpop.permute.xlu2 %2084  ;;  %v1970_v53 = vpop.permute.xlu1 %1969 }
 0x1d8   : > { %v1982_v29 = vrot.slane %v1970_v53, 4  ;;  %v1968_v56 = vpop.permute.xlu0 %1967  ;;  %v2095_v19 = vrot.slane %v12539_v20, 4 }
 0x1d9   : > { %v1981_v62 = vrot.slane %v1968_v56, 4 }
 0x1da   : > { %v1994_v35 = vsel %vm15203_vm15, %v1970_v53, %v1982_v29 }
 0x1db   : > { %2013 = vst [vmem:[#allocation4 + $0x360] sm:$0xf] %v1994_v35  ;;  %v1990_v63 = vsel %vm380_vm0, %v1980_v51, %v1981_v62  ;;  %v1992_v10 = vsel %vm380_vm0, %v1981_v62, %v1982_v29  ;;  %v9600_v9 = vld [vmem:[#allocation4 + $0x348] sm:$0xf]  ;;  %v11009_v37 = vld [vmem:[#allocation4 + $0x34c] sm:$0xf] }
 0x1dc   : > { %v1991_v36 = vsel %vm15203_vm15, %v12468_v46, %v1990_v63  ;;  %v1993_v14 = vsel %vm15203_vm15, %v1968_v56, %v1992_v10  ;;  %v1983_v46 = vrot.slane %v12483_v21, 4  ;;  %v9546_v51 = vld [vmem:[#allocation4 + $0x2f4] sm:$0xf0]  ;;  %v10991_v63 = vld [vmem:[#allocation4 + $0x2b8] sm:$0xf0] }
 0x1dd   : > { %2011 = vst [vmem:[#allocation4 + $0x350] sm:$0xff] %v1991_v36  ;;  %3186 = vrot.lane.b32.xlu2 %v12513_v33, %s15199_s12  ;;  %3184 = vrot.lane.b32.xlu1 %v12395_v48, %s15199_s12  ;;  %v9549_v53 = vor.u32 %v10995_v47, %v9546_v51  ;;  %v9518_v10 = vld [vmem:[#allocation4 + $0x2bc] sm:$0xf0] }
 0x1de   : > { %2012 = vst [vmem:[#allocation4 + $0x358] sm:$0xff] %v1993_v14  ;;  %2750 = vrot.lane.b32.xlu0 %v12508_v49, %s15222_s13 }
 0x1df   : > { %v12553_v7 = vpop.permute.xlu2 %2185  ;;  %v1976_v41 = vpop.permute.xlu1 %1975 }
 0x1e0   : > { %v1985_v0 = vrot.slane %v1976_v41, 4  ;;  %v1974_v58 = vpop.permute.xlu0 %1973 }
 0x1e1   : > { %v1984_v22 = vrot.slane %v1974_v58, 4 }
 0x1e2   : > { %v1999_v39 = vsel %vm380_vm0, %v1985_v0, %v1986_v60 }
 0x1e3   : > { %v2000_v24 = vsel %vm15203_vm15, %v1976_v41, %v1999_v39  ;;  %v1995_v34 = vsel %vm380_vm0, %v1983_v46, %v1984_v22  ;;  %v1997_v43 = vsel %vm380_vm0, %v1984_v22, %v1985_v0  ;;  %v9516_v0 = vld [vmem:[#allocation4 + $0x2a0] sm:$0xf] }
 0x1e4   : > { %2016 = vst [vmem:[#allocation4 + $0x374] sm:$0xff] %v2000_v24  ;;  %v1996_v5 = vsel %vm15203_vm15, %v12483_v21, %v1995_v34  ;;  %v1998_v2 = vsel %vm15203_vm15, %v1974_v58, %v1997_v43  ;;  %v10988_v58 = vld [vmem:[#allocation4 + $0x2a4] sm:$0xf]  ;;  %v9517_v22 = vor.u32 %v10991_v63, %v9516_v0  ;;  %v9490_v43 = vld [vmem:[#allocation4 + $0x284] sm:$0xf0]  ;;  %vm2987_vm15 = vcmask 154624  }
 0x1e5   : > { %2014 = vst [vmem:[#allocation4 + $0x364] sm:$0xff] %v1996_v5  ;;  %2629 = vrot.lane.b32.xlu2 %v12395_v48, %s15213_s16  ;;  %3194 = vrot.lane.b32.xlu1 %v12508_v49, %s15199_s12  ;;  %v9521_v39 = vor.u32 %v10988_v58, %v9518_v10  ;;  %v10984_v34 = vld [vmem:[#allocation4 + $0x280] sm:$0xf0] }
 0x1e6   : > { %2015 = vst [vmem:[#allocation4 + $0x36c] sm:$0xff] %v1998_v2  ;;  %3192 = vrot.lane.b32.xlu0 %v12453_v11, %s15199_s12 }
 0x1e7   : > { %v12570_v27 = vpop.permute.xlu2 %2191  ;;  %v2077_v21 = vpop.permute.xlu1 %2076 }
 0x1e8   : > { %v2204_v1 = vrot.slane %v12570_v27, 4  ;;  %v2091_v55 = vrot.slane %v2077_v21, 4  ;;  %v2075_v25 = vpop.permute.xlu0 %2074 }
 0x1e9   : > { %v2090_v52 = vrot.slane %v2075_v25, 4 }
 0x1ea   : > { %v2216_v59 = vsel %vm15188_vm9, %v12570_v27, %v2204_v1  ;;  %v2101_v54 = vsel %vm380_vm0, %v2091_v55, %v2092_v16  ;;  %v9432_v27 = vld [vmem:[#allocation4 + $0x1f8] sm:$0xf] }
 0x1eb   : > { %2235 = vst [vmem:[#allocation4 + $0x3d0] sm:$0xf] %v2216_v59  ;;  %v2102_v12 = vsel %vm15187_vm11, %v2077_v21, %v2101_v54  ;;  %v2098_v8 = vsel %vm380_vm0, %v2090_v52, %v2091_v55  ;;  %v9488_v55 = vld [vmem:[#allocation4 + $0x268] sm:$0xf]  ;;  %v10977_v54 = vld [vmem:[#allocation4 + $0x248] sm:$0xf0] }
 0x1ec   : > { %2122 = vst [vmem:[#allocation4 + $0x388] sm:$0xff] %v2102_v12  ;;  %v2100_v15 = vsel %vm15187_vm11, %v2075_v25, %v2098_v8  ;;  %v11012_v4 = vld [vmem:[#allocation4 + $0x360] sm:$0xf0]  ;;  %v9602_v13 = vld [vmem:[#allocation4 + $0x364] sm:$0xf0]  ;;  %v9489_v52 = vor.u32 %v10984_v34, %v9488_v55 }
 0x1ed   : > { %2121 = vst [vmem:[#allocation4 + $0x380] sm:$0xff] %v2100_v15  ;;  %2639 = vrot.lane.b32.xlu2 %v12508_v49, %s15213_s16  ;;  %2637 = vrot.lane.b32.xlu1 %v12453_v11, %s15213_s16  ;;  %v9601_v26 = vor.u32 %v11012_v4, %v9600_v9  ;;  %v9605_v60 = vor.u32 %v11009_v37, %v9602_v13  ;;  %v10981_v25 = vld [vmem:[#allocation4 + $0x26c] sm:$0xf]  ;;  %v9460_v15 = vld [vmem:[#allocation4 + $0x230] sm:$0xf]  ;;  %v2201_v13 = vrot.slane %v12553_v7, 4 }
 0x1ee   : > { %2631 = vrot.lane.b32.xlu0 %v12513_v33, %s15213_s16  ;;  %v9493_v59 = vor.u32 %v10981_v25, %v9490_v43  ;;  %v10974_v4 = vld [vmem:[#allocation4 + $0x234] sm:$0xf] }
 0x1ef   : > { %4468 = vmatpush.bf16.msra.mxu1 %v9601_v26  ;;  %4524 = vmatpush.bf16.msrb.mxu0 %v9605_v60  ;;  %v12588_v32 = vpop.permute.xlu2 %2197  ;;  %v2083_v3 = vpop.permute.xlu1 %2082  ;;  %v9461_v60 = vor.u32 %v10977_v54, %v9460_v15 }
 0x1f0   : > { %v2094_v38 = vrot.slane %v2083_v3, 4  ;;  %v2081_v42 = vpop.permute.xlu0 %2080 }
 0x1f1   : > { %v2093_v45 = vrot.slane %v2081_v42, 4 }
 0x1f2   : > { %v2106_v30 = vsel %vm380_vm0, %v2094_v38, %v2095_v19 }
 0x1f3   : > { %v2107_v29 = vsel %vm15187_vm11, %v2083_v3, %v2106_v30  ;;  %v2103_v56 = vsel %vm380_vm0, %v2092_v16, %v2093_v45  ;;  %v2105_v62 = vsel %vm15187_vm11, %v2081_v42, %v2093_v45  ;;  %4469 = vmatpush.bf16.msra.mxu1 %v9573_v17  ;;  %4525 = vmatpush.bf16.msrb.mxu0 %v9577_v50  ;;  %v10967_v42 = vld [vmem:[#allocation4 + $0x1fc] sm:$0xf]  ;;  %v9406_v45 = vld [vmem:[#allocation4 + $0x1dc] sm:$0xf0]  ;;  %v2207_v17 = vrot.slane %v12588_v32, 4 }
 0x1f4   : > { %2125 = vst [vmem:[#allocation4 + $0x39c] sm:$0xff] %v2107_v29  ;;  %v2104_v35 = vsel %vm15187_vm11, %v12525_v57, %v2103_v56  ;;  %v9437_v61 = vor.u32 %v10967_v42, %v9434_v28 }
 0x1f5   : > { %2123 = vst [vmem:[#allocation4 + $0x390] sm:$0xff] %v2104_v35  ;;  %3081 = vrot.lane.b32.xlu2 %v12453_v11, %s15197_s2  ;;  %3075 = vrot.lane.b32.xlu1 %v12513_v33, %s15197_s2 }
 0x1f6   : > { %2124 = vst [vmem:[#allocation4 + $0x398] sm:$0xf] %v2105_v62  ;;  %3073 = vrot.lane.b32.xlu0 %v12395_v48, %s15197_s2 }
 0x1f7   : > { %4470 = vmatpush.bf16.msra.mxu1 %v9545_v40  ;;  %4526 = vmatpush.bf16.msrb.mxu0 %v9549_v53  ;;  %v12602_v36 = vpop.permute.xlu2 %2298  ;;  %v2089_v14 = vpop.permute.xlu1 %2088  ;;  %v10960_v40 = vld [vmem:[#allocation4 + $0x1c4] sm:$0xf] }
 0x1f8   : > { %v2097_v57 = vrot.slane %v2089_v14, 4  ;;  %v2087_v41 = vpop.permute.xlu0 %2086  ;;  %v9409_v35 = vor.u32 %v10960_v40, %v9406_v45 }
 0x1f9   : > { %v2096_v46 = vrot.slane %v2087_v41, 4 }
 0x1fa   : > { %v2112_v24 = vsel %vm15187_vm11, %v2089_v14, %v2097_v57 }
 0x1fb   : > { %2128 = vst [vmem:[#allocation4 + $0x3b4] sm:$0xf] %v2112_v24  ;;  %v2108_v5 = vsel %vm380_vm0, %v2095_v19, %v2096_v46  ;;  %v2110_v2 = vsel %vm380_vm0, %v2096_v46, %v2097_v57  ;;  %4471 = vmatpush.bf16.msra.mxu1 %v9517_v22  ;;  %4527 = vmatpush.bf16.msrb.mxu0 %v9521_v39  ;;  %v2313_v24 = vrot.slane %v12602_v36, 4 }
 0x1fc   : > { %v2109_v16 = vsel %vm15187_vm11, %v12539_v20, %v2108_v5  ;;  %v2111_v21 = vsel %vm15187_vm11, %v2087_v41, %v2110_v2  ;;  %v9462_v20 = vld [vmem:[#allocation4 + $0x24c] sm:$0xf0]  ;;  %vm15190_vm11 = vcmask 318464  }
 0x1fd   : > { %2126 = vst [vmem:[#allocation4 + $0x3a4] sm:$0xff] %v2109_v16  ;;  %2520 = vrot.lane.b32.xlu2 %v12513_v33, %s15201_s14  ;;  %2518 = vrot.lane.b32.xlu1 %v12395_v48, %s15201_s14  ;;  %v9465_v18 = vor.u32 %v10974_v4, %v9462_v20 }
 0x1fe   : > { %2127 = vst [vmem:[#allocation4 + $0x3ac] sm:$0xff] %v2111_v21  ;;  %3083 = vrot.lane.b32.xlu0 %v12508_v49, %s15197_s2 }
 0x1ff   : > { %4472 = vmatpush.bf16.msra.mxu1 %v9489_v52  ;;  %4528 = vmatpush.bf16.msrb.mxu0 %v9493_v59  ;;  %v12616_v12 = vpop.permute.xlu2 %2304  ;;  %v2190_v8 = vpop.permute.xlu1 %2189 }
 0x200   : > { %v2203_v9 = vrot.slane %v2190_v8, 4  ;;  %v2188_v37 = vpop.permute.xlu0 %2187 }
 0x201   : > { %v2202_v26 = vrot.slane %v2188_v37, 4 }
 0x202   : > { %v2214_v19 = vsel %vm380_vm0, %v2203_v9, %v2204_v1  ;;  %v9433_v1 = vor.u32 %v10970_v23, %v9432_v27 }
 0x203   : > { %v2215_v3 = vsel %vm15188_vm9, %v2190_v8, %v2214_v19  ;;  %v2209_v31 = vsel %vm380_vm0, %v2201_v13, %v2202_v26  ;;  %v2212_v47 = vsel %vm380_vm0, %v2202_v26, %v2203_v9  ;;  %4473 = vmatpush.bf16.msra.mxu1 %v9461_v60  ;;  %4529 = vmatpush.bf16.msrb.mxu0 %v9465_v18  ;;  %v3023_v13 = vld [vmem:[%s11768_s15 + $0x38] sm:$0xff] }
 0x204   : > { %2234 = vst [vmem:[#allocation4 + $0x3c8] sm:$0xff] %v2215_v3  ;;  %v2211_v51 = vsel %vm15188_vm9, %v12553_v7, %v2209_v31  ;;  %v2213_v38 = vsel %vm15188_vm9, %v2188_v37, %v2212_v47  ;;  %v2686_v7 = vld [vmem:[%s11768_s15 + $0x14] sm:$0xff]  ;;  %v3037_v28 = vunpack.c.l.bf16 %v3023_v13  ;;  %v3038_v3 = vunpack.c.h.bf16 %v3023_v13 }
 0x205   : > { %2232 = vst [vmem:[#allocation4 + $0x3b8] sm:$0xff] %v2211_v51  ;;  %2962 = vrot.lane.b32.xlu2 %v12395_v48, %s15195_s9  ;;  %2528 = vrot.lane.b32.xlu1 %v12508_v49, %s15201_s14  ;;  %v9404_v48 = vld [vmem:[#allocation4 + $0x1c0] sm:$0xf]  ;;  %v2696_v10 = vunpack.c.l.bf16 %v2686_v7  ;;  %v2697_v14 = vunpack.c.h.bf16 %v2686_v7 }
 0x206   : > { %2233 = vst [vmem:[#allocation4 + $0x3c0] sm:$0xff] %v2213_v38  ;;  %2526 = vrot.lane.b32.xlu0 %v12453_v11, %s15201_s14  ;;  %v9405_v62 = vor.u32 %v10963_v44, %v9404_v48 }
 0x207   : > { %4474 = vmatpush.bf16.msra.mxu1 %v9433_v1  ;;  %4530 = vmatpush.bf16.msrb.mxu0 %v9437_v61  ;;  %v12636_v50 = vpop.permute.xlu2 %2310  ;;  %v2196_v30 = vpop.permute.xlu1 %2195  ;;  %v2712_v22 = vmax.f32 %v2696_v10, 0.0  ;;  %v2713_v39 = vmax.f32 %v2697_v14, 0.0  ;;  %v3053_v1 = vmax.f32 %v3037_v28, 0.0  ;;  %v3054_v61 = vmax.f32 %v3038_v3, 0.0 }
 0x208   : > { %v2319_v53 = vrot.slane %v12636_v50, 4  ;;  %v2206_v29 = vrot.slane %v2196_v30, 4  ;;  %v2194_v56 = vpop.permute.xlu0 %2193 }
 0x209   : > { %v2205_v63 = vrot.slane %v2194_v56, 4  ;;  %v12656_v21 = vpack.c.bf16 %v2713_v39, %v2712_v22  ;;  %v3063_v48 = vpack.c.bf16 %v3054_v61, %v3053_v1 }
 0x20a   : > { %v2334_v57 = vsel %vm15190_vm11, %v12636_v50, %v2319_v53  ;;  %v2219_v41 = vsel %vm380_vm0, %v2206_v29, %v2207_v17  ;;  %v2687_v50 = vld [vmem:[%s11768_s15 + $0x1c] sm:$0xff] }
 0x20b   : > { %2350 = vst [vmem:[#allocation4 + $0x424] sm:$0xf] %v2334_v57  ;;  %v2220_v0 = vsel %vm15188_vm9, %v2196_v30, %v2219_v41  ;;  %v2217_v58 = vsel %vm380_vm0, %v2205_v63, %v2206_v29  ;;  %4475 = vmatpush.bf16.msra.mxu1 %v9405_v62  ;;  %4531 = vmatpush.bf16.msrb.mxu0 %v9409_v35  ;;  %v2698_v29 = vunpack.c.l.bf16 %v2687_v50  ;;  %v2802_v41 = vld [vmem:[%s11768_s15 + $0x40] sm:$0xff] }
 0x20c   : > { %2237 = vst [vmem:[#allocation4 + $0x3dc] sm:$0xff] %v2220_v0  ;;  %v2218_v46 = vsel %vm15188_vm9, %v2194_v56, %v2217_v58  ;;  %v2699_v56 = vunpack.c.h.bf16 %v2687_v50  ;;  %v2817_v39 = vunpack.c.l.bf16 %v2802_v41 }
 0x20d   : > { %2236 = vst [vmem:[#allocation4 + $0x3d4] sm:$0xff] %v2218_v46  ;;  %2972 = vrot.lane.b32.xlu2 %v12508_v49, %s15195_s9  ;;  %2970 = vrot.lane.b32.xlu1 %v12453_v11, %s15195_s9  ;;  %v2714_v14 = vmax.f32 %v2698_v29, 0.0 }
 0x20e   : > { %2964 = vrot.lane.b32.xlu0 %v12513_v33, %s15195_s9  ;;  %v2715_v57 = vmax.f32 %v2699_v56, 0.0 }
 0x20f   : > { %v12654_v34 = vpop.permute.xlu2 %2411  ;;  %v2297_v43 = vpop.permute.xlu1 %2296 }
 0x210   : > { %v2312_v5 = vrot.slane %v2297_v43, 4  ;;  %v2200_v2 = vpop.permute.xlu0 %2199  ;;  %v2425_v44 = vrot.slane %v12654_v34, 4 }
 0x211   : > { %v2208_v16 = vrot.slane %v2200_v2, 4 }
 0x212   : > { %v2320_v49 = vsel %vm380_vm0, %v2312_v5, %v2313_v24 }
 0x213   : > { %v2322_v55 = vsel %vm15190_vm11, %v2297_v43, %v2320_v49  ;;  %v2221_v11 = vsel %vm380_vm0, %v2207_v17, %v2208_v16  ;;  %v2223_v25 = vsel %vm15188_vm9, %v2200_v2, %v2208_v16  ;;  %v12723_v16 = vpack.c.bf16 %v2715_v57, %v2714_v14 }
 0x214   : > { %2343 = vst [vmem:[#allocation4 + $0x3f0] sm:$0xff] %v2322_v55  ;;  %v2222_v33 = vsel %vm15188_vm9, %v12588_v32, %v2221_v11  ;;  %vm15192_vm9 = vcmask 310272   ;;  %v2833_v55 = vmax.f32 %v2817_v39, 0.0 }
 0x215   : > { %2238 = vst [vmem:[#allocation4 + $0x3e4] sm:$0xff] %v2222_v33  ;;  %2744 = vrot.lane.b32.xlu2 %v12656_v21, %s15222_s13  ;;  %2863 = vrot.lane.b32.xlu1 %v12490_v6, %s15224_s17 }
 0x216   : > { %2239 = vst [vmem:[#allocation4 + $0x3ec] sm:$0xf] %v2223_v25  ;;  %2855 = vrot.lane.b32.xlu0 %v12656_v21, %s15224_s17 }
 0x217   : > { %v12670_v52 = vpop.permute.xlu2 %2417  ;;  %v2303_v59 = vpop.permute.xlu1 %2302 }
 0x218   : > { %v2315_v54 = vrot.slane %v2303_v59, 4  ;;  %v2301_v20 = vpop.permute.xlu0 %2300  ;;  %v2428_v35 = vrot.slane %v12670_v52, 4 }
 0x219   : > { %v2314_v8 = vrot.slane %v2301_v20, 4 }
 0x21a   : > { %v2327_v32 = vsel %vm15190_vm11, %v2303_v59, %v2315_v54 }
 0x21b   : > { %2346 = vst [vmem:[#allocation4 + $0x408] sm:$0xf] %v2327_v32  ;;  %v2323_v9 = vsel %vm380_vm0, %v2313_v24, %v2314_v8  ;;  %v2325_v37 = vsel %vm380_vm0, %v2314_v8, %v2315_v54  ;;  %v2818_v24 = vunpack.c.h.bf16 %v2802_v41 }
 0x21c   : > { %v2324_v15 = vsel %vm15190_vm11, %v12602_v36, %v2323_v9  ;;  %v2326_v4 = vsel %vm15190_vm11, %v2301_v20, %v2325_v37  ;;  %v2316_v36 = vrot.slane %v12616_v12, 4 }
 0x21d   : > { %2344 = vst [vmem:[#allocation4 + $0x3f8] sm:$0xff] %v2324_v15  ;;  %2641 = vrot.lane.b32.xlu2 %v12490_v6, %s15213_s16  ;;  %2633 = vrot.lane.b32.xlu1 %v12656_v21, %s15213_s16  ;;  %v2834_v11 = vmax.f32 %v2818_v24, 0.0 }
 0x21e   : > { %2345 = vst [vmem:[#allocation4 + $0x400] sm:$0xff] %v2326_v4  ;;  %2752 = vrot.lane.b32.xlu0 %v12490_v6, %s15222_s13 }
 0x21f   : > { %v12685_v26 = vpop.permute.xlu2 %2851  ;;  %v2309_v60 = vpop.permute.xlu1 %2308  ;;  %v12735_v8 = vpack.c.bf16 %v2834_v11, %v2833_v55 }
 0x220   : > { %v2318_v18 = vrot.slane %v2309_v60, 4  ;;  %v2307_v19 = vpop.permute.xlu0 %2306 }
 0x221   : > { %v2317_v23 = vrot.slane %v2307_v19, 4 }
 0x222   : > { %v2332_v31 = vsel %vm380_vm0, %v2318_v18, %v2319_v53 }
 0x223   : > { %v2333_v47 = vsel %vm15190_vm11, %v2309_v60, %v2332_v31  ;;  %v2328_v51 = vsel %vm380_vm0, %v2316_v36, %v2317_v23  ;;  %v2330_v38 = vsel %vm380_vm0, %v2317_v23, %v2318_v18  ;;  %v2867_v18 = vrot.slane %v12685_v26, 4 }
 0x224   : > { %2349 = vst [vmem:[#allocation4 + $0x41c] sm:$0xff] %v2333_v47  ;;  %v2329_v27 = vsel %vm15190_vm11, %v12616_v12, %v2328_v51  ;;  %v2331_v42 = vsel %vm15190_vm11, %v2307_v19, %v2330_v38  ;;  %vm2765_vm11 = vcmask 228352  }
 0x225   : > { %2347 = vst [vmem:[#allocation4 + $0x40c] sm:$0xff] %v2329_v27  ;;  %3188 = vrot.lane.b32.xlu2 %v12656_v21, %s15199_s12  ;;  %2530 = vrot.lane.b32.xlu1 %v12490_v6, %s15201_s14 }
 0x226   : > { %2348 = vst [vmem:[#allocation4 + $0x414] sm:$0xff] %v2331_v42  ;;  %2522 = vrot.lane.b32.xlu0 %v12656_v21, %s15201_s14 }
 0x227   : > { %v12704_v45 = vpop.permute.xlu2 %2861  ;;  %v2410_v12 = vpop.permute.xlu1 %2409 }
 0x228   : > { %v2424_v17 = vrot.slane %v2410_v12, 4  ;;  %v2408_v7 = vpop.permute.xlu0 %2407  ;;  %v2872_v15 = vrot.slane %v12704_v45, 4 }
 0x229   : > { %v2423_v30 = vrot.slane %v2408_v7, 4 }
 0x22a   : > { %v2434_v40 = vsel %vm380_vm0, %v2424_v17, %v2425_v44 }
 0x22b   : > { %v2435_v6 = vsel %vm15192_vm9, %v2410_v12, %v2434_v40  ;;  %v2431_v53 = vsel %vm380_vm0, %v2423_v30, %v2424_v17 }
 0x22c   : > { %2455 = vst [vmem:[#allocation4 + $0x430] sm:$0xff] %v2435_v6  ;;  %v2433_v62 = vsel %vm15192_vm9, %v2408_v7, %v2431_v53 }
 0x22d   : > { %2454 = vst [vmem:[#allocation4 + $0x428] sm:$0xff] %v2433_v62  ;;  %3085 = vrot.lane.b32.xlu2 %v3063_v48, %s15197_s2  ;;  %3077 = vrot.lane.b32.xlu1 %v12656_v21, %s15197_s2 }
 0x22e   : > { %3196 = vrot.lane.b32.xlu0 %v3063_v48, %s15199_s12 }
 0x22f   : > { %v12716_v63 = vpop.permute.xlu2 %2748  ;;  %v2416_v10 = vpop.permute.xlu1 %2415 }
 0x230   : > { %v2427_v0 = vrot.slane %v2416_v10, 4  ;;  %v2414_v58 = vpop.permute.xlu0 %2413  ;;  %v2760_v53 = vrot.slane %v12716_v63, 4 }
 0x231   : > { %v2426_v46 = vrot.slane %v2414_v58, 4 }
 0x232   : > { %v2439_v22 = vsel %vm380_vm0, %v2427_v0, %v2428_v35 }
 0x233   : > { %v2440_v43 = vsel %vm15192_vm9, %v2416_v10, %v2439_v22  ;;  %v2436_v5 = vsel %vm380_vm0, %v2425_v44, %v2426_v46  ;;  %v2438_v2 = vsel %vm15192_vm9, %v2414_v58, %v2426_v46 }
 0x234   : > { %2458 = vst [vmem:[#allocation4 + $0x444] sm:$0xff] %v2440_v43  ;;  %v2437_v49 = vsel %vm15192_vm9, %v12654_v34, %v2436_v5 }
 0x235   : > { %2456 = vst [vmem:[#allocation4 + $0x438] sm:$0xff] %v2437_v49  ;;  %2974 = vrot.lane.b32.xlu1 %v3063_v48, %s15195_s9  ;;  %2857 = vrot.lane.b32.xlu2 %v12723_v16, %s15224_s17 }
 0x236   : > { %2457 = vst [vmem:[#allocation4 + $0x440] sm:$0xf] %v2438_v2  ;;  %2966 = vrot.lane.b32.xlu0 %v12656_v21, %s15195_s9 }
 0x237   : > { %v12732_v25 = vpop.permute.xlu2 %3186  ;;  %v2422_v33 = vpop.permute.xlu1 %2421 }
 0x238   : > { %v2430_v59 = vrot.slane %v2422_v33, 4  ;;  %v2420_v54 = vpop.permute.xlu0 %2419  ;;  %v3201_v50 = vrot.slane %v12732_v25, 4 }
 0x239   : > { %v2429_v20 = vrot.slane %v2420_v54, 4 }
 0x23a   : > { %v2445_v34 = vsel %vm15192_vm9, %v2422_v33, %v2430_v59 }
 0x23b   : > { %2461 = vst [vmem:[#allocation4 + $0x45c] sm:$0xf] %v2445_v34  ;;  %v2441_v32 = vsel %vm380_vm0, %v2428_v35, %v2429_v20  ;;  %v2443_v9 = vsel %vm380_vm0, %v2429_v20, %v2430_v59 }
 0x23c   : > { %v2442_v21 = vsel %vm15192_vm9, %v12670_v52, %v2441_v32  ;;  %v2444_v37 = vsel %vm15192_vm9, %v2420_v54, %v2443_v9  ;;  %vm2654_vm9 = vcmask 236544  }
 0x23d   : > { %2459 = vst [vmem:[#allocation4 + $0x44c] sm:$0xff] %v2442_v21  ;;  %2746 = vrot.lane.b32.xlu1 %v12723_v16, %s15222_s13  ;;  %2754 = vrot.lane.b32.xlu2 %v12735_v8, %s15222_s13 }
 0x23e   : > { %2460 = vst [vmem:[#allocation4 + $0x454] sm:$0xff] %v2444_v37  ;;  %2865 = vrot.lane.b32.xlu0 %v12735_v8, %s15224_s17 }
 0x23f   : > { %v12749_v4 = vpop.permute.xlu2 %2629  ;;  %v2860_v13 = vpop.permute.xlu1 %2859 }
 0x240   : > { %v2871_v52 = vrot.slane %v2860_v13, 4  ;;  %v12751_v60 = vpop.permute.xlu0 %2853  ;;  %v2645_v59 = vrot.slane %v12749_v4, 4 }
 0x241   : > { %v2868_v19 = vrot.slane %v12751_v60, 4 }
 0x242   : > { %v2883_v36 = vsel %vm380_vm0, %v2871_v52, %v2872_v15 }
 0x243   : > { %v2884_v23 = vsel %vm2876_vm10, %v2860_v13, %v2883_v36  ;;  %v2875_v28 = vsel %vm380_vm0, %v2867_v18, %v2868_v19 }
 0x244   : > { %2902 = vst [vmem:[#allocation4 + $0x524] sm:$0xff] %v2884_v23  ;;  %v2877_v3 = vsel %vm2876_vm10, %v12685_v26, %v2875_v28 }
 0x245   : > { %2898 = vst [vmem:[#allocation4 + $0x508] sm:$0xff] %v2877_v3  ;;  %2643 = vrot.lane.b32.xlu1 %v12735_v8, %s15213_s16  ;;  %3190 = vrot.lane.b32.xlu2 %v12723_v16, %s15199_s12 }
 0x246   : > { %2635 = vrot.lane.b32.xlu0 %v12723_v16, %s15213_s16 }
 0x247   : > { %v12770_v31 = vpop.permute.xlu2 %2639  ;;  %v12772_v47 = vpop.permute.xlu1 %2742 }
 0x248   : > { %v2757_v51 = vrot.slane %v12772_v47, 4  ;;  %v2741_v38 = vpop.permute.xlu0 %2740 }
 0x249   : > { %v2756_v27 = vrot.slane %v2741_v38, 4 }
 0x24b   : > { %v2764_v26 = vsel %vm380_vm0, %v2756_v27, %v2757_v51  ;;  %v11068_v42 = vld [vmem:[#allocation4 + $0x520] sm:$0xf0]  ;;  %v9826_v1 = vld [vmem:[#allocation4 + $0x524] sm:$0xf0] }
 0x24c   : > { %v2766_v61 = vsel %vm2765_vm11, %v2741_v38, %v2764_v26  ;;  %v9824_v44 = vld [vmem:[#allocation4 + $0x508] sm:$0xf]  ;;  %v11065_v12 = vld [vmem:[#allocation4 + $0x50c] sm:$0xf] }
 0x24d   : > { %2787 = vst [vmem:[#allocation4 + $0x4d0] sm:$0xff] %v2766_v61  ;;  %2524 = vrot.lane.b32.xlu1 %v12723_v16, %s15201_s14  ;;  %v9825_v17 = vor.u32 %v11068_v42, %v9824_v44  ;;  %v9829_v7 = vor.u32 %v11065_v12, %v9826_v1  ;;  %2532 = vrot.lane.b32.xlu2 %v12735_v8, %s15201_s14  ;;  %s15347_s14 = smov 18  }
 0x24e   : > { %3198 = vrot.lane.b32.xlu0 %v12735_v8, %s15199_s12  ;;  %s15345_s12 = smov 1  }
 0x24f   : > { %4482 = vmatpush.bf16.msra.mxu2 %v9825_v17  ;;  %4538 = vmatpush.bf16.msrb.mxu1 %v9829_v7  ;;  %v12786_v30 = vpop.permute.xlu2 %3081  ;;  %v3185_v48 = vpop.permute.xlu1 %3184 }
 0x250   : > { %v3200_v40 = vrot.slane %v3185_v48, 4  ;;  %v12788_v6 = vpop.permute.xlu0 %2750 }
 0x251   : > { %v2761_v29 = vrot.slane %v12788_v6, 4 }
 0x252   : > { %v3208_v56 = vsel %vm380_vm0, %v3200_v40, %v3201_v50  ;;  %v3093_v40 = vrot.slane %v12786_v30, 4 }
 0x253   : > { %v3210_v62 = vsel %vm3209_vm12, %v3185_v48, %v3208_v56  ;;  %v2772_v35 = vsel %vm380_vm0, %v2760_v53, %v2761_v29 }
 0x254   : > { %3231 = vst [vmem:[#allocation4 + $0x5b0] sm:$0xff] %v3210_v62  ;;  %v2773_v10 = vsel %vm2765_vm11, %v12716_v63, %v2772_v35  ;;  %v9796_v46 = vld [vmem:[#allocation4 + $0x4d0] sm:$0xf]  ;;  %v11058_v24 = vld [vmem:[#allocation4 + $0x4d4] sm:$0xf] }
 0x255   : > { %2791 = vst [vmem:[#allocation4 + $0x4ec] sm:$0xff] %v2773_v10  ;;  %3087 = vrot.lane.b32.xlu1 %v12735_v8, %s15197_s2  ;;  %2968 = vrot.lane.b32.xlu2 %v12723_v16, %s15195_s9 }
 0x256   : > { %3079 = vrot.lane.b32.xlu0 %v12723_v16, %s15197_s2  ;;  %v2650_v16 = vrot.slane %v12770_v31, 4  ;;  %s15346_s2 = smov 38  }
 0x257   : > { %v12807_v14 = vpop.permute.xlu2 %2520  ;;  %v12809_v57 = vpop.permute.xlu1 %3194 }
 0x258   : > { %v3205_v41 = vrot.slane %v12809_v57, 4  ;;  %v3193_v0 = vpop.permute.xlu0 %3192  ;;  %v2535_v61 = vrot.slane %v12807_v14, 4 }
 0x259   : > { %v3204_v58 = vrot.slane %v3193_v0, 4 }
 0x25b   : > { %v3216_v63 = vsel %vm380_vm0, %v3204_v58, %v3205_v41  ;;  %v9908_v9 = vld [vmem:[#allocation4 + $0x5b0] sm:$0xf] }
 0x25c   : > { %v3217_v22 = vsel %vm3209_vm12, %v3193_v0, %v3216_v63  ;;  %v11061_v39 = vld [vmem:[#allocation4 + $0x4e8] sm:$0xf0]  ;;  %v9798_v43 = vld [vmem:[#allocation4 + $0x4ec] sm:$0xf0] }
 0x25d   : > { %3235 = vst [vmem:[#allocation4 + $0x5cc] sm:$0xff] %v3217_v22  ;;  %v9797_v5 = vor.u32 %v11061_v39, %v9796_v46  ;;  %v9801_v2 = vor.u32 %v11058_v24, %v9798_v43 }
 0x25e   : > { %2976 = vrot.lane.b32.xlu0 %v12735_v8, %s15195_s9  ;;  %s15348_s9 = smov 9  }
 0x25f   : > { %4483 = vmatpush.bf16.msra.mxu2 %v9797_v5  ;;  %4539 = vmatpush.bf16.msrb.mxu1 %v9801_v2  ;;  %v12819_v49 = vpop.permute.xlu2 %2962  ;;  %v2638_v55 = vpop.permute.xlu1 %2637  ;;  %v1745_v2 = vld [vmem:[%s11768_s15 + $0xc] sm:$0xff] }
 0x260   : > { %v2649_v11 = vrot.slane %v2638_v55, 4  ;;  %v12821_v33 = vpop.permute.xlu0 %2631 }
 0x261   : > { %v2646_v54 = vrot.slane %v12821_v33, 4 }
 0x262   : > { %v2661_v20 = vsel %vm380_vm0, %v2649_v11, %v2650_v16 }
 0x263   : > { %v2662_v34 = vsel %vm2654_vm9, %v2638_v55, %v2661_v20  ;;  %v2653_v8 = vsel %vm380_vm0, %v2645_v59, %v2646_v54  ;;  %v1749_v55 = vld [vmem:[%s11768_s15 + $0x30] sm:$0xff]  ;;  %v1754_v20 = vunpack.c.l.bf16 %v1745_v2 }
 0x264   : > { %2680 = vst [vmem:[#allocation4 + $0x4b4] sm:$0xff] %v2662_v34  ;;  %v2655_v32 = vsel %vm2654_vm9, %v12749_v4, %v2653_v8  ;;  %v11089_v21 = vld [vmem:[#allocation4 + $0x5c8] sm:$0xf0]  ;;  %v1755_v34 = vunpack.c.h.bf16 %v1745_v2  ;;  %v9166_v2 = vld [vmem:[%s15333_s1 + $0x10] sm:$0xf0] }
 0x265   : > { %2676 = vst [vmem:[#allocation4 + $0x498] sm:$0xff] %v2655_v32  ;;  %v9909_v37 = vor.u32 %v11089_v21, %v9908_v9  ;;  %v1761_v32 = vunpack.c.l.bf16 %v1749_v55  ;;  %v1762_v9 = vunpack.c.h.bf16 %v1749_v55  ;;  %v11040_v55 = vld [vmem:[#allocation4 + $0x440] sm:$0xf0] }
 0x267   : > { %4501 = vmatpush.bf16.msra.mxu3 %v9909_v37  ;;  %v12834_v13 = vpop.permute.xlu2 %2972  ;;  %v12836_v52 = vpop.permute.xlu1 %3075 }
 0x268   : > { %v3090_v18 = vrot.slane %v12836_v52, 4  ;;  %v3074_v36 = vpop.permute.xlu0 %3073 }
 0x269   : > { %v3089_v23 = vrot.slane %v3074_v36, 4 }
 0x26b   : > { %v3097_v28 = vsel %vm380_vm0, %v3089_v23, %v3090_v18  ;;  %v11054_v3 = vld [vmem:[#allocation4 + $0x4b0] sm:$0xf0]  ;;  %v9770_v4 = vld [vmem:[#allocation4 + $0x4b4] sm:$0xf0]  ;;  %v1768_v23 = vmax.f32 %v1754_v20, 0.0 }
 0x26c   : > { %v3099_v38 = vsel %vm3098_vm14, %v3074_v36, %v3097_v28  ;;  %v9768_v27 = vld [vmem:[#allocation4 + $0x498] sm:$0xf]  ;;  %v11051_v26 = vld [vmem:[#allocation4 + $0x49c] sm:$0xf]  ;;  %v1769_v28 = vmax.f32 %v1755_v34, 0.0 }
 0x26d   : > { %3120 = vst [vmem:[#allocation4 + $0x578] sm:$0xff] %v3099_v38  ;;  %v9769_v42 = vor.u32 %v11054_v3, %v9768_v27  ;;  %v9773_v1 = vor.u32 %v11051_v26, %v9770_v4  ;;  %v1775_v4 = vmax.f32 %v1761_v32, 0.0  ;;  %v1776_v38 = vmax.f32 %v1762_v9, 0.0  ;;  %v9712_v9 = vld [vmem:[#allocation4 + $0x428] sm:$0xf] }
 0x26f   : > { %4484 = vmatpush.bf16.msra.mxu2 %v9769_v42  ;;  %4540 = vmatpush.bf16.msrb.mxu1 %v9773_v1  ;;  %v12844_v44 = vpop.permute.xlu2 %2744  ;;  %v2519_v12 = vpop.permute.xlu1 %2518  ;;  %v1781_v1 = vpack.c.bf16 %v1769_v28, %v1768_v23 }
 0x270   : > { %v2758_v17 = vrot.slane %v12844_v44, 4  ;;  %v2534_v7 = vrot.slane %v2519_v12, 4  ;;  %v12847_v48 = vpop.permute.xlu0 %3083 }
 0x271   : > { %v3094_v53 = vrot.slane %v12847_v48, 4  ;;  %1789 = vst [vmem:[#allocation4 + $0x2e0] sm:$0xff] %v1781_v1 }
 0x272   : > { %v2767_v56 = vsel %vm380_vm0, %v2757_v51, %v2758_v17  ;;  %v2542_v62 = vsel %vm380_vm0, %v2534_v7, %v2535_v61  ;;  %v9164_v51 = vld [vmem:[%s15333_s1] sm:$0xf] }
 0x273   : > { %v2768_v35 = vsel %vm2765_vm11, %v12772_v47, %v2767_v56  ;;  %v2544_v10 = vsel %vm2543_vm13, %v2519_v12, %v2542_v62  ;;  %v3105_v0 = vsel %vm380_vm0, %v3093_v40, %v3094_v53  ;;  %v10902_v47 = vld [vmem:[%s15333_s1 + $0xc] sm:$0xf0]  ;;  %v2978_v12 = vrot.slane %v12819_v49, 4 }
 0x274   : > { %2788 = vst [vmem:[#allocation4 + $0x4d8] sm:$0xff] %v2768_v35  ;;  %v3106_v58 = vsel %vm3098_vm14, %v12786_v30, %v3105_v0  ;;  %v12873_v63 = vor.u32 %v10902_v47, %v9164_v51  ;;  %v9880_v21 = vld [vmem:[#allocation4 + $0x578] sm:$0xf]  ;;  %v1785_v40 = vpack.c.bf16 %v1776_v38, %v1775_v4  ;;  %v11033_v4 = vld [vmem:[#allocation4 + $0x408] sm:$0xf0] }
 0x275   : > { %2565 = vst [vmem:[#allocation4 + $0x460] sm:$0xff] %v2544_v10  ;;  %v9686_v38 = vld [vmem:[#allocation4 + $0x40c] sm:$0xf0] }
 0x276   : > { %3124 = vst [vmem:[#allocation4 + $0x594] sm:$0xff] %v3106_v58  ;;  %4462 = vmatmul.bf16.vlgmr.msra.gmra.mxu0 %v12873_v63 }
 0x277   : > { %v12875_v46 = vpop.permute.xlu2 %2641  ;;  %v12877_v22 = vpop.permute.xlu1 %2528  ;;  %1793 = vst [vmem:[#allocation4 + $0x2fc] sm:$0xff] %v1785_v40  ;;  %v11030_v40 = vld [vmem:[#allocation4 + $0x3f4] sm:$0xf] }
 0x278   : > { %v2651_v39 = vrot.slane %v12875_v46, 4  ;;  %v2539_v30 = vrot.slane %v12877_v22, 4  ;;  %v2527_v24 = vpop.permute.xlu0 %2526 }
 0x279   : > { %v2538_v43 = vrot.slane %v2527_v24, 4 }
 0x27a   : > { %v2663_v5 = vsel %vm380_vm0, %v2650_v16, %v2651_v39  ;;  %v2983_v16 = vrot.slane %v12834_v13, 4 }
 0x27b   : > { %v2664_v11 = vsel %vm2654_vm9, %v12770_v31, %v2663_v5  ;;  %v2550_v59 = vsel %vm380_vm0, %v2538_v43, %v2539_v30 }
 0x27c   : > { %2681 = vst [vmem:[#allocation4 + $0x4bc] sm:$0xff] %v2664_v11  ;;  %v2551_v8 = vsel %vm2543_vm13, %v2527_v24, %v2550_v59  ;;  %v9740_v58 = vld [vmem:[#allocation4 + $0x460] sm:$0xf]  ;;  %v11044_v51 = vld [vmem:[#allocation4 + $0x464] sm:$0xf] }
 0x27d   : > { %2569 = vst [vmem:[#allocation4 + $0x47c] sm:$0xff] %v2551_v8  ;;  %v11082_v37 = vld [vmem:[#allocation4 + $0x590] sm:$0xf0]  ;;  %v9714_v11 = vld [vmem:[#allocation4 + $0x444] sm:$0xf0] }
 0x27e   : > { %v9881_v36 = vor.u32 %v11082_v37, %v9880_v21  ;;  %v11037_v21 = vld [vmem:[#allocation4 + $0x42c] sm:$0xf] }
 0x27f   : > { %v12896_v31 = vpop.permute.xlu2 %3188  ;;  %v2971_v3 = vpop.permute.xlu1 %2970  ;;  %v9717_v23 = vor.u32 %v11037_v21, %v9714_v11  ;;  %v11023_v11 = vld [vmem:[#allocation4 + $0x3bc] sm:$0xf] }
 0x280   : > { %4502 = vmatpush.bf16.msra.mxu3 %v9881_v36  ;;  %v3202_v27 = vrot.slane %v12896_v31, 4  ;;  %v2982_v26 = vrot.slane %v2971_v3, 4  ;;  %v12899_v42 = vpop.permute.xlu0 %2964  ;;  %v9713_v36 = vor.u32 %v11040_v55, %v9712_v9  ;;  %v9656_v55 = vld [vmem:[#allocation4 + $0x3b8] sm:$0xf] }
 0x281   : > { %v2979_v7 = vrot.slane %v12899_v42, 4 }
 0x282   : > { %v3211_v56 = vsel %vm380_vm0, %v3201_v50, %v3202_v27  ;;  %v2994_v62 = vsel %vm380_vm0, %v2982_v26, %v2983_v16 }
 0x283   : > { %v3212_v35 = vsel %vm3209_vm12, %v12732_v25, %v3211_v56  ;;  %v2995_v10 = vsel %vm2987_vm15, %v2971_v3, %v2994_v62  ;;  %v2986_v0 = vsel %vm380_vm0, %v2978_v12, %v2979_v7  ;;  %v10900_v25 = vld [vmem:[%s15333_s1 + $0x4] sm:$0xf]  ;;  %v9378_v56 = vld [vmem:[#allocation4 + $0x1a4] sm:$0xf0]  ;;  %v12955_v62 = vld [vmem:[#allocation4 + $0x16c] sm:$0xf0] }
 0x284   : > { %3232 = vst [vmem:[#allocation4 + $0x5b8] sm:$0xff] %v3212_v35  ;;  %v2988_v50 = vsel %vm2987_vm15, %v12819_v49, %v2986_v0  ;;  %v11047_v47 = vld [vmem:[#allocation4 + $0x478] sm:$0xf0]  ;;  %v9742_v24 = vld [vmem:[#allocation4 + $0x47c] sm:$0xf0]  ;;  %v12925_v59 = vor.u32 %v10900_v25, %v9166_v2  ;;  %v9689_v0 = vor.u32 %v11030_v40, %v9686_v38  ;;  %v1750_v38 = vld [vmem:[%s11768_s15 + $0x38] sm:$0xff] }
 0x285   : > { %3013 = vst [vmem:[#allocation4 + $0x55c] sm:$0xff] %v2995_v10  ;;  %v9741_v43 = vor.u32 %v11047_v47, %v9740_v58  ;;  %v9745_v5 = vor.u32 %v11044_v51, %v9742_v24  ;;  %v9174_v58 = vld [vmem:[%s15333_s1 + $0x18] sm:$0xf0]  ;;  %v9658_v47 = vld [vmem:[#allocation4 + $0x3d4] sm:$0xf0] }
 0x286   : > { %3009 = vst [vmem:[#allocation4 + $0x540] sm:$0xff] %v2988_v50  ;;  %4476 = vmatmul.bf16.vlgmr.msra.gmra.mxu1 %v12925_v59  ;;  %4532 = vmatmul.bf16.vlgmr.msrb.gmra.mxu0 %v12925_v59  ;;  %v11026_v50 = vld [vmem:[#allocation4 + $0x3d0] sm:$0xf0]  ;;  %v9322_v40 = vld [vmem:[#allocation4 + $0x134] sm:$0xf0] }
 0x287   : > { %4485 = vmatpush.bf16.msra.mxu2 %v9741_v43  ;;  %4541 = vmatpush.bf16.msrb.mxu1 %v9745_v5  ;;  %v12927_v49 = vpop.permute.xlu2 %3085  ;;  %v12929_v20 = vpop.permute.xlu1 %2863  ;;  %v10946_v43 = vld [vmem:[#allocation4 + $0x154] sm:$0xf] }
 0x288   : > { %v3095_v34 = vrot.slane %v12927_v49, 4  ;;  %v2873_v8 = vrot.slane %v12929_v20, 4  ;;  %v12933_v32 = vpop.permute.xlu0 %2855  ;;  %v9353_v9 = vor.u32 %v10946_v43, %v12955_v62 }
 0x289   : > { %v2869_v37 = vrot.slane %v12933_v32, 4 }
 0x28a   : > { %v3107_v28 = vsel %vm380_vm0, %v3094_v53, %v3095_v34  ;;  %v2885_v3 = vsel %vm380_vm0, %v2872_v15, %v2873_v8  ;;  %v9684_v53 = vld [vmem:[#allocation4 + $0x3f0] sm:$0xf] }
 0x28b   : > { %v3108_v26 = vsel %vm3098_vm14, %v12847_v48, %v3107_v28  ;;  %v2886_v1 = vsel %vm2876_vm10, %v12704_v45, %v2885_v3  ;;  %v2878_v12 = vsel %vm380_vm0, %v2868_v19, %v2869_v37  ;;  %4486 = vmatpush.bf16.msra.mxu2 %v9713_v36  ;;  %4542 = vmatpush.bf16.msrb.mxu1 %v9717_v23  ;;  %v10953_v48 = vld [vmem:[#allocation4 + $0x18c] sm:$0xf]  ;;  %v10901_v45 = vld [vmem:[%s15333_s1 + $0xc] sm:$0xf] }
 0x28c   : > { %3125 = vst [vmem:[#allocation4 + $0x59c] sm:$0xff] %v3108_v26  ;;  %v2879_v15 = vsel %vm2876_vm10, %v12751_v60, %v2878_v12  ;;  %v11075_v35 = vld [vmem:[#allocation4 + $0x558] sm:$0xf0]  ;;  %v9685_v10 = vor.u32 %v11033_v4, %v9684_v53  ;;  %v9381_v24 = vor.u32 %v10953_v48, %v9378_v56  ;;  %v12971_v21 = vor.u32 %v10901_v45, %v9174_v58  ;;  %v1746_v4 = vld [vmem:[%s11768_s15 + $0x14] sm:$0xff]  ;;  %v9630_v53 = vld [vmem:[#allocation4 + $0x39c] sm:$0xf0] }
 0x28d   : > { %2903 = vst [vmem:[#allocation4 + $0x52c] sm:$0xff] %v2886_v1  ;;  %v9852_v19 = vld [vmem:[#allocation4 + $0x540] sm:$0xf]  ;;  %v9657_v28 = vor.u32 %v11026_v50, %v9656_v55  ;;  %v9661_v3 = vor.u32 %v11023_v11, %v9658_v47  ;;  %v11019_v12 = vld [vmem:[#allocation4 + $0x398] sm:$0xf0]  ;;  %v1757_v58 = vunpack.c.h.bf16 %v1746_v4  ;;  %v1764_v50 = vunpack.c.h.bf16 %v1750_v38 }
 0x28e   : > { %2899 = vst [vmem:[#allocation4 + $0x510] sm:$0xff] %v2879_v15  ;;  %v9853_v51 = vor.u32 %v11075_v35, %v9852_v19  ;;  %v9628_v1 = vld [vmem:[#allocation4 + $0x380] sm:$0xf]  ;;  %v9910_v56 = vld [vmem:[#allocation4 + $0x5cc] sm:$0xf0]  ;;  %v1756_v35 = vunpack.c.l.bf16 %v1746_v4 }
 0x28f   : > { %4487 = vmatpush.bf16.msra.mxu2 %v9685_v10  ;;  %4543 = vmatpush.bf16.msrb.mxu1 %v9689_v0  ;;  %v12965_v60 = vpop.permute.xlu1 %2633  ;;  %v2858_v5 = vpop.permute.xlu2 %2857  ;;  %v11016_v19 = vld [vmem:[#allocation4 + $0x384] sm:$0xf]  ;;  %v9294_v0 = vld [vmem:[#allocation4 + $0xfc] sm:$0xf0]  ;;  %v9629_v47 = vor.u32 %v11019_v12, %v9628_v1  ;;  %v10939_v11 = vld [vmem:[#allocation4 + $0x11c] sm:$0xf] }
 0x290   : > { %4503 = vmatpush.bf16.msra.mxu3 %v9853_v51  ;;  %v2647_v25 = vrot.slane %v12965_v60, 4  ;;  %v12968_v2 = vpop.permute.xlu0 %2752  ;;  %v2870_v36 = vrot.slane %v2858_v5, 4  ;;  %v1763_v51 = vunpack.c.l.bf16 %v1750_v38  ;;  %v9325_v38 = vor.u32 %v10939_v11, %v9322_v40 }
 0x291   : > { %v2762_v23 = vrot.slane %v12968_v2, 4  ;;  %v1778_v1 = vmax.f32 %v1764_v50, 0.0 }
 0x292   : > { %v2656_v26 = vsel %vm380_vm0, %v2646_v54, %v2647_v25  ;;  %v2880_v62 = vsel %vm380_vm0, %v2869_v37, %v2870_v36  ;;  %v2882_v15 = vsel %vm2876_vm10, %v2858_v5, %v2870_v36  ;;  %v9172_v54 = vld [vmem:[%s15333_s1 + $0x8] sm:$0xf]  ;;  %v10903_v37 = vld [vmem:[%s15333_s1 + $0x14] sm:$0xf0]  ;;  %v1770_v5 = vmax.f32 %v1756_v35, 0.0  ;;  %s15367_s1 = smov 91  }
 0x293   : > { %v2657_v48 = vsel %vm2654_vm9, %v12821_v33, %v2656_v26  ;;  %v2774_v45 = vsel %vm380_vm0, %v2761_v29, %v2762_v23  ;;  %4488 = vmatpush.bf16.msra.mxu2 %v9657_v28  ;;  %4544 = vmatpush.bf16.msrb.mxu1 %v9661_v3  ;;  %v2881_v10 = vsel %vm2876_vm10, %v12933_v32, %v2880_v62  ;;  %v11086_v32 = vld [vmem:[#allocation4 + $0x5b4] sm:$0xf]  ;;  %v1771_v3 = vmax.f32 %v1757_v58, 0.0  ;;  %v11079_v62 = vld [vmem:[#allocation4 + $0x57c] sm:$0xf] }
 0x294   : > { %4510 = vmatpush.bf16.msrb.mxu3 %v9381_v24  ;;  %2901 = vst [vmem:[#allocation4 + $0x520] sm:$0xf] %v2882_v15  ;;  %v2775_v33 = vsel %vm2765_vm11, %v12788_v6, %v2774_v45  ;;  %v11069_v29 = vld [vmem:[#allocation4 + $0x528] sm:$0xf0]  ;;  %v9633_v24 = vor.u32 %v11016_v19, %v9630_v53  ;;  %v9913_v36 = vor.u32 %v11086_v32, %v9910_v56  ;;  %v9882_v6 = vld [vmem:[#allocation4 + $0x594] sm:$0xf0] }
 0x295   : > { %2677 = vst [vmem:[#allocation4 + $0x4a0] sm:$0xff] %v2657_v48  ;;  %9934 = vmatmul.msk.bf16.vlgmr.msra.gmra.mxu3 %vm4450_vm7, %v12971_v21  ;;  %v9832_v43 = vld [vmem:[#allocation4 + $0x510] sm:$0xf]  ;;  %v13002_v28 = vor.u32 %v10903_v37, %v9172_v54  ;;  %v10932_v56 = vld [vmem:[#allocation4 + $0xe4] sm:$0xf]  ;;  %v1782_v35 = vpack.c.bf16 %v1771_v3, %v1770_v5  ;;  %v9885_v54 = vor.u32 %v11079_v62, %v9882_v6 }
 0x296   : > { %2792 = vst [vmem:[#allocation4 + $0x4f4] sm:$0xff] %v2775_v33  ;;  %v9833_v55 = vor.u32 %v11069_v29, %v9832_v43  ;;  %v9297_v45 = vor.u32 %v10932_v56, %v9294_v0  ;;  %v9266_v37 = vld [vmem:[#allocation4 + $0xc4] sm:$0xf0]  ;;  %v11072_v0 = vld [vmem:[#allocation4 + $0x544] sm:$0xf] }
 0x297   : > { %2900 = vst [vmem:[#allocation4 + $0x518] sm:$0xff] %v2881_v10  ;;  %4489 = vmatpush.bf16.msra.mxu2 %v9629_v47  ;;  %4545 = vmatpush.bf16.msrb.mxu1 %v9633_v24  ;;  %v13004_v4 = vpop.permute.xlu1 %2530  ;;  %v2755_v26 = vpop.permute.xlu2 %2754  ;;  %v11013_v10 = vld [vmem:[#allocation4 + $0x368] sm:$0xf0]  ;;  %v9854_v58 = vld [vmem:[#allocation4 + $0x55c] sm:$0xf0] }
 0x298   : > { %4511 = vmatpush.bf16.msrb.mxu3 %v9353_v9  ;;  %v1777_v9 = vmax.f32 %v1763_v51, 0.0  ;;  %4594 = vmatpush.bf16.msra.mxu0 %v9833_v55  ;;  %v2540_v12 = vrot.slane %v13004_v4, 4  ;;  %v13007_v53 = vpop.permute.xlu0 %2522  ;;  %v2763_v15 = vrot.slane %v2755_v26, 4  ;;  %1790 = vst [vmem:[#allocation4 + $0x2e8] sm:$0xff] %v1782_v35  ;;  %v9804_v47 = vld [vmem:[#allocation4 + $0x4d8] sm:$0xf] }
 0x299   : > { %v2536_v48 = vrot.slane %v13007_v53, 4  ;;  %v10925_v43 = vld [vmem:[#allocation4 + $0xac] sm:$0xf]  ;;  %v9238_v32 = vld [vmem:[#allocation4 + $0x8c] sm:$0xf0] }
 0x29a   : > { %v2552_v40 = vsel %vm380_vm0, %v2539_v30, %v2540_v12  ;;  %4490 = vmatmul.bf16.vlgmr.msra.gmra.mxu2 %v13002_v28  ;;  %v2776_v33 = vsel %vm380_vm0, %v2762_v23, %v2763_v15  ;;  %v2778_v19 = vsel %vm2765_vm11, %v2755_v26, %v2763_v15  ;;  %4546 = vmatmul.bf16.vlgmr.msrb.gmra.mxu1 %v13002_v28  ;;  %v9608_v5 = vld [vmem:[#allocation4 + $0x350] sm:$0xf]  ;;  %v11006_v6 = vld [vmem:[#allocation4 + $0x330] sm:$0xf0]  ;;  %v11055_v26 = vld [vmem:[#allocation4 + $0x4b8] sm:$0xf0] }
 0x29b   : > { %4557 = vmatpush.bf16.msrb.mxu2 %v9913_v36  ;;  %v2553_v29 = vsel %vm2543_vm13, %v12877_v22, %v2552_v40  ;;  %v2545_v30 = vsel %vm380_vm0, %v2535_v61, %v2536_v48  ;;  %v2777_v51 = vsel %vm2765_vm11, %v12968_v2, %v2776_v33  ;;  %2794 = vst [vmem:[#allocation4 + $0x504] sm:$0xf] %v2778_v19  ;;  %v9580_v35 = vld [vmem:[#allocation4 + $0x318] sm:$0xf]  ;;  %v9552_v40 = vld [vmem:[#allocation4 + $0x2e0] sm:$0xf] }
 0x29c   : > { %4512 = vmatpush.bf16.msrb.mxu3 %v9325_v38  ;;  %v1786_v23 = vpack.c.bf16 %v1778_v1, %v1777_v9  ;;  %2570 = vst [vmem:[#allocation4 + $0x484] sm:$0xff] %v2553_v29  ;;  %v2546_v50 = vsel %vm2543_vm13, %v12807_v14, %v2545_v30  ;;  %v9857_v61 = vor.u32 %v11072_v0, %v9854_v58  ;;  %v9776_v55 = vld [vmem:[#allocation4 + $0x4a0] sm:$0xf]  ;;  %v10918_v9 = vld [vmem:[#allocation4 + $0x74] sm:$0xf] }
 0x29d   : > { %v11062_v22 = vld [vmem:[#allocation4 + $0x4f0] sm:$0xf0]  ;;  %2566 = vst [vmem:[#allocation4 + $0x468] sm:$0xff] %v2546_v50  ;;  %v9269_v11 = vor.u32 %v10925_v43, %v9266_v37  ;;  %v9609_v36 = vor.u32 %v11013_v10, %v9608_v5  ;;  %v9777_v62 = vor.u32 %v11055_v26, %v9776_v55  ;;  %v9241_v15 = vor.u32 %v10918_v9, %v9238_v32  ;;  %v10999_v37 = vld [vmem:[#allocation4 + $0x2f8] sm:$0xf0] }
 0x29e   : > { %v9805_v24 = vor.u32 %v11062_v22, %v9804_v47  ;;  %2793 = vst [vmem:[#allocation4 + $0x4fc] sm:$0xff] %v2777_v51  ;;  %v9210_v58 = vld [vmem:[#allocation4 + $0x54] sm:$0xf0]  ;;  %v9553_v51 = vor.u32 %v10999_v37, %v9552_v40  ;;  %v10911_v50 = vld [vmem:[#allocation4 + $0x3c] sm:$0xf] }
 0x29f   : > { %4558 = vmatpush.bf16.msrb.mxu2 %v9885_v54  ;;  %v13032_v2 = vpop.permute.xlu1 %3077  ;;  %v3191_v3 = vpop.permute.xlu2 %3190  ;;  %1794 = vst [vmem:[#allocation4 + $0x304] sm:$0xff] %v1786_v23  ;;  %v9581_v54 = vor.u32 %v11006_v6, %v9580_v35  ;;  %v10904_v23 = vld [vmem:[#allocation4 + $0x4] sm:$0xf]  ;;  %v9720_v32 = vld [vmem:[#allocation4 + $0x430] sm:$0xf] }
 0x2a0   : > { %4513 = vmatpush.bf16.msrb.mxu3 %v9297_v45  ;;  %4595 = vmatpush.bf16.msra.mxu0 %v9805_v24  ;;  %v3091_v14 = vrot.slane %v13032_v2, 4  ;;  %v13035_v38 = vpop.permute.xlu0 %3196  ;;  %v3203_v1 = vrot.slane %v3191_v3, 4  ;;  %v10992_v22 = vld [vmem:[#allocation4 + $0x2c0] sm:$0xf0]  ;;  %v10957_v6 = vld [vmem:[#allocation4 + $0x1a8] sm:$0xf0] }
 0x2a1   : > { %v3206_v56 = vrot.slane %v13035_v38, 4  ;;  %v9384_v9 = vld [vmem:[#allocation4 + $0x190] sm:$0xf]  ;;  %v10985_v40 = vld [vmem:[#allocation4 + $0x288] sm:$0xf0] }
 0x2a2   : > { %v3100_v45 = vsel %vm380_vm0, %v3090_v18, %v3091_v14  ;;  %v3213_v10 = vsel %vm380_vm0, %v3202_v27, %v3203_v1  ;;  %v3215_v33 = vsel %vm3209_vm12, %v3191_v3, %v3203_v1  ;;  %v9524_v3 = vld [vmem:[#allocation4 + $0x2a8] sm:$0xf] }
 0x2a3   : > { %4559 = vmatpush.bf16.msrb.mxu2 %v9857_v61  ;;  %v3101_v19 = vsel %vm3098_vm14, %v12836_v52, %v3100_v45  ;;  %v3218_v29 = vsel %vm380_vm0, %v3205_v41, %v3206_v56  ;;  %v11048_v18 = vld [vmem:[#allocation4 + $0x480] sm:$0xf0]  ;;  %v3214_v30 = vsel %vm3209_vm12, %v12896_v31, %v3213_v10  ;;  %3234 = vst [vmem:[#allocation4 + $0x5c8] sm:$0xf] %v3215_v33  ;;  %v11041_v41 = vld [vmem:[#allocation4 + $0x448] sm:$0xf0] }
 0x2a4   : > { %4514 = vmatpush.bf16.msrb.mxu3 %v9269_v11  ;;  %4596 = vmatpush.bf16.msra.mxu0 %v9777_v62  ;;  %3121 = vst [vmem:[#allocation4 + $0x580] sm:$0xff] %v3101_v19  ;;  %v3219_v27 = vsel %vm3209_vm12, %v12809_v57, %v3218_v29  ;;  %v9748_v0 = vld [vmem:[#allocation4 + $0x468] sm:$0xf]  ;;  %v9213_v31 = vor.u32 %v10911_v50, %v9210_v58  ;;  %v9182_v61 = vld [vmem:[#allocation4 + $0x1c] sm:$0xf0] }
 0x2a5   : > { %3236 = vst [vmem:[#allocation4 + $0x5d4] sm:$0xff] %v3219_v27  ;;  %v9749_v52 = vor.u32 %v11048_v18, %v9748_v0  ;;  %v9721_v11 = vor.u32 %v11041_v41, %v9720_v32  ;;  %v9525_v1 = vor.u32 %v10992_v22, %v9524_v3  ;;  %v11034_v62 = vld [vmem:[#allocation4 + $0x410] sm:$0xf0]  ;;  %v9385_v10 = vor.u32 %v10957_v6, %v9384_v9  ;;  %v9916_v33 = vld [vmem:[#allocation4 + $0x5b8] sm:$0xf] }
 0x2a6   : > { %3233 = vst [vmem:[#allocation4 + $0x5c0] sm:$0xff] %v3214_v30  ;;  %v9496_v18 = vld [vmem:[#allocation4 + $0x270] sm:$0xf]  ;;  %v11027_v30 = vld [vmem:[#allocation4 + $0x3d8] sm:$0xf0] }
 0x2a7   : > { %4580 = vmatpush.bf16.msra.mxu2 %v9609_v36  ;;  %v13058_v47 = vpop.permute.xlu1 %2974  ;;  %v2533_v24 = vpop.permute.xlu2 %2532  ;;  %v9185_v36 = vor.u32 %v10904_v23, %v9182_v61  ;;  %v9356_v0 = vld [vmem:[#allocation4 + $0x158] sm:$0xf]  ;;  %v9497_v58 = vor.u32 %v10985_v40, %v9496_v18  ;;  %v9664_v41 = vld [vmem:[#allocation4 + $0x3c0] sm:$0xf]  ;;  %v11020_v9 = vld [vmem:[#allocation4 + $0x3a0] sm:$0xf0] }
 0x2a8   : > { %4515 = vmatpush.bf16.msrb.mxu3 %v9241_v15  ;;  %4597 = vmatpush.bf16.msra.mxu0 %v9749_v52  ;;  %v2984_v43 = vrot.slane %v13058_v47, 4  ;;  %v13061_v57 = vpop.permute.xlu0 %2966  ;;  %v2541_v5 = vrot.slane %v2533_v24, 4  ;;  %v9665_v32 = vor.u32 %v11027_v30, %v9664_v41  ;;  %v10936_v40 = vld [vmem:[#allocation4 + $0x100] sm:$0xf0]  ;;  %v11010_v18 = vld [vmem:[#allocation4 + $0x354] sm:$0xf] }
 0x2a9   : > { %v2980_v55 = vrot.slane %v13061_v57, 4  ;;  %v9616_v30 = vld [vmem:[#allocation4 + $0x358] sm:$0xf]  ;;  %v9834_v41 = vld [vmem:[#allocation4 + $0x52c] sm:$0xf0] }
 0x2aa   : > { %v2996_v26 = vsel %vm380_vm0, %v2983_v16, %v2984_v43  ;;  %9935 = vmatmul.msk.bf16.vlgmr.msrb.gmra.mxu2 %vm4450_vm7, %v12971_v21  ;;  %v2554_v15 = vsel %vm380_vm0, %v2540_v12, %v2541_v5  ;;  %v2556_v35 = vsel %vm2543_vm13, %v2533_v24, %v2541_v5  ;;  %v9328_v5 = vld [vmem:[#allocation4 + $0x120] sm:$0xf] }
 0x2ab   : > { %4581 = vmatpush.bf16.msra.mxu2 %v9581_v54  ;;  %v2997_v45 = vsel %vm2987_vm15, %v12834_v13, %v2996_v26  ;;  %v2989_v16 = vsel %vm380_vm0, %v2979_v7, %v2980_v55  ;;  %v9692_v54 = vld [vmem:[#allocation4 + $0x3f8] sm:$0xf]  ;;  %v2555_v37 = vsel %vm2543_vm13, %v13004_v4, %v2554_v15  ;;  %2572 = vst [vmem:[#allocation4 + $0x494] sm:$0xf] %v2556_v35  ;;  %v10950_v7 = vld [vmem:[#allocation4 + $0x170] sm:$0xf0] }
 0x2ac   : > { %4516 = vmatpush.bf16.msrb.mxu3 %v9213_v31  ;;  %4598 = vmatpush.bf16.msra.mxu0 %v9721_v11  ;;  %3014 = vst [vmem:[#allocation4 + $0x564] sm:$0xff] %v2997_v45  ;;  %v2990_v12 = vsel %vm2987_vm15, %v12899_v42, %v2989_v16  ;;  %v11090_v13 = vld [vmem:[#allocation4 + $0x5d0] sm:$0xf0]  ;;  %v9693_v19 = vor.u32 %v11034_v62, %v9692_v54  ;;  %v9888_v27 = vld [vmem:[#allocation4 + $0x580] sm:$0xf] }
 0x2ad   : > { %3010 = vst [vmem:[#allocation4 + $0x548] sm:$0xff] %v2990_v12  ;;  %v9917_v29 = vor.u32 %v11090_v13, %v9916_v33  ;;  %v10978_v42 = vld [vmem:[#allocation4 + $0x250] sm:$0xf0]  ;;  %v9357_v50 = vor.u32 %v10950_v7, %v9356_v0  ;;  %v11083_v31 = vld [vmem:[#allocation4 + $0x598] sm:$0xf0] }
 0x2ae   : > { %2571 = vst [vmem:[#allocation4 + $0x48c] sm:$0xff] %v2555_v37  ;;  %v9889_v61 = vor.u32 %v11083_v31, %v9888_v27  ;;  %v10943_v11 = vld [vmem:[#allocation4 + $0x138] sm:$0xf0]  ;;  %v9610_v54 = vld [vmem:[#allocation4 + $0x36c] sm:$0xf0] }
 0x2af   : > { %4582 = vmatpush.bf16.msra.mxu2 %v9553_v51  ;;  %4613 = vmatpush.bf16.msra.mxu1 %v9917_v29  ;;  %v2747_v4 = vpop.permute.xlu1 %2746  ;;  %v2969_v52 = vpop.permute.xlu2 %2968  ;;  %v10971_v62 = vld [vmem:[#allocation4 + $0x218] sm:$0xf0]  ;;  %v13100_v37 = vld [vmem:[#allocation4 + $0xc8] sm:$0xf0]  ;;  %v9329_v12 = vor.u32 %v10943_v11, %v9328_v5  ;;  %v9440_v33 = vld [vmem:[#allocation4 + $0x200] sm:$0xf] }
 0x2b0   : > { %4517 = vmatpush.bf16.msrb.mxu3 %v9185_v36  ;;  %4599 = vmatpush.bf16.msra.mxu0 %v9693_v19  ;;  %v2759_v51 = vrot.slane %v2747_v4, 4  ;;  %v2866_v23 = vpop.permute.xlu0 %2865  ;;  %v2981_v22 = vrot.slane %v2969_v52, 4  ;;  %v9468_v36 = vld [vmem:[#allocation4 + $0x238] sm:$0xf]  ;;  %v10964_v19 = vld [vmem:[#allocation4 + $0x1e0] sm:$0xf0]  ;;  %v9441_v31 = vor.u32 %v10971_v62, %v9440_v33 }
 0x2b1   : > { %v2874_v24 = vrot.slane %v2866_v23, 4  ;;  %v9469_v26 = vor.u32 %v10978_v42, %v9468_v36  ;;  %v9582_v13 = vld [vmem:[#allocation4 + $0x334] sm:$0xf0]  ;;  %v9300_v27 = vld [vmem:[#allocation4 + $0xe8] sm:$0xf] }
 0x2b2   : > { %v2769_v6 = vsel %vm380_vm0, %v2758_v17, %v2759_v51  ;;  %v2771_v3 = vsel %vm2765_vm11, %v2747_v4, %v2759_v51  ;;  %v2991_v15 = vsel %vm380_vm0, %v2980_v55, %v2981_v22  ;;  %v9272_v4 = vld [vmem:[#allocation4 + $0xb0] sm:$0xf]  ;;  %v2993_v0 = vsel %vm2987_vm15, %v2969_v52, %v2981_v22  ;;  %v11003_v42 = vld [vmem:[#allocation4 + $0x31c] sm:$0xf]  ;;  %v9588_v51 = vld [vmem:[#allocation4 + $0x320] sm:$0xf] }
 0x2b3   : > { %4583 = vmatpush.bf16.msra.mxu2 %v9525_v1  ;;  %4518 = vmatmul.bf16.vlgmr.msrb.gmra.mxu3 %v12873_v63  ;;  %v11014_v1 = vld [vmem:[#allocation4 + $0x370] sm:$0xf0]  ;;  %v2770_v35 = vsel %vm2765_vm11, %v12844_v44, %v2769_v6  ;;  %2790 = vst [vmem:[#allocation4 + $0x4e8] sm:$0xf] %v2771_v3  ;;  %v2887_v45 = vsel %vm380_vm0, %v2873_v8, %v2874_v24  ;;  %v11076_v16 = vld [vmem:[#allocation4 + $0x560] sm:$0xf0] }
 0x2b4   : > { %4566 = vmatpush.bf16.msra.mxu3 %v9385_v10  ;;  %v2889_v17 = vsel %vm2876_vm10, %v2866_v23, %v2874_v24  ;;  %4600 = vmatpush.bf16.msra.mxu0 %v9665_v32  ;;  %2789 = vst [vmem:[#allocation4 + $0x4e0] sm:$0xff] %v2770_v35  ;;  %v2888_v55 = vsel %vm2876_vm10, %v12929_v20, %v2887_v45  ;;  %v9636_v44 = vld [vmem:[#allocation4 + $0x388] sm:$0xf]  ;;  %v11007_v23 = vld [vmem:[#allocation4 + $0x338] sm:$0xf0] }
 0x2b5   : > { %4614 = vmatpush.bf16.msra.mxu1 %v9889_v61  ;;  %v9860_v10 = vld [vmem:[#allocation4 + $0x548] sm:$0xf]  ;;  %v2992_v8 = vsel %vm2987_vm15, %v13061_v57, %v2991_v15  ;;  %2904 = vst [vmem:[#allocation4 + $0x534] sm:$0xff] %v2888_v55  ;;  %v9637_v29 = vor.u32 %v11020_v9, %v9636_v44  ;;  %v9613_v20 = vor.u32 %v11010_v18, %v9610_v54  ;;  %v11066_v24 = vld [vmem:[#allocation4 + $0x514] sm:$0xf] }
 0x2b6   : > { %v9861_v7 = vor.u32 %v11076_v16, %v9860_v10  ;;  %2905 = vst [vmem:[#allocation4 + $0x53c] sm:$0xf] %v2889_v17  ;;  %v10996_v32 = vld [vmem:[#allocation4 + $0x2e4] sm:$0xf]  ;;  %v9301_v22 = vor.u32 %v10936_v40, %v9300_v27  ;;  %v9273_v5 = vor.u32 %v13100_v37, %v9272_v4  ;;  %v9554_v11 = vld [vmem:[#allocation4 + $0x2fc] sm:$0xf0]  ;;  %v9585_v6 = vor.u32 %v11003_v42, %v9582_v13 }
 0x2b7   : > { %4584 = vmatpush.bf16.msra.mxu2 %v9497_v58  ;;  %v9617_v58 = vor.u32 %v11014_v1, %v9616_v30  ;;  %v2644_v57 = vpop.permute.xlu1 %2643  ;;  %3011 = vst [vmem:[#allocation4 + $0x550] sm:$0xff] %v2992_v8  ;;  %v9589_v3 = vor.u32 %v11007_v23, %v9588_v51  ;;  %v9560_v9 = vld [vmem:[#allocation4 + $0x2e8] sm:$0xf]  ;;  %v11000_v1 = vld [vmem:[#allocation4 + $0x300] sm:$0xf0]  ;;  %v9837_v35 = vor.u32 %v11066_v24, %v9834_v41 }
 0x2b8   : > { %4567 = vmatpush.bf16.msra.mxu3 %v9357_v50  ;;  %v9412_v50 = vld [vmem:[#allocation4 + $0x1c8] sm:$0xf]  ;;  %4601 = vmatpush.bf16.msra.mxu0 %v9637_v29  ;;  %v2652_v61 = vrot.slane %v2644_v57, 4  ;;  %v2636_v52 = vpop.permute.xlu0 %2635  ;;  %3012 = vst [vmem:[#allocation4 + $0x558] sm:$0xf] %v2993_v0  ;;  %v9557_v54 = vor.u32 %v10996_v32, %v9554_v11  ;;  %v9561_v40 = vor.u32 %v11000_v1, %v9560_v9 }
 0x2b9   : > { %4615 = vmatpush.bf16.msra.mxu1 %v9861_v7  ;;  %v2648_v36 = vrot.slane %v2636_v52, 4  ;;  %v9806_v37 = vld [vmem:[#allocation4 + $0x4f4] sm:$0xf0]  ;;  %v11059_v44 = vld [vmem:[#allocation4 + $0x4dc] sm:$0xf] }
 0x2ba   : > { %v2665_v62 = vsel %vm380_vm0, %v2651_v39, %v2652_v61  ;;  %v2667_v15 = vsel %vm2654_vm9, %v2644_v57, %v2652_v61  ;;  %v10993_v10 = vld [vmem:[#allocation4 + $0x2c8] sm:$0xf0]  ;;  %v10915_v29 = vld [vmem:[#allocation4 + $0x58] sm:$0xf0]  ;;  %v9532_v30 = vld [vmem:[#allocation4 + $0x2b0] sm:$0xf] }
 0x2bb   : > { %4585 = vmatpush.bf16.msra.mxu2 %v9469_v26  ;;  %v9413_v26 = vor.u32 %v10964_v19, %v9412_v50  ;;  %4602 = vmatmul.bf16.vlgmr.msra.gmra.mxu0 %v13002_v28  ;;  %v2666_v45 = vsel %vm2654_vm9, %v12875_v46, %v2665_v62  ;;  %2683 = vst [vmem:[#allocation4 + $0x4cc] sm:$0xf] %v2667_v15  ;;  %v10922_v46 = vld [vmem:[#allocation4 + $0x90] sm:$0xf0]  ;;  %v10989_v8 = vld [vmem:[#allocation4 + $0x2ac] sm:$0xf] }
 0x2bc   : > { %4568 = vmatpush.bf16.msra.mxu3 %v9329_v12  ;;  %4692 = vmatpush.bf16.msrb.mxu0 %v9617_v58  ;;  %v2658_v17 = vsel %vm380_vm0, %v2647_v25, %v2648_v36  ;;  %v2660_v16 = vsel %vm2654_vm9, %v2636_v52, %v2648_v36  ;;  %2682 = vst [vmem:[#allocation4 + $0x4c4] sm:$0xff] %v2666_v45  ;;  %v9526_v25 = vld [vmem:[#allocation4 + $0x2c4] sm:$0xf0]  ;;  %v9244_v12 = vld [vmem:[#allocation4 + $0x78] sm:$0xf] }
 0x2bd   : > { %4636 = vmatpush.bf16.msrb.mxu1 %v9613_v20  ;;  %v2659_v39 = vsel %vm2654_vm9, %v12965_v60, %v2658_v17  ;;  %2679 = vst [vmem:[#allocation4 + $0x4b0] sm:$0xf] %v2660_v16  ;;  %v9245_v13 = vor.u32 %v10922_v46, %v9244_v12  ;;  %v9809_v19 = vor.u32 %v11059_v44, %v9806_v37  ;;  %v11052_v27 = vld [vmem:[#allocation4 + $0x4a4] sm:$0xf]  ;;  %v9216_v58 = vld [vmem:[#allocation4 + $0x40] sm:$0xf] }
 0x2be   : > { %9936 = vmatmul.msk.bf16.vlgmr.msra.gmra.mxu1 %vm4450_vm7, %v12971_v21  ;;  %2678 = vst [vmem:[#allocation4 + $0x4a8] sm:$0xff] %v2659_v39  ;;  %v9529_v18 = vor.u32 %v10989_v8, %v9526_v25  ;;  %v9533_v20 = vor.u32 %v10993_v10, %v9532_v30  ;;  %v10986_v42 = vld [vmem:[#allocation4 + $0x290] sm:$0xf0]  ;;  %v9778_v41 = vld [vmem:[#allocation4 + $0x4bc] sm:$0xf0]  ;;  %v9217_v24 = vor.u32 %v10915_v29, %v9216_v58 }
 0x2bf   : > { %4586 = vmatpush.bf16.msra.mxu2 %v9441_v31  ;;  %v2525_v55 = vpop.permute.xlu1 %2524  ;;  %v9498_v57 = vld [vmem:[#allocation4 + $0x28c] sm:$0xf0]  ;;  %v9781_v32 = vor.u32 %v11052_v27, %v9778_v41  ;;  %v10982_v61 = vld [vmem:[#allocation4 + $0x274] sm:$0xf]  ;;  %v11045_v52 = vld [vmem:[#allocation4 + $0x46c] sm:$0xf] }
 0x2c0   : > { %4569 = vmatpush.bf16.msra.mxu3 %v9301_v22  ;;  %4693 = vmatpush.bf16.msrb.mxu0 %v9589_v3  ;;  %v2537_v33 = vrot.slane %v2525_v55, 4  ;;  %v3199_v60 = vpop.permute.xlu0 %3198  ;;  %v9750_v22 = vld [vmem:[#allocation4 + $0x484] sm:$0xf0]  ;;  %v9386_v11 = vld [vmem:[#allocation4 + $0x1ac] sm:$0xf0] }
 0x2c1   : > { %4637 = vmatpush.bf16.msrb.mxu1 %v9585_v6  ;;  %v3207_v7 = vrot.slane %v3199_v60, 4  ;;  %v9470_v36 = vld [vmem:[#allocation4 + $0x254] sm:$0xf0]  ;;  %v9188_v6 = vld [vmem:[#allocation4 + $0x8] sm:$0xf]  ;;  %v9753_v62 = vor.u32 %v11045_v52, %v9750_v22 }
 0x2c2   : > { %v2547_v4 = vsel %vm380_vm0, %v2536_v48, %v2537_v33  ;;  %v2549_v0 = vsel %vm2543_vm13, %v2525_v55, %v2537_v33  ;;  %v10908_v48 = vld [vmem:[#allocation4 + $0x20] sm:$0xf0]  ;;  %v10954_v1 = vld [vmem:[#allocation4 + $0x194] sm:$0xf]  ;;  %v9476_v39 = vld [vmem:[#allocation4 + $0x240] sm:$0xf] }
 0x2c3   : > { %4587 = vmatpush.bf16.msra.mxu2 %v9413_v26  ;;  %v2548_v51 = vsel %vm2543_vm13, %v13007_v53, %v2547_v4  ;;  %2568 = vst [vmem:[#allocation4 + $0x478] sm:$0xf] %v2549_v0  ;;  %v3220_v23 = vsel %vm380_vm0, %v3206_v56, %v3207_v7  ;;  %v3222_v50 = vsel %vm3209_vm12, %v3199_v60, %v3207_v7  ;;  %v9504_v53 = vld [vmem:[#allocation4 + $0x278] sm:$0xf]  ;;  %v10979_v26 = vld [vmem:[#allocation4 + $0x258] sm:$0xf0] }
 0x2c4   : > { %4570 = vmatpush.bf16.msra.mxu3 %v9273_v5  ;;  %4694 = vmatpush.bf16.msrb.mxu0 %v9561_v40  ;;  %2567 = vst [vmem:[#allocation4 + $0x470] sm:$0xff] %v2548_v51  ;;  %v3221_v31 = vsel %vm3209_vm12, %v13035_v38, %v3220_v23  ;;  %v9501_v56 = vor.u32 %v10982_v61, %v9498_v57  ;;  %v9358_v25 = vld [vmem:[#allocation4 + $0x174] sm:$0xf0]  ;;  %v9442_v55 = vld [vmem:[#allocation4 + $0x21c] sm:$0xf0] }
 0x2c5   : > { %4638 = vmatpush.bf16.msrb.mxu1 %v9557_v54  ;;  %3237 = vst [vmem:[#allocation4 + $0x5dc] sm:$0xff] %v3221_v31  ;;  %v9505_v5 = vor.u32 %v10986_v42, %v9504_v53  ;;  %v9189_v9 = vor.u32 %v10908_v48, %v9188_v6  ;;  %v9389_v17 = vor.u32 %v10954_v1, %v9386_v11  ;;  %v9722_v54 = vld [vmem:[#allocation4 + $0x44c] sm:$0xf0]  ;;  %v11038_v33 = vld [vmem:[#allocation4 + $0x434] sm:$0xf] }
 0x2c6   : > { %4588 = vmatmul.bf16.vlgmr.msra.gmra.mxu2 %v12925_v59  ;;  %3238 = vst [vmem:[#allocation4 + $0x5e4] sm:$0xf] %v3222_v50  ;;  %v9477_v37 = vor.u32 %v10979_v26, %v9476_v39  ;;  %v10972_v60 = vld [vmem:[#allocation4 + $0x220] sm:$0xf0]  ;;  %v9448_v29 = vld [vmem:[#allocation4 + $0x208] sm:$0xf] }
 0x2c7   : > { %4650 = vmatpush.bf16.msrb.mxu2 %v9837_v35  ;;  %v3088_v3 = vpop.permute.xlu1 %3087  ;;  %v10975_v35 = vld [vmem:[#allocation4 + $0x23c] sm:$0xf]  ;;  %v10968_v8 = vld [vmem:[#allocation4 + $0x204] sm:$0xf]  ;;  %v9694_v7 = vld [vmem:[#allocation4 + $0x414] sm:$0xf0] }
 0x2c8   : > { %4571 = vmatpush.bf16.msra.mxu3 %v9245_v13  ;;  %4695 = vmatpush.bf16.msrb.mxu0 %v9533_v20  ;;  %v3080_v38 = vpop.permute.xlu0 %3079  ;;  %v3096_v15 = vrot.slane %v3088_v3, 4  ;;  %v9473_v16 = vor.u32 %v10975_v35, %v9470_v36  ;;  %v10947_v13 = vld [vmem:[#allocation4 + $0x15c] sm:$0xf]  ;;  %v10940_v30 = vld [vmem:[#allocation4 + $0x124] sm:$0xf] }
 0x2c9   : > { %4639 = vmatpush.bf16.msrb.mxu1 %v9529_v18  ;;  %v3092_v45 = vrot.slane %v3080_v38, 4  ;;  %v9449_v18 = vor.u32 %v10972_v60, %v9448_v29  ;;  %v9330_v27 = vld [vmem:[#allocation4 + $0x13c] sm:$0xf0]  ;;  %v10965_v4 = vld [vmem:[#allocation4 + $0x1e8] sm:$0xf0] }
 0x2ca   : > { %v3109_v40 = vsel %vm380_vm0, %v3095_v34, %v3096_v15  ;;  %v3111_v46 = vsel %vm3098_vm14, %v3088_v3, %v3096_v15  ;;  %v10961_v0 = vld [vmem:[#allocation4 + $0x1cc] sm:$0xf]  ;;  %v9414_v20 = vld [vmem:[#allocation4 + $0x1e4] sm:$0xf0]  ;;  %v9840_v58 = vld [vmem:[#allocation4 + $0x518] sm:$0xf]  ;;  %v9333_v48 = vor.u32 %v10940_v30, %v9330_v27 }
 0x2cb   : > { %4651 = vmatpush.bf16.msrb.mxu2 %v9809_v19  ;;  %v3102_v12 = vsel %vm380_vm0, %v3091_v14, %v3092_v45  ;;  %v3104_v44 = vsel %vm3098_vm14, %v3080_v38, %v3092_v45  ;;  %v3110_v10 = vsel %vm3098_vm14, %v12927_v49, %v3109_v40  ;;  %3127 = vst [vmem:[#allocation4 + $0x5ac] sm:$0xf] %v3111_v46  ;;  %v11070_v23 = vld [vmem:[#allocation4 + $0x530] sm:$0xf0]  ;;  %v11067_v50 = vld [vmem:[#allocation4 + $0x51c] sm:$0xf] }
 0x2cc   : > { %4572 = vmatpush.bf16.msra.mxu3 %v9217_v24  ;;  %4696 = vmatpush.bf16.msrb.mxu0 %v9505_v5  ;;  %v3103_v34 = vsel %vm3098_vm14, %v13032_v2, %v3102_v12  ;;  %3123 = vst [vmem:[#allocation4 + $0x590] sm:$0xf] %v3104_v44  ;;  %v9725_v19 = vor.u32 %v11038_v33, %v9722_v54  ;;  %v11031_v2 = vld [vmem:[#allocation4 + $0x3fc] sm:$0xf]  ;;  %v9842_v41 = vld [vmem:[#allocation4 + $0x534] sm:$0xf0] }
 0x2cd   : > { %4640 = vmatpush.bf16.msrb.mxu1 %v9501_v56  ;;  %3122 = vst [vmem:[#allocation4 + $0x588] sm:$0xff] %v3103_v34  ;;  %v9361_v14 = vor.u32 %v10947_v13, %v9358_v25  ;;  %v9445_v49 = vor.u32 %v10968_v8, %v9442_v55  ;;  %v9697_v51 = vor.u32 %v11031_v2, %v9694_v7  ;;  %v9420_v31 = vld [vmem:[#allocation4 + $0x1d0] sm:$0xf]  ;;  %v9666_v24 = vld [vmem:[#allocation4 + $0x3dc] sm:$0xf0] }
 0x2ce   : > { %3126 = vst [vmem:[#allocation4 + $0x5a4] sm:$0xff] %v3110_v10  ;;  %v9421_v61 = vor.u32 %v10965_v4, %v9420_v31  ;;  %v10933_v53 = vld [vmem:[#allocation4 + $0xec] sm:$0xf]  ;;  %v9302_v52 = vld [vmem:[#allocation4 + $0x104] sm:$0xf0]  ;;  %v9841_v5 = vor.u32 %v11070_v23, %v9840_v58  ;;  %v9845_v11 = vor.u32 %v11067_v50, %v9842_v41 }
 0x2cf   : > { %4652 = vmatpush.bf16.msrb.mxu2 %v9781_v32  ;;  %v9417_v32 = vor.u32 %v10961_v0, %v9414_v20  ;;  %v11024_v36 = vld [vmem:[#allocation4 + $0x3c4] sm:$0xf]  ;;  %v11063_v6 = vld [vmem:[#allocation4 + $0x4f8] sm:$0xf0]  ;;  %v9814_v3 = vld [vmem:[#allocation4 + $0x4fc] sm:$0xf0] }
 0x2d0   : > { %4573 = vmatpush.bf16.msra.mxu3 %v9189_v9  ;;  %4697 = vmatpush.bf16.msrb.mxu0 %v9477_v37  ;;  %v2977_v42 = vpop.permute.xlu0 %2976  ;;  %v9669_v38 = vor.u32 %v11024_v36, %v9666_v24  ;;  %v9812_v9 = vld [vmem:[#allocation4 + $0x4e0] sm:$0xf]  ;;  %v11060_v1 = vld [vmem:[#allocation4 + $0x4e4] sm:$0xf]  ;;  %v9274_v15 = vld [vmem:[#allocation4 + $0xcc] sm:$0xf0] }
 0x2d1   : > { %4641 = vmatpush.bf16.msrb.mxu1 %v9473_v16  ;;  %v2985_v57 = vrot.slane %v2977_v42, 4  ;;  %v9924_v35 = vld [vmem:[#allocation4 + $0x5c0] sm:$0xf]  ;;  %v11091_v45 = vld [vmem:[#allocation4 + $0x5d8] sm:$0xf0]  ;;  %v9817_v16 = vor.u32 %v11060_v1, %v9814_v3 }
 0x2d2   : > { %v10926_v39 = vld [vmem:[#allocation4 + $0xb4] sm:$0xf]  ;;  %v11056_v54 = vld [vmem:[#allocation4 + $0x4c0] sm:$0xf0]  ;;  %v9784_v46 = vld [vmem:[#allocation4 + $0x4a8] sm:$0xf]  ;;  %v9925_v12 = vor.u32 %v11091_v45, %v9924_v35 }
 0x2d3   : > { %4653 = vmatpush.bf16.msrb.mxu2 %v9753_v62  ;;  %4574 = vmatmul.bf16.vlgmr.msra.gmra.mxu3 %v12873_v63  ;;  %v2998_v22 = vsel %vm380_vm0, %v2984_v43, %v2985_v57  ;;  %v3000_v56 = vsel %vm2987_vm15, %v2977_v42, %v2985_v57  ;;  %v9305_v43 = vor.u32 %v10933_v53, %v9302_v52  ;;  %v9638_v62 = vld [vmem:[#allocation4 + $0x3a4] sm:$0xf0]  ;;  %v11053_v37 = vld [vmem:[#allocation4 + $0x4ac] sm:$0xf]  ;;  %v10919_v44 = vld [vmem:[#allocation4 + $0x7c] sm:$0xf] }
 0x2d4   : > { %4622 = vmatpush.bf16.msrb.mxu3 %v9389_v17  ;;  %4698 = vmatpush.bf16.msrb.mxu0 %v9449_v18  ;;  %v2999_v26 = vsel %vm2987_vm15, %v13058_v47, %v2998_v22  ;;  %3016 = vst [vmem:[#allocation4 + $0x574] sm:$0xf] %v3000_v56  ;;  %v9813_v17 = vor.u32 %v11063_v6, %v9812_v9  ;;  %v11017_v47 = vld [vmem:[#allocation4 + $0x38c] sm:$0xf]  ;;  %v9786_v25 = vld [vmem:[#allocation4 + $0x4c4] sm:$0xf0] }
 0x2d5   : > { %4642 = vmatpush.bf16.msrb.mxu1 %v9445_v49  ;;  %3015 = vst [vmem:[#allocation4 + $0x56c] sm:$0xff] %v2999_v26  ;;  %v9641_v40 = vor.u32 %v11017_v47, %v9638_v62  ;;  %v9277_v55 = vor.u32 %v10926_v39, %v9274_v15  ;;  %v9246_v10 = vld [vmem:[#allocation4 + $0x94] sm:$0xf0]  ;;  %v9896_v33 = vld [vmem:[#allocation4 + $0x588] sm:$0xf]  ;;  %v9785_v34 = vor.u32 %v11056_v54, %v9784_v46 }
 0x2d6   : > { %v11084_v60 = vld [vmem:[#allocation4 + $0x5a0] sm:$0xf0]  ;;  %v9789_v13 = vor.u32 %v11053_v37, %v9786_v25  ;;  %v1747_v8 = vld [vmem:[%s11768_s15 + $0x1c] sm:$0xf]  ;;  %v9756_v29 = vld [vmem:[#allocation4 + $0x470] sm:$0xf]  ;;  %v9249_v27 = vor.u32 %v10919_v44, %v9246_v10 }
 0x2d7   : > { %4654 = vmatpush.bf16.msrb.mxu2 %v9725_v19  ;;  %v11049_v19 = vld [vmem:[#allocation4 + $0x488] sm:$0xf0]  ;;  %v11046_v7 = vld [vmem:[#allocation4 + $0x474] sm:$0xf]  ;;  %v9758_v49 = vld [vmem:[#allocation4 + $0x48c] sm:$0xf0]  ;;  %v1758_v18 = vunpack.c.l.bf16 %v1747_v8  ;;  %v9897_v4 = vor.u32 %v11084_v60, %v9896_v33 }
 0x2d8   : > { %4623 = vmatpush.bf16.msrb.mxu3 %v9361_v14  ;;  %4699 = vmatpush.bf16.msrb.mxu0 %v9421_v61  ;;  %v1751_v14 = vld [vmem:[%s11768_s15 + $0x40] sm:$0xf]  ;;  %v9218_v2 = vld [vmem:[#allocation4 + $0x5c] sm:$0xf0]  ;;  %v9761_v23 = vor.u32 %v11046_v7, %v9758_v49  ;;  %v9394_v50 = vld [vmem:[#allocation4 + $0x1b4] sm:$0xf0] }
 0x2d9   : > { %4643 = vmatpush.bf16.msrb.mxu1 %v9417_v32  ;;  %v1765_v30 = vunpack.c.l.bf16 %v1751_v14  ;;  %v9868_v0 = vld [vmem:[#allocation4 + $0x550] sm:$0xf]  ;;  %v1772_v58 = vmax.f32 %v1758_v18, 0.0  ;;  %v10912_v41 = vld [vmem:[#allocation4 + $0x44] sm:$0xf] }
 0x2da   : > { %v11042_v57 = vld [vmem:[#allocation4 + $0x450] sm:$0xf0]  ;;  %v9221_v32 = vor.u32 %v10912_v41, %v9218_v2  ;;  %v10955_v53 = vld [vmem:[#allocation4 + $0x19c] sm:$0xf]  ;;  %v9190_v52 = vld [vmem:[#allocation4 + $0x24] sm:$0xf0] }
 0x2db   : > { %4655 = vmatpush.bf16.msrb.mxu2 %v9697_v51  ;;  %4700 = vmatmul.bf16.vlgmr.msrb.gmra.mxu0 %v12925_v59  ;;  %v1779_v42 = vmax.f32 %v1765_v30, 0.0  ;;  %v9757_v51 = vor.u32 %v11049_v19, %v9756_v29  ;;  %v1783_v31 = vpack.c.bf16 %v1772_v58, %v1772_v58  ;;  %v9397_v22 = vor.u32 %v10955_v53, %v9394_v50  ;;  %v9728_v56 = vld [vmem:[#allocation4 + $0x438] sm:$0xf]  ;;  %v9366_v3 = vld [vmem:[#allocation4 + $0x17c] sm:$0xf0] }
 0x2dc   : > { %4624 = vmatpush.bf16.msrb.mxu3 %v9333_v48  ;;  %4762 = vmatpush.bf16.msra.mxu0 %v9845_v11  ;;  %v11077_v20 = vld [vmem:[#allocation4 + $0x568] sm:$0xf0]  ;;  %v9730_v48 = vld [vmem:[#allocation4 + $0x454] sm:$0xf0]  ;;  %v9729_v11 = vor.u32 %v11042_v57, %v9728_v56  ;;  %v9702_v9 = vld [vmem:[#allocation4 + $0x41c] sm:$0xf0] }
 0x2dd   : > { %4706 = vmatpush.bf16.msra.mxu1 %v9841_v5  ;;  %v1787_v24 = vpack.c.bf16 %v1779_v42, %v1779_v42  ;;  %v9869_v61 = vor.u32 %v11077_v20, %v9868_v0  ;;  %v11039_v5 = vld [vmem:[#allocation4 + $0x43c] sm:$0xf]  ;;  %1791 = vst [vmem:[#allocation4 + $0x2f0] sm:$0xf] %v1783_v31  ;;  %v9918_v6 = vld [vmem:[#allocation4 + $0x5d4] sm:$0xf0] }
 0x2de   : > { %4644 = vmatmul.bf16.vlgmr.msrb.gmra.mxu1 %v12925_v59  ;;  %v9733_v36 = vor.u32 %v11039_v5, %v9730_v48  ;;  %v10905_v26 = vld [vmem:[#allocation4 + $0xc] sm:$0xf]  ;;  %v10948_v62 = vld [vmem:[#allocation4 + $0x164] sm:$0xf]  ;;  %v9700_v45 = vld [vmem:[#allocation4 + $0x400] sm:$0xf] }
 0x2df   : > { %4656 = vmatpush.bf16.msrb.mxu2 %v9669_v38  ;;  %1795 = vst [vmem:[#allocation4 + $0x30c] sm:$0xf] %v1787_v24  ;;  %v11035_v38 = vld [vmem:[#allocation4 + $0x418] sm:$0xf0]  ;;  %v9193_v1 = vor.u32 %v10905_v26, %v9190_v52  ;;  %v9369_v35 = vor.u32 %v10948_v62, %v9366_v3  ;;  %v11080_v47 = vld [vmem:[#allocation4 + $0x584] sm:$0xf] }
 0x2e0   : > { %4625 = vmatpush.bf16.msrb.mxu3 %v9305_v43  ;;  %4763 = vmatpush.bf16.msra.mxu0 %v9817_v16  ;;  %v11087_v43 = vld [vmem:[#allocation4 + $0x5bc] sm:$0xf]  ;;  %v9701_v16 = vor.u32 %v11035_v38, %v9700_v45  ;;  %v9338_v54 = vld [vmem:[#allocation4 + $0x144] sm:$0xf0]  ;;  %v9890_v37 = vld [vmem:[#allocation4 + $0x59c] sm:$0xf0] }
 0x2e1   : > { %4707 = vmatpush.bf16.msra.mxu1 %v9813_v17  ;;  %v9921_v15 = vor.u32 %v11087_v43, %v9918_v6  ;;  %v11032_v17 = vld [vmem:[#allocation4 + $0x404] sm:$0xf]  ;;  %v9674_v46 = vld [vmem:[#allocation4 + $0x3e4] sm:$0xf0]  ;;  %v10941_v25 = vld [vmem:[#allocation4 + $0x12c] sm:$0xf] }
 0x2e2   : > { %v9705_v39 = vor.u32 %v11032_v17, %v9702_v9  ;;  %v9672_v44 = vld [vmem:[#allocation4 + $0x3c8] sm:$0xf]  ;;  %v11025_v10 = vld [vmem:[#allocation4 + $0x3cc] sm:$0xf]  ;;  %v9310_v33 = vld [vmem:[#allocation4 + $0x10c] sm:$0xf0] }
 0x2e3   : > { %4657 = vmatpush.bf16.msrb.mxu2 %v9641_v40  ;;  %v11028_v40 = vld [vmem:[#allocation4 + $0x3e0] sm:$0xf0]  ;;  %v9862_v19 = vld [vmem:[#allocation4 + $0x564] sm:$0xf0]  ;;  %v10958_v8 = vld [vmem:[#allocation4 + $0x1b0] sm:$0xf0] }
 0x2e4   : > { %4626 = vmatpush.bf16.msrb.mxu3 %v9277_v55  ;;  %4764 = vmatpush.bf16.msra.mxu0 %v9789_v13  ;;  %v9893_v55 = vor.u32 %v11080_v47, %v9890_v37  ;;  %v9673_v60 = vor.u32 %v11028_v40, %v9672_v44  ;;  %v11073_v13 = vld [vmem:[#allocation4 + $0x54c] sm:$0xf]  ;;  %v10934_v14 = vld [vmem:[#allocation4 + $0xf4] sm:$0xf]  ;;  %v9932_v7 = vld [vmem:[#allocation4 + $0x5c8] sm:$0xf] }
 0x2e5   : > { %4708 = vmatpush.bf16.msra.mxu1 %v9785_v34  ;;  %v9677_v34 = vor.u32 %v11025_v10, %v9674_v46  ;;  %v11021_v29 = vld [vmem:[#allocation4 + $0x3a8] sm:$0xf0]  ;;  %v11092_v49 = vld [vmem:[#allocation4 + $0x5e0] sm:$0xf0]  ;;  %v9646_v18 = vld [vmem:[#allocation4 + $0x3ac] sm:$0xf0]  ;;  %v9313_v0 = vor.u32 %v10934_v14, %v9310_v33 }
 0x2e6   : > { %4658 = vmatmul.bf16.vlgmr.msrb.gmra.mxu2 %v13002_v28  ;;  %v11088_v30 = vld [vmem:[#allocation4 + $0x5c4] sm:$0xf]  ;;  %v9392_v2 = vld [vmem:[#allocation4 + $0x198] sm:$0xf]  ;;  %v9644_v20 = vld [vmem:[#allocation4 + $0x390] sm:$0xf]  ;;  %v9933_v50 = vor.u32 %v11092_v49, %v9932_v7 }
 0x2e7   : > { %4725 = vmatpush.bf16.msra.mxu2 %v9925_v12  ;;  %v9341_v12 = vor.u32 %v10941_v25, %v9338_v54  ;;  %v9393_v58 = vor.u32 %v10958_v8, %v9392_v2  ;;  %v9645_v42 = vor.u32 %v11021_v29, %v9644_v20  ;;  %v10951_v48 = vld [vmem:[#allocation4 + $0x178] sm:$0xf0]  ;;  %v9904_v31 = vld [vmem:[#allocation4 + $0x590] sm:$0xf]  ;;  %v11085_v24 = vld [vmem:[#allocation4 + $0x5a8] sm:$0xf0] }
 0x2e8   : > { %4627 = vmatpush.bf16.msrb.mxu3 %v9249_v27  ;;  %4765 = vmatpush.bf16.msra.mxu0 %v9761_v23  ;;  %v9926_v27 = vld [vmem:[#allocation4 + $0x5dc] sm:$0xf0]  ;;  %v9282_v23 = vld [vmem:[#allocation4 + $0xd4] sm:$0xf0]  ;;  %v9898_v53 = vld [vmem:[#allocation4 + $0x5a4] sm:$0xf0] }
 0x2e9   : > { %4709 = vmatpush.bf16.msra.mxu1 %v9757_v51  ;;  %v11018_v51 = vld [vmem:[#allocation4 + $0x394] sm:$0xf]  ;;  %v9929_v57 = vor.u32 %v11088_v30, %v9926_v27  ;;  %v9364_v52 = vld [vmem:[#allocation4 + $0x160] sm:$0xf]  ;;  %v10944_v6 = vld [vmem:[#allocation4 + $0x140] sm:$0xf0] }
 0x2ea   : > { %v9649_v41 = vor.u32 %v11018_v51, %v9646_v18  ;;  %v9365_v56 = vor.u32 %v10951_v48, %v9364_v52  ;;  %v9254_v5 = vld [vmem:[#allocation4 + $0x9c] sm:$0xf0]  ;;  %v9876_v3 = vld [vmem:[#allocation4 + $0x558] sm:$0xf]  ;;  %v11078_v26 = vld [vmem:[#allocation4 + $0x570] sm:$0xf0] }
 0x2eb   : > { %4726 = vmatpush.bf16.msra.mxu2 %v9897_v4  ;;  %v9865_v4 = vor.u32 %v11073_v13, %v9862_v19  ;;  %v10920_v38 = vld [vmem:[#allocation4 + $0x84] sm:$0xf]  ;;  %v11074_v9 = vld [vmem:[#allocation4 + $0x554] sm:$0xf]  ;;  %v9336_v43 = vld [vmem:[#allocation4 + $0x128] sm:$0xf]  ;;  %v9877_v17 = vor.u32 %v11078_v26, %v9876_v3 }
 0x2ec   : > { %4628 = vmatpush.bf16.msrb.mxu3 %v9221_v32  ;;  %4766 = vmatpush.bf16.msra.mxu0 %v9733_v36  ;;  %v10927_v32 = vld [vmem:[#allocation4 + $0xbc] sm:$0xf]  ;;  %v9257_v62 = vor.u32 %v10920_v38, %v9254_v5  ;;  %v9226_v45 = vld [vmem:[#allocation4 + $0x64] sm:$0xf0]  ;;  %v10937_v47 = vld [vmem:[#allocation4 + $0x108] sm:$0xf0] }
 0x2ed   : > { %4710 = vmatpush.bf16.msra.mxu1 %v9729_v11  ;;  %v9905_v11 = vor.u32 %v11085_v24, %v9904_v31  ;;  %v10913_v40 = vld [vmem:[#allocation4 + $0x4c] sm:$0xf]  ;;  %v9308_v46 = vld [vmem:[#allocation4 + $0xf0] sm:$0xf]  ;;  %v10952_v25 = vld [vmem:[#allocation4 + $0x180] sm:$0xf0] }
 0x2ee   : > { %v9229_v37 = vor.u32 %v10913_v40, %v9226_v45  ;;  %v9198_v44 = vld [vmem:[#allocation4 + $0x2c] sm:$0xf0]  ;;  %v9372_v10 = vld [vmem:[#allocation4 + $0x168] sm:$0xf]  ;;  %v9624_v33 = vld [vmem:[#allocation4 + $0x360] sm:$0xf] }
 0x2ef   : > { %4727 = vmatpush.bf16.msra.mxu2 %v9869_v61  ;;  %v11081_v61 = vld [vmem:[#allocation4 + $0x58c] sm:$0xf]  ;;  %v10906_v13 = vld [vmem:[#allocation4 + $0x14] sm:$0xf]  ;;  %v9280_v19 = vld [vmem:[#allocation4 + $0xb8] sm:$0xf] }
 0x2f0   : > { %4629 = vmatpush.bf16.msrb.mxu3 %v9193_v1  ;;  %4767 = vmatpush.bf16.msra.mxu0 %v9705_v39  ;;  %v9901_v36 = vor.u32 %v11081_v61, %v9898_v53  ;;  %v9870_v1 = vld [vmem:[#allocation4 + $0x56c] sm:$0xf0]  ;;  %v9400_v39 = vld [vmem:[#allocation4 + $0x1a0] sm:$0xf]  ;;  %v9201_v8 = vor.u32 %v10906_v13, %v9198_v44  ;;  %v10945_v29 = vld [vmem:[#allocation4 + $0x148] sm:$0xf0] }
 0x2f1   : > { %4711 = vmatpush.bf16.msra.mxu1 %v9701_v16  ;;  %v9873_v16 = vor.u32 %v11074_v9, %v9870_v1  ;;  %v9344_v14 = vld [vmem:[#allocation4 + $0x130] sm:$0xf]  ;;  %v10923_v18 = vld [vmem:[#allocation4 + $0x98] sm:$0xf0]  ;;  %v11008_v30 = vld [vmem:[#allocation4 + $0x340] sm:$0xf0] }
 0x2f2   : > { %v9345_v27 = vor.u32 %v10945_v29, %v9344_v14  ;;  %v10938_v2 = vld [vmem:[#allocation4 + $0x110] sm:$0xf0]  ;;  %v9568_v20 = vld [vmem:[#allocation4 + $0x2f0] sm:$0xf]  ;;  %v9224_v48 = vld [vmem:[#allocation4 + $0x48] sm:$0xf] }
 0x2f3   : > { %4734 = vmatpush.bf16.msrb.mxu2 %v9397_v22  ;;  %4630 = vmatmul.bf16.vlgmr.msrb.gmra.mxu3 %v12873_v63  ;;  %v9285_v22 = vor.u32 %v10927_v32, %v9282_v23  ;;  %v9316_v23 = vld [vmem:[#allocation4 + $0xf8] sm:$0xf]  ;;  %v10931_v31 = vld [vmem:[#allocation4 + $0xd8] sm:$0xf0]  ;;  %v9288_v32 = vld [vmem:[#allocation4 + $0xc0] sm:$0xf] }
 0x2f4   : > { %4669 = vmatpush.bf16.msra.mxu3 %v9921_v15  ;;  %4768 = vmatpush.bf16.msra.mxu0 %v9677_v34  ;;  %v10959_v15 = vld [vmem:[#allocation4 + $0x1b8] sm:$0xf0]  ;;  %v9373_v34 = vor.u32 %v10952_v25, %v9372_v10  ;;  %v10909_v61 = vld [vmem:[#allocation4 + $0x28] sm:$0xf0]  ;;  %v10994_v53 = vld [vmem:[#allocation4 + $0x2d0] sm:$0xf0]  ;;  %v9289_v52 = vor.u32 %v10931_v31, %v9288_v32 }
 0x2f5   : > { %4712 = vmatpush.bf16.msra.mxu1 %v9673_v60  ;;  %v9401_v54 = vor.u32 %v10959_v15, %v9400_v39  ;;  %v11015_v60 = vld [vmem:[#allocation4 + $0x378] sm:$0xf0]  ;;  %v9540_v5 = vld [vmem:[#allocation4 + $0x2b8] sm:$0xf]  ;;  %v9512_v9 = vld [vmem:[#allocation4 + $0x280] sm:$0xf] }
 0x2f6   : > { %9938 = vmatmul.msk.bf16.vlgmr.msra.gmra.mxu2 %vm4450_vm7, %v12971_v21  ;;  %v9625_v49 = vor.u32 %v11015_v60, %v9624_v33  ;;  %v11011_v3 = vld [vmem:[#allocation4 + $0x35c] sm:$0xf]  ;;  %v9541_v26 = vor.u32 %v10994_v53, %v9540_v5  ;;  %v11004_v15 = vld [vmem:[#allocation4 + $0x324] sm:$0xf]  ;;  %v10997_v45 = vld [vmem:[#allocation4 + $0x2ec] sm:$0xf] }
 0x2f7   : > { %4735 = vmatpush.bf16.msrb.mxu2 %v9369_v35  ;;  %v9337_v35 = vor.u32 %v10944_v6, %v9336_v43  ;;  %v9590_v43 = vld [vmem:[#allocation4 + $0x33c] sm:$0xf0]  ;;  %v9232_v39 = vld [vmem:[#allocation4 + $0x50] sm:$0xf]  ;;  %v10990_v60 = vld [vmem:[#allocation4 + $0x2b4] sm:$0xf] }
 0x2f8   : > { %4670 = vmatpush.bf16.msra.mxu3 %v9893_v55  ;;  %4769 = vmatpush.bf16.msra.mxu0 %v9649_v41  ;;  %v9309_v55 = vor.u32 %v10937_v47, %v9308_v46  ;;  %v9317_v41 = vor.u32 %v10938_v2, %v9316_v23  ;;  %v10980_v47 = vld [vmem:[#allocation4 + $0x260] sm:$0xf0]  ;;  %v9484_v46 = vld [vmem:[#allocation4 + $0x248] sm:$0xf]  ;;  %v9534_v10 = vld [vmem:[#allocation4 + $0x2cc] sm:$0xf0] }
 0x2f9   : > { %4713 = vmatpush.bf16.msra.mxu1 %v9645_v42  ;;  %v9485_v25 = vor.u32 %v10980_v47, %v9484_v46  ;;  %v9456_v33 = vld [vmem:[#allocation4 + $0x210] sm:$0xf]  ;;  %v9537_v13 = vor.u32 %v10990_v60, %v9534_v10  ;;  %v9506_v14 = vld [vmem:[#allocation4 + $0x294] sm:$0xf0]  ;;  %v10983_v29 = vld [vmem:[#allocation4 + $0x27c] sm:$0xf] }
 0x2fa   : > { %v9422_v23 = vld [vmem:[#allocation4 + $0x1ec] sm:$0xf0]  ;;  %v11036_v10 = vld [vmem:[#allocation4 + $0x420] sm:$0xf0] }
 0x2fb   : > { %4736 = vmatpush.bf16.msrb.mxu2 %v9341_v12  ;;  %4770 = vmatmul.bf16.vlgmr.msra.gmra.mxu0 %v13002_v28  ;;  %v10930_v12 = vld [vmem:[#allocation4 + $0xd0] sm:$0xf0] }
 0x2fc   : > { %4671 = vmatpush.bf16.msra.mxu3 %v9865_v4  ;;  %4837 = vmatpush.bf16.msrb.mxu0 %v9933_v50  ;;  %v9281_v7 = vor.u32 %v10930_v12, %v9280_v19  ;;  %v9252_v4 = vld [vmem:[#allocation4 + $0x80] sm:$0xf]  ;;  %v10916_v50 = vld [vmem:[#allocation4 + $0x60] sm:$0xf0]  ;;  %v10973_v12 = vld [vmem:[#allocation4 + $0x228] sm:$0xf0] }
 0x2fd   : > { %4781 = vmatpush.bf16.msrb.mxu1 %v9929_v57  ;;  %v9253_v42 = vor.u32 %v10923_v18, %v9252_v4  ;;  %v9225_v24 = vor.u32 %v10916_v50, %v9224_v48  ;;  %v9428_v19 = vld [vmem:[#allocation4 + $0x1d8] sm:$0xf]  ;;  %v9509_v18 = vor.u32 %v10983_v29, %v9506_v14  ;;  %v10976_v4 = vld [vmem:[#allocation4 + $0x244] sm:$0xf]  ;;  %v10962_v48 = vld [vmem:[#allocation4 + $0x1d4] sm:$0xf] }
 0x2fe   : > { %4714 = vmatmul.bf16.vlgmr.msra.gmra.mxu1 %v13002_v28 }
 0x2ff   : > { %4737 = vmatpush.bf16.msrb.mxu2 %v9313_v0  ;;  %v9596_v0 = vld [vmem:[#allocation4 + $0x328] sm:$0xf] }
 0x300   : > { %4678 = vmatpush.bf16.msrb.mxu3 %v9393_v58  ;;  %4838 = vmatpush.bf16.msrb.mxu0 %v9905_v11  ;;  %v11001_v58 = vld [vmem:[#allocation4 + $0x308] sm:$0xf0]  ;;  %v9597_v51 = vor.u32 %v11008_v30, %v9596_v0  ;;  %v9260_v11 = vld [vmem:[#allocation4 + $0x88] sm:$0xf]  ;;  %v9478_v30 = vld [vmem:[#allocation4 + $0x25c] sm:$0xf0] }
 0x301   : > { %4782 = vmatpush.bf16.msrb.mxu1 %v9901_v36  ;;  %v9569_v57 = vor.u32 %v11001_v58, %v9568_v20  ;;  %v10924_v36 = vld [vmem:[#allocation4 + $0xa0] sm:$0xf0]  ;;  %v9481_v20 = vor.u32 %v10976_v4, %v9478_v30  ;;  %v9450_v58 = vld [vmem:[#allocation4 + $0x224] sm:$0xf0]  ;;  %v9680_v4 = vld [vmem:[#allocation4 + $0x3d0] sm:$0xf] }
 0x302   : > { %v9261_v1 = vor.u32 %v10924_v36, %v9260_v11  ;;  %v9792_v11 = vld [vmem:[#allocation4 + $0x4b0] sm:$0xf]  ;;  %v11057_v36 = vld [vmem:[#allocation4 + $0x4c8] sm:$0xf0] }
 0x303   : > { %4738 = vmatpush.bf16.msrb.mxu2 %v9285_v22  ;;  %9937 = vmatmul.msk.bf16.vlgmr.msra.gmra.mxu3 %vm4450_vm7, %v12971_v21  ;;  %v9196_v22 = vld [vmem:[#allocation4 + $0x10] sm:$0xf] }
 0x304   : > { %4679 = vmatpush.bf16.msrb.mxu3 %v9365_v56  ;;  %4839 = vmatpush.bf16.msrb.mxu0 %v9877_v17  ;;  %v9618_v56 = vld [vmem:[#allocation4 + $0x374] sm:$0xf0]  ;;  %v9197_v6 = vor.u32 %v10909_v61, %v9196_v22  ;;  %v9562_v17 = vld [vmem:[#allocation4 + $0x304] sm:$0xf0]  ;;  %v11064_v22 = vld [vmem:[#allocation4 + $0x500] sm:$0xf0] }
 0x305   : > { %4783 = vmatpush.bf16.msrb.mxu1 %v9873_v16  ;;  %v9621_v38 = vor.u32 %v11011_v3, %v9618_v56  ;;  %v9593_v16 = vor.u32 %v11004_v15, %v9590_v43  ;;  %v9565_v40 = vor.u32 %v10997_v45, %v9562_v17 }
 0x307   : > { %4739 = vmatpush.bf16.msrb.mxu2 %v9257_v62  ;;  %v10917_v62 = vld [vmem:[#allocation4 + $0x68] sm:$0xf0] }
 0x308   : > { %4680 = vmatpush.bf16.msrb.mxu3 %v9337_v35 }
 0x309   : > { %4790 = vmatpush.bf16.msra.mxu1 %v9401_v54  ;;  %v9233_v54 = vor.u32 %v10917_v62, %v9232_v39  ;;  %v13176_v62 = vld [vmem:[#allocation10] sm:$0xff] }
 0x30a   : > { %v13179_v39 = vperm.slane %v13176_v62, 0  ;;  %v13182_v46 = vperm.slane %v13176_v62, 1 }
 0x30b   : > { %4740 = vmatpush.bf16.msrb.mxu2 %v9229_v37  ;;  %9940 = vmatmul.msk.bf16.vlgmr.msrb.gmra.mxu0 %vm4450_vm7, %v12971_v21  ;;  %v10910_v37 = vld [vmem:[#allocation4 + $0x30] sm:$0xf0] }
 0x30c   : > { %4681 = vmatpush.bf16.msrb.mxu3 %v9309_v55  ;;  %v9204_v55 = vld [vmem:[#allocation4 + $0x18] sm:$0xf]  ;;  %15334 = vst [vmem:[#allocation16_spill] sm:$0xff] %v13179_v39 }
 0x30d   : > { %4791 = vmatpush.bf16.msra.mxu1 %v9373_v34  ;;  %v9205_v44 = vor.u32 %v10910_v37, %v9204_v55  ;;  %v9457_v34 = vor.u32 %v10973_v12, %v9456_v33  ;;  %15335 = vst [vmem:[#allocation17_spill] sm:$0xff] %v13182_v46  ;;  %v9736_v37 = vld [vmem:[#allocation4 + $0x440] sm:$0xf] }
 0x30e   : > { %9939 = vmatmul.msk.bf16.vlgmr.msrb.gmra.mxu1 %vm4450_vm7, %v12971_v21  ;;  %v10987_v21 = vld [vmem:[#allocation4 + $0x298] sm:$0xf0] }
 0x30f   : > { %4741 = vmatpush.bf16.msrb.mxu2 %v9201_v8  ;;  %v9513_v35 = vor.u32 %v10987_v21, %v9512_v9  ;;  %v10966_v8 = vld [vmem:[#allocation4 + $0x1f0] sm:$0xf0]  ;;  %v9764_v9 = vld [vmem:[#allocation4 + $0x478] sm:$0xf] }
 0x310   : > { %4682 = vmatpush.bf16.msrb.mxu3 %v9281_v7  ;;  %v9429_v7 = vor.u32 %v10966_v8, %v9428_v19  ;;  %v11050_v21 = vld [vmem:[#allocation4 + $0x490] sm:$0xf0] }
 0x311   : > { %4792 = vmatpush.bf16.msra.mxu1 %v9345_v27  ;;  %v4477_v27 = vpop.f32.mrf.mxu1  ;;  %v9765_v17 = vor.u32 %v11050_v21, %v9764_v9 }
 0x312   : > { %4742 = vmatmul.bf16.vlgmr.msrb.gmra.mxu2 %v12873_v63 }
 0x313   : > { %4804 = vmatpush.bf16.msra.mxu2 %v9625_v49  ;;  %v4463_v49 = vpop.f32.mrf.mxu0 }
 0x314   : > { %4683 = vmatpush.bf16.msrb.mxu3 %v9253_v42  ;;  %v11633_v42 = vmov 0   ;;  %v4478_v56 = vadd.f32 %v4477_v27, %v4463_v49 }
 0x315   : > { %4793 = vmatpush.bf16.msra.mxu1 %v9317_v41  ;;  %4846 = vst [vmem:[#allocation2] sm:$0xf] %v11633_v42  ;;  %v9848_v41 = vld [vmem:[#allocation4 + $0x520] sm:$0xf] }
 0x316   : > { %4847 = vst [vmem:[#allocation2 + $0x24] sm:$0xf] %v11633_v42 }
 0x317   : > { %4805 = vmatpush.bf16.msra.mxu2 %v9597_v51  ;;  %v10969_v51 = vld [vmem:[#allocation4 + $0x20c] sm:$0xf]  ;;  %4848 = vst [vmem:[#allocation2 + $0x20] sm:$0xf] %v11633_v42 }
 0x318   : > { %4684 = vmatpush.bf16.msrb.mxu3 %v9225_v24  ;;  %v4505_v2 = vpop.f32.mrf.mxu3  ;;  %4849 = vst [vmem:[#allocation2 + $0x44] sm:$0xf] %v11633_v42  ;;  %v9425_v24 = vor.u32 %v10962_v48, %v9422_v23 }
 0x319   : > { %4794 = vmatpush.bf16.msra.mxu1 %v9289_v52  ;;  %v4479_v31 = vpop.f32.mrf.mxu1  ;;  %7118 = vst [vmem:[#allocation3] sm:$0xf] %v11633_v42  ;;  %v9820_v52 = vld [vmem:[#allocation4 + $0x4e8] sm:$0xf] }
 0x31a   : > { %7119 = vst [vmem:[#allocation3 + $0x24] sm:$0xf] %v11633_v42  ;;  %v9821_v5 = vor.u32 %v11064_v22, %v9820_v52 }
 0x31b   : > { %4806 = vmatpush.bf16.msra.mxu2 %v9569_v57  ;;  %v4465_v50 = vpop.f32.mrf.mxu0  ;;  %v11071_v57 = vld [vmem:[#allocation4 + $0x538] sm:$0xf0] }
 0x31c   : > { %4685 = vmatpush.bf16.msrb.mxu3 %v9197_v6  ;;  %v9849_v61 = vor.u32 %v11071_v57, %v9848_v41 }
 0x31d   : > { %4795 = vmatpush.bf16.msra.mxu1 %v9261_v1  ;;  %v4491_v0 = vpop.f32.mrf.mxu2 }
 0x31e   : > { %v4492_v3 = vadd.f32 %v4491_v0, %v4478_v56 }
 0x31f   : > { %4807 = vmatpush.bf16.msra.mxu2 %v9541_v26  ;;  %4686 = vmatmul.bf16.vlgmr.msrb.gmra.mxu3 %v12873_v63  ;;  %v9793_v26 = vor.u32 %v11057_v36, %v9792_v11 }
 0x320   : > { %4748 = vmatpush.bf16.msra.mxu3 %v9621_v38  ;;  %v4507_v32 = vpop.f32.mrf.mxu3  ;;  %v4506_v15 = vadd.f32 %v4505_v2, %v4492_v3 }
 0x321   : > { %4796 = vmatpush.bf16.msra.mxu1 %v9233_v54  ;;  %v4547_v38 = vpop.f32.mrf.mxu1 }
 0x322   : > { %v4850_v47 = vmax.f32 %v4506_v15, 0.0 }
 0x323   : > { %4808 = vmatpush.bf16.msra.mxu2 %v9513_v35  ;;  %v4533_v6 = vpop.f32.mrf.mxu0  ;;  %v4480_v35 = vadd.f32 %v4479_v31, %v4465_v50 }
 0x324   : > { %4749 = vmatpush.bf16.msra.mxu3 %v9593_v16  ;;  %v11043_v16 = vld [vmem:[#allocation4 + $0x458] sm:$0xf0] }
 0x325   : > { %4797 = vmatpush.bf16.msra.mxu1 %v9205_v44  ;;  %v4493_v53 = vpop.f32.mrf.mxu2  ;;  %v9737_v55 = vor.u32 %v11043_v16, %v9736_v37  ;;  %v9708_v44 = vld [vmem:[#allocation4 + $0x408] sm:$0xf] }
 0x326   : > { %v4494_v54 = vadd.f32 %v4493_v53, %v4480_v35  ;;  %v9709_v29 = vor.u32 %v11036_v10, %v9708_v44  ;;  %v13205_v35 = vperm.slane %v13176_v62, 3 }
 0x327   : > { %4809 = vmatpush.bf16.msra.mxu2 %v9485_v25 }
 0x328   : > { %4750 = vmatpush.bf16.msra.mxu3 %v9565_v40  ;;  %4798 = vmatmul.bf16.vlgmr.msra.gmra.mxu1 %v12873_v63  ;;  %v9453_v63 = vor.u32 %v10969_v51, %v9450_v58  ;;  %v9652_v51 = vld [vmem:[#allocation4 + $0x398] sm:$0xf]  ;;  %15337 = vst [vmem:[#allocation19_spill] sm:$0xff] %v13205_v35 }
 0x329   : > { %v4549_v60 = vpop.f32.mrf.mxu1 }
 0x32b   : > { %4810 = vmatpush.bf16.msra.mxu2 %v9457_v34  ;;  %v4535_v25 = vpop.f32.mrf.mxu0  ;;  %v4879_v34 = vmul.f32 %v13179_v39, %v4850_v47 }
 0x32c   : > { %4751 = vmatpush.bf16.msra.mxu3 %v9537_v13  ;;  %v4508_v13 = vadd.f32 %v4507_v32, %v4494_v54 }
 0x32d   : > { %v4561_v43 = vpop.f32.mrf.mxu2 }
 0x32e   : > { %v4857_v30 = vmax.f32 %v4508_v13, 0.0 }
 0x32f   : > { %4811 = vmatpush.bf16.msra.mxu2 %v9429_v7 }
 0x330   : > { %4752 = vmatpush.bf16.msra.mxu3 %v9509_v18  ;;  %v11029_v18 = vld [vmem:[#allocation4 + $0x3e8] sm:$0xf0]  ;;  %v4886_v58 = vmul.f32 %v13179_v39, %v4857_v30 }
 0x331   : > { %v9681_v2 = vor.u32 %v11029_v18, %v9680_v4 }
 0x332   : > { %4812 = vmatmul.bf16.vlgmr.msra.gmra.mxu2 %v12925_v59 }
 0x334   : > { %4753 = vmatpush.bf16.msra.mxu3 %v9481_v20  ;;  %v11022_v20 = vld [vmem:[#allocation4 + $0x3b0] sm:$0xf0] }
 0x335   : > { %v4563_v14 = vpop.f32.mrf.mxu2 }
 0x336   : > { %v4519_v1 = vpop.f32.mrf.mxu3 }
 0x337   : > { %v4534_v45 = vadd.f32 %v4533_v6, %v4519_v1 }
 0x338   : > { %4754 = vmatpush.bf16.msra.mxu3 %v9453_v63  ;;  %v9653_v63 = vor.u32 %v11022_v20, %v9652_v51  ;;  %v4603_v53 = vpop.f32.mrf.mxu0 }
 0x33b   : > { %v4617_v57 = vpop.f32.mrf.mxu1 }
 0x33c   : > { %4755 = vmatpush.bf16.msra.mxu3 %v9425_v24 }
 0x33e   : > { %v4521_v33 = vpop.f32.mrf.mxu3 }
 0x33f   : > { %4756 = vmatmul.bf16.vlgmr.msra.gmra.mxu3 %v12925_v59  ;;  %v4548_v59 = vadd.f32 %v4547_v38, %v4534_v45  ;;  %v4536_v8 = vadd.f32 %v4535_v25, %v4521_v33 }
 0x340   : > { %4818 = vmatpush.bf16.msrb.mxu3 %v9849_v61 }
 0x341   : > { %v4562_v40 = vadd.f32 %v4561_v43, %v4548_v59  ;;  %v4550_v49 = vadd.f32 %v4549_v60, %v4536_v8 }
 0x343   : > { %v4851_v12 = vmax.f32 %v4562_v40, 0.0  ;;  %v4564_v27 = vadd.f32 %v4563_v14, %v4550_v49  ;;  %v4619_v24 = vpop.f32.mrf.mxu1 }
 0x344   : > { %4819 = vmatpush.bf16.msrb.mxu3 %v9821_v5 }
 0x345   : > { %v4880_v19 = vmul.f32 %v13182_v46, %v4851_v12  ;;  %v4858_v0 = vmax.f32 %v4564_v27, 0.0 }
 0x347   : > { %v13186_v7 = vpack.c.bf16 %v4880_v19, %v4879_v34  ;;  %v4887_v42 = vmul.f32 %v13182_v46, %v4858_v0 }
 0x348   : > { %4820 = vmatpush.bf16.msrb.mxu3 %v9793_v26  ;;  %v4605_v26 = vpop.f32.mrf.mxu0 }
 0x349   : > { %4901 = vst [vmem:[#allocation2 + $0x4] sm:$0xff] %v13186_v7  ;;  %v13192_v23 = vpack.c.bf16 %v4887_v42, %v4886_v58  ;;  %v4589_v31 = vpop.f32.mrf.mxu2 }
 0x34a   : > { %5827 = vst [vmem:[#allocation4 + $0x2d8] sm:$0xff] %v13186_v7 }
 0x34b   : > { %4905 = vst [vmem:[#allocation2 + $0x28] sm:$0xff] %v13192_v23 }
 0x34c   : > { %4821 = vmatpush.bf16.msrb.mxu3 %v9765_v17  ;;  %5831 = vst [vmem:[#allocation4 + $0x2f4] sm:$0xff] %v13192_v23 }
 0x350   : > { %4822 = vmatpush.bf16.msrb.mxu3 %v9737_v55  ;;  %v13194_v50 = vld [vmem:[#allocation2] sm:$0xff] }
 0x351   : > { %4925 = vrot.lane.b32.xlu1 %v13194_v50, %s15205_s18  ;;  %v4591_v61 = vpop.f32.mrf.mxu2 }
 0x352   : > { %v13223_v13 = vld [vmem:[#allocation2 + $0x24] sm:$0xff] }
 0x354   : > { %4823 = vmatpush.bf16.msrb.mxu3 %v9709_v29 }
 0x356   : > { %v4575_v41 = vpop.f32.mrf.mxu3 }
 0x357   : > { %v4590_v52 = vadd.f32 %v4589_v31, %v4575_v41 }
 0x358   : > { %4824 = vmatpush.bf16.msrb.mxu3 %v9681_v2  ;;  %v4701_v14 = vpop.f32.mrf.mxu0 }
 0x359   : > { %v4604_v5 = vadd.f32 %v4603_v53, %v4590_v52 }
 0x35b   : > { %v4645_v22 = vpop.f32.mrf.mxu1  ;;  %v4618_v6 = vadd.f32 %v4617_v57, %v4604_v5 }
 0x35c   : > { %4825 = vmatpush.bf16.msrb.mxu3 %v9653_v63 }
 0x35d   : > { %v4852_v1 = vmax.f32 %v4618_v6, 0.0 }
 0x35e   : > { %v4577_v48 = vpop.f32.mrf.mxu3 }
 0x35f   : > { %4826 = vmatmul.bf16.vlgmr.msrb.gmra.mxu3 %v13002_v28  ;;  %v4592_v3 = vadd.f32 %v4591_v61, %v4577_v48  ;;  %v13202_v28 = vperm.slane %v13176_v62, 2  ;;  %v13228_v48 = vperm.slane %v13176_v62, 4  ;;  %v13231_v61 = vperm.slane %v13176_v62, 5 }
 0x360   : > { %v4703_v30 = vpop.f32.mrf.mxu0 }
 0x361   : > { %15336 = vst [vmem:[#allocation18_spill] sm:$0xff] %v13202_v28  ;;  %v4606_v43 = vadd.f32 %v4605_v26, %v4592_v3  ;;  %v4881_v16 = vmul.f32 %v13202_v28, %v4852_v1 }
 0x362   : > { %15338 = vst [vmem:[#allocation20_spill] sm:$0xff] %v13228_v48 }
 0x363   : > { %v4647_v9 = vpop.f32.mrf.mxu1  ;;  %v4620_v47 = vadd.f32 %v4619_v24, %v4606_v43  ;;  %15339 = vst [vmem:[#allocation21_spill] sm:$0xff] %v13231_v61 }
 0x365   : > { %v4859_v55 = vmax.f32 %v4620_v47, 0.0 }
 0x367   : > { %v4888_v10 = vmul.f32 %v13202_v28, %v4859_v55 }
 0x369   : > { %v4659_v11 = vpop.f32.mrf.mxu2 }
 0x371   : > { %v4661_v59 = vpop.f32.mrf.mxu2 }
 0x376   : > { %v4631_v32 = vpop.f32.mrf.mxu3 }
 0x377   : > { %v4646_v36 = vadd.f32 %v4645_v22, %v4631_v32 }
 0x378   : > { %v4771_v20 = vpop.f32.mrf.mxu0 }
 0x379   : > { %v4660_v38 = vadd.f32 %v4659_v11, %v4646_v36  ;;  %v4729_v19 = vpop.f32.mrf.mxu2 }
 0x37b   : > { %v4715_v29 = vpop.f32.mrf.mxu1 }
 0x37e   : > { %v4633_v56 = vpop.f32.mrf.mxu3 }
 0x37f   : > { %v4648_v45 = vadd.f32 %v4647_v9, %v4633_v56 }
 0x380   : > { %v4773_v56 = vpop.f32.mrf.mxu0 }
 0x381   : > { %v4662_v40 = vadd.f32 %v4661_v59, %v4648_v45  ;;  %v4731_v49 = vpop.f32.mrf.mxu2 }
 0x383   : > { %v4717_v27 = vpop.f32.mrf.mxu1 }
 0x386   : > { %v4673_v21 = vpop.f32.mrf.mxu3 }
 0x387   : > { %v4674_v15 = vadd.f32 %v4673_v21, %v4660_v38 }
 0x389   : > { %v4853_v17 = vmax.f32 %v4674_v15, 0.0 }
 0x38b   : > { %v4882_v54 = vmul.f32 %v13205_v35, %v4853_v17  ;;  %v4785_v42 = vpop.f32.mrf.mxu1 }
 0x38d   : > { %v13209_v37 = vpack.c.bf16 %v4882_v54, %v4881_v16 }
 0x38e   : > { %v4675_v25 = vpop.f32.mrf.mxu3 }
 0x38f   : > { %4902 = vst [vmem:[#allocation2 + $0xc] sm:$0xff] %v13209_v37  ;;  %v4676_v12 = vadd.f32 %v4675_v25, %v4662_v40  ;;  %v4841_v40 = vpop.f32.mrf.mxu0 }
 0x390   : > { %5828 = vst [vmem:[#allocation4 + $0x2e0] sm:$0xff] %v13209_v37 }
 0x391   : > { %v4860_v44 = vmax.f32 %v4676_v12, 0.0 }
 0x393   : > { %v4889_v33 = vmul.f32 %v13205_v35, %v4860_v44  ;;  %v4787_v3 = vpop.f32.mrf.mxu1  ;;  %v13246_v44 = vperm.slane %v13176_v62, 6 }
 0x395   : > { %v13215_v60 = vpack.c.bf16 %v4889_v33, %v4888_v10  ;;  %v4743_v2 = vpop.f32.mrf.mxu2  ;;  %15340 = vst [vmem:[#allocation22_spill] sm:$0xff] %v13246_v44 }
 0x396   : > { %v13217_v34 = vld [vmem:[#allocation2 + $0x8] sm:$0xff] }
 0x397   : > { %4906 = vst [vmem:[#allocation2 + $0x30] sm:$0xff] %v13215_v60  ;;  %4927 = vrot.lane.b32.xlu2 %v13217_v34, %s15205_s18 }
 0x398   : > { %5832 = vst [vmem:[#allocation4 + $0x2fc] sm:$0xff] %v13215_v60 }
 0x39d   : > { %v4745_v53 = vpop.f32.mrf.mxu2 }
 0x39e   : > { %v13241_v54 = vld [vmem:[#allocation2 + $0x2c] sm:$0xff] }
 0x39f   : > { %4933 = vrot.lane.b32.xlu2 %v13223_v13, %s15205_s18 }
 0x3a2   : > { %v4687_v8 = vpop.f32.mrf.mxu3 }
 0x3a3   : > { %v4702_v4 = vadd.f32 %v4701_v14, %v4687_v8 }
 0x3a5   : > { %v4716_v0 = vadd.f32 %v4715_v29, %v4702_v4  ;;  %v4799_v59 = vpop.f32.mrf.mxu1 }
 0x3a7   : > { %v4730_v51 = vadd.f32 %v4729_v19, %v4716_v0 }
 0x3a9   : > { %v4854_v31 = vmax.f32 %v4730_v51, 0.0 }
 0x3aa   : > { %v4689_v18 = vpop.f32.mrf.mxu3 }
 0x3ab   : > { %v4704_v63 = vadd.f32 %v4703_v30, %v4689_v18  ;;  %v4883_v5 = vmul.f32 %v13228_v48, %v4854_v31  ;;  %v4843_v30 = vpop.f32.mrf.mxu0 }
 0x3ad   : > { %v4718_v24 = vadd.f32 %v4717_v27, %v4704_v63  ;;  %v4801_v10 = vpop.f32.mrf.mxu1 }
 0x3af   : > { %v4732_v11 = vadd.f32 %v4731_v49, %v4718_v24 }
 0x3b1   : > { %v4861_v9 = vmax.f32 %v4732_v11, 0.0 }
 0x3b3   : > { %v4890_v43 = vmul.f32 %v13228_v48, %v4861_v9 }
 0x3b5   : > { %v4813_v16 = vpop.f32.mrf.mxu2 }
 0x3b6   : > { %v4814_v47 = vadd.f32 %v4813_v16, %v4799_v59 }
 0x3bd   : > { %v4815_v33 = vpop.f32.mrf.mxu2 }
 0x3be   : > { %v4816_v8 = vadd.f32 %v4815_v33, %v4801_v10 }
 0x3c2   : > { %v4757_v58 = vpop.f32.mrf.mxu3 }
 0x3c3   : > { %v4758_v41 = vadd.f32 %v4757_v58, %v4743_v2  ;;  %v4926_v58 = vpop.permute.xlu1 %4925 }
 0x3c5   : > { %v4772_v57 = vadd.f32 %v4771_v20, %v4758_v41 }
 0x3c7   : > { %v4786_v32 = vadd.f32 %v4785_v42, %v4772_v57  ;;  %v4941_v57 = vrot.slane %v4926_v58, 4 }
 0x3c9   : > { %v4855_v52 = vmax.f32 %v4786_v32, 0.0 }
 0x3ca   : > { %v4759_v22 = vpop.f32.mrf.mxu3 }
 0x3cb   : > { %v4884_v36 = vmul.f32 %v13231_v61, %v4855_v52  ;;  %v4760_v6 = vadd.f32 %v4759_v22, %v4745_v53 }
 0x3cd   : > { %v4895_v26 = vpack.c.bf16 %v4884_v36, %v4883_v5  ;;  %v4774_v38 = vadd.f32 %v4773_v56, %v4760_v6 }
 0x3cf   : > { %4903 = vst [vmem:[#allocation2 + $0x14] sm:$0xff] %v4895_v26  ;;  %v4788_v21 = vadd.f32 %v4787_v3, %v4774_v38 }
 0x3d0   : > { %5829 = vst [vmem:[#allocation4 + $0x2e8] sm:$0xff] %v4895_v26 }
 0x3d1   : > { %v4862_v1 = vmax.f32 %v4788_v21, 0.0 }
 0x3d3   : > { %v4891_v15 = vmul.f32 %v13231_v61, %v4862_v1 }
 0x3d5   : > { %v4899_v45 = vpack.c.bf16 %v4891_v15, %v4890_v43 }
 0x3d6   : > { %v13237_v17 = vld [vmem:[#allocation2 + $0x10] sm:$0xff] }
 0x3d7   : > { %4907 = vst [vmem:[#allocation2 + $0x38] sm:$0xff] %v4899_v45  ;;  %4929 = vrot.lane.b32.xlu0 %v13237_v17, %s15205_s18 }
 0x3d8   : > { %5833 = vst [vmem:[#allocation4 + $0x304] sm:$0xff] %v4899_v45 }
 0x3de   : > { %v4985_v42 = vld [vmem:[#allocation2 + $0x34] sm:$0xff] }
 0x3df   : > { %4935 = vrot.lane.b32.xlu0 %v13241_v54, %s15205_s18 }
 0x3e2   : > { %v4827_v25 = vpop.f32.mrf.mxu3 }
 0x3e3   : > { %v4828_v55 = vadd.f32 %v4827_v25, %v4814_v47 }
 0x3e5   : > { %v4842_v12 = vadd.f32 %v4841_v40, %v4828_v55 }
 0x3e7   : > { %v4856_v19 = vmax.f32 %v4842_v12, 0.0  ;;  %4995 = vrot.lane.b32.xlu0 %v13194_v50, %s11608_s19 }
 0x3e9   : > { %v4885_v14 = vmul.f32 %v13246_v44, %v4856_v19 }
 0x3ea   : > { %v4829_v29 = vpop.f32.mrf.mxu3 }
 0x3eb   : > { %v4896_v49 = vpack.c.bf16 %v4885_v14, %v4885_v14  ;;  %v4830_v18 = vadd.f32 %v4829_v29, %v4816_v8 }
 0x3ed   : > { %4904 = vst [vmem:[#allocation2 + $0x1c] sm:$0xf] %v4896_v49  ;;  %v4844_v27 = vadd.f32 %v4843_v30, %v4830_v18 }
 0x3ef   : > { %v4863_v4 = vmax.f32 %v4844_v27, 0.0 }
 0x3f1   : > { %v4892_v2 = vmul.f32 %v13246_v44, %v4863_v4  ;;  %v4928_v41 = vpop.permute.xlu2 %4927  ;;  %v9992_v44 = vld [vmem:[#allocation5 + $0x18] sm:$0xf0] }
 0x3f2   : > { %v4942_v31 = vrot.slane %v4928_v41, 4 }
 0x3f3   : > { %v4900_v62 = vpack.c.bf16 %v4892_v2, %v4892_v2 }
 0x3f4   : > { %v5822_v0 = vld [vmem:[#allocation2 + $0x1c] sm:$0xf]  ;;  %v4949_v24 = vsel %vm380_vm0, %v4941_v57, %v4942_v31 }
 0x3f5   : > { %v4982_v20 = vld [vmem:[#allocation2 + $0x18] sm:$0xff]  ;;  %5830 = vst [vmem:[#allocation4 + $0x2f0] sm:$0xf] %v5822_v0  ;;  %v4950_v32 = vsel %vm382_vm1, %v4926_v58, %v4949_v24 }
 0x3f6   : > { %5001 = vrot.lane.b32.xlu0 %v4982_v20, %s11608_s19  ;;  %4931 = vrot.lane.b32.xlu1 %v4982_v20, %s15205_s18  ;;  %4908 = vst [vmem:[#allocation2 + $0x40] sm:$0xf] %v4900_v62  ;;  %v14067_v28 = vld [vmem:[#allocation2 + $0x1c] sm:$0xff] }
 0x3f7   : > { %4971 = vst [vmem:[#allocation4] sm:$0xff] %v4950_v32 }
 0x3f9   : > { %v4934_v56 = vpop.permute.xlu2 %4933 }
 0x3fa   : > { %v4945_v36 = vrot.slane %v4934_v56, 4 }
 0x3fd   : > { %v5826_v51 = vld [vmem:[#allocation2 + $0x40] sm:$0xf] }
 0x3fe   : > { %5007 = vrot.lane.b32.xlu0 %v4985_v42, %s11608_s19  ;;  %v4916_v63 = vld [vmem:[#allocation2 + $0x3c] sm:$0xff]  ;;  %4937 = vrot.lane.b32.xlu1 %v4985_v42, %s15205_s18  ;;  %5834 = vst [vmem:[#allocation4 + $0x30c] sm:$0xf] %v5826_v51 }
 0x3ff   : > { %4939 = vrot.lane.b32.xlu2 %v4916_v63, %s15205_s18  ;;  %s15351_s18 = smov 39  }
 0x406   : > { %5067 = vrot.lane.b32.xlu0 %v13217_v34, %s11609_s20  ;;  %4997 = vrot.lane.b32.xlu1 %v13217_v34, %s11608_s19 }
 0x407   : > { %4999 = vrot.lane.b32.xlu2 %v13237_v17, %s11608_s19 }
 0x40e   : > { %5073 = vrot.lane.b32.xlu0 %v13223_v13, %s11609_s20  ;;  %5003 = vrot.lane.b32.xlu1 %v13223_v13, %s11608_s19 }
 0x40f   : > { %5005 = vrot.lane.b32.xlu2 %v13241_v54, %s11608_s19 }
 0x416   : > { %5079 = vrot.lane.b32.xlu0 %v4916_v63, %s11609_s20  ;;  %5009 = vrot.lane.b32.xlu1 %v4916_v63, %s11608_s19  ;;  %s15341_s19 = smov 119  }
 0x417   : > { %5065 = vrot.lane.b32.xlu2 %v13194_v50, %s11609_s20 }
 0x41e   : > { %5139 = vrot.lane.b32.xlu0 %v13237_v17, %s11610_s26  ;;  %5069 = vrot.lane.b32.xlu1 %v13237_v17, %s11609_s20 }
 0x41f   : > { %5071 = vrot.lane.b32.xlu2 %v4982_v20, %s11609_s20 }
 0x426   : > { %5145 = vrot.lane.b32.xlu0 %v13241_v54, %s11610_s26  ;;  %5075 = vrot.lane.b32.xlu1 %v13241_v54, %s11609_s20 }
 0x427   : > { %5077 = vrot.lane.b32.xlu2 %v4985_v42, %s11609_s20  ;;  %s15342_s20 = smov 127  }
 0x42e   : > { %5205 = vrot.lane.b32.xlu0 %v13194_v50, %s11611_s28  ;;  %5135 = vrot.lane.b32.xlu1 %v13194_v50, %s11610_s26 }
 0x42f   : > { %5137 = vrot.lane.b32.xlu2 %v13217_v34, %s11610_s26 }
 0x436   : > { %5211 = vrot.lane.b32.xlu0 %v4982_v20, %s11611_s28  ;;  %5141 = vrot.lane.b32.xlu1 %v4982_v20, %s11610_s26 }
 0x437   : > { %5143 = vrot.lane.b32.xlu2 %v13223_v13, %s11610_s26 }
 0x43e   : > { %5217 = vrot.lane.b32.xlu0 %v4985_v42, %s11611_s28  ;;  %5147 = vrot.lane.b32.xlu1 %v4985_v42, %s11610_s26 }
 0x43f   : > { %5149 = vrot.lane.b32.xlu2 %v4916_v63, %s11610_s26  ;;  %s15343_s26 = smov 37  }
 0x446   : > { %5277 = vrot.lane.b32.xlu0 %v13217_v34, %s15207_s29  ;;  %5207 = vrot.lane.b32.xlu1 %v13217_v34, %s11611_s28 }
 0x447   : > { %5209 = vrot.lane.b32.xlu2 %v13237_v17, %s11611_s28 }
 0x449   : > { %v4930_v53 = vpop.permute.xlu0 %4929 }
 0x44a   : > { %v4943_v52 = vrot.slane %v4930_v53, 4 }
 0x44c   : > { %v4951_v22 = vsel %vm380_vm0, %v4942_v31, %v4943_v52 }
 0x44d   : > { %v4952_v5 = vsel %vm382_vm1, %v4928_v41, %v4951_v22 }
 0x44e   : > { %5423 = vrot.lane.b32.xlu0 %v13223_v13, %s15209_s11  ;;  %5213 = vrot.lane.b32.xlu1 %v13223_v13, %s11611_s28  ;;  %4972 = vst [vmem:[#allocation4 + $0x8] sm:$0xff] %v4952_v5 }
 0x44f   : > { %5215 = vrot.lane.b32.xlu2 %v13241_v54, %s11611_s28 }
 0x451   : > { %v4936_v11 = vpop.permute.xlu0 %4935 }
 0x452   : > { %v4946_v6 = vrot.slane %v4936_v11, 4 }
 0x454   : > { %v4956_v3 = vsel %vm380_vm0, %v4945_v36, %v4946_v6 }
 0x455   : > { %v4957_v26 = vsel %vm382_vm1, %v4934_v56, %v4956_v3 }
 0x456   : > { %5347 = vrot.lane.b32.xlu0 %v13217_v34, %s15211_s10  ;;  %5219 = vrot.lane.b32.xlu1 %v4916_v63, %s11611_s28  ;;  %4975 = vst [vmem:[#allocation4 + $0x1c] sm:$0xff] %v4957_v26  ;;  %s15344_s28 = smov 17  }
 0x457   : > { %5275 = vrot.lane.b32.xlu2 %v13194_v50, %s15207_s29 }
 0x459   : > { %v4940_v38 = vpop.permute.xlu2 %4939  ;;  %v4996_v1 = vpop.permute.xlu0 %4995 }
 0x45a   : > { %v4948_v9 = vrot.slane %v4940_v38, 4  ;;  %v5011_v42 = vrot.slane %v4996_v1, 4 }
 0x45c   : > { %v4962_v21 = vsel %vm382_vm1, %v4940_v38, %v4948_v9 }
 0x45d   : > { %4978 = vst [vmem:[#allocation4 + $0x34] sm:$0xf] %v4962_v21 }
 0x45e   : > { %6481 = vrot.lane.b32.xlu0 %v13186_v7, %s15224_s17  ;;  %5415 = vrot.lane.b32.xlu1 %v13194_v50, %s15209_s11 }
 0x45f   : > { %5417 = vrot.lane.b32.xlu2 %v13217_v34, %s15209_s11 }
 0x461   : > { %v5000_v43 = vpop.permute.xlu2 %4999 }
 0x462   : > { %v5013_v17 = vrot.slane %v5000_v43, 4 }
 0x466   : > { %6491 = vrot.lane.b32.xlu0 %v13215_v60, %s15224_s17  ;;  %5425 = vrot.lane.b32.xlu1 %v13241_v54, %s15209_s11  ;;  %s15354_s11 = smov 10  }
 0x467   : > { %5345 = vrot.lane.b32.xlu2 %v13194_v50, %s15211_s10 }
 0x468   : > { %v5002_v15 = vpop.permute.xlu0 %5001  ;;  %v4932_v45 = vpop.permute.xlu1 %4931 }
 0x469   : > { %v5014_v59 = vrot.slane %v5002_v15, 4  ;;  %v5006_v16 = vpop.permute.xlu2 %5005  ;;  %v4944_v47 = vrot.slane %v4932_v45, 4 }
 0x46a   : > { %v5016_v14 = vrot.slane %v5006_v16, 4 }
 0x46b   : > { %v5023_v40 = vsel %vm380_vm0, %v5013_v17, %v5014_v59  ;;  %v5025_v25 = vsel %vm493_vm2, %v5002_v15, %v5014_v59  ;;  %v4953_v55 = vsel %vm380_vm0, %v4943_v52, %v4944_v47  ;;  %v4955_v33 = vsel %vm382_vm1, %v4932_v45, %v4944_v47 }
 0x46c   : > { %v5024_v12 = vsel %vm493_vm2, %v5000_v43, %v5023_v40  ;;  %5044 = vst [vmem:[#allocation4 + $0x50] sm:$0xf] %v5025_v25  ;;  %v4954_v10 = vsel %vm382_vm1, %v4930_v53, %v4953_v55 }
 0x46d   : > { %5043 = vst [vmem:[#allocation4 + $0x48] sm:$0xff] %v5024_v12 }
 0x46e   : > { %4973 = vst [vmem:[#allocation4 + $0x10] sm:$0xff] %v4954_v10  ;;  %5921 = vrot.lane.b32.xlu0 %v13186_v7, %s15341_s19  ;;  %5353 = vrot.lane.b32.xlu1 %v13223_v13, %s15211_s10 }
 0x46f   : > { %4974 = vst [vmem:[#allocation4 + $0x18] sm:$0xf] %v4955_v33  ;;  %5355 = vrot.lane.b32.xlu2 %v13241_v54, %s15211_s10  ;;  %s15357_s10 = smov 117  }
 0x470   : > { %v5008_v19 = vpop.permute.xlu0 %5007  ;;  %v4938_v8 = vpop.permute.xlu1 %4937 }
 0x471   : > { %v5017_v29 = vrot.slane %v5008_v19, 4  ;;  %v5066_v49 = vpop.permute.xlu2 %5065  ;;  %v4947_v18 = vrot.slane %v4938_v8, 4 }
 0x472   : > { %v5081_v51 = vrot.slane %v5066_v49, 4 }
 0x473   : > { %v5028_v30 = vsel %vm380_vm0, %v5016_v14, %v5017_v29  ;;  %v4958_v27 = vsel %vm380_vm0, %v4946_v6, %v4947_v18  ;;  %v4960_v4 = vsel %vm380_vm0, %v4947_v18, %v4948_v9 }
 0x474   : > { %v5029_v2 = vsel %vm493_vm2, %v5006_v16, %v5028_v30  ;;  %v4959_v62 = vsel %vm382_vm1, %v4936_v11, %v4958_v27  ;;  %v4961_v0 = vsel %vm382_vm1, %v4938_v8, %v4960_v4 }
 0x475   : > { %5046 = vst [vmem:[#allocation4 + $0x5c] sm:$0xff] %v5029_v2 }
 0x476   : > { %4976 = vst [vmem:[#allocation4 + $0x24] sm:$0xff] %v4959_v62  ;;  %5931 = vrot.lane.b32.xlu0 %v13215_v60, %s15341_s19  ;;  %6483 = vrot.lane.b32.xlu1 %v13209_v37, %s15224_s17 }
 0x477   : > { %4977 = vst [vmem:[#allocation4 + $0x2c] sm:$0xff] %v4961_v0  ;;  %6489 = vrot.lane.b32.xlu2 %v13192_v23, %s15224_s17 }
 0x478   : > { %v5068_v20 = vpop.permute.xlu0 %5067  ;;  %v4998_v58 = vpop.permute.xlu1 %4997 }
 0x479   : > { %v5082_v63 = vrot.slane %v5068_v20, 4  ;;  %v5072_v41 = vpop.permute.xlu2 %5071  ;;  %v5012_v57 = vrot.slane %v4998_v58, 4 }
 0x47a   : > { %v5084_v31 = vrot.slane %v5072_v41, 4 }
 0x47b   : > { %v5089_v24 = vsel %vm380_vm0, %v5081_v51, %v5082_v63  ;;  %v5019_v32 = vsel %vm380_vm0, %v5011_v42, %v5012_v57  ;;  %v5021_v53 = vsel %vm380_vm0, %v5012_v57, %v5013_v17 }
 0x47c   : > { %v5090_v52 = vsel %vm604_vm3, %v5066_v49, %v5089_v24  ;;  %v5095_v22 = vsel %vm604_vm3, %v5072_v41, %v5084_v31  ;;  %v5020_v56 = vsel %vm493_vm2, %v4996_v1, %v5019_v32  ;;  %v5022_v5 = vsel %vm493_vm2, %v4998_v58, %v5021_v53 }
 0x47d   : > { %5111 = vst [vmem:[#allocation4 + $0x70] sm:$0xff] %v5090_v52 }
 0x47e   : > { %5114 = vst [vmem:[#allocation4 + $0x88] sm:$0xf] %v5095_v22  ;;  %6419 = vrot.lane.b32.xlu0 %v13192_v23, %s15222_s13  ;;  %5283 = vrot.lane.b32.xlu1 %v13223_v13, %s15207_s29 }
 0x47f   : > { %5041 = vst [vmem:[#allocation4 + $0x38] sm:$0xff] %v5020_v56  ;;  %5285 = vrot.lane.b32.xlu2 %v13241_v54, %s15207_s29  ;;  %s15352_s29 = smov 19  }
 0x480   : > { %5042 = vst [vmem:[#allocation4 + $0x40] sm:$0xff] %v5022_v5  ;;  %v5074_v11 = vpop.permute.xlu0 %5073  ;;  %v5004_v36 = vpop.permute.xlu1 %5003 }
 0x481   : > { %v5078_v6 = vpop.permute.xlu2 %5077  ;;  %v5015_v3 = vrot.slane %v5004_v36, 4  ;;  %v5085_v62 = vrot.slane %v5074_v11, 4 }
 0x482   : > { %v5087_v1 = vrot.slane %v5078_v6, 4 }
 0x483   : > { %v5026_v26 = vsel %vm380_vm0, %v5015_v3, %v5016_v14 }
 0x484   : > { %v5027_v38 = vsel %vm493_vm2, %v5004_v36, %v5026_v26 }
 0x485   : > { %5045 = vst [vmem:[#allocation4 + $0x54] sm:$0xff] %v5027_v38 }
 0x486   : > { %5853 = vrot.lane.b32.xlu0 %v13209_v37, %s15342_s20  ;;  %5923 = vrot.lane.b32.xlu1 %v13209_v37, %s15341_s19 }
 0x487   : > { %5929 = vrot.lane.b32.xlu2 %v13192_v23, %s15341_s19 }
 0x488   : > { %v5080_v9 = vpop.permute.xlu0 %5079  ;;  %v5010_v21 = vpop.permute.xlu1 %5009 }
 0x489   : > { %v5088_v43 = vrot.slane %v5080_v9, 4  ;;  %v5138_v15 = vpop.permute.xlu2 %5137  ;;  %v5018_v45 = vrot.slane %v5010_v21, 4 }
 0x48a   : > { %v5152_v10 = vrot.slane %v5138_v15, 4 }
 0x48b   : > { %v5100_v17 = vsel %vm380_vm0, %v5087_v1, %v5088_v43  ;;  %v5102_v59 = vsel %vm604_vm3, %v5080_v9, %v5088_v43  ;;  %v5030_v16 = vsel %vm380_vm0, %v5017_v29, %v5018_v45  ;;  %v5032_v25 = vsel %vm493_vm2, %v5010_v21, %v5018_v45 }
 0x48c   : > { %v5101_v47 = vsel %vm604_vm3, %v5078_v6, %v5100_v17  ;;  %5118 = vst [vmem:[#allocation4 + $0xa4] sm:$0xf] %v5102_v59  ;;  %v5031_v40 = vsel %vm493_vm2, %v5008_v19, %v5030_v16  ;;  %vm15349_vm2 = vcmask 736256  }
 0x48d   : > { %5117 = vst [vmem:[#allocation4 + $0x9c] sm:$0xff] %v5101_v47 }
 0x48e   : > { %5047 = vst [vmem:[#allocation4 + $0x64] sm:$0xff] %v5031_v40  ;;  %6341 = vrot.lane.b32.xlu0 %v13186_v7, %s15213_s16  ;;  %6411 = vrot.lane.b32.xlu1 %v13186_v7, %s15222_s13 }
 0x48f   : > { %5048 = vst [vmem:[#allocation4 + $0x6c] sm:$0xf] %v5032_v25  ;;  %6413 = vrot.lane.b32.xlu2 %v13209_v37, %s15222_s13 }
 0x490   : > { %v5140_v55 = vpop.permute.xlu0 %5139  ;;  %v5070_v12 = vpop.permute.xlu1 %5069 }
 0x491   : > { %v5153_v33 = vrot.slane %v5140_v55, 4  ;;  %v5144_v8 = vpop.permute.xlu2 %5143  ;;  %v5083_v19 = vrot.slane %v5070_v12, 4 }
 0x492   : > { %v5155_v0 = vrot.slane %v5144_v8, 4 }
 0x493   : > { %v5161_v14 = vsel %vm380_vm0, %v5152_v10, %v5153_v33  ;;  %v5091_v29 = vsel %vm380_vm0, %v5082_v63, %v5083_v19  ;;  %v5093_v49 = vsel %vm380_vm0, %v5083_v19, %v5084_v31 }
 0x494   : > { %v5162_v18 = vsel %vm715_vm5, %v5138_v15, %v5161_v14  ;;  %v5092_v30 = vsel %vm604_vm3, %v5068_v20, %v5091_v29  ;;  %v5094_v27 = vsel %vm604_vm3, %v5070_v12, %v5093_v49 }
 0x495   : > { %5182 = vst [vmem:[#allocation4 + $0xb0] sm:$0xff] %v5162_v18 }
 0x496   : > { %5112 = vst [vmem:[#allocation4 + $0x78] sm:$0xff] %v5092_v30  ;;  %6351 = vrot.lane.b32.xlu0 %v13215_v60, %s15213_s16  ;;  %6421 = vrot.lane.b32.xlu1 %v13215_v60, %s15222_s13  ;;  %s15360_s13 = smov 118  }
 0x497   : > { %5113 = vst [vmem:[#allocation4 + $0x80] sm:$0xff] %v5094_v27  ;;  %5851 = vrot.lane.b32.xlu2 %v13186_v7, %s15342_s20 }
 0x498   : > { %v5146_v4 = vpop.permute.xlu0 %5145  ;;  %v5076_v2 = vpop.permute.xlu1 %5075 }
 0x499   : > { %v5156_v58 = vrot.slane %v5146_v4, 4  ;;  %v5150_v20 = vpop.permute.xlu2 %5149  ;;  %v5086_v42 = vrot.slane %v5076_v2, 4 }
 0x49a   : > { %v5158_v51 = vrot.slane %v5150_v20, 4 }
 0x49b   : > { %v5166_v63 = vsel %vm380_vm0, %v5155_v0, %v5156_v58  ;;  %v5096_v41 = vsel %vm380_vm0, %v5085_v62, %v5086_v42  ;;  %v5098_v57 = vsel %vm380_vm0, %v5086_v42, %v5087_v1 }
 0x49c   : > { %v5167_v31 = vsel %vm715_vm5, %v5144_v8, %v5166_v63  ;;  %v5172_v24 = vsel %vm715_vm5, %v5150_v20, %v5158_v51  ;;  %v5097_v32 = vsel %vm604_vm3, %v5074_v11, %v5096_v41  ;;  %v5099_v53 = vsel %vm604_vm3, %v5076_v2, %v5098_v57 }
 0x49d   : > { %5185 = vst [vmem:[#allocation4 + $0xc4] sm:$0xff] %v5167_v31  ;;  %vm7016_vm3 = vcmask 130048  }
 0x49e   : > { %5188 = vst [vmem:[#allocation4 + $0xdc] sm:$0xf] %v5172_v24  ;;  %6279 = vrot.lane.b32.xlu0 %v13192_v23, %s15343_s26  ;;  %5859 = vrot.lane.b32.xlu1 %v13192_v23, %s15342_s20 }
 0x49f   : > { %5115 = vst [vmem:[#allocation4 + $0x8c] sm:$0xff] %v5097_v32  ;;  %5861 = vrot.lane.b32.xlu2 %v13215_v60, %s15342_s20 }
 0x4a0   : > { %5116 = vst [vmem:[#allocation4 + $0x94] sm:$0xff] %v5099_v53  ;;  %v5206_v52 = vpop.permute.xlu0 %5205  ;;  %v5136_v22 = vpop.permute.xlu1 %5135  ;;  %v11288_v53 = vld [vmem:[%s11768_s15 + $0x10] sm:$0xf] }
 0x4a1   : > { %v5210_v56 = vpop.permute.xlu2 %5209  ;;  %v5151_v5 = vrot.slane %v5136_v22, 4  ;;  %v5221_v30 = vrot.slane %v5206_v52, 4 }
 0x4a2   : > { %v5223_v26 = vrot.slane %v5210_v56, 4 }
 0x4a3   : > { %v5159_v11 = vsel %vm380_vm0, %v5151_v5, %v5152_v10 }
 0x4a4   : > { %v5160_v36 = vsel %vm715_vm5, %v5136_v22, %v5159_v11 }
 0x4a5   : > { %5181 = vst [vmem:[#allocation4 + $0xa8] sm:$0xff] %v5160_v36 }
 0x4a6   : > { %6693 = vrot.lane.b32.xlu0 %v13209_v37, %s15344_s28  ;;  %6343 = vrot.lane.b32.xlu1 %v13209_v37, %s15213_s16 }
 0x4a7   : > { %6349 = vrot.lane.b32.xlu2 %v13192_v23, %s15213_s16  ;;  %s15358_s16 = smov 11  }
 0x4a8   : > { %v5212_v6 = vpop.permute.xlu0 %5211  ;;  %v5142_v3 = vpop.permute.xlu1 %5141 }
 0x4a9   : > { %v5224_v38 = vrot.slane %v5212_v6, 4  ;;  %v5216_v9 = vpop.permute.xlu2 %5215  ;;  %v5154_v21 = vrot.slane %v5142_v3, 4 }
 0x4aa   : > { %v5226_v40 = vrot.slane %v5216_v9, 4 }
 0x4ab   : > { %v5233_v1 = vsel %vm380_vm0, %v5223_v26, %v5224_v38  ;;  %v5235_v43 = vsel %vm826_vm4, %v5212_v6, %v5224_v38  ;;  %v5163_v15 = vsel %vm380_vm0, %v5153_v33, %v5154_v21  ;;  %v5165_v59 = vsel %vm715_vm5, %v5142_v3, %v5154_v21 }
 0x4ac   : > { %v5234_v45 = vsel %vm826_vm4, %v5210_v56, %v5233_v1  ;;  %5254 = vst [vmem:[#allocation4 + $0xf8] sm:$0xf] %v5235_v43  ;;  %v5164_v17 = vsel %vm715_vm5, %v5140_v55, %v5163_v15  ;;  %v13489_v1 = vld [vmem:[#allocation2 + $0x4] sm:$0xff] }
 0x4ad   : > { %5253 = vst [vmem:[#allocation4 + $0xf0] sm:$0xff] %v5234_v45 }
 0x4ae   : > { %5183 = vst [vmem:[#allocation4 + $0xb8] sm:$0xff] %v5164_v17  ;;  %5765 = vrot.lane.b32.xlu0 %v13194_v50, %s15345_s12  ;;  %6271 = vrot.lane.b32.xlu1 %v13186_v7, %s15343_s26 }
 0x4af   : > { %5184 = vst [vmem:[#allocation4 + $0xc0] sm:$0xf] %v5165_v59  ;;  %6273 = vrot.lane.b32.xlu2 %v13209_v37, %s15343_s26 }
 0x4b0   : > { %v5218_v16 = vpop.permute.xlu0 %5217  ;;  %v5148_v47 = vpop.permute.xlu1 %5147 }
 0x4b1   : > { %v5227_v25 = vrot.slane %v5218_v16, 4  ;;  %v5276_v12 = vpop.permute.xlu2 %5275  ;;  %v5157_v55 = vrot.slane %v5148_v47, 4 }
 0x4b2   : > { %v5291_v27 = vrot.slane %v5276_v12, 4 }
 0x4b3   : > { %v5238_v10 = vsel %vm380_vm0, %v5226_v40, %v5227_v25  ;;  %v5168_v33 = vsel %vm380_vm0, %v5156_v58, %v5157_v55  ;;  %v5170_v8 = vsel %vm380_vm0, %v5157_v55, %v5158_v51  ;;  %v9965_v55 = vld [vmem:[%s11768_s15 + $0x38] sm:$0xf0] }
 0x4b4   : > { %v5239_v19 = vsel %vm826_vm4, %v5216_v9, %v5238_v10  ;;  %v5169_v14 = vsel %vm715_vm5, %v5146_v4, %v5168_v33  ;;  %v5171_v29 = vsel %vm715_vm5, %v5148_v47, %v5170_v8  ;;  %v11287_v47 = vld [vmem:[%s11768_s15 + $0x8] sm:$0xf]  ;;  %v13514_v10 = vld [vmem:[#allocation8] sm:$0xff]  ;;  %vm15353_vm5 = vcmask 973824  }
 0x4b5   : > { %5256 = vst [vmem:[#allocation4 + $0x104] sm:$0xff] %v5239_v19 }
 0x4b6   : > { %5186 = vst [vmem:[#allocation4 + $0xcc] sm:$0xff] %v5169_v14  ;;  %5775 = vrot.lane.b32.xlu0 %v13241_v54, %s15345_s12  ;;  %6281 = vrot.lane.b32.xlu1 %v13215_v60, %s15343_s26 }
 0x4b7   : > { %5187 = vst [vmem:[#allocation4 + $0xd4] sm:$0xff] %v5171_v29  ;;  %6691 = vrot.lane.b32.xlu2 %v13186_v7, %s15344_s28 }
 0x4b8   : > { %v13446_v49 = vpop.permute.xlu0 %5277  ;;  %v5208_v18 = vpop.permute.xlu1 %5207 }
 0x4b9   : > { %v15217_v4 = vrot.slane %v13446_v49, 4  ;;  %v13449_v2 = vpop.permute.xlu2 %5417  ;;  %v5222_v62 = vrot.slane %v5208_v18, 4 }
 0x4ba   : > { %v15218_v45 = vrot.slane %v13449_v2, 4 }
 0x4bb   : > { %v5299_v0 = vsel %vm380_vm0, %v5291_v27, %v15217_v4  ;;  %v5229_v58 = vsel %vm380_vm0, %v5221_v30, %v5222_v62  ;;  %v5231_v20 = vsel %vm380_vm0, %v5222_v62, %v5223_v26 }
 0x4bc   : > { %v5300_v7 = vsel %vm937_vm6, %v5276_v12, %v5299_v0  ;;  %v5230_v42 = vsel %vm826_vm4, %v5206_v52, %v5229_v58  ;;  %v5232_v51 = vsel %vm826_vm4, %v5208_v18, %v5231_v20  ;;  %v9957_v52 = vld [vmem:[%s11768_s15 + $0x30] sm:$0xf0]  ;;  %v11289_v12 = vld [vmem:[%s11768_s15 + $0x18] sm:$0xf]  ;;  %v13538_v20 = vld [vmem:[#allocation2 + $0x28] sm:$0xff] }
 0x4bd   : > { %5321 = vst [vmem:[#allocation4 + $0x118] sm:$0xff] %v5300_v7 }
 0x4be   : > { %5251 = vst [vmem:[#allocation4 + $0xe0] sm:$0xff] %v5230_v42  ;;  %6209 = vrot.lane.b32.xlu0 %v13192_v23, %s15346_s2  ;;  %6699 = vrot.lane.b32.xlu1 %v13192_v23, %s15344_s28  ;;  %v9960_v23 = vor.u32 %v11288_v53, %v9957_v52 }
 0x4bf   : > { %5252 = vst [vmem:[#allocation4 + $0xe8] sm:$0xff] %v5232_v51  ;;  %6701 = vrot.lane.b32.xlu2 %v13215_v60, %s15344_s28 }
 0x4c0   : > { %v13465_v63 = vpop.permute.xlu0 %5423  ;;  %v5214_v41 = vpop.permute.xlu1 %5213  ;;  %7069 = vmatpush.bf16.msra.mxu3 %v9960_v23 }
 0x4c1   : > { %v5346_v57 = vpop.permute.xlu2 %5345  ;;  %v5225_v31 = vrot.slane %v5214_v41, 4  ;;  %v5435_v19 = vrot.slane %v13465_v63, 4 }
 0x4c2   : > { %v5361_v5 = vrot.slane %v5346_v57, 4 }
 0x4c3   : > { %v5236_v24 = vsel %vm380_vm0, %v5225_v31, %v5226_v40  ;;  %v9949_v40 = vld [vmem:[%s11768_s15 + $0x28] sm:$0xf0]  ;;  %9976 = vmatmul.msk.bf16.vlgmr.msra.gmra.mxu3 %vm7016_vm3, %v13514_v10  ;;  %v9947_v31 = vld [vmem:[%s11768_s15 + $0x4] sm:$0xf] }
 0x4c4   : > { %v5237_v32 = vsel %vm826_vm4, %v5214_v41, %v5236_v24  ;;  %v11290_v24 = vld [vmem:[%s11768_s15 + $0x24] sm:$0xf0] }
 0x4c5   : > { %5255 = vst [vmem:[#allocation4 + $0xfc] sm:$0xff] %v5237_v32  ;;  %v9948_v52 = vor.u32 %v11290_v24, %v9947_v31 }
 0x4c6   : > { %6623 = vrot.lane.b32.xlu0 %v13209_v37, %s15347_s14  ;;  %5767 = vrot.lane.b32.xlu1 %v13217_v34, %s15345_s12 }
 0x4c7   : > { %5773 = vrot.lane.b32.xlu2 %v13223_v13, %s15345_s12  ;;  %7027 = vmatpush.bf16.msra.mxu0 %v9948_v52 }
 0x4c8   : > { %v13477_v22 = vpop.permute.xlu0 %5347  ;;  %v5220_v56 = vpop.permute.xlu1 %5219 }
 0x4c9   : > { %v15221_v11 = vrot.slane %v13477_v22, 4  ;;  %v13480_v36 = vpop.permute.xlu2 %5355  ;;  %v5228_v6 = vrot.slane %v5220_v56, 4 }
 0x4ca   : > { %v15219_v51 = vrot.slane %v13480_v36, 4  ;;  %9973 = vmatmul.msk.bf16.vlgmr.msra.gmra.mxu0 %vm7016_vm3, %v13514_v10 }
 0x4cb   : > { %v5369_v3 = vsel %vm380_vm0, %v5361_v5, %v15221_v11  ;;  %v5240_v26 = vsel %vm380_vm0, %v5227_v25, %v5228_v6  ;;  %v5242_v38 = vsel %vm826_vm4, %v5220_v56, %v5228_v6  ;;  %v9952_v25 = vor.u32 %v11287_v47, %v9949_v40  ;;  %v9963_v56 = vld [vmem:[%s11768_s15 + $0x14] sm:$0xf]  ;;  %v11292_v6 = vld [vmem:[%s11768_s15 + $0x34] sm:$0xf0]  ;;  %v11191_v11 = vld [vmem:[#allocation4 + $0x2f0] sm:$0xf0] }
 0x4cc   : > { %v5370_v9 = vsel %vm1048_vm8, %v5346_v57, %v5369_v3  ;;  %v5241_v21 = vsel %vm826_vm4, %v5218_v16, %v5240_v26  ;;  %5258 = vst [vmem:[#allocation4 + $0x114] sm:$0xf] %v5242_v38  ;;  %vm15350_vm4 = vmmov %vm15349_vm2  ;;  %v9964_v3 = vor.u32 %v11292_v6, %v9963_v56  ;;  %v10138_v6 = vld [vmem:[#allocation4 + $0x118] sm:$0xf] }
 0x4cd   : > { %5391 = vst [vmem:[#allocation4 + $0x150] sm:$0xff] %v5370_v9  ;;  %7041 = vmatpush.bf16.msrb.mxu1 %v9952_v25  ;;  %v13587_v25 = vld [vmem:[#allocation2] sm:$0xff] }
 0x4ce   : > { %5257 = vst [vmem:[#allocation4 + $0x10c] sm:$0xff] %v5241_v21  ;;  %5695 = vrot.lane.b32.xlu0 %v13194_v50, %s15348_s9  ;;  %6201 = vrot.lane.b32.xlu1 %v13489_v1, %s15346_s2 }
 0x4cf   : > { %6203 = vrot.lane.b32.xlu2 %v13209_v37, %s15346_s2  ;;  %v9968_v37 = vor.u32 %v11289_v12, %v9965_v55  ;;  %7083 = vmatpush.bf16.msrb.mxu0 %v9964_v3 }
 0x4d0   : > { %v13497_v43 = vpop.permute.xlu0 %6481  ;;  %v5416_v15 = vpop.permute.xlu1 %5415  ;;  %9974 = vmatmul.msk.bf16.vlgmr.msrb.gmra.mxu1 %vm7016_vm3, %v13514_v10 }
 0x4d1   : > { %v6490_v17 = vpop.permute.xlu2 %6489  ;;  %v5431_v59 = vrot.slane %v5416_v15, 4  ;;  %7097 = vmatpush.bf16.msra.mxu1 %v9968_v37  ;;  %v6497_v9 = vrot.slane %v13497_v43, 4 }
 0x4d2   : > { %v6501_v14 = vrot.slane %v6490_v17, 4 }
 0x4d3   : > { %v5439_v16 = vsel %vm380_vm0, %v5431_v59, %v15218_v45 }
 0x4d4   : > { %v5440_v50 = vsel %vm15349_vm2, %v5416_v15, %v5439_v16  ;;  %v10166_v40 = vld [vmem:[#allocation4 + $0x150] sm:$0xf]  ;;  %vm15355_vm2 = vcmask 1039360  }
 0x4d5   : > { %5461 = vst [vmem:[#allocation4 + $0x188] sm:$0xff] %v5440_v50 }
 0x4d6   : > { %5705 = vrot.lane.b32.xlu0 %v13241_v54, %s15348_s9  ;;  %6211 = vrot.lane.b32.xlu1 %v13215_v60, %s15346_s2 }
 0x4d7   : > { %6621 = vrot.lane.b32.xlu2 %v13489_v1, %s15347_s14 }
 0x4d8   : > { %v13516_v33 = vpop.permute.xlu0 %6491  ;;  %v13518_v8 = vpop.permute.xlu1 %5425 }
 0x4d9   : > { %v15249_v29 = vrot.slane %v13516_v33, 4  ;;  %v13522_v18 = vpop.permute.xlu2 %5285  ;;  %v15237_v30 = vrot.slane %v13518_v8, 4 }
 0x4da   : > { %v15216_v37 = vrot.slane %v13522_v18, 4  ;;  %9977 = vmatmul.msk.bf16.vlgmr.msrb.gmra.mxu0 %vm7016_vm3, %v13514_v10 }
 0x4db   : > { %v6512_v27 = vsel %vm380_vm0, %v6501_v14, %v15249_v29  ;;  %v5446_v62 = vsel %vm380_vm0, %v5435_v19, %v15237_v30 }
 0x4dc   : > { %v6513_v0 = vsel %vm2876_vm10, %v6490_v17, %v6512_v27  ;;  %v5447_v58 = vsel %vm15350_vm4, %v13465_v63, %v5446_v62  ;;  %v10194_v53 = vld [vmem:[#allocation4 + $0x188] sm:$0xf]  ;;  %vm15356_vm4 = vmmov %vm15353_vm5 }
 0x4dd   : > { %6531 = vst [vmem:[#allocation4 + $0x524] sm:$0xff] %v6513_v0  ;;  %v13602_v0 = vld [vmem:[#allocation2 + $0x30] sm:$0xff] }
 0x4de   : > { %5465 = vst [vmem:[#allocation4 + $0x1a4] sm:$0xff] %v5447_v58  ;;  %6139 = vrot.lane.b32.xlu0 %v13538_v20, %s15351_s18  ;;  %6629 = vrot.lane.b32.xlu1 %v13538_v20, %s15347_s14 }
 0x4df   : > { %6631 = vrot.lane.b32.xlu2 %v13215_v60, %s15347_s14  ;;  %v13555_v60 = vld [vmem:[#allocation2 + $0xc] sm:$0xff] }
 0x4e0   : > { %v13546_v7 = vpop.permute.xlu0 %5921  ;;  %v5354_v42 = vpop.permute.xlu1 %5353  ;;  %9978 = vmatmul.msk.bf16.vlgmr.msra.gmra.mxu1 %vm7016_vm3, %v13514_v10 }
 0x4e1   : > { %v5930_v63 = vpop.permute.xlu2 %5929  ;;  %v5365_v41 = vrot.slane %v5354_v42, 4  ;;  %v5937_v31 = vrot.slane %v13546_v7, 4 }
 0x4e2   : > { %v5941_v21 = vrot.slane %v5930_v63, 4 }
 0x4e3   : > { %v5376_v57 = vsel %vm380_vm0, %v5365_v41, %v15219_v51 }
 0x4e4   : > { %v5377_v32 = vsel %vm1048_vm8, %v5354_v42, %v5376_v57  ;;  %v11261_v42 = vld [vmem:[#allocation4 + $0x520] sm:$0xf0] }
 0x4e5   : > { %5395 = vst [vmem:[#allocation4 + $0x16c] sm:$0xff] %v5377_v32  ;;  %v11149_v23 = vld [vmem:[#allocation4 + $0x1a0] sm:$0xf0] }
 0x4e6   : > { %6553 = vrot.lane.b32.xlu0 %v13555_v60, %s15352_s29  ;;  %5697 = vrot.lane.b32.xlu1 %v13217_v34, %s15348_s9  ;;  %v10195_v5 = vor.u32 %v11149_v23, %v10194_v53 }
 0x4e7   : > { %5703 = vrot.lane.b32.xlu2 %v13223_v13, %s15348_s9 }
 0x4e8   : > { %8116 = vmatpush.bf16.msrb.mxu3 %v10195_v5  ;;  %v13565_v26 = vpop.permute.xlu0 %5931  ;;  %v13567_v38 = vpop.permute.xlu1 %6483 }
 0x4e9   : > { %v5942_v15 = vrot.slane %v13565_v26, 4  ;;  %v13571_v17 = vpop.permute.xlu2 %6413  ;;  %v15250_v34 = vrot.slane %v13567_v38, 4 }
 0x4eb   : > { %v5952_v13 = vsel %vm380_vm0, %v5941_v21, %v5942_v15  ;;  %v6505_v59 = vsel %vm380_vm0, %v6497_v9, %v15250_v34  ;;  %v11128_v21 = vld [vmem:[#allocation4 + $0xf8] sm:$0xf0]  ;;  %v11094_v34 = vld [vmem:[#allocation5 + $0xc] sm:$0xf] }
 0x4ec   : > { %v5953_v16 = vsel %vm15353_vm5, %v5930_v63, %v5952_v13  ;;  %v6506_v47 = vsel %vm2876_vm10, %v13497_v43, %v6505_v59  ;;  %v11142_v50 = vld [vmem:[#allocation4 + $0x168] sm:$0xf0]  ;;  %vm15359_vm5 = vmmov %vm15355_vm2 }
 0x4ed   : > { %5971 = vst [vmem:[#allocation4 + $0x364] sm:$0xff] %v5953_v16  ;;  %v10167_v12 = vor.u32 %v11142_v50, %v10166_v40  ;;  %v15242_v16 = vrot.slane %v13571_v17, 4 }
 0x4ee   : > { %6527 = vst [vmem:[#allocation4 + $0x508] sm:$0xff] %v6506_v47  ;;  %5625 = vrot.lane.b32.xlu0 %v13587_v25, %s15354_s11  ;;  %6131 = vrot.lane.b32.xlu1 %v13489_v1, %s15351_s18 }
 0x4ef   : > { %6133 = vrot.lane.b32.xlu2 %v13555_v60, %s15351_s18  ;;  %8117 = vmatpush.bf16.msrb.mxu3 %v10167_v12  ;;  %v10082_v12 = vld [vmem:[#allocation4 + $0xa8] sm:$0xf] }
 0x4f0   : > { %v13595_v55 = vpop.permute.xlu0 %6419  ;;  %v5284_v43 = vpop.permute.xlu1 %5283 }
 0x4f1   : > { %v5852_v19 = vpop.permute.xlu2 %5851  ;;  %v5295_v14 = vrot.slane %v5284_v43, 4 }
 0x4f2   : > { %v5867_v24 = vrot.slane %v5852_v19, 4 }
 0x4f3   : > { %v5306_v27 = vsel %vm380_vm0, %v5295_v14, %v15216_v37  ;;  %v13643_v14 = vld [vmem:[#allocation2 + $0x8] sm:$0xff] }
 0x4f4   : > { %v5307_v62 = vsel %vm937_vm6, %v5284_v43, %v5306_v27  ;;  %v11121_v27 = vld [vmem:[#allocation4 + $0xc0] sm:$0xf0] }
 0x4f5   : > { %5325 = vst [vmem:[#allocation4 + $0x134] sm:$0xff] %v5307_v62  ;;  %v10642_v58 = vld [vmem:[#allocation4 + $0x508] sm:$0xf]  ;;  %v11114_v62 = vld [vmem:[#allocation4 + $0x88] sm:$0xf0] }
 0x4f6   : > { %5635 = vrot.lane.b32.xlu0 %v13241_v54, %s15354_s11  ;;  %6141 = vrot.lane.b32.xlu1 %v13602_v0, %s15351_s18  ;;  %v10643_v63 = vor.u32 %v11261_v42, %v10642_v58  ;;  %v13645_v58 = vld [vmem:[#allocation2 + $0x38] sm:$0xff]  ;;  %v10083_v42 = vor.u32 %v11121_v27, %v10082_v12  ;;  %v10026_v27 = vld [vmem:[#allocation4 + $0x38] sm:$0xf] }
 0x4f7   : > { %6551 = vrot.lane.b32.xlu2 %v13489_v1, %s15352_s29 }
 0x4f8   : > { %8144 = vmatpush.bf16.msrb.mxu1 %v10643_v63  ;;  %v13610_v41 = vpop.permute.xlu0 %5853  ;;  %v13612_v57 = vpop.permute.xlu1 %5923 }
 0x4f9   : > { %v15248_v32 = vrot.slane %v13610_v41, 4  ;;  %v13616_v53 = vpop.permute.xlu2 %5861  ;;  %v5938_v54 = vrot.slane %v13612_v57, 4 }
 0x4fb   : > { %v5875_v52 = vsel %vm380_vm0, %v5867_v24, %v15248_v32  ;;  %v5945_v23 = vsel %vm380_vm0, %v5937_v31, %v5938_v54  ;;  %v11205_v31 = vld [vmem:[#allocation4 + $0x360] sm:$0xf0]  ;;  %v13649_v24 = vld [vmem:[#allocation2 + $0x24] sm:$0xff]  ;;  %v11146_v32 = vld [vmem:[#allocation4 + $0x18c] sm:$0xf] }
 0x4fc   : > { %v5876_v56 = vsel %vm15355_vm2, %v5852_v19, %v5875_v52  ;;  %v5946_v5 = vsel %vm15356_vm4, %v13546_v7, %v5945_v23  ;;  %v11135_v3 = vld [vmem:[#allocation4 + $0x130] sm:$0xf0]  ;;  %v10110_v7 = vld [vmem:[#allocation4 + $0xe0] sm:$0xf]  ;;  %v10054_v23 = vld [vmem:[#allocation4 + $0x70] sm:$0xf] }
 0x4fd   : > { %5897 = vst [vmem:[#allocation4 + $0x310] sm:$0xff] %v5876_v56  ;;  %v10139_v9 = vor.u32 %v11135_v3, %v10138_v6  ;;  %v10111_v50 = vor.u32 %v11128_v21, %v10110_v7  ;;  %v10055_v6 = vor.u32 %v11114_v62, %v10054_v23  ;;  %v6431_v3 = vrot.slane %v13595_v55, 4 }
 0x4fe   : > { %5967 = vst [vmem:[#allocation4 + $0x348] sm:$0xff] %v5946_v5  ;;  %6069 = vrot.lane.b32.xlu0 %v13538_v20, %s15357_s10  ;;  %6559 = vrot.lane.b32.xlu1 %v13538_v20, %s15352_s29  ;;  %vm15361_vm2 = vcmask 7168  }
 0x4ff   : > { %6561 = vrot.lane.b32.xlu2 %v13602_v0, %s15352_s29  ;;  %8118 = vmatpush.bf16.msrb.mxu3 %v10139_v9  ;;  %vm15364_vm4 = vmmov %vm15361_vm2 }
 0x500   : > { %v13636_v13 = vpop.permute.xlu0 %6341  ;;  %v6412_v59 = vpop.permute.xlu1 %6411 }
 0x501   : > { %v6350_v47 = vpop.permute.xlu2 %6349  ;;  %v6427_v40 = vrot.slane %v6412_v59, 4 }
 0x502   : > { %v6361_v9 = vrot.slane %v6350_v47, 4 }
 0x503   : > { %v6435_v43 = vsel %vm380_vm0, %v6427_v40, %v15242_v16  ;;  %8119 = vmatpush.bf16.msrb.mxu3 %v10111_v50  ;;  %v11107_v40 = vld [vmem:[#allocation4 + $0x50] sm:$0xf0] }
 0x504   : > { %v6436_v19 = vsel %vm2765_vm11, %v6412_v59, %v6435_v43  ;;  %v10027_v62 = vor.u32 %v11107_v40, %v10026_v27  ;;  %v13688_v27 = vld [vmem:[#allocation2 + $0x14] sm:$0xff]  ;;  %v11195_v4 = vld [vmem:[#allocation4 + $0x314] sm:$0xf] }
 0x505   : > { %6457 = vst [vmem:[#allocation4 + $0x4d0] sm:$0xff] %v6436_v19  ;;  %v10418_v63 = vld [vmem:[#allocation4 + $0x348] sm:$0xf] }
 0x506   : > { %5933 = vrot.lane.b32.xlu0 %v13645_v58, %s15341_s19  ;;  %5627 = vrot.lane.b32.xlu1 %v13643_v14, %s15354_s11  ;;  %v10419_v52 = vor.u32 %v11205_v31, %v10418_v63  ;;  %v11202_v63 = vld [vmem:[#allocation4 + $0x34c] sm:$0xf] }
 0x507   : > { %5633 = vrot.lane.b32.xlu2 %v13649_v24, %s15354_s11  ;;  %8120 = vmatpush.bf16.msrb.mxu3 %v10083_v42  ;;  %v11100_v42 = vld [vmem:[#allocation4 + $0x18] sm:$0xf0] }
 0x508   : > { %8130 = vmatpush.bf16.msra.mxu0 %v10419_v52  ;;  %v13655_v56 = vpop.permute.xlu0 %6351  ;;  %v13657_v5 = vpop.permute.xlu1 %6421  ;;  %v15247_v52 = vrot.slane %v13616_v53, 4 }
 0x509   : > { %v15215_v21 = vrot.slane %v13655_v56, 4  ;;  %v13661_v59 = vpop.permute.xlu2 %6273  ;;  %v15241_v7 = vrot.slane %v13657_v5, 4 }
 0x50b   : > { %v6372_v50 = vsel %vm380_vm0, %v6361_v9, %v15215_v21  ;;  %v6442_v12 = vsel %vm380_vm0, %v6431_v3, %v15241_v7  ;;  %8121 = vmatpush.bf16.msrb.mxu3 %v10055_v6  ;;  %v10420_v9 = vld [vmem:[#allocation4 + $0x364] sm:$0xf0] }
 0x50c   : > { %v6373_v43 = vsel %vm2654_vm9, %v6350_v47, %v6372_v50  ;;  %v6443_v19 = vsel %vm2765_vm11, %v13595_v55, %v6442_v12  ;;  %v9998_v55 = vld [vmem:[#allocation4] sm:$0xf]  ;;  %v10423_v40 = vor.u32 %v11202_v63, %v10420_v9 }
 0x50d   : > { %6391 = vst [vmem:[#allocation4 + $0x4b4] sm:$0xff] %v6373_v43  ;;  %v9999_v3 = vor.u32 %v11100_v42, %v9998_v55  ;;  %v10614_v43 = vld [vmem:[#allocation4 + $0x4d0] sm:$0xf] }
 0x50e   : > { %6461 = vst [vmem:[#allocation4 + $0x4ec] sm:$0xff] %v6443_v19  ;;  %5563 = vrot.lane.b32.xlu0 %v13649_v24, %s15358_s16  ;;  %6061 = vrot.lane.b32.xlu1 %v13489_v1, %s15357_s10 }
 0x50f   : > { %6063 = vrot.lane.b32.xlu2 %v13555_v60, %s15357_s10  ;;  %8122 = vmatpush.bf16.msrb.mxu3 %v10027_v62 }
 0x510   : > { %v13679_v47 = vpop.permute.xlu0 %6279  ;;  %v5860_v31 = vpop.permute.xlu1 %5859 }
 0x511   : > { %v6692_v23 = vpop.permute.xlu2 %6691  ;;  %v5871_v6 = vrot.slane %v5860_v31, 4 }
 0x512   : > { %v6707_v55 = vrot.slane %v6692_v23, 4 }
 0x513   : > { %v5882_v50 = vsel %vm380_vm0, %v5871_v6, %v15247_v52  ;;  %8123 = vmatpush.bf16.msrb.mxu3 %v9999_v3 }
 0x514   : > { %v5883_v12 = vsel %vm15359_vm5, %v5860_v31, %v5882_v50  ;;  %v6357_v31 = vrot.slane %v13636_v13, 4  ;;  %vm15366_vm5 = vcmask 310272  }
 0x515   : > { %5901 = vst [vmem:[#allocation4 + $0x32c] sm:$0xff] %v5883_v12  ;;  %v11254_v19 = vld [vmem:[#allocation4 + $0x4e8] sm:$0xf0]  ;;  %v10390_v12 = vld [vmem:[#allocation4 + $0x310] sm:$0xf] }
 0x516   : > { %6493 = vrot.lane.b32.xlu0 %v13645_v58, %s15224_s17  ;;  %6071 = vrot.lane.b32.xlu1 %v13602_v0, %s15357_s10  ;;  %v10615_v62 = vor.u32 %v11254_v19, %v10614_v43  ;;  %v9955_v43 = vld [vmem:[%s11768_s15 + $0xc] sm:$0xf]  ;;  %v11291_v19 = vld [vmem:[%s11768_s15 + $0x2c] sm:$0xf0] }
 0x517   : > { %8186 = vmatpush.bf16.msra.mxu3 %v10423_v40  ;;  %5925 = vrot.lane.b32.xlu2 %v13688_v27, %s15341_s19  ;;  %v9956_v51 = vor.u32 %v11291_v19, %v9955_v43  ;;  %v11188_v43 = vld [vmem:[#allocation4 + $0x2dc] sm:$0xf] }
 0x518   : > { %8145 = vmatpush.bf16.msrb.mxu1 %v10615_v62  ;;  %v13694_v42 = vpop.permute.xlu0 %6693  ;;  %v13696_v63 = vpop.permute.xlu1 %6343 }
 0x519   : > { %v15220_v6 = vrot.slane %v13694_v42, 4  ;;  %v13700_v3 = vpop.permute.xlu2 %6701  ;;  %v15236_v9 = vrot.slane %v13696_v63, 4  ;;  %7055 = vmatpush.bf16.msrb.mxu2 %v9956_v51  ;;  %v13731_v51 = vld [vmem:[#allocation2 + $0x2c] sm:$0xff] }
 0x51b   : > { %v6715_v40 = vsel %vm380_vm0, %v6707_v55, %v15220_v6  ;;  %v6365_v50 = vsel %vm380_vm0, %v6357_v31, %v15236_v9  ;;  %v9971_v31 = vld [vmem:[%s11768_s15 + $0x1c] sm:$0xf] }
 0x51c   : > { %v6716_v62 = vsel %vm3209_vm12, %v6692_v23, %v6715_v40  ;;  %v6366_v21 = vsel %vm2654_vm9, %v13636_v13, %v6365_v50  ;;  %v11198_v37 = vld [vmem:[#allocation4 + $0x328] sm:$0xf0]  ;;  %v10392_v45 = vld [vmem:[#allocation4 + $0x32c] sm:$0xf0]  ;;  %v10364_v13 = vld [vmem:[#allocation4 + $0x2f4] sm:$0xf0]  ;;  %9975 = vmatmul.msk.bf16.vlgmr.msrb.gmra.mxu2 %vm7016_vm3, %v13514_v10 }
 0x51d   : > { %6737 = vst [vmem:[#allocation4 + $0x5b0] sm:$0xff] %v6716_v62  ;;  %v10391_v55 = vor.u32 %v11198_v37, %v10390_v12  ;;  %v10395_v6 = vor.u32 %v11195_v4, %v10392_v45  ;;  %v11293_v23 = vld [vmem:[%s11768_s15 + $0x3c] sm:$0xf0]  ;;  %v10362_v45 = vld [vmem:[#allocation4 + $0x2d8] sm:$0xf]  ;;  %v15234_v37 = vrot.slane %v13661_v59, 4  ;;  %v10367_v19 = vor.u32 %v11188_v43, %v10364_v13 }
 0x51e   : > { %6387 = vst [vmem:[#allocation4 + $0x498] sm:$0xff] %v6366_v21  ;;  %5999 = vrot.lane.b32.xlu0 %v13538_v20, %s15360_s13  ;;  %5555 = vrot.lane.b32.xlu1 %v13587_v25, %s15358_s16  ;;  %v9972_v40 = vor.u32 %v11293_v23, %v9971_v31  ;;  %v10363_v12 = vor.u32 %v11191_v11, %v10362_v45  ;;  %v11247_v31 = vld [vmem:[#allocation4 + $0x4b0] sm:$0xf0]  ;;  %s15362_s15 = smov 89  }
 0x51f   : > { %5557 = vrot.lane.b32.xlu2 %v13643_v14, %s15358_s16  ;;  %8131 = vmatpush.bf16.msra.mxu0 %v10391_v55 }
 0x520   : > { %8187 = vmatpush.bf16.msra.mxu3 %v10395_v6  ;;  %v13722_v50 = vpop.permute.xlu0 %5765  ;;  %v6272_v4 = vpop.permute.xlu1 %6271  ;;  %7111 = vmatpush.bf16.msra.mxu2 %v9972_v40  ;;  %v6291_v40 = vrot.slane %v13679_v47, 4 }
 0x521   : > { %v5774_v20 = vpop.permute.xlu2 %5773  ;;  %v6287_v21 = vrot.slane %v6272_v4, 4 }
 0x523   : > { %v6295_v62 = vsel %vm380_vm0, %v6287_v21, %v15234_v37  ;;  %8132 = vmatpush.bf16.msra.mxu0 %v10363_v12 }
 0x524   : > { %v6296_v6 = vsel %vm2543_vm13, %v6272_v4, %v6295_v62  ;;  %8188 = vmatpush.bf16.msra.mxu3 %v10367_v19  ;;  %v5785_v4 = vrot.slane %v5774_v20, 4 }
 0x525   : > { %6317 = vst [vmem:[#allocation4 + $0x460] sm:$0xff] %v6296_v6  ;;  %v10586_v55 = vld [vmem:[#allocation4 + $0x498] sm:$0xf] }
 0x526   : > { %5863 = vrot.lane.b32.xlu0 %v13645_v58, %s15342_s20  ;;  %5565 = vrot.lane.b32.xlu1 %v13731_v51, %s15358_s16  ;;  %v10587_v11 = vor.u32 %v11247_v31, %v10586_v55 }
 0x527   : > { %6485 = vrot.lane.b32.xlu2 %v13688_v27, %s15224_s17  ;;  %s15363_s17 = smov 28  }
 0x528   : > { %8146 = vmatpush.bf16.msrb.mxu1 %v10587_v11  ;;  %v13739_v23 = vpop.permute.xlu0 %5775  ;;  %v13741_v13 = vpop.permute.xlu1 %6281  ;;  %v15226_v11 = vrot.slane %v13700_v3, 4 }
 0x529   : > { %v15235_v45 = vrot.slane %v13739_v23, 4  ;;  %v13745_v21 = vpop.permute.xlu2 %6203  ;;  %v15228_v12 = vrot.slane %v13741_v13, 4 }
 0x52b   : > { %v5796_v43 = vsel %vm380_vm0, %v5785_v4, %v15235_v45  ;;  %v6302_v19 = vsel %vm380_vm0, %v6291_v40, %v15228_v12 }
 0x52c   : > { %v5797_v62 = vsel %vm15361_vm2, %v5774_v20, %v5796_v43  ;;  %v6303_v6 = vsel %vm2543_vm13, %v13679_v47, %v6302_v19  ;;  %9979 = vmatmul.msk.bf16.vlgmr.msra.gmra.mxu2 %vm7016_vm3, %v13514_v10  ;;  %v5781_v10 = vrot.slane %v13722_v50, 4  ;;  %vm15368_vm2 = vcmask 72704  }
 0x52d   : > { %5815 = vst [vmem:[#allocation4 + $0x2bc] sm:$0xff] %v5797_v62 }
 0x52e   : > { %6321 = vst [vmem:[#allocation4 + $0x47c] sm:$0xff] %v6303_v6  ;;  %5493 = vrot.lane.b32.xlu0 %v13649_v24, %s15362_s15  ;;  %5991 = vrot.lane.b32.xlu1 %v13489_v1, %s15360_s13  ;;  %v10558_v1 = vld [vmem:[#allocation4 + $0x460] sm:$0xf] }
 0x52f   : > { %5993 = vrot.lane.b32.xlu2 %v13555_v60, %s15360_s13 }
 0x530   : > { %v13763_v55 = vpop.permute.xlu0 %6209  ;;  %v6700_v31 = vpop.permute.xlu1 %6699 }
 0x531   : > { %v6622_v20 = vpop.permute.xlu2 %6621  ;;  %v6711_v40 = vrot.slane %v6700_v31, 4 }
 0x532   : > { %v6637_v62 = vrot.slane %v6622_v20, 4 }
 0x533   : > { %v6722_v47 = vsel %vm380_vm0, %v6711_v40, %v15226_v11 }
 0x534   : > { %v6723_v24 = vsel %vm3209_vm12, %v6700_v31, %v6722_v47 }
 0x535   : > { %6741 = vst [vmem:[#allocation4 + $0x5cc] sm:$0xff] %v6723_v24  ;;  %v11240_v4 = vld [vmem:[#allocation4 + $0x478] sm:$0xf0] }
 0x536   : > { %6423 = vrot.lane.b32.xlu0 %v13645_v58, %s15363_s17  ;;  %6001 = vrot.lane.b32.xlu1 %v13602_v0, %s15360_s13  ;;  %v10559_v60 = vor.u32 %v11240_v4, %v10558_v1  ;;  %v10726_v4 = vld [vmem:[#allocation4 + $0x5b0] sm:$0xf] }
 0x537   : > { %5855 = vrot.lane.b32.xlu2 %v13688_v27, %s15342_s20 }
 0x538   : > { %8147 = vmatpush.bf16.msrb.mxu1 %v10559_v60  ;;  %v13778_v43 = vpop.permute.xlu0 %6623  ;;  %v13780_v19 = vpop.permute.xlu1 %5767 }
 0x539   : > { %v15227_v6 = vrot.slane %v13778_v43, 4  ;;  %v13784_v31 = vpop.permute.xlu2 %6631  ;;  %v15229_v40 = vrot.slane %v13780_v19, 4 }
 0x53b   : > { %v6645_v0 = vsel %vm380_vm0, %v6637_v62, %v15227_v6  ;;  %v5789_v47 = vsel %vm380_vm0, %v5781_v10, %v15229_v40 }
 0x53c   : > { %v6646_v24 = vsel %vm3098_vm14, %v6622_v20, %v6645_v0  ;;  %v5790_v1 = vsel %vm15364_vm4, %v13722_v50, %v5789_v47  ;;  %v11282_v60 = vld [vmem:[#allocation4 + $0x5c8] sm:$0xf0]  ;;  %v15231_v50 = vrot.slane %v13745_v21, 4  ;;  %vm15369_vm4 = vmmov %vm15366_vm5 }
 0x53d   : > { %6667 = vst [vmem:[#allocation4 + $0x578] sm:$0xff] %v6646_v24  ;;  %v10727_v11 = vor.u32 %v11282_v60, %v10726_v4  ;;  %v10336_v4 = vld [vmem:[#allocation4 + $0x2bc] sm:$0xf0] }
 0x53e   : > { %5811 = vst [vmem:[#allocation4 + $0x2a0] sm:$0xff] %v5790_v1  ;;  %6345 = vrot.lane.b32.xlu0 %v13688_v27, %s15365_s0  ;;  %5485 = vrot.lane.b32.xlu1 %v13587_v25, %s15362_s15  ;;  %v11184_v1 = vld [vmem:[#allocation4 + $0x2b8] sm:$0xf0]  ;;  %v13809_v25 = vld [vmem:[#allocation2 + $0x34] sm:$0xff] }
 0x53f   : > { %5487 = vrot.lane.b32.xlu2 %v13643_v14, %s15362_s15  ;;  %8163 = vmatpush.bf16.msrb.mxu2 %v10727_v11 }
 0x540   : > { %v13802_v10 = vpop.permute.xlu0 %5695  ;;  %v6202_v20 = vpop.permute.xlu1 %6201 }
 0x541   : > { %v5704_v62 = vpop.permute.xlu2 %5703  ;;  %v6217_v0 = vrot.slane %v6202_v20, 4 }
 0x543   : > { %v6225_v47 = vsel %vm380_vm0, %v6217_v0, %v15231_v50 }
 0x544   : > { %v6226_v24 = vsel %vm15366_vm5, %v6202_v20, %v6225_v47  ;;  %v6221_v47 = vrot.slane %v13763_v55, 4  ;;  %vm15372_vm5 = vmmov %vm15368_vm2  ;;  %v10698_v45 = vld [vmem:[#allocation4 + $0x578] sm:$0xf] }
 0x545   : > { %6247 = vst [vmem:[#allocation4 + $0x428] sm:$0xff] %v6226_v24  ;;  %v10334_v14 = vld [vmem:[#allocation4 + $0x2a0] sm:$0xf]  ;;  %v11181_v11 = vld [vmem:[#allocation4 + $0x2a4] sm:$0xf]  ;;  %v5715_v24 = vrot.slane %v5704_v62, 4 }
 0x546   : > { %5357 = vrot.lane.b32.xlu0 %v13809_v25, %s15367_s1  ;;  %5495 = vrot.lane.b32.xlu1 %v13731_v51, %s15362_s15  ;;  %v10335_v60 = vor.u32 %v11184_v1, %v10334_v14  ;;  %v10339_v6 = vor.u32 %v11181_v11, %v10336_v4  ;;  %v13835_v11 = vld [vmem:[#allocation2 + $0x10] sm:$0xff] }
 0x547   : > { %6415 = vrot.lane.b32.xlu2 %v13688_v27, %s15363_s17 }
 0x548   : > { %8133 = vmatpush.bf16.msra.mxu0 %v10335_v60  ;;  %8189 = vmatpush.bf16.msra.mxu3 %v10339_v6  ;;  %v13817_v20 = vpop.permute.xlu0 %5705  ;;  %v13819_v0 = vpop.permute.xlu1 %6211 }
 0x549   : > { %v15232_v12 = vrot.slane %v13817_v20, 4  ;;  %v13823_v40 = vpop.permute.xlu2 %6133  ;;  %v15230_v51 = vrot.slane %v13819_v0, 4 }
 0x54b   : > { %v5726_v1 = vsel %vm380_vm0, %v5715_v24, %v15232_v12  ;;  %v6232_v6 = vsel %vm380_vm0, %v6221_v47, %v15230_v51 }
 0x54c   : > { %v5727_v4 = vsel %vm15368_vm2, %v5704_v62, %v5726_v1  ;;  %v6233_v14 = vsel %vm15369_vm4, %v13763_v55, %v6232_v6  ;;  %v15233_v62 = vrot.slane %v13784_v31, 4  ;;  %vm15373_vm2 = vcmask 318464  }
 0x54d   : > { %5745 = vst [vmem:[#allocation4 + $0x284] sm:$0xff] %v5727_v4  ;;  %v10530_v4 = vld [vmem:[#allocation4 + $0x428] sm:$0xf]  ;;  %vm15374_vm4 = vcmask 80896  }
 0x54e   : > { %6251 = vst [vmem:[#allocation4 + $0x444] sm:$0xff] %v6233_v14  ;;  %6275 = vrot.lane.b32.xlu0 %v13688_v27, %s15343_s26  ;;  %5419 = vrot.lane.b32.xlu1 %v13835_v11, %s15370_s3 }
 0x54f   : > { %5427 = vrot.lane.b32.xlu2 %v13809_v25, %s15370_s3 }
 0x550   : > { %v13843_v60 = vpop.permute.xlu0 %6139  ;;  %v6630_v47 = vpop.permute.xlu1 %6629 }
 0x551   : > { %v6552_v24 = vpop.permute.xlu2 %6551  ;;  %v6641_v55 = vrot.slane %v6630_v47, 4 }
 0x553   : > { %v6652_v1 = vsel %vm380_vm0, %v6641_v55, %v15233_v62  ;;  %v6567_v55 = vrot.slane %v6552_v24, 4 }
 0x554   : > { %v6653_v6 = vsel %vm3098_vm14, %v6630_v47, %v6652_v1  ;;  %v5711_v47 = vrot.slane %v13802_v10, 4 }
 0x555   : > { %6671 = vst [vmem:[#allocation4 + $0x594] sm:$0xff] %v6653_v6  ;;  %v11233_v14 = vld [vmem:[#allocation4 + $0x440] sm:$0xf0] }
 0x556   : > { %5287 = vrot.lane.b32.xlu0 %v13809_v25, %s15371_s4  ;;  %6353 = vrot.lane.b32.xlu1 %v13645_v58, %s15365_s0  ;;  %v10531_v51 = vor.u32 %v11233_v14, %v10530_v4 }
 0x557   : > { %5349 = vrot.lane.b32.xlu2 %v13835_v11, %s15367_s1 }
 0x558   : > { %8148 = vmatpush.bf16.msrb.mxu1 %v10531_v51  ;;  %v13856_v50 = vpop.permute.xlu0 %6553  ;;  %v13858_v12 = vpop.permute.xlu1 %5697 }
 0x559   : > { %v15238_v1 = vrot.slane %v13856_v50, 4  ;;  %v13862_v6 = vpop.permute.xlu2 %6561  ;;  %v15239_v62 = vrot.slane %v13858_v12, 4 }
 0x55b   : > { %v6575_v4 = vsel %vm380_vm0, %v6567_v55, %v15238_v1  ;;  %v5719_v51 = vsel %vm380_vm0, %v5711_v47, %v15239_v62 }
 0x55c   : > { %v6576_v14 = vsel %vm2987_vm15, %v6552_v24, %v6575_v4  ;;  %v5720_v37 = vsel %vm15372_vm5, %v13802_v10, %v5719_v51  ;;  %v11275_v9 = vld [vmem:[#allocation4 + $0x590] sm:$0xf0]  ;;  %v15240_v10 = vrot.slane %v13823_v40, 4  ;;  %v10308_v51 = vld [vmem:[#allocation4 + $0x284] sm:$0xf0]  ;;  %vm15375_vm5 = vmmov %vm15373_vm2 }
 0x55d   : > { %6597 = vst [vmem:[#allocation4 + $0x540] sm:$0xff] %v6576_v14  ;;  %v10699_v30 = vor.u32 %v11275_v9, %v10698_v45  ;;  %v11177_v45 = vld [vmem:[#allocation4 + $0x280] sm:$0xf0] }
 0x55e   : > { %5741 = vst [vmem:[#allocation4 + $0x268] sm:$0xff] %v5720_v37  ;;  %6205 = vrot.lane.b32.xlu0 %v13688_v27, %s15346_s2  ;;  %5769 = vrot.lane.b32.xlu1 %v13835_v11, %s15345_s12 }
 0x55f   : > { %5777 = vrot.lane.b32.xlu2 %v13809_v25, %s15345_s12  ;;  %8164 = vmatpush.bf16.msrb.mxu2 %v10699_v30 }
 0x560   : > { %v13880_v47 = vpop.permute.xlu0 %5625  ;;  %v6132_v24 = vpop.permute.xlu1 %6131 }
 0x561   : > { %v5634_v55 = vpop.permute.xlu2 %5633  ;;  %v6147_v4 = vrot.slane %v6132_v24, 4 }
 0x563   : > { %v6155_v9 = vsel %vm380_vm0, %v6147_v4, %v15240_v10 }
 0x564   : > { %v6156_v37 = vsel %vm15373_vm2, %v6132_v24, %v6155_v9  ;;  %v6151_v9 = vrot.slane %v13843_v60, 4  ;;  %vm15377_vm2 = vcmask 973824  }
 0x565   : > { %6177 = vst [vmem:[#allocation4 + $0x3f0] sm:$0xff] %v6156_v37  ;;  %v10306_v14 = vld [vmem:[#allocation4 + $0x268] sm:$0xf]  ;;  %v11174_v1 = vld [vmem:[#allocation4 + $0x26c] sm:$0xf]  ;;  %v5645_v37 = vrot.slane %v5634_v55, 4 }
 0x566   : > { %5637 = vrot.lane.b32.xlu0 %v13809_v25, %s15354_s11  ;;  %6283 = vrot.lane.b32.xlu1 %v13645_v58, %s15343_s26  ;;  %v10307_v30 = vor.u32 %v11177_v45, %v10306_v14  ;;  %v10311_v62 = vor.u32 %v11174_v1, %v10308_v51 }
 0x567   : > { %5279 = vrot.lane.b32.xlu2 %v13835_v11, %s15371_s4 }
 0x568   : > { %8134 = vmatpush.bf16.msra.mxu0 %v10307_v30  ;;  %8190 = vmatpush.bf16.msra.mxu3 %v10311_v62  ;;  %v13893_v4 = vpop.permute.xlu0 %5635  ;;  %v13895_v24 = vpop.permute.xlu1 %6141 }
 0x569   : > { %v15244_v10 = vrot.slane %v13893_v4, 4  ;;  %v13899_v7 = vpop.permute.xlu2 %6063  ;;  %v15243_v16 = vrot.slane %v13895_v24, 4 }
 0x56b   : > { %v5656_v1 = vsel %vm380_vm0, %v5645_v37, %v15244_v10  ;;  %v6162_v62 = vsel %vm380_vm0, %v6151_v9, %v15243_v16  ;;  %v15246_v9 = vrot.slane %v13862_v6, 4 }
 0x56c   : > { %v5657_v45 = vsel %vm15374_vm4, %v5634_v55, %v5656_v1  ;;  %v6163_v51 = vsel %vm15375_vm5, %v13843_v60, %v6162_v62  ;;  %v10502_v16 = vld [vmem:[#allocation4 + $0x3f0] sm:$0xf]  ;;  %vm15378_vm4 = vmmov %vm15377_vm2  ;;  %vm15379_vm5 = vcmask 80896  }
 0x56d   : > { %5675 = vst [vmem:[#allocation4 + $0x24c] sm:$0xff] %v5657_v45 }
 0x56e   : > { %6181 = vst [vmem:[#allocation4 + $0x40c] sm:$0xff] %v6163_v51  ;;  %5559 = vrot.lane.b32.xlu0 %v13835_v11, %s15358_s16  ;;  %5699 = vrot.lane.b32.xlu1 %v13835_v11, %s15348_s9 }
 0x56f   : > { %5707 = vrot.lane.b32.xlu2 %v13809_v25, %s15348_s9 }
 0x570   : > { %v13917_v14 = vpop.permute.xlu0 %6069  ;;  %v6560_v30 = vpop.permute.xlu1 %6559 }
 0x571   : > { %v13920_v55 = vpop.permute.xlu2 %5925  ;;  %v6571_v37 = vrot.slane %v6560_v30, 4 }
 0x572   : > { %15376 = vst [vmem:[#allocation23_spill] sm:$0xff] %v13920_v55  ;;  %v15245_v60 = vrot.slane %v13920_v55, 4 }
 0x573   : > { %v6582_v1 = vsel %vm380_vm0, %v6571_v37, %v15246_v9  ;;  %v10670_v9 = vld [vmem:[#allocation4 + $0x540] sm:$0xf] }
 0x574   : > { %v5947_v62 = vsel %vm380_vm0, %v5938_v54, %v15245_v60  ;;  %v6583_v45 = vsel %vm2987_vm15, %v6560_v30, %v6582_v1 }
 0x575   : > { %v5948_v51 = vsel %vm15377_vm2, %v13612_v57, %v5947_v62  ;;  %6601 = vst [vmem:[#allocation4 + $0x55c] sm:$0xff] %v6583_v45  ;;  %v11226_v10 = vld [vmem:[#allocation4 + $0x408] sm:$0xf0]  ;;  %v5641_v57 = vrot.slane %v13880_v47, 4  ;;  %vm15381_vm2 = vcmask 957440  }
 0x576   : > { %5968 = vst [vmem:[#allocation4 + $0x350] sm:$0xff] %v5948_v51  ;;  %6073 = vrot.lane.b32.xlu0 %v13645_v58, %s15357_s10  ;;  %6213 = vrot.lane.b32.xlu1 %v13645_v58, %s15346_s2  ;;  %v10503_v37 = vor.u32 %v11226_v10, %v10502_v16  ;;  %v10196_v51 = vld [vmem:[#allocation4 + $0x1a4] sm:$0xf0] }
 0x577   : > { %5629 = vrot.lane.b32.xlu2 %v13835_v11, %s15354_s11 }
 0x578   : > { %8149 = vmatpush.bf16.msrb.mxu1 %v10503_v37  ;;  %v13940_v54 = vpop.permute.xlu0 %5933  ;;  %v13942_v30 = vpop.permute.xlu1 %5627 }
 0x579   : > { %v15253_v1 = vrot.slane %v13940_v54, 4  ;;  %v13946_v62 = vpop.permute.xlu2 %5557  ;;  %v15254_v45 = vrot.slane %v13942_v30, 4 }
 0x57b   : > { %v5954_v16 = vsel %vm380_vm0, %v5942_v15, %v15253_v1  ;;  %v5649_v10 = vsel %vm380_vm0, %v5641_v57, %v15254_v45  ;;  %v10199_v15 = vor.u32 %v11146_v32, %v10196_v51  ;;  %v13965_v57 = vor.u32 %v11094_v34, %v9992_v44  ;;  %v10280_v1 = vld [vmem:[#allocation4 + $0x24c] sm:$0xf0]  ;;  %v10140_v45 = vld [vmem:[#allocation4 + $0x134] sm:$0xf0] }
 0x57c   : > { %v5955_v37 = vsel %vm15378_vm4, %v13565_v26, %v5954_v16  ;;  %v5650_v60 = vsel %vm15379_vm5, %v13880_v47, %v5649_v10  ;;  %v11268_v52 = vld [vmem:[#allocation4 + $0x558] sm:$0xf0]  ;;  %v10168_v26 = vld [vmem:[#allocation4 + $0x16c] sm:$0xf0]  ;;  %v11139_v10 = vld [vmem:[#allocation4 + $0x154] sm:$0xf] }
 0x57d   : > { %5972 = vst [vmem:[#allocation4 + $0x36c] sm:$0xff] %v5955_v37  ;;  %v10671_v29 = vor.u32 %v11268_v52, %v10670_v9  ;;  %v15260_v9 = vrot.slane %v13899_v7, 4  ;;  %v10171_v32 = vor.u32 %v11139_v10, %v10168_v26  ;;  %vm15383_vm4 = vmmov %vm15381_vm2  ;;  %vm15385_vm5 = vcmask 89088  }
 0x57e   : > { %5671 = vst [vmem:[#allocation4 + $0x230] sm:$0xff] %v5650_v60  ;;  %5995 = vrot.lane.b32.xlu0 %v13688_v27, %s15360_s13  ;;  %6135 = vrot.lane.b32.xlu1 %v13688_v27, %s15351_s18 }
 0x57f   : > { %6143 = vrot.lane.b32.xlu2 %v13645_v58, %s15351_s18  ;;  %8165 = vmatpush.bf16.msrb.mxu2 %v10671_v29  ;;  %v15380_v29 = vrot.slane %v13567_v38, 4 }
 0x580   : > { %v13969_v47 = vpop.permute.xlu0 %5563  ;;  %v6062_v52 = vpop.permute.xlu1 %6061 }
 0x581   : > { %v13972_v60 = vpop.permute.xlu2 %6485  ;;  %v6077_v16 = vrot.slane %v6062_v52, 4 }
 0x582   : > { %v15257_v37 = vrot.slane %v13972_v60, 4  ;;  %10752 = vmatmul.msk.bf16.vlgmr.msrb.gmra.mxu2 %vm4450_vm7, %v13965_v57 }
 0x583   : > { %8172 = vmatpush.bf16.msra.mxu2 %v10199_v15  ;;  %v6085_v44 = vsel %vm380_vm0, %v6077_v16, %v15260_v9  ;;  %v11170_v15 = vld [vmem:[#allocation4 + $0x248] sm:$0xf0] }
 0x584   : > { %v6507_v34 = vsel %vm380_vm0, %v15380_v29, %v15257_v37  ;;  %v6086_v51 = vsel %vm15381_vm2, %v6062_v52, %v6085_v44  ;;  %v11132_v52 = vld [vmem:[#allocation4 + $0x11c] sm:$0xf]  ;;  %vm15386_vm2 = vcmask 1039360  }
 0x585   : > { %v6508_v26 = vsel %vm2876_vm10, %v13567_v38, %v6507_v34  ;;  %6107 = vst [vmem:[#allocation4 + $0x3b8] sm:$0xff] %v6086_v51  ;;  %v10278_v10 = vld [vmem:[#allocation4 + $0x230] sm:$0xf]  ;;  %v11167_v61 = vld [vmem:[#allocation4 + $0x234] sm:$0xf]  ;;  %v6081_v51 = vrot.slane %v13917_v14, 4 }
 0x586   : > { %6528 = vst [vmem:[#allocation4 + $0x510] sm:$0xff] %v6508_v26  ;;  %6703 = vrot.lane.b32.xlu0 %v13645_v58, %s15344_s28  ;;  %5567 = vrot.lane.b32.xlu1 %v13809_v25, %s15358_s16  ;;  %v10279_v16 = vor.u32 %v11170_v15, %v10278_v10  ;;  %v10283_v29 = vor.u32 %v11167_v61, %v10280_v1  ;;  %v10112_v34 = vld [vmem:[#allocation4 + $0xfc] sm:$0xf0]  ;;  %v11125_v1 = vld [vmem:[#allocation4 + $0xe4] sm:$0xf] }
 0x587   : > { %8173 = vmatpush.bf16.msra.mxu2 %v10171_v32  ;;  %6065 = vrot.lane.b32.xlu2 %v13688_v27, %s15357_s10  ;;  %v10143_v32 = vor.u32 %v11132_v52, %v10140_v45  ;;  %v15382_v45 = vrot.slane %v13516_v33, 4 }
 0x588   : > { %8135 = vmatpush.bf16.msra.mxu0 %v10279_v16  ;;  %8191 = vmatpush.bf16.msra.mxu3 %v10283_v29  ;;  %v13994_v38 = vpop.permute.xlu0 %6493  ;;  %v13996_v44 = vpop.permute.xlu1 %6071  ;;  %v10115_v16 = vor.u32 %v11125_v1, %v10112_v34  ;;  %v10056_v1 = vld [vmem:[#allocation4 + $0x8c] sm:$0xf0] }
 0x589   : > { %v15258_v26 = vrot.slane %v13994_v38, 4  ;;  %v14000_v37 = vpop.permute.xlu2 %5993  ;;  %v15259_v61 = vrot.slane %v13996_v44, 4 }
 0x58b   : > { %8174 = vmatpush.bf16.msra.mxu2 %v10143_v32  ;;  %v6514_v15 = vsel %vm380_vm0, %v15382_v45, %v15258_v26  ;;  %v6092_v10 = vsel %vm380_vm0, %v6081_v51, %v15259_v61  ;;  %v11118_v32 = vld [vmem:[#allocation4 + $0xac] sm:$0xf]  ;;  %v10084_v45 = vld [vmem:[#allocation4 + $0xc4] sm:$0xf0]  ;;  %v10028_v26 = vld [vmem:[#allocation4 + $0x54] sm:$0xf0] }
 0x58c   : > { %v6515_v29 = vsel %vm2876_vm10, %v13516_v33, %v6514_v15  ;;  %v6093_v52 = vsel %vm15383_vm4, %v13917_v14, %v6092_v10  ;;  %v10087_v34 = vor.u32 %v11118_v32, %v10084_v45  ;;  %v15264_v14 = vrot.slane %v13946_v62, 4  ;;  %v14038_v61 = vld [vmem:[#allocation2 + $0x3c] sm:$0xff]  ;;  %v10474_v9 = vld [vmem:[#allocation4 + $0x3b8] sm:$0xf]  ;;  %vm15388_vm4 = vmmov %vm15386_vm2 }
 0x58d   : > { %6532 = vst [vmem:[#allocation4 + $0x52c] sm:$0xff] %v6515_v29  ;;  %v11111_v29 = vld [vmem:[#allocation4 + $0x74] sm:$0xf] }
 0x58e   : > { %6111 = vst [vmem:[#allocation4 + $0x3d4] sm:$0xff] %v6093_v52  ;;  %6625 = vrot.lane.b32.xlu0 %v13688_v27, %s15347_s14  ;;  %5489 = vrot.lane.b32.xlu1 %v13835_v11, %s15362_s15  ;;  %v10059_v52 = vor.u32 %v11111_v29, %v10056_v1 }
 0x58f   : > { %8175 = vmatpush.bf16.msra.mxu2 %v10115_v16  ;;  %5497 = vrot.lane.b32.xlu2 %v13809_v25, %s15362_s15  ;;  %v15384_v25 = vrot.slane %v13610_v41, 4 }
 0x590   : > { %v14021_v51 = vpop.permute.xlu0 %5999  ;;  %v5556_v33 = vpop.permute.xlu1 %5555 }
 0x591   : > { %v14024_v15 = vpop.permute.xlu2 %5855  ;;  %v5571_v10 = vrot.slane %v5556_v33, 4 }
 0x592   : > { %v15263_v16 = vrot.slane %v14024_v15, 4 }
 0x593   : > { %8176 = vmatpush.bf16.msra.mxu2 %v10087_v34  ;;  %v5579_v11 = vsel %vm380_vm0, %v5571_v10, %v15264_v14  ;;  %v11104_v10 = vld [vmem:[#allocation4 + $0x3c] sm:$0xf] }
 0x594   : > { %v5877_v32 = vsel %vm380_vm0, %v15384_v25, %v15263_v16  ;;  %v5580_v45 = vsel %vm15385_vm5, %v5556_v33, %v5579_v11  ;;  %v10031_v33 = vor.u32 %v11104_v10, %v10028_v26  ;;  %v10000_v11 = vld [vmem:[#allocation4 + $0x1c] sm:$0xf0]  ;;  %v15387_v26 = vrot.slane %v13616_v53, 4  ;;  %v10426_v16 = vld [vmem:[#allocation4 + $0x350] sm:$0xf] }
 0x595   : > { %v5878_v34 = vsel %vm15386_vm2, %v13610_v41, %v5877_v32  ;;  %5601 = vst [vmem:[#allocation4 + $0x1f8] sm:$0xff] %v5580_v45  ;;  %v11219_v48 = vld [vmem:[#allocation4 + $0x3d0] sm:$0xf0]  ;;  %v11097_v45 = vld [vmem:[#allocation4 + $0x4] sm:$0xf]  ;;  %vm15391_vm2 = vcmask 965632  }
 0x596   : > { %5898 = vst [vmem:[#allocation4 + $0x318] sm:$0xff] %v5878_v34  ;;  %5359 = vrot.lane.b32.xlu0 %v14038_v61, %s15367_s1  ;;  %6003 = vrot.lane.b32.xlu1 %v13645_v58, %s15360_s13  ;;  %v10475_v1 = vor.u32 %v11219_v48, %v10474_v9  ;;  %v11206_v9 = vld [vmem:[#allocation4 + $0x368] sm:$0xf0]  ;;  %v10003_v10 = vor.u32 %v11097_v45, %v10000_v11  ;;  %v15390_v45 = vrot.slane %v13571_v17, 4 }
 0x597   : > { %8177 = vmatpush.bf16.msra.mxu2 %v10059_v52  ;;  %6695 = vrot.lane.b32.xlu2 %v13688_v27, %s15344_s28  ;;  %v5575_v52 = vrot.slane %v13969_v47, 4  ;;  %v10427_v35 = vor.u32 %v11206_v9, %v10426_v16 }
 0x598   : > { %8150 = vmatpush.bf16.msrb.mxu1 %v10475_v1  ;;  %v14046_v41 = vpop.permute.xlu0 %5863  ;;  %v14048_v29 = vpop.permute.xlu1 %5565 }
 0x599   : > { %v15269_v25 = vrot.slane %v14046_v41, 4  ;;  %v14052_v32 = vpop.permute.xlu2 %5487  ;;  %v15270_v48 = vrot.slane %v14048_v29, 4 }
 0x59b   : > { %8178 = vmatpush.bf16.msra.mxu2 %v10031_v33  ;;  %v5884_v34 = vsel %vm380_vm0, %v15387_v26, %v15269_v25  ;;  %v5586_v1 = vsel %vm380_vm0, %v5575_v52, %v15270_v48  ;;  %v14071_v26 = vld [vmem:[#allocation2 + $0x18] sm:$0xff] }
 0x59c   : > { %v5885_v14 = vsel %vm15388_vm4, %v13616_v53, %v5884_v34  ;;  %v5587_v33 = vsel %vm15385_vm5, %v13969_v47, %v5586_v1  ;;  %v10250_v9 = vld [vmem:[#allocation4 + $0x1f8] sm:$0xf]  ;;  %vm15395_vm4 = vmmov %vm15391_vm2  ;;  %vm15396_vm5 = vcmask 736256  }
 0x59d   : > { %5902 = vst [vmem:[#allocation4 + $0x334] sm:$0xff] %v5885_v14  ;;  %v15277_v14 = vrot.slane %v14000_v37, 4 }
 0x59e   : > { %5605 = vst [vmem:[#allocation4 + $0x214] sm:$0xff] %v5587_v33  ;;  %6487 = vrot.lane.b32.xlu0 %v14067_v28, %s15389_s30  ;;  %5421 = vrot.lane.b32.xlu1 %v14071_v26, %s15370_s3  ;;  %v10398_v33 = vld [vmem:[#allocation4 + $0x318] sm:$0xf] }
 0x59f   : > { %8179 = vmatpush.bf16.msra.mxu2 %v10003_v10  ;;  %5429 = vrot.lane.b32.xlu2 %v14038_v61, %s15370_s3  ;;  %v11160_v10 = vld [vmem:[#allocation4 + $0x1fc] sm:$0xf]  ;;  %s290_s3 = sand.u32 1, %s11590_s22  }
 0x5a0   : > { %v14077_v53 = vpop.permute.xlu0 %5493  ;;  %v5992_v47 = vpop.permute.xlu1 %5991 }
 0x5a1   : > { %v14080_v16 = vpop.permute.xlu2 %6415  ;;  %v6007_v11 = vrot.slane %v5992_v47, 4 }
 0x5a3   : > { %8242 = vmatpush.bf16.msrb.mxu2 %v10427_v35  ;;  %v15280_v35 = vrot.slane %v14080_v16, 4  ;;  %v6015_v52 = vsel %vm380_vm0, %v6007_v11, %v15277_v14 }
 0x5a4   : > { %v6016_v1 = vsel %vm15391_vm2, %v5992_v47, %v6015_v52  ;;  %v11199_v25 = vld [vmem:[#allocation4 + $0x330] sm:$0xf0]  ;;  %v11192_v52 = vld [vmem:[#allocation4 + $0x2f8] sm:$0xf0]  ;;  %vm15400_vm2 = vcmask 728064  }
 0x5a5   : > { %v6437_v34 = vsel %vm380_vm0, %v15390_v45, %v15280_v35  ;;  %6037 = vst [vmem:[#allocation4 + $0x380] sm:$0xff] %v6016_v1  ;;  %v11163_v46 = vld [vmem:[#allocation4 + $0x210] sm:$0xf0]  ;;  %v10252_v39 = vld [vmem:[#allocation4 + $0x214] sm:$0xf0]  ;;  %v10399_v55 = vor.u32 %v11199_v25, %v10398_v33  ;;  %v6011_v45 = vrot.slane %v14021_v51, 4 }
 0x5a6   : > { %v6438_v48 = vsel %vm2765_vm11, %v13571_v17, %v6437_v34  ;;  %5289 = vrot.lane.b32.xlu0 %v14038_v61, %s15371_s4  ;;  %v10251_v11 = vor.u32 %v11163_v46, %v10250_v9  ;;  %v10255_v14 = vor.u32 %v11160_v10, %v10252_v39  ;;  %6633 = vrot.lane.b32.xlu1 %v13645_v58, %s15347_s14  ;;  %v9982_v25 = vld [vmem:[#allocation5] sm:$0xf]  ;;  %v15393_v1 = vrot.slane %v13657_v5, 4  ;;  %v9990_v35 = vld [vmem:[#allocation5 + $0x8] sm:$0xf] }
 0x5a7   : > { %6458 = vst [vmem:[#allocation4 + $0x4d8] sm:$0xff] %v6438_v48  ;;  %5351 = vrot.lane.b32.xlu2 %v14071_v26, %s15367_s1  ;;  %v11095_v48 = vld [vmem:[#allocation5 + $0xc] sm:$0xf0]  ;;  %8243 = vmatpush.bf16.msrb.mxu2 %v10399_v55  ;;  %s11635_s1 = smov 23  }
 0x5a8   : > { %8136 = vmatpush.bf16.msra.mxu0 %v10251_v11  ;;  %8192 = vmatpush.bf16.msra.mxu3 %v10255_v14  ;;  %v14100_v47 = vpop.permute.xlu0 %6423  ;;  %v14102_v17 = vpop.permute.xlu1 %6001  ;;  %v14109_v34 = vor.u32 %v11095_v48, %v9982_v25  ;;  %v10370_v14 = vld [vmem:[#allocation4 + $0x2e0] sm:$0xf]  ;;  %v15394_v25 = vrot.slane %v13518_v8, 4 }
 0x5a9   : > { %15392 = vst [vmem:[#allocation24_spill] sm:$0xff] %v14100_v47  ;;  %v15278_v39 = vrot.slane %v14100_v47, 4  ;;  %v14106_v46 = vpop.permute.xlu2 %5427  ;;  %v15281_v9 = vrot.slane %v14102_v17, 4  ;;  %v10371_v33 = vor.u32 %v11192_v52, %v10370_v14 }
 0x5aa   : > { %v15284_v58 = vrot.slane %v14106_v46, 4  ;;  %8124 = vmatmul.bf16.vlgmr.msrb.gmra.mxu3 %v14109_v34  ;;  %8180 = vmatmul.bf16.vlgmr.msra.gmra.mxu2 %v14109_v34 }
 0x5ab   : > { %v6444_v10 = vsel %vm380_vm0, %v15393_v1, %v15278_v39  ;;  %v6022_v55 = vsel %vm380_vm0, %v6011_v45, %v15281_v9  ;;  %8244 = vmatpush.bf16.msrb.mxu2 %v10371_v33  ;;  %v6541_v45 = vld [vmem:[#allocation2 + $0x38] sm:$0xff]  ;;  %v10728_v39 = vld [vmem:[#allocation4 + $0x5cc] sm:$0xf0] }
 0x5ac   : > { %v6445_v11 = vsel %vm2765_vm11, %v13657_v5, %v6444_v10  ;;  %v5448_v48 = vsel %vm380_vm0, %v15394_v25, %v15284_v58  ;;  %v6023_v1 = vsel %vm15395_vm4, %v14021_v51, %v6022_v55  ;;  %v15283_v51 = vrot.slane %v14052_v32, 4  ;;  %vm15404_vm4 = vmmov %vm15400_vm2 }
 0x5ad   : > { %6462 = vst [vmem:[#allocation4 + $0x4f4] sm:$0xff] %v6445_v11  ;;  %v5449_v52 = vsel %vm15396_vm5, %v13518_v8, %v5448_v48  ;;  %v15398_v11 = vrot.slane %v13696_v63, 4  ;;  %vm15405_vm5 = vcmask 7168  }
 0x5ae   : > { %5466 = vst [vmem:[#allocation4 + $0x1ac] sm:$0xff] %v5449_v52  ;;  %6417 = vrot.lane.b32.xlu0 %v14067_v28, %s15363_s17  ;;  %6555 = vrot.lane.b32.xlu1 %v13688_v27, %s15352_s29 }
 0x5af   : > { %6041 = vst [vmem:[#allocation4 + $0x39c] sm:$0xff] %v6023_v1  ;;  %6563 = vrot.lane.b32.xlu2 %v6541_v45, %s15352_s29  ;;  %v15399_v1 = vrot.slane %v13477_v22, 4 }
 0x5b0   : > { %v14138_v5 = vpop.permute.xlu0 %6345  ;;  %v5486_v14 = vpop.permute.xlu1 %5485 }
 0x5b1   : > { %15397 = vst [vmem:[#allocation25_spill] sm:$0xff] %v14138_v5  ;;  %v15279_v10 = vrot.slane %v14138_v5, 4  ;;  %v14142_v8 = vpop.permute.xlu2 %5349  ;;  %v5501_v55 = vrot.slane %v5486_v14, 4 }
 0x5b2   : > { %v15282_v33 = vrot.slane %v14142_v8, 4 }
 0x5b3   : > { %v6367_v25 = vsel %vm380_vm0, %v15398_v11, %v15279_v10  ;;  %v5509_v27 = vsel %vm380_vm0, %v5501_v55, %v15283_v51  ;;  %v14163_v10 = vld [vmem:[#allocation2 + $0x40] sm:$0xff]  ;;  %v11096_v55 = vld [vmem:[#allocation5 + $0x14] sm:$0xf0]  ;;  %v10700_v51 = vld [vmem:[#allocation4 + $0x594] sm:$0xf0] }
 0x5b4   : > { %v6368_v48 = vsel %vm2654_vm9, %v13696_v63, %v6367_v25  ;;  %v5371_v52 = vsel %vm380_vm0, %v15399_v1, %v15282_v33  ;;  %v5510_v45 = vsel %vm15400_vm2, %v5486_v14, %v5509_v27  ;;  %v10446_v63 = vld [vmem:[#allocation4 + $0x380] sm:$0xf]  ;;  %v11279_v27 = vld [vmem:[#allocation4 + $0x5b4] sm:$0xf]  ;;  %vm15409_vm2 = vcmask 736256  }
 0x5b5   : > { %6388 = vst [vmem:[#allocation4 + $0x4a0] sm:$0xff] %v6368_v48  ;;  %v5372_v11 = vsel %vm1048_vm8, %v13477_v22, %v5371_v52  ;;  %v10731_v48 = vor.u32 %v11279_v27, %v10728_v39  ;;  %v14175_v52 = vor.u32 %v11096_v55, %v9990_v35  ;;  %v15402_v39 = vrot.slane %v13480_v36, 4 }
 0x5b6   : > { %5392 = vst [vmem:[#allocation4 + $0x158] sm:$0xff] %v5372_v11  ;;  %5865 = vrot.lane.b32.xlu0 %v14163_v10, %s15342_s20  ;;  %v11212_v25 = vld [vmem:[#allocation4 + $0x398] sm:$0xf0]  ;;  %6495 = vrot.lane.b32.xlu1 %v14163_v10, %s15389_s30  ;;  %v5505_v11 = vrot.slane %v14077_v53, 4  ;;  %v15403_v27 = vrot.slane %v13739_v23, 4 }
 0x5b7   : > { %5531 = vst [vmem:[#allocation4 + $0x1c0] sm:$0xff] %v5510_v45  ;;  %5281 = vrot.lane.b32.xlu2 %v14071_v26, %s15371_s4  ;;  %v10447_v14 = vor.u32 %v11212_v25, %v10446_v63  ;;  %v11272_v25 = vld [vmem:[#allocation4 + $0x57c] sm:$0xf]  ;;  %s11634_s4 = smov 95  }
 0x5b8   : > { %v14171_v22 = vpop.permute.xlu0 %5357  ;;  %v14173_v1 = vpop.permute.xlu1 %5495  ;;  %v10703_v5 = vor.u32 %v11272_v25, %v10700_v51  ;;  %v15406_v25 = vrot.slane %v13661_v59, 4 }
 0x5b9   : > { %8151 = vmatpush.bf16.msrb.mxu1 %v10447_v14  ;;  %v15289_v45 = vrot.slane %v14171_v22, 4  ;;  %v14179_v9 = vpop.permute.xlu2 %5777  ;;  %v15292_v33 = vrot.slane %v14173_v1, 4 }
 0x5ba   : > { %15401 = vst [vmem:[#allocation26_spill] sm:$0xff] %v14179_v9  ;;  %v15287_v63 = vrot.slane %v14179_v9, 4  ;;  %v11255_v9 = vld [vmem:[#allocation4 + $0x4f0] sm:$0xf0] }
 0x5bb   : > { %v5378_v35 = vsel %vm380_vm0, %v15402_v39, %v15289_v45  ;;  %v5516_v55 = vsel %vm380_vm0, %v5505_v11, %v15292_v33  ;;  %v10672_v39 = vld [vmem:[#allocation4 + $0x55c] sm:$0xf0] }
 0x5bc   : > { %v5379_v14 = vsel %vm1048_vm8, %v13480_v36, %v5378_v35  ;;  %v5517_v58 = vsel %vm15404_vm4, %v14077_v53, %v5516_v55  ;;  %8152 = vmatmul.bf16.vlgmr.msrb.gmra.mxu1 %v14175_v52  ;;  %v11265_v36 = vld [vmem:[#allocation4 + $0x544] sm:$0xf]  ;;  %vm15413_vm4 = vcmask 72704  }
 0x5bd   : > { %8219 = vmatpush.bf16.msra.mxu1 %v10731_v48  ;;  %v5798_v48 = vsel %vm380_vm0, %v15403_v27, %v15287_v63  ;;  %5396 = vst [vmem:[#allocation4 + $0x174] sm:$0xff] %v5379_v14  ;;  %v10675_v51 = vor.u32 %v11265_v36, %v10672_v39  ;;  %v15407_v27 = vrot.slane %v13449_v2, 4  ;;  %v15408_v39 = vrot.slane %v13446_v49, 4  ;;  %v11258_v63 = vld [vmem:[#allocation4 + $0x50c] sm:$0xf] }
 0x5be   : > { %v5799_v11 = vsel %vm15405_vm5, %v13739_v23, %v5798_v48  ;;  %6277 = vrot.lane.b32.xlu0 %v14067_v28, %s15343_s26  ;;  %5535 = vst [vmem:[#allocation4 + $0x1dc] sm:$0xff] %v5517_v58  ;;  %5927 = vrot.lane.b32.xlu1 %v14067_v28, %s15341_s19  ;;  %v10222_v45 = vld [vmem:[#allocation4 + $0x1c0] sm:$0xf]  ;;  %vm15418_vm5 = vcmask 310272  }
 0x5bf   : > { %5816 = vst [vmem:[#allocation4 + $0x2c4] sm:$0xff] %v5799_v11  ;;  %5935 = vrot.lane.b32.xlu2 %v14163_v10, %s15341_s19 }
 0x5c0   : > { %v14209_v53 = vpop.permute.xlu0 %6275  ;;  %v14211_v35 = vpop.permute.xlu1 %5419 }
 0x5c1   : > { %8220 = vmatpush.bf16.msra.mxu1 %v10703_v5  ;;  %v15288_v23 = vrot.slane %v14209_v53, 4  ;;  %v14214_v55 = vpop.permute.xlu2 %5279  ;;  %v15290_v5 = vrot.slane %v14211_v35, 4 }
 0x5c2   : > { %v15291_v58 = vrot.slane %v14214_v55, 4 }
 0x5c3   : > { %v6297_v14 = vsel %vm380_vm0, %v15406_v25, %v15288_v23  ;;  %v5441_v48 = vsel %vm380_vm0, %v15407_v27, %v15290_v5  ;;  %v11262_v25 = vld [vmem:[#allocation4 + $0x528] sm:$0xf0]  ;;  %v11153_v27 = vld [vmem:[#allocation4 + $0x1c4] sm:$0xf] }
 0x5c4   : > { %v6298_v11 = vsel %vm2543_vm13, %v13661_v59, %v6297_v14  ;;  %v5301_v36 = vsel %vm380_vm0, %v15408_v39, %v15291_v58  ;;  %v10650_v39 = vld [vmem:[#allocation4 + $0x510] sm:$0xf] }
 0x5c5   : > { %8221 = vmatpush.bf16.msra.mxu1 %v10675_v51  ;;  %v5442_v51 = vsel %vm15409_vm2, %v13449_v2, %v5441_v48  ;;  %6318 = vst [vmem:[#allocation4 + $0x468] sm:$0xff] %v6298_v11  ;;  %v5302_v23 = vsel %vm937_vm6, %v13446_v49, %v5301_v36  ;;  %v11156_v59 = vld [vmem:[#allocation4 + $0x1d8] sm:$0xf0]  ;;  %v10224_v14 = vld [vmem:[#allocation4 + $0x1dc] sm:$0xf0]  ;;  %vm15420_vm2 = vcmask 7168  }
 0x5c6   : > { %5322 = vst [vmem:[#allocation4 + $0x120] sm:$0xff] %v5302_v23  ;;  %6705 = vrot.lane.b32.xlu0 %v14163_v10, %s15344_s28  ;;  %6425 = vrot.lane.b32.xlu1 %v14163_v10, %s15363_s17  ;;  %v10223_v2 = vor.u32 %v11156_v59, %v10222_v45  ;;  %v10227_v48 = vor.u32 %v11153_v27, %v10224_v14  ;;  %v10644_v11 = vld [vmem:[#allocation4 + $0x524] sm:$0xf0]  ;;  %v10616_v58 = vld [vmem:[#allocation4 + $0x4ec] sm:$0xf0]  ;;  %v15411_v59 = vrot.slane %v13655_v56, 4 }
 0x5c7   : > { %5462 = vst [vmem:[#allocation4 + $0x190] sm:$0xff] %v5442_v51  ;;  %5857 = vrot.lane.b32.xlu2 %v14067_v28, %s15342_s20  ;;  %v10647_v36 = vor.u32 %v11258_v63, %v10644_v11  ;;  %v10651_v23 = vor.u32 %v11262_v25, %v10650_v39  ;;  %v11251_v27 = vld [vmem:[#allocation4 + $0x4d4] sm:$0xf]  ;;  %v15410_v63 = vrot.slane %v13522_v18, 4  ;;  %v15412_v39 = vrot.slane %v13817_v20, 4 }
 0x5c8   : > { %v14245_v49 = vpop.permute.xlu0 %5287  ;;  %v14247_v5 = vpop.permute.xlu1 %6353  ;;  %8137 = vmatpush.bf16.msra.mxu0 %v10223_v2  ;;  %8193 = vmatpush.bf16.msra.mxu3 %v10227_v48  ;;  %v10619_v2 = vor.u32 %v11251_v27, %v10616_v58  ;;  %v10622_v48 = vld [vmem:[#allocation4 + $0x4d8] sm:$0xf]  ;;  %v11244_v27 = vld [vmem:[#allocation4 + $0x49c] sm:$0xf] }
 0x5c9   : > { %v15300_v51 = vrot.slane %v14245_v49, 4  ;;  %v14250_v33 = vpop.permute.xlu2 %5707  ;;  %v15298_v47 = vrot.slane %v14247_v5, 4 }
 0x5ca   : > { %v15297_v45 = vrot.slane %v14250_v33, 4 }
 0x5cb   : > { %v5308_v25 = vsel %vm380_vm0, %v15410_v63, %v15300_v51  ;;  %v6374_v14 = vsel %vm380_vm0, %v15411_v59, %v15298_v47  ;;  %v10623_v63 = vor.u32 %v11255_v9, %v10622_v48  ;;  %v10588_v9 = vld [vmem:[#allocation4 + $0x4b4] sm:$0xf0] }
 0x5cc   : > { %8200 = vmatpush.bf16.msrb.mxu0 %v10647_v36  ;;  %8256 = vmatpush.bf16.msrb.mxu3 %v10651_v23  ;;  %v5309_v11 = vsel %vm937_vm6, %v13522_v18, %v5308_v25  ;;  %v5728_v36 = vsel %vm380_vm0, %v15412_v39, %v15297_v45  ;;  %v6375_v23 = vsel %vm2654_vm9, %v13655_v56, %v6374_v14  ;;  %v11150_v25 = vld [vmem:[#allocation4 + $0x1a8] sm:$0xf0] }
 0x5cd   : > { %10753 = vmatmul.msk.bf16.vlgmr.msra.gmra.mxu1 %vm4450_vm7, %v13965_v57  ;;  %5326 = vst [vmem:[#allocation4 + $0x13c] sm:$0xff] %v5309_v11  ;;  %v5729_v58 = vsel %vm15413_vm4, %v13817_v20, %v5728_v36  ;;  %v10591_v20 = vor.u32 %v11244_v27, %v10588_v9  ;;  %v10560_v36 = vld [vmem:[#allocation4 + $0x47c] sm:$0xf0]  ;;  %v11237_v9 = vld [vmem:[#allocation4 + $0x464] sm:$0xf]  ;;  %vm15421_vm4 = vcmask 80896  }
 0x5ce   : > { %5746 = vst [vmem:[#allocation4 + $0x28c] sm:$0xff] %v5729_v58  ;;  %v10202_v18 = vld [vmem:[#allocation4 + $0x190] sm:$0xf]  ;;  %6207 = vrot.lane.b32.xlu0 %v14067_v28, %s15346_s2  ;;  %6347 = vrot.lane.b32.xlu1 %v14067_v28, %s15365_s0  ;;  %v15416_v58 = vrot.slane %v13745_v21, 4  ;;  %v10146_v51 = vld [vmem:[#allocation4 + $0x120] sm:$0xf] }
 0x5cf   : > { %6392 = vst [vmem:[#allocation4 + $0x4bc] sm:$0xff] %v6375_v23  ;;  %6355 = vrot.lane.b32.xlu2 %v14163_v10, %s15365_s0  ;;  %v10203_v56 = vor.u32 %v11150_v25, %v10202_v18  ;;  %v15417_v18 = vrot.slane %v13780_v19, 4  ;;  %s15541_s0 = smov 111  }
 0x5d0   : > { %8201 = vmatpush.bf16.msrb.mxu0 %v10619_v2  ;;  %8257 = vmatpush.bf16.msrb.mxu3 %v10623_v63  ;;  %v14283_v59 = vpop.permute.xlu0 %6205  ;;  %v14285_v14 = vpop.permute.xlu1 %5769  ;;  %v11143_v2 = vld [vmem:[#allocation4 + $0x170] sm:$0xf0]  ;;  %v10174_v63 = vld [vmem:[#allocation4 + $0x158] sm:$0xf] }
 0x5d1   : > { %15414 = vst [vmem:[#allocation27_spill] sm:$0xff] %v14285_v14  ;;  %8228 = vmatpush.bf16.msrb.mxu1 %v10203_v56  ;;  %v15299_v48 = vrot.slane %v14283_v59, 4  ;;  %v14288_v11 = vpop.permute.xlu2 %5629  ;;  %v15305_v39 = vrot.slane %v14285_v14, 4  ;;  %v10175_v56 = vor.u32 %v11143_v2, %v10174_v63 }
 0x5d2   : > { %15415 = vst [vmem:[#allocation28_spill] sm:$0xff] %v14288_v11  ;;  %v15303_v23 = vrot.slane %v14288_v11, 4  ;;  %v9984_v11 = vld [vmem:[#allocation5 + $0x10] sm:$0xf0] }
 0x5d3   : > { %v6227_v27 = vsel %vm380_vm0, %v15416_v58, %v15299_v48  ;;  %v5791_v25 = vsel %vm380_vm0, %v15417_v18, %v15305_v39  ;;  %v10563_v48 = vor.u32 %v11237_v9, %v10560_v36  ;;  %v10532_v18 = vld [vmem:[#allocation4 + $0x444] sm:$0xf0]  ;;  %v11230_v36 = vld [vmem:[#allocation4 + $0x42c] sm:$0xf] }
 0x5d4   : > { %8202 = vmatpush.bf16.msrb.mxu0 %v10591_v20  ;;  %v6228_v45 = vsel %vm15418_vm5, %v13745_v21, %v6227_v27  ;;  %v15419_v20 = vrot.slane %v13942_v30, 4  ;;  %v5792_v58 = vsel %vm15420_vm2, %v13780_v19, %v5791_v25  ;;  %v11136_v14 = vld [vmem:[#allocation4 + $0x138] sm:$0xf0]  ;;  %v10594_v21 = vld [vmem:[#allocation4 + $0x4a0] sm:$0xf]  ;;  %vm15424_vm5 = vmmov %vm15421_vm4  ;;  %vm15426_vm2 = vcmask 318464  }
 0x5d5   : > { %6248 = vst [vmem:[#allocation4 + $0x430] sm:$0xff] %v6228_v45  ;;  %8229 = vmatpush.bf16.msrb.mxu1 %v10175_v56  ;;  %v10147_v63 = vor.u32 %v11136_v14, %v10146_v51  ;;  %v10118_v45 = vld [vmem:[#allocation4 + $0xe8] sm:$0xf]  ;;  %v10504_v56 = vld [vmem:[#allocation4 + $0x40c] sm:$0xf0] }
 0x5d6   : > { %v5651_v47 = vsel %vm380_vm0, %v15419_v20, %v15303_v23  ;;  %v11248_v27 = vld [vmem:[#allocation4 + $0x4b8] sm:$0xf0]  ;;  %5812 = vst [vmem:[#allocation4 + $0x2a8] sm:$0xff] %v5792_v58  ;;  %6635 = vrot.lane.b32.xlu0 %v14163_v10, %s15347_s14  ;;  %6285 = vrot.lane.b32.xlu1 %v14163_v10, %s15343_s26  ;;  %v11129_v20 = vld [vmem:[#allocation4 + $0x100] sm:$0xf0]  ;;  %v15422_v58 = vrot.slane %v13893_v4, 4 }
 0x5d7   : > { %v5652_v2 = vsel %vm15421_vm4, %v13942_v30, %v5651_v47  ;;  %6697 = vrot.lane.b32.xlu2 %v14067_v28, %s15344_s28  ;;  %v10595_v19 = vor.u32 %v11248_v27, %v10594_v21  ;;  %v10535_v47 = vor.u32 %v11230_v36, %v10532_v18  ;;  %v10119_v21 = vor.u32 %v11129_v20, %v10118_v45  ;;  %v11223_v27 = vld [vmem:[#allocation4 + $0x3f4] sm:$0xf]  ;;  %v11093_v39 = vld [vmem:[#allocation5 + $0x4] sm:$0xf]  ;;  %v10090_v20 = vld [vmem:[#allocation4 + $0xb0] sm:$0xf] }
 0x5d8   : > { %5672 = vst [vmem:[#allocation4 + $0x238] sm:$0xff] %v5652_v2  ;;  %8203 = vmatpush.bf16.msrb.mxu0 %v10563_v48  ;;  %v14319_v30 = vpop.permute.xlu0 %5637  ;;  %v14321_v51 = vpop.permute.xlu1 %6283  ;;  %v15425_v36 = vrot.slane %v13895_v24, 4  ;;  %v10507_v23 = vor.u32 %v11223_v27, %v10504_v56  ;;  %vm15429_vm4 = vcmask 89088   ;;  %s9042_s28 = scalar_lea.sflag [#allocation7], %s290_s3 }
 0x5d9   : > { %8230 = vmatpush.bf16.msrb.mxu1 %v10147_v63  ;;  %8258 = vmatpush.bf16.msrb.mxu3 %v10595_v19  ;;  %v15304_v14 = vrot.slane %v14319_v30, 4  ;;  %v14324_v48 = vpop.permute.xlu2 %6143  ;;  %v15317_v25 = vrot.slane %v14321_v51, 4  ;;  %v15423_v63 = vrot.slane %v13741_v13, 4 }
 0x5da   : > { %v15308_v9 = vrot.slane %v14324_v48, 4 }
 0x5db   : > { %v5658_v2 = vsel %vm380_vm0, %v15422_v58, %v15304_v14  ;;  %v6304_v18 = vsel %vm380_vm0, %v15423_v63, %v15317_v25  ;;  %v11122_v14 = vld [vmem:[#allocation4 + $0xc8] sm:$0xf0] }
 0x5dc   : > { %8204 = vmatpush.bf16.msrb.mxu0 %v10535_v47  ;;  %v5659_v19 = vsel %vm15424_vm5, %v13893_v4, %v5658_v2  ;;  %v6164_v47 = vsel %vm380_vm0, %v15425_v36, %v15308_v9  ;;  %v6305_v58 = vsel %vm2543_vm13, %v13741_v13, %v6304_v18  ;;  %v10476_v4 = vld [vmem:[#allocation4 + $0x3d4] sm:$0xf0]  ;;  %v14349_v2 = vor.u32 %v11093_v39, %v9984_v11  ;;  %v11185_v36 = vld [vmem:[#allocation4 + $0x2c0] sm:$0xf0]  ;;  %v11216_v18 = vld [vmem:[#allocation4 + $0x3bc] sm:$0xf] }
 0x5dd   : > { %5676 = vst [vmem:[#allocation4 + $0x254] sm:$0xff] %v5659_v19  ;;  %v6165_v45 = vsel %vm15426_vm2, %v13895_v24, %v6164_v47  ;;  %8231 = vmatpush.bf16.msrb.mxu1 %v10119_v21  ;;  %v10342_v63 = vld [vmem:[#allocation4 + $0x2a8] sm:$0xf]  ;;  %v10091_v13 = vor.u32 %v11122_v14, %v10090_v20  ;;  %v10479_v11 = vor.u32 %v11216_v18, %v10476_v4  ;;  %v10448_v19 = vld [vmem:[#allocation4 + $0x39c] sm:$0xf0]  ;;  %v15428_v4 = vrot.slane %v13858_v12, 4 }
 0x5de   : > { %6182 = vst [vmem:[#allocation4 + $0x414] sm:$0xff] %v6165_v45  ;;  %6137 = vrot.lane.b32.xlu0 %v14067_v28, %s15351_s18  ;;  %v10343_v56 = vor.u32 %v11185_v36, %v10342_v63  ;;  %5771 = vrot.lane.b32.xlu1 %v14071_v26, %s15345_s12  ;;  %v15427_v45 = vrot.slane %v13946_v62, 4  ;;  %v15430_v18 = vrot.slane %v13899_v7, 4  ;;  %vm15431_vm5 = vcmask 72704  }
 0x5df   : > { %6322 = vst [vmem:[#allocation4 + $0x484] sm:$0xff] %v6305_v58  ;;  %5779 = vrot.lane.b32.xlu2 %v14038_v61, %s15345_s12  ;;  %8138 = vmatmul.bf16.vlgmr.msra.gmra.mxu0 %v14349_v2  ;;  %v10062_v58 = vld [vmem:[#allocation4 + $0x78] sm:$0xf]  ;;  %vm15432_vm2 = vcmask 957440  }
 0x5e0   : > { %8205 = vmatpush.bf16.msrb.mxu0 %v10507_v23  ;;  %v14357_v24 = vpop.permute.xlu0 %5559  ;;  %v14359_v39 = vpop.permute.xlu1 %5699  ;;  %v11115_v23 = vld [vmem:[#allocation4 + $0x90] sm:$0xf0]  ;;  %8245 = vmatpush.bf16.msrb.mxu2 %v10343_v56 }
 0x5e1   : > { %8232 = vmatpush.bf16.msrb.mxu1 %v10091_v13  ;;  %v15309_v21 = vrot.slane %v14357_v24, 4  ;;  %v14363_v27 = vpop.permute.xlu2 %6065  ;;  %v15310_v14 = vrot.slane %v14359_v39, 4  ;;  %8194 = vmatmul.bf16.vlgmr.msra.gmra.mxu3 %v14349_v2  ;;  %v10063_v36 = vor.u32 %v11115_v23, %v10062_v58  ;;  %v11209_v13 = vld [vmem:[#allocation4 + $0x384] sm:$0xf]  ;;  %v11108_v23 = vld [vmem:[#allocation4 + $0x58] sm:$0xf0] }
 0x5e2   : > { %v15312_v47 = vrot.slane %v14363_v27, 4  ;;  %v10451_v9 = vor.u32 %v11209_v13, %v10448_v19 }
 0x5e3   : > { %v5581_v20 = vsel %vm380_vm0, %v15427_v45, %v15309_v21  ;;  %v5721_v63 = vsel %vm380_vm0, %v15428_v4, %v15310_v14  ;;  %v10034_v21 = vld [vmem:[#allocation4 + $0x40] sm:$0xf] }
 0x5e4   : > { %8206 = vmatpush.bf16.msrb.mxu0 %v10479_v11  ;;  %v5582_v56 = vsel %vm15429_vm4, %v13946_v62, %v5581_v20  ;;  %v6087_v11 = vsel %vm380_vm0, %v15430_v18, %v15312_v47  ;;  %v5722_v45 = vsel %vm15431_vm5, %v13858_v12, %v5721_v63  ;;  %v10566_v62 = vld [vmem:[#allocation4 + $0x468] sm:$0xf]  ;;  %v10035_v12 = vor.u32 %v11108_v23, %v10034_v21  ;;  %v11101_v63 = vld [vmem:[#allocation4 + $0x20] sm:$0xf0]  ;;  %vm15435_vm4 = vmmov %vm15432_vm2 }
 0x5e5   : > { %5602 = vst [vmem:[#allocation4 + $0x200] sm:$0xff] %v5582_v56  ;;  %v6088_v4 = vsel %vm15432_vm2, %v13899_v7, %v6087_v11  ;;  %8233 = vmatpush.bf16.msrb.mxu1 %v10063_v36  ;;  %v10428_v56 = vld [vmem:[#allocation4 + $0x36c] sm:$0xf0]  ;;  %v10006_v18 = vld [vmem:[#allocation4 + $0x8] sm:$0xf]  ;;  %v15433_v11 = vrot.slane %v13996_v44, 4 }
 0x5e6   : > { %6108 = vst [vmem:[#allocation4 + $0x3c0] sm:$0xff] %v6088_v4  ;;  %v11241_v58 = vld [vmem:[#allocation4 + $0x480] sm:$0xf0]  ;;  %6565 = vrot.lane.b32.xlu0 %v14163_v10, %s15352_s29  ;;  %6215 = vrot.lane.b32.xlu1 %v14163_v10, %s15346_s2  ;;  %v15434_v4 = vrot.slane %v13819_v0, 4  ;;  %vm15437_vm5 = vcmask 310272   ;;  %vm15438_vm2 = vcmask 728064  }
 0x5e7   : > { %5742 = vst [vmem:[#allocation4 + $0x270] sm:$0xff] %v5722_v45  ;;  %6627 = vrot.lane.b32.xlu2 %v14067_v28, %s15347_s14  ;;  %v10567_v19 = vor.u32 %v11241_v58, %v10566_v62  ;;  %v10007_v62 = vor.u32 %v11101_v63, %v10006_v18  ;;  %v11203_v58 = vld [vmem:[#allocation4 + $0x354] sm:$0xf]  ;;  %v10400_v63 = vld [vmem:[#allocation4 + $0x334] sm:$0xf0] }
 0x5e8   : > { %8207 = vmatpush.bf16.msrb.mxu0 %v10451_v9  ;;  %v14395_v20 = vpop.permute.xlu0 %6073  ;;  %v14397_v7 = vpop.permute.xlu1 %6213  ;;  %v10288_v25 = vld [vmem:[#allocation4 + $0x254] sm:$0xf0] }
 0x5e9   : > { %8234 = vmatpush.bf16.msrb.mxu1 %v10035_v12  ;;  %8259 = vmatpush.bf16.msrb.mxu3 %v10567_v19  ;;  %v15311_v9 = vrot.slane %v14395_v20, 4  ;;  %v14400_v36 = vpop.permute.xlu2 %5497  ;;  %v15315_v13 = vrot.slane %v14397_v7, 4  ;;  %v15436_v19 = vrot.slane %v14173_v1, 4 }
 0x5ea   : > { %v15313_v21 = vrot.slane %v14400_v36, 4 }
 0x5eb   : > { %v6094_v45 = vsel %vm380_vm0, %v15433_v11, %v15311_v9  ;;  %v6234_v23 = vsel %vm380_vm0, %v15434_v4, %v15315_v13  ;;  %v10431_v9 = vor.u32 %v11203_v58, %v10428_v56 }
 0x5ec   : > { %v6095_v12 = vsel %vm15435_vm4, %v13996_v44, %v6094_v45  ;;  %v5518_v14 = vsel %vm380_vm0, %v15436_v19, %v15313_v21  ;;  %v6235_v11 = vsel %vm15437_vm5, %v13819_v0, %v6234_v23  ;;  %v11178_v44 = vld [vmem:[#allocation4 + $0x288] sm:$0xf0]  ;;  %v11196_v0 = vld [vmem:[#allocation4 + $0x31c] sm:$0xf]  ;;  %v15439_v19 = vrot.slane %v14000_v37, 4 }
 0x5ed   : > { %6112 = vst [vmem:[#allocation4 + $0x3dc] sm:$0xff] %v6095_v12  ;;  %v5519_v47 = vsel %vm15438_vm2, %v14173_v1, %v5518_v14  ;;  %8235 = vmatpush.bf16.msrb.mxu1 %v10007_v62  ;;  %v10403_v1 = vor.u32 %v11196_v0, %v10400_v63  ;;  %v10372_v62 = vld [vmem:[#allocation4 + $0x2fc] sm:$0xf0]  ;;  %v10286_v12 = vld [vmem:[#allocation4 + $0x238] sm:$0xf]  ;;  %v15440_v63 = vrot.slane %v13823_v40, 4 }
 0x5ee   : > { %5536 = vst [vmem:[#allocation4 + $0x1e4] sm:$0xff] %v5519_v47  ;;  %v10314_v18 = vld [vmem:[#allocation4 + $0x270] sm:$0xf]  ;;  %6067 = vrot.lane.b32.xlu0 %v14067_v28, %s15357_s10  ;;  %5701 = vrot.lane.b32.xlu1 %v14071_v26, %s15348_s9  ;;  %v11171_v47 = vld [vmem:[#allocation4 + $0x250] sm:$0xf0]  ;;  %vm15441_vm4 = vcmask 965632  }
 0x5ef   : > { %6252 = vst [vmem:[#allocation4 + $0x44c] sm:$0xff] %v6235_v11  ;;  %5709 = vrot.lane.b32.xlu2 %v14038_v61, %s15348_s9  ;;  %v10315_v45 = vor.u32 %v11178_v44, %v10314_v18  ;;  %8208 = vmatmul.bf16.vlgmr.msrb.gmra.mxu0 %v14175_v52  ;;  %v10287_v44 = vor.u32 %v11171_v47, %v10286_v12  ;;  %vm15443_vm5 = vcmask 318464   ;;  %v11182_v47 = vld [vmem:[#allocation4 + $0x2ac] sm:$0xf]  ;;  %v10538_v12 = vld [vmem:[#allocation4 + $0x430] sm:$0xf] }
 0x5f0   : > { %v14431_v56 = vpop.permute.xlu0 %5995  ;;  %v14433_v14 = vpop.permute.xlu1 %6135  ;;  %8236 = vmatmul.bf16.vlgmr.msrb.gmra.mxu1 %v14109_v34  ;;  %vm15447_vm2 = vcmask 736256  }
 0x5f1   : > { %8298 = vmatpush.bf16.msra.mxu1 %v10431_v9  ;;  %8246 = vmatpush.bf16.msrb.mxu2 %v10315_v45  ;;  %v15314_v9 = vrot.slane %v14431_v56, 4  ;;  %v14437_v4 = vpop.permute.xlu2 %6695  ;;  %v15316_v23 = vrot.slane %v14433_v14, 4  ;;  %v11189_v45 = vld [vmem:[#allocation4 + $0x2e4] sm:$0xf] }
 0x5f2   : > { %v6709_v58 = vrot.slane %v14437_v4, 4 }
 0x5f3   : > { %v6017_v11 = vsel %vm380_vm0, %v15439_v19, %v15314_v9  ;;  %v6157_v18 = vsel %vm380_vm0, %v15440_v63, %v15316_v23  ;;  %v10375_v9 = vor.u32 %v11189_v45, %v10372_v62  ;;  %v15444_v45 = vrot.slane %v13700_v3, 4 }
 0x5f4   : > { %v6018_v0 = vsel %vm15441_vm4, %v14000_v37, %v6017_v11  ;;  %v6158_v19 = vsel %vm15443_vm5, %v13823_v40, %v6157_v18  ;;  %v10344_v40 = vld [vmem:[#allocation4 + $0x2c4] sm:$0xf0]  ;;  %v11175_v18 = vld [vmem:[#allocation4 + $0x274] sm:$0xf]  ;;  %vm15448_vm4 = vmmov %vm15447_vm2  ;;  %vm15449_vm5 = vcmask 89088  }
 0x5f5   : > { %8299 = vmatpush.bf16.msra.mxu1 %v10403_v1  ;;  %v15442_v1 = vrot.slane %v13694_v42, 4  ;;  %6038 = vst [vmem:[#allocation4 + $0x388] sm:$0xff] %v6018_v0  ;;  %8247 = vmatpush.bf16.msrb.mxu2 %v10287_v44 }
 0x5f6   : > { %v11234_v37 = vld [vmem:[#allocation4 + $0x448] sm:$0xf0]  ;;  %6178 = vst [vmem:[#allocation4 + $0x3f8] sm:$0xff] %v6158_v19  ;;  %5569 = vrot.lane.b32.xlu0 %v14038_v61, %s15358_s16  ;;  %6145 = vrot.lane.b32.xlu1 %v14163_v10, %s15351_s18 }
 0x5f7   : > { %v6717_v21 = vsel %vm380_vm0, %v15442_v1, %v6709_v58  ;;  %6557 = vrot.lane.b32.xlu2 %v14067_v28, %s15352_s29  ;;  %v10539_v11 = vor.u32 %v11234_v37, %v10538_v12  ;;  %v15445_v1 = vrot.slane %v14048_v29, 4  ;;  %v15446_v37 = vrot.slane %v14106_v46, 4  ;;  %s11637_s29 = smov 16  }
 0x5f8   : > { %v6718_v13 = vsel %vm3209_vm12, %v13694_v42, %v6717_v21  ;;  %v14469_v62 = vpop.permute.xlu0 %6703  ;;  %v10347_v42 = vor.u32 %v11182_v47, %v10344_v40  ;;  %v14471_v21 = vpop.permute.xlu1 %5567  ;;  %v10316_v47 = vld [vmem:[#allocation4 + $0x28c] sm:$0xf0] }
 0x5f9   : > { %6738 = vst [vmem:[#allocation4 + $0x5b8] sm:$0xff] %v6718_v13  ;;  %8300 = vmatpush.bf16.msra.mxu1 %v10375_v9  ;;  %8260 = vmatpush.bf16.msrb.mxu3 %v10539_v11  ;;  %v6713_v13 = vrot.slane %v14469_v62, 4  ;;  %v5430_v9 = vpop.permute.xlu2 %5429  ;;  %v15318_v63 = vrot.slane %v14471_v21, 4 }
 0x5fa   : > { %v5438_v44 = vrot.slane %v5430_v9, 4 }
 0x5fb   : > { %v6724_v0 = vsel %vm380_vm0, %v15444_v45, %v6713_v13  ;;  %v5588_v19 = vsel %vm380_vm0, %v15445_v1, %v15318_v63  ;;  %v11227_v63 = vld [vmem:[#allocation4 + $0x410] sm:$0xf0] }
 0x5fc   : > { %v6725_v12 = vsel %vm3209_vm12, %v13700_v3, %v6724_v0  ;;  %v5450_v11 = vsel %vm380_vm0, %v15446_v37, %v5438_v44  ;;  %v5452_v40 = vsel %vm15447_vm2, %v5430_v9, %v5438_v44  ;;  %v5589_v23 = vsel %vm15449_vm5, %v14048_v29, %v5588_v19  ;;  %v11168_v9 = vld [vmem:[#allocation4 + $0x23c] sm:$0xf] }
 0x5fd   : > { %8301 = vmatpush.bf16.msra.mxu1 %v10347_v42  ;;  %v10319_v42 = vor.u32 %v11175_v18, %v10316_v47  ;;  %6742 = vst [vmem:[#allocation4 + $0x5d4] sm:$0xff] %v6725_v12  ;;  %v5451_v45 = vsel %vm15448_vm4, %v14106_v46, %v5450_v11  ;;  %v10510_v1 = vld [vmem:[#allocation4 + $0x3f8] sm:$0xf]  ;;  %v10291_v29 = vor.u32 %v11168_v9, %v10288_v25  ;;  %v11220_v44 = vld [vmem:[#allocation4 + $0x3d8] sm:$0xf0]  ;;  %v15451_v25 = vrot.slane %v14052_v32, 4 }
 0x5fe   : > { %5467 = vst [vmem:[#allocation4 + $0x1b4] sm:$0xff] %v5451_v45  ;;  %5491 = vrot.lane.b32.xlu0 %v14071_v26, %s15362_s15  ;;  %v10511_v3 = vor.u32 %v11227_v63, %v10510_v1  ;;  %5631 = vrot.lane.b32.xlu1 %v14071_v26, %s15354_s11  ;;  %vm15453_vm2 = vcmask 728064   ;;  %vm15457_vm4 = vcmask 965632  }
 0x5ff   : > { %5468 = vst [vmem:[#allocation4 + $0x1bc] sm:$0xf] %v5452_v40  ;;  %5639 = vrot.lane.b32.xlu2 %v14038_v61, %s15354_s11  ;;  %v10482_v61 = vld [vmem:[#allocation4 + $0x3c0] sm:$0xf]  ;;  %s11639_s11 = smov 48  }
 0x600   : > { %5606 = vst [vmem:[#allocation4 + $0x21c] sm:$0xff] %v5589_v23  ;;  %v14501_v46 = vpop.permute.xlu0 %6625  ;;  %v14503_v18 = vpop.permute.xlu1 %5489  ;;  %8261 = vmatpush.bf16.msrb.mxu3 %v10511_v3  ;;  %v15450_v23 = vrot.slane %v13778_v43, 4  ;;  %v10483_v11 = vor.u32 %v11220_v44, %v10482_v61  ;;  %v10734_v3 = vld [vmem:[#allocation4 + $0x5b8] sm:$0xf]  ;;  %v10258_v61 = vld [vmem:[#allocation4 + $0x200] sm:$0xf] }
 0x601   : > { %8302 = vmatpush.bf16.msra.mxu1 %v10319_v42  ;;  %v6639_v0 = vrot.slane %v14501_v46, 4  ;;  %v5352_v19 = vpop.permute.xlu2 %5351  ;;  %v5503_v47 = vrot.slane %v14503_v18, 4  ;;  %v15452_v42 = vrot.slane %v14142_v8, 4 }
 0x602   : > { %v5364_v12 = vrot.slane %v5352_v19, 4 }
 0x603   : > { %v6647_v63 = vsel %vm380_vm0, %v15450_v23, %v6639_v0  ;;  %v5511_v37 = vsel %vm380_vm0, %v15451_v25, %v5503_v47 }
 0x604   : > { %v6648_v40 = vsel %vm3098_vm14, %v13778_v43, %v6647_v63  ;;  %v5373_v45 = vsel %vm380_vm0, %v15452_v42, %v5364_v12  ;;  %v5375_v1 = vsel %vm1048_vm8, %v5352_v19, %v5364_v12  ;;  %v11283_v9 = vld [vmem:[#allocation4 + $0x5d0] sm:$0xf0]  ;;  %v5512_v23 = vsel %vm15453_vm2, %v14052_v32, %v5511_v37  ;;  %8262 = vmatpush.bf16.msrb.mxu3 %v10483_v11  ;;  %v11161_v43 = vld [vmem:[#allocation4 + $0x204] sm:$0xf] }
 0x605   : > { %8303 = vmatpush.bf16.msra.mxu1 %v10291_v29  ;;  %6668 = vst [vmem:[#allocation4 + $0x580] sm:$0xff] %v6648_v40  ;;  %v5374_v29 = vsel %vm1048_vm8, %v14142_v8, %v5373_v45  ;;  %v10735_v44 = vor.u32 %v11283_v9, %v10734_v3  ;;  %v15454_v42 = vrot.slane %v14171_v22, 4  ;;  %v15455_v3 = vrot.slane %v14102_v17, 4 }
 0x606   : > { %5393 = vst [vmem:[#allocation4 + $0x160] sm:$0xff] %v5374_v29  ;;  %6075 = vrot.lane.b32.xlu1 %v14163_v10, %s15357_s10  ;;  %vm15465_vm2 = vcmask 973824   ;;  %s11638_s10 = smov 32  }
 0x607   : > { %5394 = vst [vmem:[#allocation4 + $0x168] sm:$0xf] %v5375_v1  ;;  %5561 = vrot.lane.b32.xlu2 %v14071_v26, %s15358_s16  ;;  %v11164_v63 = vld [vmem:[#allocation4 + $0x218] sm:$0xf0]  ;;  %8275 = vmatpush.bf16.msra.mxu0 %v10735_v44  ;;  %v10260_v19 = vld [vmem:[#allocation4 + $0x21c] sm:$0xf0] }
 0x608   : > { %5532 = vst [vmem:[#allocation4 + $0x1c8] sm:$0xff] %v5512_v23  ;;  %v10259_v8 = vor.u32 %v11164_v63, %v10258_v61  ;;  %v10263_v12 = vor.u32 %v11161_v43, %v10260_v19  ;;  %v5360_v25 = vpop.permute.xlu0 %5359  ;;  %v14531_v32 = vpop.permute.xlu1 %6003  ;;  %v15456_v23 = vrot.slane %v13862_v6, 4  ;;  %v10652_v63 = vld [vmem:[#allocation4 + $0x52c] sm:$0xf0]  ;;  %v11157_v19 = vld [vmem:[#allocation4 + $0x1e0] sm:$0xf0] }
 0x609   : > { %v5368_v37 = vrot.slane %v5360_v25, 4  ;;  %v14533_v11 = vpop.permute.xlu2 %6563  ;;  %v6013_v40 = vrot.slane %v14531_v32, 4 }
 0x60a   : > { %8248 = vmatpush.bf16.msrb.mxu2 %v10259_v8  ;;  %8304 = vmatpush.bf16.msra.mxu1 %v10263_v12  ;;  %v6573_v26 = vrot.slane %v14533_v11, 4  ;;  %v10232_v8 = vld [vmem:[#allocation4 + $0x1e4] sm:$0xf0] }
 0x60b   : > { %v5380_v45 = vsel %vm380_vm0, %v15454_v42, %v5368_v37  ;;  %v5382_v1 = vsel %vm1048_vm8, %v5360_v25, %v5368_v37  ;;  %v6024_v9 = vsel %vm380_vm0, %v15455_v3, %v6013_v40  ;;  %v11259_v42 = vld [vmem:[#allocation4 + $0x514] sm:$0xf] }
 0x60c   : > { %v5381_v29 = vsel %vm1048_vm8, %v14171_v22, %v5380_v45  ;;  %5398 = vst [vmem:[#allocation4 + $0x184] sm:$0xf] %v5382_v1  ;;  %v6584_v44 = vsel %vm380_vm0, %v15456_v23, %v6573_v26  ;;  %v6025_v61 = vsel %vm15457_vm4, %v14102_v17, %v6024_v9  ;;  %v10624_v23 = vld [vmem:[#allocation4 + $0x4f4] sm:$0xf0]  ;;  %vm15461_vm8 = vcmask 736256   ;;  %vm15467_vm4 = vmmov %vm15465_vm2 }
 0x60d   : > { %5397 = vst [vmem:[#allocation4 + $0x17c] sm:$0xff] %v5381_v29  ;;  %v6585_v43 = vsel %vm2987_vm15, %v13862_v6, %v6584_v44  ;;  %v10655_v6 = vor.u32 %v11259_v42, %v10652_v63  ;;  %v10736_v42 = vld [vmem:[#allocation4 + $0x5d4] sm:$0xf0]  ;;  %vm15462_vm5 = vmmov %vm15461_vm8 }
 0x60e   : > { %6602 = vst [vmem:[#allocation4 + $0x564] sm:$0xff] %v6585_v43  ;;  %5997 = vrot.lane.b32.xlu1 %v14067_v28, %s15360_s13  ;;  %v15459_v43 = vrot.slane %v14214_v55, 4 }
 0x60f   : > { %6042 = vst [vmem:[#allocation4 + $0x3a4] sm:$0xff] %v6025_v61  ;;  %6005 = vrot.lane.b32.xlu2 %v14163_v10, %s15360_s13  ;;  %v10230_v22 = vld [vmem:[#allocation4 + $0x1c8] sm:$0xf]  ;;  %v11154_v12 = vld [vmem:[#allocation4 + $0x1cc] sm:$0xf]  ;;  %v15458_v10 = vrot.slane %v13972_v60, 4 }
 0x610   : > { %v10231_v25 = vor.u32 %v11157_v19, %v10230_v22  ;;  %v10235_v37 = vor.u32 %v11154_v12, %v10232_v8  ;;  %v6488_v17 = vpop.permute.xlu0 %6487  ;;  %v5422_v3 = vpop.permute.xlu1 %5421  ;;  %v15460_v8 = vrot.slane %v14211_v35, 4  ;;  %v11252_v12 = vld [vmem:[#allocation4 + $0x4dc] sm:$0xf]  ;;  %s11327_s13 = sshll.u32 %s11698_s25, 4 }
 0x611   : > { %v6500_v45 = vrot.slane %v6488_v17, 4  ;;  %v5282_v1 = vpop.permute.xlu2 %5281  ;;  %v5434_v29 = vrot.slane %v5422_v3, 4  ;;  %s9053_s19 = scalar_lea.hbm %s15162_s6, %s11327_s13 }
 0x612   : > { %8249 = vmatpush.bf16.msrb.mxu2 %v10231_v25  ;;  %8305 = vmatpush.bf16.msra.mxu1 %v10235_v37  ;;  %v5294_v9 = vrot.slane %v5282_v1, 4  ;;  %s9056_s26 = sshll.u32 %s9053_s19, 4  ;;  %s9057_s26 = int_to_ptr.hbm [resolvable:$true] %s9056_s26 }
 0x613   : > { %v6509_v44 = vsel %vm380_vm0, %v15458_v10, %v6500_v45  ;;  %v6511_v61 = vsel %vm2876_vm10, %v6488_v17, %v6500_v45  ;;  %v5443_v22 = vsel %vm380_vm0, %v15460_v8, %v5434_v29  ;;  %v10596_v17 = vld [vmem:[#allocation4 + $0x4bc] sm:$0xf0]  ;;  %v5445_v45 = vsel %vm15462_vm5, %v5422_v3, %v5434_v29  ;;  %s11542_s12 = sshra.s32 %s9057_s26, 4  ;;  %s11543_s12 = int_to_ptr.hbm [resolvable:$true] %s11542_s12 }
 0x614   : > { %v6510_v28 = vsel %vm2876_vm10, %v13972_v60, %v6509_v44  ;;  %6530 = vst [vmem:[#allocation4 + $0x520] sm:$0xf] %v6511_v61  ;;  %v5303_v63 = vsel %vm380_vm0, %v15459_v43, %v5294_v9  ;;  %v5305_v19 = vsel %vm937_vm6, %v5282_v1, %v5294_v9  ;;  %v5444_v37 = vsel %vm15461_vm8, %v14211_v35, %v5443_v22  ;;  %v10454_v1 = vld [vmem:[#allocation4 + $0x388] sm:$0xf]  ;;  %v5476_v9 = vld [vmem:[#allocation2 + $0x3c] sm:$0xff]  ;;  %s11544_s2 = scalar_lea.hbm %s11543_s12, 16  ;;  %p11549_p3 = scmp.lt.s32.totalorder %s11543_s12, %s15162_s6 }
 0x615   : > { %6529 = vst [vmem:[#allocation4 + $0x518] sm:$0xff] %v6510_v28  ;;  %v5304_v25 = vsel %vm937_vm6, %v14214_v55, %v5303_v63  ;;  %8250 = vmatmul.bf16.vlgmr.msrb.gmra.mxu2 %v14349_v2  ;;  %v10627_v60 = vor.u32 %v11252_v12, %v10624_v23  ;;  %8306 = vmatmul.bf16.vlgmr.msra.gmra.mxu1 %v14349_v2  ;;  %v11280_v55 = vld [vmem:[#allocation4 + $0x5bc] sm:$0xf]  ;;  %v11245_v44 = vld [vmem:[#allocation4 + $0x4a4] sm:$0xf]  ;;  %v15463_v8 = vrot.slane %v14245_v49, 4  ;;  %p11545_p0 = scmp.ne.s32.totalorder %s11543_s12, %s11544_s2 }
 0x616   : > { %8312 = vmatpush.bf16.msra.mxu2 %v10655_v6  ;;  %5323 = vst [vmem:[#allocation4 + $0x128] sm:$0xff] %v5304_v25  ;;  %v11213_v6 = vld [vmem:[#allocation4 + $0x3a0] sm:$0xf0]  ;;  %5499 = vrot.lane.b32.xlu1 %v5476_v9, %s15362_s15  ;;  %v10739_v23 = vor.u32 %v11280_v55, %v10736_v42  ;;  %v10599_v43 = vor.u32 %v11245_v44, %v10596_v17  ;;  %v15466_v42 = vrot.slane %v13784_v31, 4 }
 0x617   : > { %5324 = vst [vmem:[#allocation4 + $0x130] sm:$0xf] %v5305_v19  ;;  %v10455_v10 = vor.u32 %v11213_v6, %v10454_v1  ;;  %v10568_v19 = vld [vmem:[#allocation4 + $0x484] sm:$0xf0]  ;;  %v11238_v1 = vld [vmem:[#allocation4 + $0x46c] sm:$0xf]  ;;  %p11546_p1 = pnand %p11545_p0, %p11715_p5 }
 0x618   : > { %5463 = vst [vmem:[#allocation4 + $0x198] sm:$0xff] %v5444_v37  ;;  %v5290_v35 = vpop.permute.xlu0 %5289  ;;  %v14582_v63 = vpop.permute.xlu1 %6633  ;;  %v15464_v37 = vrot.slane %v13940_v54, 4  ;;  %v10571_v9 = vor.u32 %v11238_v1, %v10568_v19 }
 0x619   : > { %5464 = vst [vmem:[#allocation4 + $0x1a0] sm:$0xf] %v5445_v45  ;;  %8263 = vmatpush.bf16.msrb.mxu3 %v10455_v10  ;;  %v5298_v61 = vrot.slane %v5290_v35, 4  ;;  %v5936_v28 = vpop.permute.xlu2 %5935  ;;  %v6643_v29 = vrot.slane %v14582_v63, 4  ;;  %v10540_v10 = vld [vmem:[#allocation4 + $0x44c] sm:$0xf0]  ;;  %p11547_p2 = pneg %p11546_p1 }
 0x61a   : > { %8313 = vmatpush.bf16.msra.mxu2 %v10627_v60  ;;  %v5944_v3 = vrot.slane %v5936_v28, 4 }
 0x61b   : > { %v5310_v22 = vsel %vm380_vm0, %v15463_v8, %v5298_v61  ;;  %v5312_v12 = vsel %vm937_vm6, %v5290_v35, %v5298_v61  ;;  %v6654_v45 = vsel %vm380_vm0, %v15466_v42, %v6643_v29  ;;  %v11231_v35 = vld [vmem:[#allocation4 + $0x434] sm:$0xf]  ;;  %v10512_v42 = vld [vmem:[#allocation4 + $0x414] sm:$0xf0] }
 0x61c   : > { %v5311_v25 = vsel %vm937_vm6, %v14245_v49, %v5310_v22  ;;  %5328 = vst [vmem:[#allocation4 + $0x14c] sm:$0xf] %v5312_v12  ;;  %v5956_v60 = vsel %vm380_vm0, %v15464_v37, %v5944_v3  ;;  %v5958_v17 = vsel %vm15465_vm2, %v5936_v28, %v5944_v3  ;;  %v6655_v49 = vsel %vm3098_vm14, %v13784_v31, %v6654_v45  ;;  %v11224_v3 = vld [vmem:[#allocation4 + $0x3fc] sm:$0xf] }
 0x61d   : > { %8331 = vmatpush.bf16.msra.mxu3 %v10739_v23  ;;  %5327 = vst [vmem:[#allocation4 + $0x144] sm:$0xff] %v5311_v25  ;;  %v5957_v6 = vsel %vm15467_vm4, %v13940_v54, %v5956_v60  ;;  %v10543_v61 = vor.u32 %v11231_v35, %v10540_v10  ;;  %v15468_v31 = vrot.slane %v14080_v16, 4  ;;  %v15469_v12 = vrot.slane %v14024_v15, 4 }
 0x61e   : > { %8314 = vmatpush.bf16.msra.mxu2 %v10599_v43  ;;  %8264 = vmatmul.bf16.vlgmr.msrb.gmra.mxu3 %v14175_v52  ;;  %5973 = vst [vmem:[#allocation4 + $0x374] sm:$0xff] %v5957_v6  ;;  %vm15470_vm6 = vcmask 1039360   ;;  %v15471_v60 = vrot.slane %v13856_v50, 4  ;;  %v10515_v1 = vor.u32 %v11224_v3, %v10512_v42  ;;  %v10484_v6 = vld [vmem:[#allocation4 + $0x3dc] sm:$0xf0] }
 0x61f   : > { %5974 = vst [vmem:[#allocation4 + $0x37c] sm:$0xf] %v5958_v17  ;;  %vm15472_vm8 = vmmov %vm15470_vm6 }
 0x620   : > { %6672 = vst [vmem:[#allocation4 + $0x59c] sm:$0xff] %v6655_v49  ;;  %v6418_v55 = vpop.permute.xlu0 %6417  ;;  %v14605_v28 = vpop.permute.xlu1 %6555  ;;  %v10706_v49 = vld [vmem:[#allocation4 + $0x580] sm:$0xf]  ;;  %vm15474_vm5 = vmmov %vm15470_vm6 }
 0x621   : > { %v6430_v44 = vrot.slane %v6418_v55, 4  ;;  %v5858_v23 = vpop.permute.xlu2 %5857  ;;  %v6569_v54 = vrot.slane %v14605_v28, 4  ;;  %vm15475_vm2 = vmmov %vm15474_vm5 }
 0x622   : > { %8315 = vmatpush.bf16.msra.mxu2 %v10571_v9  ;;  %v5870_v43 = vrot.slane %v5858_v23, 4  ;;  %v11273_v9 = vld [vmem:[#allocation4 + $0x584] sm:$0xf] }
 0x623   : > { %v6439_v19 = vsel %vm380_vm0, %v15468_v31, %v6430_v44  ;;  %v6441_v8 = vsel %vm2765_vm11, %v6418_v55, %v6430_v44  ;;  %v6577_v17 = vsel %vm380_vm0, %v15471_v60, %v6569_v54  ;;  %v15476_v60 = vrot.slane %v14247_v5, 4 }
 0x624   : > { %v6440_v22 = vsel %vm2765_vm11, %v14080_v16, %v6439_v19  ;;  %6460 = vst [vmem:[#allocation4 + $0x4e8] sm:$0xf] %v6441_v8  ;;  %v5879_v25 = vsel %vm380_vm0, %v15469_v12, %v5870_v43  ;;  %v5881_v37 = vsel %vm15470_vm6, %v5858_v23, %v5870_v43  ;;  %v6578_v16 = vsel %vm2987_vm15, %v13856_v50, %v6577_v17  ;;  %v10456_v8 = vld [vmem:[#allocation4 + $0x3a4] sm:$0xf0] }
 0x625   : > { %6459 = vst [vmem:[#allocation4 + $0x4e0] sm:$0xff] %v6440_v22  ;;  %v5880_v45 = vsel %vm15472_vm8, %v14024_v15, %v5879_v25  ;;  %v15473_v22 = vrot.slane %v14046_v41, 4  ;;  %vm15484_vm6 = vcmask 7168  }
 0x626   : > { %8316 = vmatpush.bf16.msra.mxu2 %v10543_v61  ;;  %5899 = vst [vmem:[#allocation4 + $0x320] sm:$0xff] %v5880_v45  ;;  %v11217_v61 = vld [vmem:[#allocation4 + $0x3c4] sm:$0xf]  ;;  %v15477_v45 = vrot.slane %v13994_v38, 4  ;;  %vm15487_vm8 = vmmov %vm15484_vm6 }
 0x627   : > { %5900 = vst [vmem:[#allocation4 + $0x328] sm:$0xf] %v5881_v37  ;;  %v11276_v10 = vld [vmem:[#allocation4 + $0x598] sm:$0xf0]  ;;  %v10708_v55 = vld [vmem:[#allocation4 + $0x59c] sm:$0xf0]  ;;  %v10487_v15 = vor.u32 %v11217_v61, %v10484_v6 }
 0x628   : > { %6598 = vst [vmem:[#allocation4 + $0x548] sm:$0xff] %v6578_v16  ;;  %v10707_v35 = vor.u32 %v11276_v10, %v10706_v49  ;;  %v10711_v44 = vor.u32 %v11273_v9, %v10708_v55  ;;  %v5866_v23 = vpop.permute.xlu0 %5865  ;;  %v6496_v19 = vpop.permute.xlu1 %6495  ;;  %v11269_v9 = vld [vmem:[#allocation4 + $0x560] sm:$0xf0]  ;;  %v11147_v10 = vld [vmem:[#allocation4 + $0x194] sm:$0xf] }
 0x629   : > { %v5874_v43 = vrot.slane %v5866_v23, 4  ;;  %v6356_v31 = vpop.permute.xlu2 %6355  ;;  %v6504_v3 = vrot.slane %v6496_v19, 4 }
 0x62a   : > { %8317 = vmatpush.bf16.msra.mxu2 %v10515_v1  ;;  %8276 = vmatpush.bf16.msra.mxu0 %v10707_v35  ;;  %v6364_v50 = vrot.slane %v6356_v31, 4  ;;  %v11210_v1 = vld [vmem:[#allocation4 + $0x38c] sm:$0xf]  ;;  %v10680_v35 = vld [vmem:[#allocation4 + $0x564] sm:$0xf0] }
 0x62b   : > { %8332 = vmatpush.bf16.msra.mxu3 %v10711_v44  ;;  %v5886_v12 = vsel %vm380_vm0, %v15473_v22, %v5874_v43  ;;  %v5888_v25 = vsel %vm15474_vm5, %v5866_v23, %v5874_v43  ;;  %v6516_v16 = vsel %vm380_vm0, %v15477_v45, %v6504_v3  ;;  %v6518_v55 = vsel %vm2876_vm10, %v6496_v19, %v6504_v3  ;;  %v10204_v44 = vld [vmem:[#allocation4 + $0x1ac] sm:$0xf0]  ;;  %v10210_v23 = vld [vmem:[#allocation4 + $0x198] sm:$0xf] }
 0x62c   : > { %v5887_v37 = vsel %vm15475_vm2, %v14046_v41, %v5886_v12  ;;  %5904 = vst [vmem:[#allocation4 + $0x344] sm:$0xf] %v5888_v25  ;;  %v6376_v17 = vsel %vm380_vm0, %v15476_v60, %v6364_v50  ;;  %v6378_v42 = vsel %vm2654_vm9, %v6356_v31, %v6364_v50  ;;  %v6517_v49 = vsel %vm2876_vm10, %v13994_v38, %v6516_v16  ;;  %v11151_v50 = vld [vmem:[#allocation4 + $0x1b0] sm:$0xf0]  ;;  %v10176_v22 = vld [vmem:[#allocation4 + $0x174] sm:$0xf0]  ;;  %vm15481_vm10 = vmmov %vm15467_vm4 }
 0x62d   : > { %5903 = vst [vmem:[#allocation4 + $0x33c] sm:$0xff] %v5887_v37  ;;  %v6377_v6 = vsel %vm2654_vm9, %v14247_v5, %v6376_v17  ;;  %v10459_v41 = vor.u32 %v11210_v1, %v10456_v8  ;;  %v10207_v12 = vor.u32 %v11147_v10, %v10204_v44  ;;  %v10211_v25 = vor.u32 %v11151_v50, %v10210_v23  ;;  %v11140_v60 = vld [vmem:[#allocation4 + $0x15c] sm:$0xf]  ;;  %v15479_v10 = vld [vmem:[#allocation23_spill] sm:$0xff]  ;;  %v10182_v44 = vld [vmem:[#allocation4 + $0x160] sm:$0xf] }
 0x62e   : > { %8318 = vmatpush.bf16.msra.mxu2 %v10487_v15  ;;  %6393 = vst [vmem:[#allocation4 + $0x4c4] sm:$0xff] %v6377_v6  ;;  %v11144_v17 = vld [vmem:[#allocation4 + $0x178] sm:$0xf0]  ;;  %v15478_v45 = vrot.slane %v14209_v53, 4  ;;  %v10179_v6 = vor.u32 %v11140_v60, %v10176_v22  ;;  %v11133_v22 = vld [vmem:[#allocation4 + $0x124] sm:$0xf]  ;;  %vm15502_vm2 = vmmov %vm15484_vm6 }
 0x62f   : > { %6394 = vst [vmem:[#allocation4 + $0x4cc] sm:$0xf] %v6378_v42  ;;  %v10678_v61 = vld [vmem:[#allocation4 + $0x548] sm:$0xf]  ;;  %v11266_v43 = vld [vmem:[#allocation4 + $0x54c] sm:$0xf]  ;;  %v14645_v42 = vpop.f32.mrf.mxu1 }
 0x630   : > { %6533 = vst [vmem:[#allocation4 + $0x534] sm:$0xff] %v6517_v49  ;;  %v10679_v31 = vor.u32 %v11269_v9, %v10678_v61  ;;  %v10683_v15 = vor.u32 %v11266_v43, %v10680_v35  ;;  %v6278_v5 = vpop.permute.xlu0 %6277  ;;  %v5928_v37 = vpop.permute.xlu1 %5927  ;;  %v10148_v43 = vld [vmem:[#allocation4 + $0x13c] sm:$0xf0] }
 0x631   : > { %6534 = vst [vmem:[#allocation4 + $0x53c] sm:$0xf] %v6518_v55  ;;  %v6290_v38 = vrot.slane %v6278_v5, 4  ;;  %v6698_v8 = vpop.permute.xlu2 %6697  ;;  %v5940_v3 = vrot.slane %v5928_v37, 4  ;;  %v15480_v55 = vrot.slane %v15479_v10, 4 }
 0x632   : > { %8319 = vmatpush.bf16.msra.mxu2 %v10459_v41  ;;  %8277 = vmatpush.bf16.msra.mxu0 %v10679_v31  ;;  %v6710_v19 = vrot.slane %v6698_v8, 4  ;;  %v11137_v31 = vld [vmem:[#allocation4 + $0x140] sm:$0xf0] }
 0x633   : > { %8333 = vmatpush.bf16.msra.mxu3 %v10683_v15  ;;  %v6299_v16 = vsel %vm380_vm0, %v15478_v45, %v6290_v38  ;;  %v6301_v1 = vsel %vm2543_vm13, %v6278_v5, %v6290_v38  ;;  %v5949_v35 = vsel %vm380_vm0, %v15480_v55, %v5940_v3  ;;  %v10154_v38 = vld [vmem:[#allocation4 + $0x128] sm:$0xf]  ;;  %v11130_v45 = vld [vmem:[#allocation4 + $0x108] sm:$0xf0] }
 0x634   : > { %v6300_v49 = vsel %vm2543_vm13, %v14209_v53, %v6299_v16  ;;  %6320 = vst [vmem:[#allocation4 + $0x478] sm:$0xf] %v6301_v1  ;;  %v6719_v41 = vsel %vm380_vm0, %v6709_v58, %v6710_v19  ;;  %v6721_v9 = vsel %vm3209_vm12, %v6698_v8, %v6710_v19  ;;  %v5950_v61 = vsel %vm15481_vm10, %v15479_v10, %v5949_v35  ;;  %v14670_v16 = vpop.f32.mrf.mxu2  ;;  %v15485_v35 = vld [vmem:[#allocation24_spill] sm:$0xff]  ;;  %vm15503_vm10 = vmmov %vm15502_vm2 }
 0x635   : > { %6319 = vst [vmem:[#allocation4 + $0x470] sm:$0xff] %v6300_v49  ;;  %v6720_v23 = vsel %vm3209_vm12, %v14437_v4, %v6719_v41  ;;  %10754 = vmatmul.msk.bf16.vlgmr.msra.gmra.mxu0 %vm4450_vm7, %v13965_v57  ;;  %v10183_v53 = vor.u32 %v11144_v17, %v10182_v44  ;;  %v5951_v58 = vsel %vm15467_vm4, %v5928_v37, %v5940_v3  ;;  %v10658_v4 = vld [vmem:[#allocation4 + $0x518] sm:$0xf]  ;;  %v11126_v17 = vld [vmem:[#allocation4 + $0xec] sm:$0xf]  ;;  %v15486_v44 = vrot.slane %v15485_v35, 4 }
 0x636   : > { %8284 = vmatpush.bf16.msrb.mxu0 %v10207_v12  ;;  %10755 = vmatmul.msk.bf16.vlgmr.msra.gmra.mxu3 %vm4450_vm7, %v13965_v57  ;;  %6739 = vst [vmem:[#allocation4 + $0x5c0] sm:$0xff] %v6720_v23  ;;  %v10155_v19 = vor.u32 %v11137_v31, %v10154_v38  ;;  %v15482_v41 = vld [vmem:[#allocation26_spill] sm:$0xff]  ;;  %v10098_v38 = vld [vmem:[#allocation4 + $0xb8] sm:$0xf]  ;;  %vm15505_vm4 = vcmask 80896  }
 0x637   : > { %8340 = vmatpush.bf16.msrb.mxu3 %v10211_v25  ;;  %8320 = vmatmul.bf16.vlgmr.msra.gmra.mxu2 %v14175_v52  ;;  %6740 = vst [vmem:[#allocation4 + $0x5c8] sm:$0xf] %v6721_v9  ;;  %v11263_v15 = vld [vmem:[#allocation4 + $0x530] sm:$0xf0]  ;;  %v10151_v25 = vor.u32 %v11133_v22, %v10148_v43  ;;  %v15483_v9 = vrot.slane %v15482_v41, 4  ;;  %v14692_v22 = vpop.f32.mrf.mxu0 }
 0x638   : > { %5969 = vst [vmem:[#allocation4 + $0x358] sm:$0xff] %v5950_v61  ;;  %v10659_v5 = vor.u32 %v11263_v15, %v10658_v4  ;;  %v6706_v50 = vpop.permute.xlu0 %6705  ;;  %v6426_v37 = vpop.permute.xlu1 %6425  ;;  %v10120_v61 = vld [vmem:[#allocation4 + $0x104] sm:$0xf0]  ;;  %v10092_v15 = vld [vmem:[#allocation4 + $0xcc] sm:$0xf0] }
 0x639   : > { %5970 = vst [vmem:[#allocation4 + $0x360] sm:$0xf] %v5951_v58  ;;  %v6714_v8 = vrot.slane %v6706_v50, 4  ;;  %v5780_v12 = vpop.permute.xlu2 %5779  ;;  %v6434_v60 = vrot.slane %v6426_v37, 4  ;;  %v10123_v43 = vor.u32 %v11126_v17, %v10120_v61  ;;  %v10064_v17 = vld [vmem:[#allocation4 + $0x94] sm:$0xf0] }
 0x63a   : > { %8285 = vmatpush.bf16.msrb.mxu0 %v10179_v6  ;;  %8368 = vmatpush.bf16.msrb.mxu1 %v10659_v5  ;;  %v5788_v3 = vrot.slane %v5780_v12, 4  ;;  %v11123_v5 = vld [vmem:[#allocation4 + $0xd0] sm:$0xf0] }
 0x63b   : > { %8341 = vmatpush.bf16.msrb.mxu3 %v10183_v53  ;;  %v6726_v1 = vsel %vm380_vm0, %v6713_v13, %v6714_v8  ;;  %v6728_v6 = vsel %vm3209_vm12, %v6706_v50, %v6714_v8  ;;  %v6446_v23 = vsel %vm380_vm0, %v15486_v44, %v6434_v60  ;;  %v10126_v13 = vld [vmem:[#allocation4 + $0xf0] sm:$0xf]  ;;  %v14685_v53 = vpop.f32.mrf.mxu1  ;;  %v6448_v4 = vsel %vm2765_vm11, %v6426_v37, %v6434_v60  ;;  %v11119_v50 = vld [vmem:[#allocation4 + $0xb4] sm:$0xf]  ;;  %v10070_v8 = vld [vmem:[#allocation4 + $0x80] sm:$0xf] }
 0x63c   : > { %v6727_v49 = vsel %vm3209_vm12, %v14469_v62, %v6726_v1  ;;  %6744 = vst [vmem:[#allocation4 + $0x5e4] sm:$0xf] %v6728_v6  ;;  %v5800_v10 = vsel %vm380_vm0, %v15483_v9, %v5788_v3  ;;  %v5802_v55 = vsel %vm15484_vm6, %v5780_v12, %v5788_v3  ;;  %v6447_v62 = vsel %vm2765_vm11, %v15485_v35, %v6446_v23  ;;  %v11116_v60 = vld [vmem:[#allocation4 + $0x98] sm:$0xf0]  ;;  %v14694_v6 = vpop.f32.mrf.mxu2  ;;  %vm15506_vm6 = vmmov %vm15505_vm4 }
 0x63d   : > { %6743 = vst [vmem:[#allocation4 + $0x5dc] sm:$0xff] %v6727_v49  ;;  %v5801_v58 = vsel %vm15487_vm8, %v15482_v41, %v5800_v10  ;;  %v10127_v31 = vor.u32 %v11130_v45, %v10126_v13  ;;  %v10099_v3 = vor.u32 %v11123_v5, %v10098_v38  ;;  %v11112_v41 = vld [vmem:[#allocation4 + $0x7c] sm:$0xf]  ;;  %v10071_v9 = vor.u32 %v11116_v60, %v10070_v8  ;;  %v10042_v38 = vld [vmem:[#allocation4 + $0x48] sm:$0xf] }
 0x63e   : > { %8286 = vmatpush.bf16.msrb.mxu0 %v10151_v25  ;;  %5817 = vst [vmem:[#allocation4 + $0x2cc] sm:$0xff] %v5801_v58  ;;  %v15488_v10 = vrot.slane %v14283_v59, 4  ;;  %vm15489_vm11 = vcmask 310272   ;;  %v10067_v23 = vor.u32 %v11112_v41, %v10064_v17  ;;  %v11109_v8 = vld [vmem:[#allocation4 + $0x60] sm:$0xf0] }
 0x63f   : > { %8342 = vmatpush.bf16.msrb.mxu3 %v10155_v19  ;;  %5818 = vst [vmem:[#allocation4 + $0x2d4] sm:$0xf] %v5802_v55  ;;  %v10095_v19 = vor.u32 %v11119_v50, %v10092_v15  ;;  %vm15490_vm12 = vmmov %vm15489_vm11  ;;  %v10742_v15 = vld [vmem:[#allocation4 + $0x5c0] sm:$0xf]  ;;  %v11105_v50 = vld [vmem:[#allocation4 + $0x44] sm:$0xf] }
 0x640   : > { %6463 = vst [vmem:[#allocation4 + $0x4fc] sm:$0xff] %v6447_v62  ;;  %v6208_v12 = vpop.permute.xlu0 %6207  ;;  %v6348_v37 = vpop.permute.xlu1 %6347  ;;  %v10036_v17 = vld [vmem:[#allocation4 + $0x5c] sm:$0xf0]  ;;  %vm15508_vm8 = vmmov %vm15489_vm11 }
 0x641   : > { %6464 = vst [vmem:[#allocation4 + $0x504] sm:$0xf] %v6448_v4  ;;  %v6628_v25 = vpop.permute.xlu2 %6627  ;;  %v6220_v45 = vrot.slane %v6208_v12, 4  ;;  %v6360_v49 = vrot.slane %v6348_v37, 4  ;;  %v10039_v41 = vor.u32 %v11105_v50, %v10036_v17 }
 0x642   : > { %8287 = vmatpush.bf16.msrb.mxu0 %v10123_v43  ;;  %v6640_v1 = vrot.slane %v6628_v25, 4  ;;  %v15491_v43 = vld [vmem:[#allocation25_spill] sm:$0xff] }
 0x643   : > { %8343 = vmatpush.bf16.msrb.mxu3 %v10127_v31  ;;  %v6229_v55 = vsel %vm380_vm0, %v15488_v10, %v6220_v45  ;;  %v6231_v35 = vsel %vm15489_vm11, %v6208_v12, %v6220_v45  ;;  %v15492_v31 = vrot.slane %v15491_v43, 4  ;;  %v10630_v12 = vld [vmem:[#allocation4 + $0x4e0] sm:$0xf]  ;;  %v10008_v45 = vld [vmem:[#allocation4 + $0x24] sm:$0xf0]  ;;  %v10043_v10 = vor.u32 %v11109_v8, %v10042_v38  ;;  %vm15509_vm11 = vmmov %vm15508_vm8 }
 0x644   : > { %v6649_v44 = vsel %vm380_vm0, %v6639_v0, %v6640_v1  ;;  %v11284_v61 = vld [vmem:[#allocation4 + $0x5d8] sm:$0xf0]  ;;  %v6230_v13 = vsel %vm15490_vm12, %v14283_v59, %v6229_v55  ;;  %6250 = vst [vmem:[#allocation4 + $0x440] sm:$0xf] %v6231_v35  ;;  %v6651_v62 = vsel %vm3098_vm14, %v6628_v25, %v6640_v1  ;;  %v14713_v59 = vpop.f32.mrf.mxu1  ;;  %v11098_v55 = vld [vmem:[#allocation4 + $0xc] sm:$0xf] }
 0x645   : > { %v6650_v58 = vsel %vm3098_vm14, %v14501_v46, %v6649_v44  ;;  %v6369_v4 = vsel %vm380_vm0, %v15492_v31, %v6360_v49  ;;  %6249 = vst [vmem:[#allocation4 + $0x438] sm:$0xff] %v6230_v13  ;;  %v10743_v5 = vor.u32 %v11284_v61, %v10742_v15  ;;  %v6371_v46 = vsel %vm2654_vm9, %v6348_v37, %v6360_v49  ;;  %v11102_v35 = vld [vmem:[#allocation4 + $0x28] sm:$0xf0]  ;;  %v10014_v44 = vld [vmem:[#allocation4 + $0x10] sm:$0xf] }
 0x646   : > { %8288 = vmatpush.bf16.msrb.mxu0 %v10095_v19  ;;  %v6370_v0 = vsel %vm2654_vm9, %v15491_v43, %v6369_v4  ;;  %6669 = vst [vmem:[#allocation4 + $0x588] sm:$0xff] %v6650_v58  ;;  %v14716_v19 = vpop.f32.mrf.mxu0  ;;  %v10011_v13 = vor.u32 %v11098_v55, %v10008_v45  ;;  %v10434_v58 = vld [vmem:[#allocation4 + $0x358] sm:$0xf]  ;;  %v14720_v43 = vpop.f32.mrf.mxu3  ;;  %v15493_v15 = vrot.slane %v14250_v33, 4  ;;  %vm15494_vm9 = vcmask 72704  }
 0x647   : > { %8344 = vmatpush.bf16.msrb.mxu3 %v10099_v3  ;;  %v11256_v25 = vld [vmem:[#allocation4 + $0x4f8] sm:$0xf0]  ;;  %6670 = vst [vmem:[#allocation4 + $0x590] sm:$0xf] %v6651_v62  ;;  %8387 = vmatpush.bf16.msrb.mxu2 %v10743_v5  ;;  %v10015_v5 = vor.u32 %v11102_v35, %v10014_v44  ;;  %vm15495_vm5 = vmmov %vm15494_vm9 }
 0x648   : > { %v10631_v3 = vor.u32 %v11256_v25, %v10630_v12  ;;  %6389 = vst [vmem:[#allocation4 + $0x4a8] sm:$0xff] %v6370_v0  ;;  %v6636_v1 = vpop.permute.xlu0 %6635  ;;  %v11204_v62 = vld [vmem:[#allocation4 + $0x35c] sm:$0xf]  ;;  %v11207_v12 = vld [vmem:[#allocation4 + $0x370] sm:$0xf0] }
 0x649   : > { %v5710_v60 = vpop.permute.xlu2 %5709  ;;  %6390 = vst [vmem:[#allocation4 + $0x4b0] sm:$0xf] %v6371_v46  ;;  %v6644_v37 = vrot.slane %v6636_v1, 4  ;;  %v15496_v46 = vrot.slane %v14321_v51, 4  ;;  %v10436_v25 = vld [vmem:[#allocation4 + $0x374] sm:$0xf0]  ;;  %v10435_v17 = vor.u32 %v11207_v12, %v10434_v58 }
 0x64a   : > { %8289 = vmatpush.bf16.msrb.mxu0 %v10067_v23  ;;  %8369 = vmatpush.bf16.msrb.mxu1 %v10631_v3  ;;  %v5718_v49 = vrot.slane %v5710_v60, 4  ;;  %v14718_v23 = vpop.f32.mrf.mxu2  ;;  %v10439_v45 = vor.u32 %v11204_v62, %v10436_v25 }
 0x64b   : > { %8345 = vmatpush.bf16.msrb.mxu3 %v10071_v9  ;;  %v6286_v9 = vpop.permute.xlu1 %6285  ;;  %v6656_v31 = vsel %vm380_vm0, %v6643_v29, %v6644_v37  ;;  %v6658_v4 = vsel %vm3098_vm14, %v6636_v1, %v6644_v37  ;;  %v10406_v37 = vld [vmem:[#allocation4 + $0x320] sm:$0xf] }
 0x64c   : > { %v6294_v61 = vrot.slane %v6286_v9, 4  ;;  %v5730_v0 = vsel %vm380_vm0, %v15493_v15, %v5718_v49  ;;  %v6657_v50 = vsel %vm3098_vm14, %v14582_v63, %v6656_v31  ;;  %6674 = vst [vmem:[#allocation4 + $0x5ac] sm:$0xf] %v6658_v4  ;;  %v5732_v8 = vsel %vm15495_vm5, %v5710_v60, %v5718_v49  ;;  %v10408_v49 = vld [vmem:[#allocation4 + $0x33c] sm:$0xf0] }
 0x64d   : > { %v5731_v38 = vsel %vm15494_vm9, %v14250_v33, %v5730_v0  ;;  %6673 = vst [vmem:[#allocation4 + $0x5a4] sm:$0xff] %v6657_v50  ;;  %v11200_v33 = vld [vmem:[#allocation4 + $0x338] sm:$0xf0]  ;;  %v11197_v31 = vld [vmem:[#allocation4 + $0x324] sm:$0xf]  ;;  %v15497_v0 = vrot.slane %v14433_v14, 4 }
 0x64e   : > { %8290 = vmatpush.bf16.msrb.mxu0 %v10039_v41  ;;  %v6306_v29 = vsel %vm380_vm0, %v15496_v46, %v6294_v61  ;;  %5747 = vst [vmem:[#allocation4 + $0x294] sm:$0xff] %v5731_v38  ;;  %v6308_v63 = vsel %vm2543_vm13, %v6286_v9, %v6294_v61  ;;  %v14740_v1 = vpop.f32.mrf.mxu0  ;;  %v11249_v41 = vld [vmem:[#allocation4 + $0x4c0] sm:$0xf0]  ;;  %v14748_v15 = vpop.f32.mrf.mxu3  ;;  %v10378_v46 = vld [vmem:[#allocation4 + $0x2e8] sm:$0xf]  ;;  %vm15514_vm9 = vcmask 89088  }
 0x64f   : > { %8346 = vmatpush.bf16.msrb.mxu3 %v10043_v10  ;;  %v6307_v3 = vsel %vm2543_vm13, %v14321_v51, %v6306_v29  ;;  %5748 = vst [vmem:[#allocation4 + $0x29c] sm:$0xf] %v5732_v8  ;;  %v10602_v60 = vld [vmem:[#allocation4 + $0x4a8] sm:$0xf]  ;;  %v14742_v10 = vpop.f32.mrf.mxu1  ;;  %v11193_v4 = vld [vmem:[#allocation4 + $0x300] sm:$0xf0]  ;;  %v10411_v8 = vor.u32 %v11197_v31, %v10408_v49  ;;  %vm15515_vm5 = vmmov %vm15514_vm9 }
 0x650   : > { %6323 = vst [vmem:[#allocation4 + $0x48c] sm:$0xff] %v6307_v3  ;;  %v10603_v55 = vor.u32 %v11249_v41, %v10602_v60  ;;  %v6138_v51 = vpop.permute.xlu0 %6137  ;;  %vm15498_vm13 = vcmask 318464   ;;  %v10380_v29 = vld [vmem:[#allocation4 + $0x304] sm:$0xf0]  ;;  %v10379_v41 = vor.u32 %v11193_v4, %v10378_v46  ;;  %v15504_v46 = vrot.slane %v14319_v30, 4 }
 0x651   : > { %v6558_v35 = vpop.permute.xlu2 %6557  ;;  %6324 = vst [vmem:[#allocation4 + $0x494] sm:$0xf] %v6308_v63  ;;  %v6150_v9 = vrot.slane %v6138_v51, 4  ;;  %vm15499_vm14 = vmmov %vm15498_vm13 }
 0x652   : > { %8291 = vmatpush.bf16.msrb.mxu0 %v10011_v13  ;;  %v6570_v44 = vrot.slane %v6558_v35, 4  ;;  %v10407_v13 = vor.u32 %v11200_v33, %v10406_v37  ;;  %v14746_v58 = vpop.f32.mrf.mxu2  ;;  %8370 = vmatpush.bf16.msrb.mxu1 %v10603_v55  ;;  %v10714_v33 = vld [vmem:[#allocation4 + $0x588] sm:$0xf]  ;;  %v10574_v37 = vld [vmem:[#allocation4 + $0x470] sm:$0xf] }
 0x653   : > { %8347 = vmatpush.bf16.msrb.mxu3 %v10015_v5  ;;  %v5772_v61 = vpop.permute.xlu1 %5771  ;;  %v6159_v5 = vsel %vm380_vm0, %v15497_v0, %v6150_v9  ;;  %v6161_v50 = vsel %vm15498_vm13, %v6138_v51, %v6150_v9  ;;  %v11190_v51 = vld [vmem:[#allocation4 + $0x2ec] sm:$0xf]  ;;  %vm15517_vm13 = vcmask 72704  }
 0x654   : > { %v5784_v62 = vrot.slane %v5772_v61, 4  ;;  %v6579_v38 = vsel %vm380_vm0, %v6569_v54, %v6570_v44  ;;  %v6160_v12 = vsel %vm15499_vm14, %v14433_v14, %v6159_v5  ;;  %6180 = vst [vmem:[#allocation4 + $0x408] sm:$0xf] %v6161_v50  ;;  %v6581_v3 = vsel %vm2987_vm15, %v6558_v35, %v6570_v44  ;;  %v11277_v60 = vld [vmem:[#allocation4 + $0x5a0] sm:$0xf0]  ;;  %vm15518_vm14 = vmmov %vm15517_vm13 }
 0x655   : > { %8292 = vmatmul.bf16.vlgmr.msrb.gmra.mxu0 %v14109_v34  ;;  %v6580_v25 = vsel %vm2987_vm15, %v14605_v28, %v6579_v38  ;;  %6179 = vst [vmem:[#allocation4 + $0x400] sm:$0xff] %v6160_v12  ;;  %v10715_v55 = vor.u32 %v11277_v60, %v10714_v33  ;;  %v10383_v35 = vor.u32 %v11190_v51, %v10380_v29  ;;  %v11186_v33 = vld [vmem:[#allocation4 + $0x2c8] sm:$0xf0]  ;;  %v10352_v60 = vld [vmem:[#allocation4 + $0x2cc] sm:$0xf0] }
 0x656   : > { %8354 = vmatpush.bf16.msra.mxu0 %v10435_v17  ;;  %8348 = vmatmul.bf16.vlgmr.msrb.gmra.mxu3 %v14109_v34  ;;  %v15500_v17 = vld [vmem:[#allocation27_spill] sm:$0xff]  ;;  %6599 = vst [vmem:[#allocation4 + $0x550] sm:$0xff] %v6580_v25  ;;  %v5795_v14 = vsel %vm15503_vm10, %v5772_v61, %v5784_v62  ;;  %v14768_v28 = vpop.f32.mrf.mxu0  ;;  %v8125_v50 = vpop.f32.mrf.mxu3 }
 0x657   : > { %8410 = vmatpush.bf16.msra.mxu3 %v10439_v45  ;;  %v15501_v45 = vrot.slane %v15500_v17, 4  ;;  %6600 = vst [vmem:[#allocation4 + $0x558] sm:$0xf] %v6581_v3  ;;  %v11242_v49 = vld [vmem:[#allocation4 + $0x488] sm:$0xf0]  ;;  %8388 = vmatpush.bf16.msrb.mxu2 %v10715_v55 }
 0x658   : > { %v10575_v9 = vor.u32 %v11242_v49, %v10574_v37  ;;  %v6566_v44 = vpop.permute.xlu0 %6565  ;;  %5814 = vst [vmem:[#allocation4 + $0x2b8] sm:$0xf] %v5795_v14 }
 0x659   : > { %v5793_v63 = vsel %vm380_vm0, %v15501_v45, %v5784_v62  ;;  %v6574_v31 = vrot.slane %v6566_v44, 4  ;;  %v14772_v62 = vpop.f32.mrf.mxu1 }
 0x65a   : > { %8355 = vmatpush.bf16.msra.mxu0 %v10407_v13  ;;  %v5794_v54 = vsel %vm15502_vm2, %v15500_v17, %v5793_v63  ;;  %v5640_v13 = vpop.permute.xlu2 %5639  ;;  %v14770_v5 = vpop.f32.mrf.mxu2  ;;  %8371 = vmatpush.bf16.msrb.mxu1 %v10575_v9  ;;  %v15507_v17 = vrot.slane %v14397_v7, 4  ;;  %vm15520_vm2 = vmmov %vm15515_vm5 }
 0x65b   : > { %8411 = vmatpush.bf16.msra.mxu3 %v10411_v8  ;;  %5813 = vst [vmem:[#allocation4 + $0x2b0] sm:$0xff] %v5794_v54  ;;  %v5648_v4 = vrot.slane %v5640_v13, 4  ;;  %v6216_v0 = vpop.permute.xlu1 %6215  ;;  %v6586_v38 = vsel %vm380_vm0, %v6573_v26, %v6574_v31  ;;  %v6588_v8 = vsel %vm2987_vm15, %v6566_v44, %v6574_v31  ;;  %v8126_v44 = vadd.f32 %v8125_v50, %v14692_v22  ;;  %vm15521_vm10 = vmmov %vm15520_vm2 }
 0x65c   : > { %v6224_v61 = vrot.slane %v6216_v0, 4  ;;  %v6587_v12 = vsel %vm2987_vm15, %v14533_v11, %v6586_v38  ;;  %6604 = vst [vmem:[#allocation4 + $0x574] sm:$0xf] %v6588_v8  ;;  %v15510_v31 = vrot.slane %v14363_v27, 4  ;;  %vm15511_vm15 = vcmask 957440  }
 0x65d   : > { %v5660_v29 = vsel %vm380_vm0, %v15504_v46, %v5648_v4  ;;  %v5662_v3 = vsel %vm15506_vm6, %v5640_v13, %v5648_v4  ;;  %6603 = vst [vmem:[#allocation4 + $0x56c] sm:$0xff] %v6587_v12  ;;  %v11148_v8 = vld [vmem:[#allocation4 + $0x19c] sm:$0xf]  ;;  %vm15513_vm12 = vmmov %vm15511_vm15  ;;  %v15516_v50 = vrot.slane %v14359_v39, 4 }
 0x65e   : > { %8356 = vmatpush.bf16.msra.mxu0 %v10379_v41  ;;  %v5661_v25 = vsel %vm15505_vm4, %v14319_v30, %v5660_v29  ;;  %v6236_v45 = vsel %vm380_vm0, %v15507_v17, %v6224_v61  ;;  %v6238_v63 = vsel %vm15509_vm11, %v6216_v0, %v6224_v61  ;;  %v8139_v11 = vpop.f32.mrf.mxu0  ;;  %5678 = vst [vmem:[#allocation4 + $0x264] sm:$0xf] %v5662_v3  ;;  %v8127_v13 = vpop.f32.mrf.mxu3  ;;  %v15512_v61 = vrot.slane %v14357_v24, 4 }
 0x65f   : > { %8412 = vmatpush.bf16.msra.mxu3 %v10383_v35  ;;  %v6237_v26 = vsel %vm15508_vm8, %v14397_v7, %v6236_v45  ;;  %5677 = vst [vmem:[#allocation4 + $0x25c] sm:$0xff] %v5661_v25  ;;  %v10686_v25 = vld [vmem:[#allocation4 + $0x550] sm:$0xf]  ;;  %vm15522_vm4 = vcmask 965632   ;;  %vm15525_vm8 = vcmask 318464  }
 0x660   : > { %6253 = vst [vmem:[#allocation4 + $0x454] sm:$0xff] %v6237_v26  ;;  %v6068_v14 = vpop.permute.xlu0 %6067  ;;  %vm15523_vm6 = vmmov %vm15522_vm4 }
 0x661   : > { %6254 = vst [vmem:[#allocation4 + $0x45c] sm:$0xf] %v6238_v63  ;;  %v6080_v35 = vrot.slane %v6068_v14, 4  ;;  %v14810_v17 = vpop.f32.mrf.mxu1  ;;  %vm15526_vm11 = vmmov %vm15525_vm8 }
 0x662   : > { %v10350_v54 = vld [vmem:[#allocation4 + $0x2b0] sm:$0xf]  ;;  %v11183_v41 = vld [vmem:[#allocation4 + $0x2b4] sm:$0xf]  ;;  %v5562_v51 = vpop.permute.xlu2 %5561  ;;  %v14792_v9 = vpop.f32.mrf.mxu2 }
 0x663   : > { %v10351_v30 = vor.u32 %v11186_v33, %v10350_v54  ;;  %v10355_v55 = vor.u32 %v11183_v41, %v10352_v60  ;;  %v5574_v37 = vrot.slane %v5562_v51, 4  ;;  %v5702_v49 = vpop.permute.xlu1 %5701  ;;  %v6089_v4 = vsel %vm380_vm0, %v15510_v31, %v6080_v35  ;;  %v10546_v54 = vld [vmem:[#allocation4 + $0x438] sm:$0xf] }
 0x664   : > { %v5714_v7 = vrot.slane %v5702_v49, 4  ;;  %v6091_v0 = vsel %vm15511_vm15, %v6068_v14, %v6080_v35  ;;  %v6090_v46 = vsel %vm15513_vm12, %v14363_v27, %v6089_v4  ;;  %v11270_v3 = vld [vmem:[#allocation4 + $0x568] sm:$0xf0]  ;;  %v10212_v27 = vld [vmem:[#allocation4 + $0x1b4] sm:$0xf0]  ;;  %v8140_v33 = vadd.f32 %v8139_v11, %v8126_v44 }
 0x665   : > { %8357 = vmatpush.bf16.msra.mxu0 %v10351_v30  ;;  %8413 = vmatpush.bf16.msra.mxu3 %v10355_v55  ;;  %v5583_v38 = vsel %vm380_vm0, %v15512_v61, %v5574_v37  ;;  %6110 = vst [vmem:[#allocation4 + $0x3d0] sm:$0xf] %v6091_v0  ;;  %v5585_v22 = vsel %vm15515_vm5, %v5562_v51, %v5574_v37  ;;  %v10184_v51 = vld [vmem:[#allocation4 + $0x17c] sm:$0xf0]  ;;  %v15519_v61 = vrot.slane %v14471_v21, 4  ;;  %vm15528_vm15 = vcmask 728064  }
 0x666   : > { %v5584_v29 = vsel %vm15514_vm9, %v14357_v24, %v5583_v38  ;;  %v5723_v12 = vsel %vm380_vm0, %v15516_v50, %v5714_v7  ;;  %6109 = vst [vmem:[#allocation4 + $0x3c8] sm:$0xff] %v6090_v46  ;;  %v10687_v26 = vor.u32 %v11270_v3, %v10686_v25  ;;  %v5725_v63 = vsel %vm15518_vm14, %v5702_v49, %v5714_v7  ;;  %v8141_v60 = vpop.f32.mrf.mxu0  ;;  %v11141_v7 = vld [vmem:[#allocation4 + $0x164] sm:$0xf]  ;;  %v8195_v0 = vpop.f32.mrf.mxu3  ;;  %v10156_v50 = vld [vmem:[#allocation4 + $0x144] sm:$0xf0]  ;;  %vm15530_vm12 = vmmov %vm15528_vm15 }
 0x667   : > { %v5724_v45 = vsel %vm15517_vm13, %v14359_v39, %v5723_v12  ;;  %5603 = vst [vmem:[#allocation4 + $0x208] sm:$0xff] %v5584_v29  ;;  %v10215_v24 = vor.u32 %v11148_v8, %v10212_v27  ;;  %v11235_v41 = vld [vmem:[#allocation4 + $0x450] sm:$0xf0]  ;;  %v8128_v31 = vadd.f32 %v8127_v13, %v14716_v19  ;;  %v8154_v44 = vadd.f32 %v14772_v62, %v8140_v33 }
 0x668   : > { %5604 = vst [vmem:[#allocation4 + $0x210] sm:$0xf] %v5585_v22  ;;  %8389 = vmatpush.bf16.msrb.mxu2 %v10687_v26  ;;  %v10547_v30 = vor.u32 %v11235_v41, %v10546_v54  ;;  %v5570_v55 = vpop.permute.xlu0 %5569  ;;  %v10187_v13 = vor.u32 %v11141_v7, %v10184_v51  ;;  %v15524_v29 = vrot.slane %v14324_v48, 4  ;;  %vm15533_vm9 = vcmask 80896  }
 0x669   : > { %5743 = vst [vmem:[#allocation4 + $0x278] sm:$0xff] %v5724_v45  ;;  %v5578_v39 = vrot.slane %v5570_v55, 4  ;;  %v8142_v25 = vadd.f32 %v8141_v60, %v8128_v31  ;;  %v11179_v45 = vld [vmem:[#allocation4 + $0x290] sm:$0xf0]  ;;  %v8168_v26 = vadd.f32 %v14770_v5, %v8154_v44  ;;  %v8223_v27 = vpop.f32.mrf.mxu1  ;;  %v10128_v60 = vld [vmem:[#allocation4 + $0x10c] sm:$0xf0]  ;;  %vm15534_vm5 = vmmov %vm15533_vm9 }
 0x66a   : > { %v6006_v14 = vpop.permute.xlu2 %6005  ;;  %5744 = vst [vmem:[#allocation4 + $0x280] sm:$0xf] %v5725_v63  ;;  %v8181_v49 = vpop.f32.mrf.mxu2  ;;  %8372 = vmatpush.bf16.msrb.mxu1 %v10547_v30  ;;  %v11127_v31 = vld [vmem:[#allocation4 + $0xf4] sm:$0xf]  ;;  %vm15536_vm13 = vcmask 957440  }
 0x66b   : > { %v6014_v35 = vrot.slane %v6006_v14, 4  ;;  %v6146_v37 = vpop.permute.xlu1 %6145  ;;  %10756 = vmatmul.msk.bf16.vlgmr.msrb.gmra.mxu2 %vm4450_vm7, %v13965_v57  ;;  %v8182_v4 = vadd.f32 %v8181_v49, %v14645_v42  ;;  %v5590_v38 = vsel %vm380_vm0, %v15519_v61, %v5578_v39  ;;  %v5592_v8 = vsel %vm15520_vm2, %v5570_v55, %v5578_v39  ;;  %v15527_v49 = vld [vmem:[#allocation16_spill] sm:$0xff]  ;;  %vm15537_vm14 = vmmov %vm15536_vm13 }
 0x66c   : > { %8396 = vmatpush.bf16.msra.mxu2 %v10215_v24  ;;  %v6154_v11 = vrot.slane %v6146_v37, 4  ;;  %v5591_v46 = vsel %vm15521_vm10, %v14471_v21, %v5590_v38  ;;  %5608 = vst [vmem:[#allocation4 + $0x22c] sm:$0xf] %v5592_v8  ;;  %v8156_v39 = vadd.f32 %v14810_v17, %v8142_v25  ;;  %v10131_v61 = vor.u32 %v11127_v31, %v10128_v60  ;;  %v15529_v38 = vld [vmem:[#allocation17_spill] sm:$0xff]  ;;  %vm15539_vm2 = vmmov %vm15522_vm4 }
 0x66d   : > { %v6026_v19 = vsel %vm380_vm0, %v6013_v40, %v6014_v35  ;;  %v6028_v42 = vsel %vm15523_vm6, %v6006_v14, %v6014_v35  ;;  %5607 = vst [vmem:[#allocation4 + $0x224] sm:$0xff] %v5591_v46  ;;  %v11134_v40 = vld [vmem:[#allocation4 + $0x12c] sm:$0xf]  ;;  %v8196_v3 = vadd.f32 %v8195_v0, %v8182_v4  ;;  %v10296_v60 = vld [vmem:[#allocation4 + $0x25c] sm:$0xf0]  ;;  %vm15540_vm10 = vmmov %vm15539_vm2 }
 0x66e   : > { %v6027_v62 = vsel %vm15522_vm4, %v14531_v32, %v6026_v19  ;;  %v6166_v22 = vsel %vm380_vm0, %v15524_v29, %v6154_v11  ;;  %v6168_v21 = vsel %vm15526_vm11, %v6146_v37, %v6154_v11  ;;  %v10324_v32 = vld [vmem:[#allocation4 + $0x294] sm:$0xf0]  ;;  %v8209_v63 = vpop.f32.mrf.mxu0  ;;  %6044 = vst [vmem:[#allocation4 + $0x3b4] sm:$0xf] %v6028_v42  ;;  %v10159_v54 = vor.u32 %v11134_v40, %v10156_v50  ;;  %v8197_v44 = vpop.f32.mrf.mxu3  ;;  %vm15543_vm4 = vmmov %vm15530_vm12 }
 0x66f   : > { %v6167_v12 = vsel %vm15525_vm8, %v14324_v48, %v6166_v22  ;;  %6043 = vst [vmem:[#allocation4 + $0x3ac] sm:$0xff] %v6027_v62  ;;  %v8210_v41 = vadd.f32 %v8209_v63, %v8196_v3  ;;  %v8508_v11 = vmul.f32 %v8168_v26, %v15527_v49  ;;  %v15531_v19 = vld [vmem:[#allocation28_spill] sm:$0xff]  ;;  %v8170_v29 = vadd.f32 %v14792_v9, %v8156_v39  ;;  %vm15544_vm6 = vmmov %vm15543_vm4 }
 0x670   : > { %8397 = vmatpush.bf16.msra.mxu2 %v10187_v13  ;;  %v10322_v24 = vld [vmem:[#allocation4 + $0x278] sm:$0xf]  ;;  %v11176_v33 = vld [vmem:[#allocation4 + $0x27c] sm:$0xf]  ;;  %6183 = vst [vmem:[#allocation4 + $0x41c] sm:$0xff] %v6167_v12  ;;  %v5492_v55 = vpop.permute.xlu0 %5491  ;;  %v15532_v13 = vrot.slane %v15531_v19, 4 }
 0x671   : > { %v10323_v48 = vor.u32 %v11179_v45, %v10322_v24  ;;  %v10327_v30 = vor.u32 %v11176_v33, %v10324_v32  ;;  %6184 = vst [vmem:[#allocation4 + $0x424] sm:$0xf] %v6168_v21  ;;  %v5504_v14 = vrot.slane %v5492_v55, 4  ;;  %v8224_v35 = vadd.f32 %v8223_v27, %v8210_v41  ;;  %v10100_v62 = vld [vmem:[#allocation4 + $0xd4] sm:$0xf0]  ;;  %v8225_v32 = vpop.f32.mrf.mxu1 }
 0x672   : > { %v8183_v5 = vpop.f32.mrf.mxu2  ;;  %v11120_v22 = vld [vmem:[#allocation4 + $0xbc] sm:$0xf]  ;;  %v10518_v12 = vld [vmem:[#allocation4 + $0x400] sm:$0xf]  ;;  %v11113_v45 = vld [vmem:[#allocation4 + $0x84] sm:$0xf]  ;;  %v8515_v27 = vmul.f32 %v8170_v29, %v15527_v49 }
 0x673   : > { %v5632_v51 = vpop.permute.xlu1 %5631  ;;  %8358 = vmatpush.bf16.msra.mxu0 %v10323_v48  ;;  %8414 = vmatpush.bf16.msra.mxu3 %v10327_v30  ;;  %v8184_v7 = vadd.f32 %v8183_v5, %v14685_v53  ;;  %v5513_v4 = vsel %vm380_vm0, %v5503_v47, %v5504_v14  ;;  %v5515_v0 = vsel %vm15528_vm15, %v5492_v55, %v5504_v14  ;;  %v10072_v24 = vld [vmem:[#allocation4 + $0x9c] sm:$0xf0]  ;;  %v15535_v41 = vrot.slane %v14395_v20, 4  ;;  %v11172_v55 = vld [vmem:[#allocation4 + $0x258] sm:$0xf0] }
 0x674   : > { %8398 = vmatpush.bf16.msra.mxu2 %v10159_v54  ;;  %v5644_v37 = vrot.slane %v5632_v51, 4  ;;  %v8509_v17 = vmul.f32 %v8224_v35, %v15529_v38  ;;  %v5514_v8 = vsel %vm15530_vm12, %v14503_v18, %v5513_v4  ;;  %5534 = vst [vmem:[#allocation4 + $0x1d8] sm:$0xf] %v5515_v0  ;;  %v10103_v25 = vor.u32 %v11120_v22, %v10100_v62  ;;  %v10044_v14 = vld [vmem:[#allocation4 + $0x64] sm:$0xf0] }
 0x675   : > { %v8198_v42 = vadd.f32 %v8197_v44, %v8184_v7  ;;  %5533 = vst [vmem:[#allocation4 + $0x1d0] sm:$0xff] %v5514_v8  ;;  %v10075_v33 = vor.u32 %v11113_v45, %v10072_v24  ;;  %v11106_v49 = vld [vmem:[#allocation4 + $0x4c] sm:$0xf]  ;;  %v11165_v7 = vld [vmem:[#allocation4 + $0x220] sm:$0xf0]  ;;  %v15538_v62 = vrot.slane %v14431_v56, 4 }
 0x676   : > { %v5653_v46 = vsel %vm380_vm0, %v15532_v13, %v5644_v37  ;;  %v5655_v53 = vsel %vm15533_vm9, %v5632_v51, %v5644_v37  ;;  %v8522_v50 = vpack.c.bf16 %v8509_v17, %v8508_v11  ;;  %v8211_v18 = vpop.f32.mrf.mxu0  ;;  %v10047_v11 = vor.u32 %v11106_v49, %v10044_v14  ;;  %v10268_v44 = vld [vmem:[#allocation4 + $0x224] sm:$0xf0]  ;;  %v10016_v4 = vld [vmem:[#allocation4 + $0x2c] sm:$0xf0]  ;;  %v11099_v13 = vld [vmem:[#allocation4 + $0x14] sm:$0xf] }
 0x677   : > { %v5654_v47 = vsel %vm15534_vm5, %v15531_v19, %v5653_v46  ;;  %5674 = vst [vmem:[#allocation4 + $0x248] sm:$0xf] %v5655_v53  ;;  %v11228_v40 = vld [vmem:[#allocation4 + $0x418] sm:$0xf0]  ;;  %v8212_v3 = vadd.f32 %v8211_v18, %v8198_v42  ;;  %v10019_v46 = vor.u32 %v11099_v13, %v10016_v4  ;;  %v11201_v22 = vld [vmem:[#allocation4 + $0x340] sm:$0xf0] }
 0x678   : > { %8399 = vmatpush.bf16.msra.mxu2 %v10131_v61  ;;  %5673 = vst [vmem:[#allocation4 + $0x240] sm:$0xff] %v5654_v47  ;;  %v10519_v21 = vor.u32 %v11228_v40, %v10518_v12  ;;  %v10266_v61 = vld [vmem:[#allocation4 + $0x208] sm:$0xf]  ;;  %v11208_v53 = vld [vmem:[#allocation4 + $0x378] sm:$0xf0]  ;;  %vm8886_vm11 = vcmask 777216  }
 0x679   : > { %8530 = vst [vmem:[#allocation3 + $0x4] sm:$0xff] %v8522_v50  ;;  %v8226_v63 = vadd.f32 %v8225_v32, %v8212_v3  ;;  %v10267_v8 = vor.u32 %v11165_v7, %v10266_v61  ;;  %v10490_v12 = vld [vmem:[#allocation4 + $0x3c8] sm:$0xf]  ;;  %v10358_v14 = vld [vmem:[#allocation4 + $0x2b8] sm:$0xf]  ;;  %vm8977_vm12 = vcmask 187392  }
 0x67a   : > { %8373 = vmatpush.bf16.msrb.mxu1 %v10519_v21  ;;  %v10414_v21 = vld [vmem:[#allocation4 + $0x328] sm:$0xf]  ;;  %v10688_v13 = vld [vmem:[#allocation4 + $0x56c] sm:$0xf0]  ;;  %vm8946_vm9 = vcmask 392448   ;;  %vm9038_vm5 = vcmask 523648  }
 0x67b   : > { %v6076_v26 = vpop.permute.xlu1 %6075  ;;  %v8516_v54 = vmul.f32 %v8226_v63, %v15529_v38  ;;  %v10442_v38 = vld [vmem:[#allocation4 + $0x360] sm:$0xf]  ;;  %v10415_v32 = vor.u32 %v11201_v22, %v10414_v21  ;;  %v10716_v4 = vld [vmem:[#allocation4 + $0x5a4] sm:$0xf0]  ;;  %v11260_v22 = vld [vmem:[#allocation4 + $0x51c] sm:$0xf] }
 0x67c   : > { %8400 = vmatpush.bf16.msra.mxu2 %v10103_v25  ;;  %v6084_v9 = vrot.slane %v6076_v26, 4  ;;  %v10443_v29 = vor.u32 %v11208_v53, %v10442_v38  ;;  %v10660_v38 = vld [vmem:[#allocation4 + $0x534] sm:$0xf0] }
 0x67d   : > { %v8526_v5 = vpack.c.bf16 %v8516_v54, %v8515_v27  ;;  %v15542_v54 = vrot.slane %v14400_v36, 4 }
 0x67e   : > { %v6096_v48 = vsel %vm380_vm0, %v15535_v41, %v6084_v9  ;;  %v6098_v30 = vsel %vm15536_vm13, %v6076_v26, %v6084_v9  ;;  %v11194_v9 = vld [vmem:[#allocation4 + $0x308] sm:$0xf0] }
 0x67f   : > { %v6097_v51 = vsel %vm15537_vm14, %v14395_v20, %v6096_v48  ;;  %6114 = vst [vmem:[#allocation4 + $0x3ec] sm:$0xf] %v6098_v30  ;;  %v10294_v39 = vld [vmem:[#allocation4 + $0x240] sm:$0xf]  ;;  %v11169_v35 = vld [vmem:[#allocation4 + $0x244] sm:$0xf] }
 0x680   : > { %8401 = vmatpush.bf16.msra.mxu2 %v10075_v33  ;;  %6113 = vst [vmem:[#allocation4 + $0x3e4] sm:$0xff] %v6097_v51  ;;  %v10295_v37 = vor.u32 %v11172_v55, %v10294_v39  ;;  %v10299_v31 = vor.u32 %v11169_v35, %v10296_v60  ;;  %v11162_v20 = vld [vmem:[#allocation4 + $0x20c] sm:$0xf]  ;;  %v10769_v50 = vld [vmem:[#allocation3 + $0x8] sm:$0xf] }
 0x681   : > { %8534 = vst [vmem:[#allocation3 + $0x28] sm:$0xff] %v8526_v5  ;;  %v10271_v19 = vor.u32 %v11162_v20, %v10268_v44  ;;  %v11313_v26 = vld [vmem:[#allocation3 + $0x4] sm:$0xf]  ;;  %v10386_v33 = vld [vmem:[#allocation4 + $0x2f0] sm:$0xf] }
 0x682   : > { %8359 = vmatpush.bf16.msra.mxu0 %v10295_v37  ;;  %8415 = vmatpush.bf16.msra.mxu3 %v10299_v31  ;;  %v10387_v30 = vor.u32 %v11194_v9, %v10386_v33  ;;  %v11281_v55 = vld [vmem:[#allocation4 + $0x5c4] sm:$0xf]  ;;  %v10744_v60 = vld [vmem:[#allocation4 + $0x5dc] sm:$0xf0]  ;;  %v11214_v35 = vld [vmem:[#allocation4 + $0x3a8] sm:$0xf0] }
 0x683   : > { %v5998_v0 = vpop.permute.xlu1 %5997  ;;  %v10850_v37 = vld [vmem:[#allocation3 + $0x4] sm:$0xf]  ;;  %v10747_v49 = vor.u32 %v11281_v55, %v10744_v60  ;;  %v11145_v9 = vld [vmem:[#allocation4 + $0x180] sm:$0xf0]  ;;  %v10274_v55 = vld [vmem:[#allocation4 + $0x210] sm:$0xf] }
 0x684   : > { %8402 = vmatpush.bf16.msra.mxu2 %v10047_v11  ;;  %v6010_v17 = vrot.slane %v5998_v0, 4  ;;  %v11187_v11 = vld [vmem:[#allocation4 + $0x2d0] sm:$0xf0]  ;;  %v11180_v20 = vld [vmem:[#allocation4 + $0x298] sm:$0xf0] }
 0x685   : > { %v10359_v44 = vor.u32 %v11187_v11, %v10358_v14  ;;  %v11246_v60 = vld [vmem:[#allocation4 + $0x4ac] sm:$0xf]  ;;  %v10761_v11 = vld [vmem:[#allocation3] sm:$0xf] }
 0x686   : > { %v6019_v42 = vsel %vm380_vm0, %v15538_v62, %v6010_v17  ;;  %v6021_v47 = vsel %vm15539_vm2, %v5998_v0, %v6010_v17  ;;  %8360 = vmatpush.bf16.msra.mxu0 %v10267_v8  ;;  %8416 = vmatpush.bf16.msra.mxu3 %v10271_v19  ;;  %v10330_v0 = vld [vmem:[#allocation4 + $0x280] sm:$0xf]  ;;  %v10238_v19 = vld [vmem:[#allocation4 + $0x1d0] sm:$0xf]  ;;  %v11155_v62 = vld [vmem:[#allocation4 + $0x1d4] sm:$0xf] }
 0x687   : > { %v6020_v18 = vsel %vm15540_vm10, %v14431_v56, %v6019_v42  ;;  %6040 = vst [vmem:[#allocation4 + $0x398] sm:$0xf] %v6021_v47  ;;  %v11221_v40 = vld [vmem:[#allocation4 + $0x3e0] sm:$0xf0]  ;;  %v10218_v17 = vld [vmem:[#allocation4 + $0x1a0] sm:$0xf]  ;;  %v10331_v8 = vor.u32 %v11180_v20, %v10330_v0 }
 0x688   : > { %8403 = vmatpush.bf16.msra.mxu2 %v10019_v46  ;;  %6039 = vst [vmem:[#allocation4 + $0x390] sm:$0xff] %v6020_v18  ;;  %v10491_v25 = vor.u32 %v11221_v40, %v10490_v12  ;;  %v11315_v3 = vld [vmem:[#allocation3 + $0x28] sm:$0xf0]  ;;  %v10763_v27 = vld [vmem:[#allocation3 + $0x24] sm:$0xf0]  ;;  %v10663_v12 = vor.u32 %v11260_v22, %v10660_v38 }
 0x689   : > { %v10770_v45 = vor.u32 %v11315_v3, %v10769_v50  ;;  %v10766_v56 = vor.u32 %v11313_v26, %v10763_v27  ;;  %v11318_v31 = vld [vmem:[#allocation3 + $0x24] sm:$0xf0]  ;;  %v11264_v46 = vld [vmem:[#allocation4 + $0x538] sm:$0xf0]  ;;  %v11267_v50 = vld [vmem:[#allocation4 + $0x554] sm:$0xf] }
 0x68a   : > { %8374 = vmatpush.bf16.msrb.mxu1 %v10491_v25  ;;  %v10851_v7 = vor.u32 %v11318_v31, %v10850_v37  ;;  %v10302_v18 = vld [vmem:[#allocation4 + $0x248] sm:$0xf]  ;;  %v10691_v40 = vor.u32 %v11267_v50, %v10688_v13  ;;  %v10666_v25 = vld [vmem:[#allocation4 + $0x520] sm:$0xf]  ;;  %v11152_v3 = vld [vmem:[#allocation4 + $0x1b8] sm:$0xf0] }
 0x68b   : > { %8404 = vmatmul.bf16.vlgmr.msra.gmra.mxu2 %v14109_v34  ;;  %v5500_v63 = vpop.permute.xlu1 %5499  ;;  %8599 = vrot.lane.b32.xlu1 %v10770_v45, %s15541_s0  ;;  %v10667_v21 = vor.u32 %v11264_v46, %v10666_v25  ;;  %v10219_v45 = vor.u32 %v11152_v3, %v10218_v17  ;;  %v10632_v26 = vld [vmem:[#allocation4 + $0x4fc] sm:$0xf0]  ;;  %v10246_v0 = vld [vmem:[#allocation4 + $0x1d8] sm:$0xf]  ;;  %v11243_v38 = vld [vmem:[#allocation4 + $0x490] sm:$0xf0] }
 0x68c   : > { %8466 = vmatpush.bf16.msrb.mxu2 %v10443_v29  ;;  %v5508_v24 = vrot.slane %v5500_v63, 4  ;;  %8597 = vrot.lane.b32.xlu0 %v10766_v56, %s15541_s0  ;;  %v11253_v56 = vld [vmem:[#allocation4 + $0x4e4] sm:$0xf]  ;;  %v11131_v17 = vld [vmem:[#allocation4 + $0x110] sm:$0xf0] }
 0x68d   : > { %v10635_v33 = vor.u32 %v11253_v56, %v10632_v26  ;;  %v10582_v13 = vld [vmem:[#allocation4 + $0x478] sm:$0xf]  ;;  %v11232_v22 = vld [vmem:[#allocation4 + $0x43c] sm:$0xf]  ;;  %v10520_v3 = vld [vmem:[#allocation4 + $0x41c] sm:$0xf0] }
 0x68e   : > { %v5520_v41 = vsel %vm380_vm0, %v15542_v54, %v5508_v24  ;;  %v5522_v48 = vsel %vm15543_vm4, %v5500_v63, %v5508_v24  ;;  %v11257_v63 = vld [vmem:[#allocation4 + $0x500] sm:$0xf0]  ;;  %v11166_v24 = vld [vmem:[#allocation4 + $0x228] sm:$0xf0]  ;;  %v10638_v54 = vld [vmem:[#allocation4 + $0x4e8] sm:$0xf] }
 0x68f   : > { %v5521_v51 = vsel %vm15544_vm6, %v14400_v36, %v5520_v41  ;;  %5538 = vst [vmem:[#allocation4 + $0x1f4] sm:$0xf] %v5522_v48  ;;  %v10462_v39 = vld [vmem:[#allocation4 + $0x390] sm:$0xf]  ;;  %v11274_v36 = vld [vmem:[#allocation4 + $0x58c] sm:$0xf]  ;;  %v10639_v48 = vor.u32 %v11257_v63, %v10638_v54  ;;  %v10275_v14 = vor.u32 %v11166_v24, %v10274_v55 }
 0x690   : > { %8467 = vmatpush.bf16.msrb.mxu2 %v10415_v32  ;;  %5537 = vst [vmem:[#allocation4 + $0x1ec] sm:$0xff] %v5521_v51  ;;  %v10463_v5 = vor.u32 %v11214_v35, %v10462_v39  ;;  %v10719_v61 = vor.u32 %v11274_v36, %v10716_v4  ;;  %v11173_v32 = vld [vmem:[#allocation4 + $0x260] sm:$0xf0]  ;;  %v10190_v41 = vld [vmem:[#allocation4 + $0x168] sm:$0xf]  ;;  %vm8722_vm0 = vcmask 1045504  }
 0x691   : > { %v10303_v27 = vor.u32 %v11173_v32, %v10302_v18  ;;  %v10610_v51 = vld [vmem:[#allocation4 + $0x4b0] sm:$0xf]  ;;  %v11138_v39 = vld [vmem:[#allocation4 + $0x148] sm:$0xf0]  ;;  %v10604_v35 = vld [vmem:[#allocation4 + $0x4c4] sm:$0xf0] }
 0x692   : > { %8375 = vmatpush.bf16.msrb.mxu1 %v10463_v5  ;;  %v10162_v5 = vld [vmem:[#allocation4 + $0x130] sm:$0xf]  ;;  %v10607_v31 = vor.u32 %v11246_v60, %v10604_v35  ;;  %v10134_v46 = vld [vmem:[#allocation4 + $0xf8] sm:$0xf]  ;;  %v10554_v18 = vld [vmem:[#allocation4 + $0x440] sm:$0xf] }
 0x693   : > { %8792 = vrot.lane.b32.xlu1 %v10851_v7, %s15351_s18  ;;  %v11314_v7 = vld [vmem:[#allocation3 + $0x20] sm:$0xf0]  ;;  %v10163_v4 = vor.u32 %v11138_v39, %v10162_v5  ;;  %v10576_v36 = vld [vmem:[#allocation4 + $0x48c] sm:$0xf0]  ;;  %v11225_v32 = vld [vmem:[#allocation4 + $0x404] sm:$0xf] }
 0x694   : > { %8468 = vmatpush.bf16.msrb.mxu2 %v10387_v30  ;;  %v10191_v30 = vor.u32 %v11145_v9, %v10190_v41  ;;  %v10523_v26 = vor.u32 %v11225_v32, %v10520_v3  ;;  %v10078_v63 = vld [vmem:[#allocation4 + $0x88] sm:$0xf]  ;;  %v11110_v54 = vld [vmem:[#allocation4 + $0x68] sm:$0xf0]  ;;  %v10022_v39 = vld [vmem:[#allocation4 + $0x18] sm:$0xf] }
 0x695   : > { %8376 = vmatmul.bf16.vlgmr.msrb.gmra.mxu1 %v14175_v52  ;;  %v10492_v24 = vld [vmem:[#allocation4 + $0x3e4] sm:$0xf0]  ;;  %v10464_v35 = vld [vmem:[#allocation4 + $0x3ac] sm:$0xf0]  ;;  %v11285_v5 = vld [vmem:[#allocation4 + $0x5e0] sm:$0xf0] }
 0x696   : > { %8443 = vmatpush.bf16.msra.mxu1 %v10747_v49  ;;  %v11159_v37 = vld [vmem:[#allocation4 + $0x1f0] sm:$0xf0]  ;;  %v11250_v49 = vld [vmem:[#allocation4 + $0x4c8] sm:$0xf0] }
 0x697   : > { %v11158_v53 = vld [vmem:[#allocation4 + $0x1e8] sm:$0xf0]  ;;  %v10240_v42 = vld [vmem:[#allocation4 + $0x1ec] sm:$0xf0]  ;;  %v10247_v20 = vor.u32 %v11159_v37, %v10246_v0 }
 0x698   : > { %8469 = vmatpush.bf16.msrb.mxu2 %v10359_v44  ;;  %v10239_v47 = vor.u32 %v11158_v53, %v10238_v19  ;;  %v10243_v29 = vor.u32 %v11155_v62, %v10240_v42  ;;  %v10611_v44 = vor.u32 %v11250_v49, %v10610_v51  ;;  %v10583_v53 = vor.u32 %v11243_v38, %v10582_v13  ;;  %v10548_v42 = vld [vmem:[#allocation4 + $0x454] sm:$0xf0]  ;;  %v11103_v49 = vld [vmem:[#allocation4 + $0x30] sm:$0xf0]  ;;  %v11278_v0 = vld [vmem:[#allocation4 + $0x5a8] sm:$0xf0] }
 0x699   : > { %v10135_v62 = vor.u32 %v11131_v17, %v10134_v46  ;;  %v10551_v50 = vor.u32 %v11232_v22, %v10548_v42  ;;  %v10470_v51 = vld [vmem:[#allocation4 + $0x398] sm:$0xf]  ;;  %v11271_v38 = vld [vmem:[#allocation4 + $0x570] sm:$0xf0]  ;;  %v8251_v17 = vpop.f32.mrf.mxu2 }
 0x69a   : > { %8444 = vmatpush.bf16.msra.mxu1 %v10719_v61  ;;  %8361 = vmatpush.bf16.msra.mxu0 %v10239_v47  ;;  %v10762_v61 = vor.u32 %v11314_v7, %v10761_v11  ;;  %v11236_v47 = vld [vmem:[#allocation4 + $0x458] sm:$0xf0]  ;;  %v10023_v7 = vor.u32 %v11103_v49, %v10022_v39  ;;  %v14920_v39 = vld [vmem:[%s15161_s5 + $0x70] sm:$0xff]  ;;  %v14946_v49 = vld [vmem:[%s15161_s5 + $0x60] sm:$0xff] }
 0x69b   : > { %8417 = vmatpush.bf16.msra.mxu3 %v10243_v29  ;;  %v10106_v29 = vld [vmem:[#allocation4 + $0xc0] sm:$0xf] }
 0x69c   : > { %8470 = vmatpush.bf16.msrb.mxu2 %v10331_v8  ;;  %v11239_v8 = vld [vmem:[#allocation4 + $0x474] sm:$0xf]  ;;  %8595 = vrot.lane.b32.xlu2 %v10762_v61, %s15541_s0 }
 0x69d   : > { %8362 = vmatmul.bf16.vlgmr.msra.gmra.mxu0 %v14349_v2  ;;  %v10579_v19 = vor.u32 %v11239_v8, %v10576_v36  ;;  %v10722_v36 = vld [vmem:[#allocation4 + $0x590] sm:$0xf] }
 0x69e   : > { %8424 = vmatpush.bf16.msrb.mxu0 %v10663_v12  ;;  %8445 = vmatpush.bf16.msra.mxu1 %v10691_v40  ;;  %v11124_v12 = vld [vmem:[#allocation4 + $0xd8] sm:$0xf0]  ;;  %v10555_v40 = vor.u32 %v11236_v47, %v10554_v18  ;;  %v10723_v61 = vor.u32 %v11278_v0, %v10722_v36 }
 0x69f   : > { %8480 = vmatpush.bf16.msrb.mxu3 %v10667_v21  ;;  %v10107_v25 = vor.u32 %v11124_v12, %v10106_v29  ;;  %v11229_v21 = vld [vmem:[#allocation4 + $0x420] sm:$0xf0] }
 0x6a0   : > { %8471 = vmatpush.bf16.msrb.mxu2 %v10303_v27  ;;  %8418 = vmatmul.bf16.vlgmr.msra.gmra.mxu3 %v14349_v2  ;;  %v10526_v27 = vld [vmem:[#allocation4 + $0x408] sm:$0xf] }
 0x6a1   : > { %v10527_v9 = vor.u32 %v11229_v21, %v10526_v27  ;;  %v8265_v46 = vpop.f32.mrf.mxu3 }
 0x6a2   : > { %8452 = vmatpush.bf16.msrb.mxu1 %v10219_v45  ;;  %8425 = vmatpush.bf16.msrb.mxu0 %v10635_v33  ;;  %v11117_v45 = vld [vmem:[#allocation4 + $0xa0] sm:$0xf0]  ;;  %v11222_v33 = vld [vmem:[#allocation4 + $0x3e8] sm:$0xf0] }
 0x6a3   : > { %8481 = vmatpush.bf16.msrb.mxu3 %v10639_v48  ;;  %v10079_v56 = vor.u32 %v11117_v45, %v10078_v63  ;;  %v10498_v48 = vld [vmem:[#allocation4 + $0x3d0] sm:$0xf]  ;;  %v15545_v63 = vld [vmem:[#allocation18_spill] sm:$0xff] }
 0x6a4   : > { %8472 = vmatpush.bf16.msrb.mxu2 %v10275_v14  ;;  %v10499_v55 = vor.u32 %v11222_v33, %v10498_v48  ;;  %v11211_v14 = vld [vmem:[#allocation4 + $0x394] sm:$0xf] }
 0x6a5   : > { %10757 = vmatmul.msk.bf16.vlgmr.msra.gmra.mxu1 %vm4450_vm7, %v13965_v57  ;;  %v10467_v37 = vor.u32 %v11211_v14, %v10464_v35 }
 0x6a6   : > { %8453 = vmatpush.bf16.msrb.mxu1 %v10191_v30  ;;  %8426 = vmatpush.bf16.msrb.mxu0 %v10607_v31  ;;  %v10050_v30 = vld [vmem:[#allocation4 + $0x50] sm:$0xf]  ;;  %v11215_v31 = vld [vmem:[#allocation4 + $0x3b0] sm:$0xf0] }
 0x6a7   : > { %8482 = vmatpush.bf16.msrb.mxu3 %v10611_v44  ;;  %v10051_v60 = vor.u32 %v11110_v54, %v10050_v30  ;;  %v10471_v11 = vor.u32 %v11215_v31, %v10470_v51  ;;  %v10750_v44 = vld [vmem:[#allocation4 + $0x5c8] sm:$0xf]  ;;  %v14915_v51 = vld [vmem:[%s15161_s5 + $0x30] sm:$0xff]  ;;  %v14941_v31 = vld [vmem:[%s15161_s5 + $0x20] sm:$0xff] }
 0x6a8   : > { %8473 = vmatpush.bf16.msrb.mxu2 %v10247_v20  ;;  %v8237_v20 = vpop.f32.mrf.mxu1 }
 0x6a9   : > { %v8267_v47 = vpop.f32.mrf.mxu3 }
 0x6aa   : > { %8454 = vmatpush.bf16.msrb.mxu1 %v10163_v4  ;;  %8427 = vmatpush.bf16.msrb.mxu0 %v10579_v19  ;;  %v10751_v4 = vor.u32 %v11285_v5, %v10750_v44  ;;  %v10694_v19 = vld [vmem:[#allocation4 + $0x558] sm:$0xf] }
 0x6ab   : > { %8483 = vmatpush.bf16.msrb.mxu3 %v10583_v53  ;;  %8474 = vmatmul.bf16.vlgmr.msrb.gmra.mxu2 %v14349_v2  ;;  %v11218_v2 = vld [vmem:[#allocation4 + $0x3cc] sm:$0xf]  ;;  %v10695_v13 = vor.u32 %v11271_v38, %v10694_v19  ;;  %v14928_v5 = vld [vmem:[%s15161_s5 + $0x28] sm:$0xff]  ;;  %v10845_v19 = vld [vmem:[%s15161_s5 + $0x90] sm:$0xf] }
 0x6ac   : > { %v10495_v41 = vor.u32 %v11218_v2, %v10492_v24 }
 0x6ae   : > { %8455 = vmatpush.bf16.msrb.mxu1 %v10135_v62  ;;  %8428 = vmatpush.bf16.msrb.mxu0 %v10551_v50  ;;  %v8253_v62 = vpop.f32.mrf.mxu2 }
 0x6af   : > { %8484 = vmatpush.bf16.msrb.mxu3 %v10555_v40 }
 0x6b0   : > { %v8239_v53 = vpop.f32.mrf.mxu1 }
 0x6b1   : > { %v8240_v45 = vadd.f32 %v8239_v53, %v14694_v6  ;;  %v14901_v6 = vld [vmem:[%s15161_s5 + $0x38] sm:$0xff]  ;;  %v14976_v53 = vld [vmem:[%s15161_s5 + $0x10] sm:$0xff] }
 0x6b2   : > { %8456 = vmatpush.bf16.msrb.mxu1 %v10107_v25  ;;  %8429 = vmatpush.bf16.msrb.mxu0 %v10523_v26  ;;  %v8279_v8 = vpop.f32.mrf.mxu0 }
 0x6b3   : > { %8485 = vmatpush.bf16.msrb.mxu3 %v10527_v9 }
 0x6b6   : > { %8457 = vmatpush.bf16.msrb.mxu1 %v10079_v56  ;;  %8430 = vmatpush.bf16.msrb.mxu0 %v10495_v41 }
 0x6b7   : > { %8486 = vmatpush.bf16.msrb.mxu3 %v10499_v55 }
 0x6b9   : > { %v8335_v25 = vpop.f32.mrf.mxu3 }
 0x6ba   : > { %8458 = vmatpush.bf16.msrb.mxu1 %v10051_v60  ;;  %8431 = vmatpush.bf16.msrb.mxu0 %v10467_v37  ;;  %v8281_v42 = vpop.f32.mrf.mxu0  ;;  %v8321_v22 = vpop.f32.mrf.mxu2  ;;  %v14906_v60 = vld [vmem:[%s15161_s5 + $0x78] sm:$0xff]  ;;  %v14933_v37 = vld [vmem:[%s15161_s5 + $0x68] sm:$0xff] }
 0x6bb   : > { %8487 = vmatpush.bf16.msrb.mxu3 %v10471_v11 }
 0x6bd   : > { %8432 = vmatmul.bf16.vlgmr.msrb.gmra.mxu0 %v14175_v52 }
 0x6be   : > { %8459 = vmatpush.bf16.msrb.mxu1 %v10023_v7  ;;  %8499 = vmatpush.bf16.msra.mxu0 %v10751_v4 }
 0x6bf   : > { %8488 = vmatmul.bf16.vlgmr.msrb.gmra.mxu3 %v14175_v52  ;;  %v8238_v52 = vadd.f32 %v8237_v20, %v14670_v16  ;;  %v15546_v16 = vld [vmem:[#allocation19_spill] sm:$0xff] }
 0x6c0   : > { %8808 = vmatpush.bf16.msra.mxu3 %v14901_v6 }
 0x6c1   : > { %8460 = vmatmul.bf16.vlgmr.msrb.gmra.mxu1 %v14109_v34  ;;  %v8307_v34 = vpop.f32.mrf.mxu1  ;;  %v8252_v50 = vadd.f32 %v8251_v17, %v8238_v52  ;;  %v8337_v30 = vpop.f32.mrf.mxu3  ;;  %v14954_v17 = vld [vmem:[%s15161_s5 + $0x18] sm:$0xff] }
 0x6c2   : > { %8500 = vmatpush.bf16.msra.mxu0 %v10723_v61  ;;  %v8323_v33 = vpop.f32.mrf.mxu2  ;;  %8740 = vmatpush.bf16.msra.mxu1 %v14906_v60 }
 0x6c3   : > { %v8266_v12 = vadd.f32 %v8265_v46, %v8252_v50  ;;  %v15002_v50 = vld [vmem:[%s15161_s5 + $0x48] sm:$0xff] }
 0x6c4   : > { %8809 = vmatpush.bf16.msra.mxu3 %v14915_v51 }
 0x6c5   : > { %v8280_v3 = vadd.f32 %v8279_v8, %v8266_v12  ;;  %v14959_v8 = vld [vmem:[%s15161_s5 + $0x58] sm:$0xff] }
 0x6c6   : > { %8501 = vmatpush.bf16.msra.mxu0 %v10695_v13  ;;  %8741 = vmatpush.bf16.msra.mxu1 %v14920_v39  ;;  %v11312_v13 = vld [vmem:[%s15161_s5 + $0x90] sm:$0x30] }
 0x6c7   : > { %v8510_v9 = vmul.f32 %v8280_v3, %v15545_v63  ;;  %v10846_v46 = vor.u32 %v11312_v13, %v10845_v19 }
 0x6c8   : > { %8810 = vmatpush.bf16.msra.mxu3 %v14928_v5 }
 0x6c9   : > { %v8309_v27 = vpop.f32.mrf.mxu1  ;;  %v14983_v52 = vsel %vm8722_vm0, %v10846_v46, 0 }
 0x6ca   : > { %8726 = vmatpush.bf16.msrb.mxu0 %v14901_v6  ;;  %8742 = vmatpush.bf16.msra.mxu1 %v14933_v37 }
 0x6cb   : > { %8759 = vmatpush.bf16.msra.mxu2 %v14983_v52 }
 0x6cc   : > { %8811 = vmatpush.bf16.msra.mxu3 %v14941_v31 }
 0x6cd   : > { %10758 = vmatmul.msk.bf16.vlgmr.msra.gmra.mxu0 %vm4450_vm7, %v13965_v57  ;;  %v8254_v57 = vadd.f32 %v8253_v62, %v8240_v45  ;;  %v14981_v62 = vld [vmem:[%s15161_s5 + $0x50] sm:$0xff]  ;;  %vm8718_vm7 = vcmask 359424   ;;  %v15025_v45 = vld [vmem:[%s15161_s5 + $0x40] sm:$0xff] }
 0x6ce   : > { %8727 = vmatpush.bf16.msrb.mxu0 %v14915_v51  ;;  %8743 = vmatpush.bf16.msra.mxu1 %v14946_v49 }
 0x6cf   : > { %v8268_v54 = vadd.f32 %v8267_v47, %v8254_v57  ;;  %v10852_v47 = vld [vmem:[#allocation3 + $0x28] sm:$0xf0] }
 0x6d0   : > { %8812 = vmatpush.bf16.msra.mxu3 %v14954_v17 }
 0x6d1   : > { %v8282_v41 = vadd.f32 %v8281_v42, %v8268_v54  ;;  %v11316_v42 = vld [vmem:[#allocation3 + $0x8] sm:$0xf] }
 0x6d2   : > { %v8293_v29 = vpop.f32.mrf.mxu0  ;;  %8728 = vmatpush.bf16.msrb.mxu0 %v14928_v5  ;;  %8744 = vmatpush.bf16.msra.mxu1 %v14959_v8 }
 0x6d3   : > { %v8294_v18 = vadd.f32 %v8293_v29, %v14720_v43  ;;  %v10855_v29 = vor.u32 %v11316_v42, %v10852_v47 }
 0x6d4   : > { %8813 = vmatpush.bf16.msra.mxu3 %v14976_v53 }
 0x6d5   : > { %v8308_v40 = vadd.f32 %v8307_v34, %v8294_v18  ;;  %v14990_v34 = vld [vmem:[%s15161_s5 + $0x88] sm:$0xff]  ;;  %v15010_v18 = vld [vmem:[%s15161_s5 + $0x80] sm:$0xff] }
 0x6d6   : > { %8729 = vmatpush.bf16.msrb.mxu0 %v14941_v31  ;;  %8745 = vmatpush.bf16.msra.mxu1 %v14981_v62 }
 0x6d7   : > { %v8322_v21 = vadd.f32 %v8321_v22, %v8308_v40  ;;  %v14997_v22 = vld [vmem:[%s15161_s5 + $0x8] sm:$0xff]  ;;  %8760 = vmatpush.bf16.msra.mxu2 %v14990_v34 }
 0x6d8   : > { %8814 = vmatpush.bf16.msra.mxu3 %v14997_v22 }
 0x6d9   : > { %v8336_v32 = vadd.f32 %v8335_v25, %v8322_v21  ;;  %v15020_v21 = vld [vmem:[%s15161_s5] sm:$0xff] }
 0x6da   : > { %v8295_v26 = vpop.f32.mrf.mxu0  ;;  %8730 = vmatpush.bf16.msrb.mxu0 %v14954_v17  ;;  %8746 = vmatpush.bf16.msra.mxu1 %v15002_v50 }
 0x6db   : > { %v8511_v56 = vmul.f32 %v8336_v32, %v15546_v16  ;;  %v8296_v24 = vadd.f32 %v8295_v26, %v14748_v15  ;;  %v8517_v15 = vmul.f32 %v8282_v41, %v15545_v63  ;;  %8761 = vmatpush.bf16.msra.mxu2 %v15010_v18 }
 0x6dc   : > { %8815 = vmatpush.bf16.msra.mxu3 %v15020_v21 }
 0x6dd   : > { %v8523_v43 = vpack.c.bf16 %v8511_v56, %v8510_v9  ;;  %v8310_v2 = vadd.f32 %v8309_v27, %v8296_v24  ;;  %v8349_v56 = vpop.f32.mrf.mxu3 }
 0x6de   : > { %8731 = vmatpush.bf16.msrb.mxu0 %v14976_v53  ;;  %8747 = vmatpush.bf16.msra.mxu1 %v15025_v45  ;;  %v8350_v41 = vadd.f32 %v8349_v56, %v14740_v1 }
 0x6df   : > { %8531 = vst [vmem:[#allocation3 + $0xc] sm:$0xff] %v8523_v43  ;;  %v8324_v48 = vadd.f32 %v8323_v33, %v8310_v2  ;;  %8822 = vmatpush.bf16.msrb.mxu2 %v14906_v60 }
 0x6e0   : > { %8908 = vmatpush.bf16.msrb.mxu3 %v14906_v60 }
 0x6e1   : > { %v8338_v55 = vadd.f32 %v8337_v30, %v8324_v48 }
 0x6e2   : > { %8732 = vmatpush.bf16.msrb.mxu0 %v14997_v22  ;;  %8894 = vmatpush.bf16.msrb.mxu1 %v14901_v6 }
 0x6e3   : > { %v8518_v14 = vmul.f32 %v8338_v55, %v15546_v16  ;;  %8823 = vmatpush.bf16.msrb.mxu2 %v14920_v39 }
 0x6e4   : > { %8909 = vmatpush.bf16.msrb.mxu3 %v14920_v39 }
 0x6e5   : > { %v8527_v35 = vpack.c.bf16 %v8518_v14, %v8517_v15  ;;  %v8351_v43 = vpop.f32.mrf.mxu3 }
 0x6e6   : > { %v10867_v11 = vld [vmem:[#allocation3 + $0xc] sm:$0xf]  ;;  %v11317_v44 = vld [vmem:[#allocation3 + $0x10] sm:$0xf]  ;;  %8733 = vmatpush.bf16.msrb.mxu0 %v15020_v21  ;;  %8895 = vmatpush.bf16.msrb.mxu1 %v14915_v51 }
 0x6e7   : > { %8535 = vst [vmem:[#allocation3 + $0x30] sm:$0xff] %v8527_v35  ;;  %v10858_v7 = vld [vmem:[#allocation3 + $0xc] sm:$0xf]  ;;  %v11320_v40 = vld [vmem:[#allocation3 + $0x10] sm:$0xf]  ;;  %8824 = vmatpush.bf16.msrb.mxu2 %v14933_v37  ;;  %v8352_v35 = vadd.f32 %v8351_v43, %v14768_v28 }
 0x6e8   : > { %8910 = vmatpush.bf16.msrb.mxu3 %v14933_v37 }
 0x6ea   : > { %8841 = vmatpush.bf16.msra.mxu0 %v14983_v52  ;;  %8896 = vmatpush.bf16.msrb.mxu1 %v14928_v5 }
 0x6eb   : > { %8825 = vmatpush.bf16.msrb.mxu2 %v14946_v49 }
 0x6ec   : > { %8911 = vmatpush.bf16.msrb.mxu3 %v14946_v49 }
 0x6ee   : > { %v11321_v4 = vld [vmem:[#allocation3 + $0x2c] sm:$0xf0]  ;;  %v10860_v36 = vld [vmem:[#allocation3 + $0x30] sm:$0xf0]  ;;  %8842 = vmatpush.bf16.msra.mxu0 %v14990_v34  ;;  %8897 = vmatpush.bf16.msrb.mxu1 %v14941_v31  ;;  %v8391_v9 = vpop.f32.mrf.mxu2 }
 0x6ef   : > { %v11319_v0 = vld [vmem:[#allocation3 + $0x2c] sm:$0xf0]  ;;  %v10868_v61 = vor.u32 %v11321_v4, %v10867_v11  ;;  %v10863_v38 = vor.u32 %v11317_v44, %v10860_v36  ;;  %v10869_v12 = vld [vmem:[#allocation3 + $0x30] sm:$0xf0]  ;;  %8826 = vmatpush.bf16.msrb.mxu2 %v14959_v8 }
 0x6f0   : > { %v10859_v20 = vor.u32 %v11319_v0, %v10858_v7  ;;  %v10872_v25 = vor.u32 %v11320_v40, %v10869_v12  ;;  %8912 = vmatpush.bf16.msrb.mxu3 %v14959_v8 }
 0x6f1   : > { %8880 = vrot.lane.b32.xlu1 %v10868_v61, %s11634_s4  ;;  %8798 = vrot.lane.b32.xlu0 %v10863_v38, %s15351_s18  ;;  %v15547_v61 = vld [vmem:[#allocation20_spill] sm:$0xff] }
 0x6f2   : > { %8796 = vrot.lane.b32.xlu2 %v10859_v20, %s15351_s18  ;;  %8843 = vmatpush.bf16.msra.mxu0 %v15010_v18 }
 0x6f3   : > { %8827 = vmatpush.bf16.msrb.mxu2 %v14981_v62  ;;  %8898 = vmatpush.bf16.msrb.mxu1 %v14954_v17 }
 0x6f4   : > { %8913 = vmatpush.bf16.msrb.mxu3 %v14981_v62 }
 0x6f6   : > { %v8596_v32 = vpop.permute.xlu2 %8595  ;;  %v8393_v24 = vpop.f32.mrf.mxu2 }
 0x6f7   : > { %8828 = vmatpush.bf16.msrb.mxu2 %v15002_v50  ;;  %8899 = vmatpush.bf16.msrb.mxu1 %v14976_v53 }
 0x6f8   : > { %8914 = vmatpush.bf16.msrb.mxu3 %v15002_v50 }
 0x6fa   : > { %8794 = vrot.lane.b32.xlu2 %v10855_v29, %s15351_s18  ;;  %s11548_s18 = scalar_lea.hbm %s15162_s6, 32 }
 0x6fb   : > { %8829 = vmatpush.bf16.msrb.mxu2 %v15025_v45  ;;  %8900 = vmatpush.bf16.msrb.mxu1 %v14997_v22  ;;  %p11550_p4 = scmp.lt.s32.totalorder %s11548_s18, %s11544_s2 }
 0x6fc   : > { %8915 = vmatpush.bf16.msrb.mxu3 %v15025_v45 }
 0x6fd   : > { %v8600_v3 = vpop.permute.xlu1 %8599  ;;  %p11551_p7 = por %p11550_p4, %p11549_p3 }
 0x6fe   : > { %10847 = vmatmul.msk.bf16.vlgmr.msra.gmra.mxu2 %vm8718_vm7, %v8600_v3  ;;  %v8598_v26 = vpop.permute.xlu0 %8597 }
 0x6ff   : > { %v8601_v27 = vsel %vm382_vm1, %v8596_v32, %v8598_v26  ;;  %v8602_v57 = vsel %vm382_vm1, %v8598_v26, %v8600_v3  ;;  %8986 = vmatpush.bf16.msra.mxu2 %v14901_v6  ;;  %8901 = vmatpush.bf16.msrb.mxu1 %v15020_v21  ;;  %vm15550_vm1 = vmmov %vm15525_vm8  ;;  %p11552_p8 = pnand %p11551_p7, %p11547_p2 }
 0x700   : > { %8734 = vmatmul.bf16.vlgmr.msrb.gmra.mxu0 %v8601_v27  ;;  %8748 = vmatmul.bf16.vlgmr.msra.gmra.mxu1 %v8602_v57  ;;  %v15549_v27 = vld [vmem:[#allocation22_spill] sm:$0xff]  ;;  %vm15551_vm8 = vmmov %vm15550_vm1 }
 0x701   : > { %8927 = vmatpush.bf16.msrb.mxu0 %v14983_v52  ;;  %vm15552_vm15 = vmmov %vm15550_vm1 }
 0x702   : > { %8882 = vrot.lane.b32.xlu2 %v10872_v25, %s11634_s4 }
 0x703   : > { %8987 = vmatpush.bf16.msra.mxu2 %v14915_v51  ;;  %9019 = vmatpush.bf16.msra.mxu1 %v14983_v52 }
 0x705   : > { %8928 = vmatpush.bf16.msrb.mxu0 %v14990_v34 }
 0x707   : > { %8988 = vmatpush.bf16.msra.mxu2 %v14928_v5  ;;  %9020 = vmatpush.bf16.msra.mxu1 %v14990_v34 }
 0x709   : > { %8929 = vmatpush.bf16.msrb.mxu0 %v15010_v18 }
 0x70b   : > { %8989 = vmatpush.bf16.msra.mxu2 %v14941_v31  ;;  %9021 = vmatpush.bf16.msra.mxu1 %v15010_v18 }
 0x70e   : > { %v8405_v2 = vpop.f32.mrf.mxu2 }
 0x70f   : > { %8990 = vmatpush.bf16.msra.mxu2 %v14954_v17  ;;  %v8406_v15 = vadd.f32 %v8405_v2, %v14713_v59  ;;  %v15548_v59 = vld [vmem:[#allocation21_spill] sm:$0xff] }
 0x712   : > { %v8377_v63 = vpop.f32.mrf.mxu1 }
 0x713   : > { %8991 = vmatpush.bf16.msra.mxu2 %v14976_v53 }
 0x716   : > { %v8407_v51 = vpop.f32.mrf.mxu2 }
 0x717   : > { %8992 = vmatpush.bf16.msra.mxu2 %v14997_v22  ;;  %v8408_v36 = vadd.f32 %v8407_v51, %v14742_v10 }
 0x71a   : > { %v8379_v16 = vpop.f32.mrf.mxu1  ;;  %v8363_v33 = vpop.f32.mrf.mxu0 }
 0x71b   : > { %v8364_v6 = vadd.f32 %v8363_v33, %v8350_v41  ;;  %8993 = vmatpush.bf16.msra.mxu2 %v15020_v21 }
 0x71d   : > { %v8378_v14 = vadd.f32 %v8377_v63, %v8364_v6  ;;  %v8793_v6 = vpop.permute.xlu1 %8792 }
 0x71f   : > { %v8392_v11 = vadd.f32 %v8391_v9, %v8378_v14 }
 0x721   : > { %v8512_v20 = vmul.f32 %v8392_v11, %v15547_v61  ;;  %v10880_v11 = vld [vmem:[#allocation3 + $0x10] sm:$0xf] }
 0x722   : > { %v8447_v54 = vpop.f32.mrf.mxu1  ;;  %v8365_v30 = vpop.f32.mrf.mxu0 }
 0x723   : > { %v8419_v48 = vpop.f32.mrf.mxu3  ;;  %v8366_v7 = vadd.f32 %v8365_v30, %v8352_v35 }
 0x724   : > { %v8420_v5 = vadd.f32 %v8419_v48, %v8406_v15 }
 0x725   : > { %v8380_v38 = vadd.f32 %v8379_v16, %v8366_v7 }
 0x727   : > { %v8394_v42 = vadd.f32 %v8393_v24, %v8380_v38 }
 0x729   : > { %v8519_v10 = vmul.f32 %v8394_v42, %v15547_v61 }
 0x72a   : > { %v8449_v55 = vpop.f32.mrf.mxu1 }
 0x72b   : > { %v8421_v1 = vpop.f32.mrf.mxu3 }
 0x72c   : > { %v8422_v13 = vadd.f32 %v8421_v1, %v8408_v36 }
 0x72e   : > { %v8475_v19 = vpop.f32.mrf.mxu2 }
 0x736   : > { %v8477_v3 = vpop.f32.mrf.mxu2 }
 0x73a   : > { %v8433_v31 = vpop.f32.mrf.mxu0 }
 0x73b   : > { %v8434_v44 = vadd.f32 %v8433_v31, %v8420_v5  ;;  %v11325_v31 = vld [vmem:[#allocation3 + $0x30] sm:$0xf0] }
 0x73c   : > { %v10881_v7 = vor.u32 %v11325_v31, %v10880_v11 }
 0x73d   : > { %v8448_v0 = vadd.f32 %v8447_v54, %v8434_v44 }
 0x73e   : > { %v8461_v4 = vpop.f32.mrf.mxu1 }
 0x73f   : > { %v8513_v17 = vmul.f32 %v8448_v0, %v15548_v59  ;;  %v8462_v28 = vadd.f32 %v8461_v4, %v14718_v23 }
 0x741   : > { %v8524_v46 = vpack.c.bf16 %v8513_v17, %v8512_v20  ;;  %v8476_v34 = vadd.f32 %v8475_v19, %v8462_v28 }
 0x742   : > { %v8435_v53 = vpop.f32.mrf.mxu0  ;;  %v8489_v52 = vpop.f32.mrf.mxu3 }
 0x743   : > { %8532 = vst [vmem:[#allocation3 + $0x14] sm:$0xff] %v8524_v46  ;;  %v8436_v47 = vadd.f32 %v8435_v53, %v8422_v13  ;;  %v8490_v12 = vadd.f32 %v8489_v52, %v8476_v34 }
 0x745   : > { %v8450_v29 = vadd.f32 %v8449_v55, %v8436_v47 }
 0x746   : > { %v8463_v22 = vpop.f32.mrf.mxu1 }
 0x747   : > { %v8520_v18 = vmul.f32 %v8450_v29, %v15548_v59  ;;  %v8464_v25 = vadd.f32 %v8463_v22, %v14746_v58 }
 0x749   : > { %v8528_v40 = vpack.c.bf16 %v8520_v18, %v8519_v10  ;;  %v8478_v26 = vadd.f32 %v8477_v3, %v8464_v25 }
 0x74a   : > { %v8503_v21 = vpop.f32.mrf.mxu0  ;;  %v8491_v63 = vpop.f32.mrf.mxu3  ;;  %v10888_v16 = vld [vmem:[#allocation3 + $0x18] sm:$0xf]  ;;  %v11323_v24 = vld [vmem:[#allocation3 + $0x14] sm:$0xf] }
 0x74b   : > { %8536 = vst [vmem:[#allocation3 + $0x38] sm:$0xff] %v8528_v40  ;;  %v8504_v23 = vadd.f32 %v8503_v21, %v8490_v12  ;;  %v8492_v56 = vadd.f32 %v8491_v63, %v8478_v26  ;;  %v10875_v33 = vld [vmem:[#allocation3 + $0x14] sm:$0xf] }
 0x74c   : > { %v8797_v32 = vpop.permute.xlu2 %8796 }
 0x74d   : > { %v8514_v57 = vmul.f32 %v8504_v23, %v15549_v27 }
 0x74f   : > { %v8525_v9 = vpack.c.bf16 %v8514_v57, %v8514_v57 }
 0x751   : > { %8533 = vst [vmem:[#allocation3 + $0x1c] sm:$0xf] %v8525_v9 }
 0x752   : > { %v8505_v54 = vpop.f32.mrf.mxu0  ;;  %v11326_v43 = vld [vmem:[#allocation3 + $0x38] sm:$0xf0]  ;;  %v10882_v2 = vld [vmem:[#allocation3 + $0x34] sm:$0xf0] }
 0x753   : > { %v11322_v41 = vld [vmem:[#allocation3 + $0x34] sm:$0xf0]  ;;  %v8506_v58 = vadd.f32 %v8505_v54, %v8492_v56  ;;  %v10889_v48 = vor.u32 %v11326_v43, %v10888_v16  ;;  %v10885_v30 = vor.u32 %v11323_v24, %v10882_v2 }
 0x754   : > { %v10876_v55 = vor.u32 %v11322_v41, %v10875_v33  ;;  %v8795_v15 = vpop.permute.xlu2 %8794 }
 0x755   : > { %v8521_v14 = vmul.f32 %v8506_v58, %v15549_v27  ;;  %v8800_v51 = vsel %vm15550_vm1, %v8793_v6, %v8795_v15  ;;  %v8801_v35 = vsel %vm15551_vm8, %v8795_v15, %v8797_v32  ;;  %8973 = vrot.lane.b32.xlu2 %v10889_v48, %s11635_s1  ;;  %8971 = vrot.lane.b32.xlu1 %v10885_v30, %s11635_s1 }
 0x756   : > { %8884 = vrot.lane.b32.xlu0 %v10876_v55, %s11634_s4  ;;  %8816 = vmatmul.bf16.vlgmr.msra.gmra.mxu3 %v8800_v51  ;;  %s9160_s4 = sshll.u32 %s290_s3, 4 }
 0x757   : > { %v8529_v5 = vpack.c.bf16 %v8521_v14, %v8521_v14  ;;  %8830 = vmatmul.bf16.vlgmr.msrb.gmra.mxu2 %v8801_v35  ;;  %s15103_s30 = scalar_lea.vmem [#allocation11], %s9160_s4 }
 0x758   : > { %v11324_v1 = vld [vmem:[#allocation3 + $0x1c] sm:$0xf]  ;;  %s9054_s20 = sshll.u32 %s15103_s30, 4  ;;  %s9055_s20 = int_to_ptr.vmem [resolvable:$true] %s9054_s20 }
 0x759   : > { %8537 = vst [vmem:[#allocation3 + $0x40] sm:$0xf] %v8529_v5 }
 0x75c   : > { %v8883_v4 = vpop.permute.xlu2 %8882 }
 0x75e   : > { %8969 = vrot.lane.b32.xlu0 %v10881_v7, %s11635_s1 }
 0x760   : > { %v10890_v44 = vld [vmem:[#allocation3 + $0x3c] sm:$0xf0] }
 0x761   : > { %v10893_v36 = vor.u32 %v11324_v1, %v10890_v44 }
 0x763   : > { %v8881_v0 = vpop.permute.xlu1 %8880  ;;  %v8799_v61 = vpop.permute.xlu0 %8798 }
 0x764   : > { %v8887_v20 = vsel %vm8886_vm11, %v8881_v0, %v8883_v4  ;;  %v8802_v38 = vsel %vm15552_vm15, %v8797_v32, %v8799_v61 }
 0x765   : > { %8902 = vmatmul.bf16.vlgmr.msrb.gmra.mxu1 %v8887_v20  ;;  %10864 = vmatmul.msk.bf16.vlgmr.msra.gmra.mxu0 %vm8718_vm7, %v8802_v38 }
 0x766   : > { %8975 = vrot.lane.b32.xlu0 %v10893_v36, %s11635_s1  ;;  %9000 = vmatpush.bf16.msra.mxu0 %v14906_v60 }
 0x76a   : > { %9001 = vmatpush.bf16.msra.mxu0 %v14920_v39 }
 0x76e   : > { %9002 = vmatpush.bf16.msra.mxu0 %v14933_v37 }
 0x772   : > { %9003 = vmatpush.bf16.msra.mxu0 %v14946_v49 }
 0x776   : > { %9004 = vmatpush.bf16.msra.mxu0 %v14959_v8 }
 0x77a   : > { %9005 = vmatpush.bf16.msra.mxu0 %v14981_v62  ;;  %v11636_v62 = vmov 0.0  }
 0x77b   : > { %8539 = vst [vmem:[%s15103_s30 + $0x8] sm:$0xff] %v11636_v62 }
 0x77c   : > { %8538 = vst [vmem:[%s15103_s30] sm:$0xff] %v11636_v62 }
 0x77d   : > { %v8735_v59 = vpop.f32.mrf.mxu0  ;;  %v8749_v17 = vpop.f32.mrf.mxu1 }
 0x77e   : > { %9006 = vmatpush.bf16.msra.mxu0 %v15002_v50  ;;  %v8750_v13 = vadd.f32 %v8749_v17, %v8735_v59 }
 0x781   : > { %v8763_v19 = vpop.f32.mrf.mxu2 }
 0x782   : > { %9007 = vmatpush.bf16.msra.mxu0 %v15025_v45  ;;  %v8764_v39 = vadd.f32 %v8763_v19, %v8750_v13 }
 0x784   : > { %v8768_v8 = vmul.f32 0.037037037, %v8764_v39 }
 0x785   : > { %v8737_v60 = vpop.f32.mrf.mxu0  ;;  %v8751_v37 = vpop.f32.mrf.mxu1 }
 0x786   : > { %v8752_v46 = vadd.f32 %v8751_v37, %v8737_v60  ;;  %8770 = vst.msk [vmem:[%s15103_s30] sm:$0xff] %vm7016_vm3, %v8768_v8 }
 0x789   : > { %v8765_v49 = vpop.f32.mrf.mxu2 }
 0x78a   : > { %v8766_v28 = vadd.f32 %v8765_v49, %v8752_v46 }
 0x78c   : > { %v8769_v53 = vmul.f32 0.037037037, %v8766_v28 }
 0x78e   : > { %8771 = vst.msk [vmem:[%s15103_s30 + $0x8] sm:$0xff] %vm7016_vm3, %v8769_v53  ;;  %vm8860_vm3 = vcmask 261248  }
 0x7af   : > { %v8974_v34 = vpop.permute.xlu2 %8973 }
 0x7c7   : > { %v8972_v42 = vpop.permute.xlu1 %8971 }
 0x7c8   : > { %v8885_v50 = vpop.permute.xlu0 %8884  ;;  %v8979_v29 = vsel %vm8977_vm12, %v8972_v42, %v8974_v34 }
 0x7c9   : > { %v8888_v45 = vsel %vm8886_vm11, %v8883_v4, %v8885_v50  ;;  %10877 = vmatmul.msk.bf16.vlgmr.msrb.gmra.mxu0 %vm8718_vm7, %v8885_v50 }
 0x7ca   : > { %8916 = vmatmul.bf16.vlgmr.msrb.gmra.mxu3 %v8888_v45 }
 0x7d0   : > { %v8970_v47 = vpop.permute.xlu0 %8969 }
 0x7d1   : > { %v8978_v52 = vsel %vm8977_vm12, %v8970_v47, %v8972_v42 }
 0x7d2   : > { %8994 = vmatmul.bf16.vlgmr.msra.gmra.mxu2 %v8978_v52 }
 0x7d8   : > { %v8976_v22 = vpop.permute.xlu0 %8975 }
 0x7d9   : > { %v8980_v10 = vsel %vm8977_vm12, %v8974_v34, %v8976_v22  ;;  %9008 = vmatmul.bf16.vlgmr.msra.gmra.mxu0 %v8979_v29  ;;  %v8817_v18 = vpop.f32.mrf.mxu3 }
 0x7da   : > { %10894 = vmatmul.msk.bf16.vlgmr.msra.gmra.mxu1 %vm8718_vm7, %v8980_v10  ;;  %v8831_v12 = vpop.f32.mrf.mxu2 }
 0x7db   : > { %v8832_v40 = vadd.f32 %v8831_v12, %v8817_v18 }
 0x7e1   : > { %v8819_v23 = vpop.f32.mrf.mxu3 }
 0x7e2   : > { %v8845_v25 = vpop.f32.mrf.mxu0  ;;  %v8833_v32 = vpop.f32.mrf.mxu2 }
 0x7e3   : > { %v8846_v3 = vadd.f32 %v8845_v25, %v8832_v40  ;;  %v8834_v26 = vadd.f32 %v8833_v32, %v8819_v23  ;;  %v8903_v9 = vpop.f32.mrf.mxu1 }
 0x7e5   : > { %v8850_v21 = vmul.f32 0.037037037, %v8846_v3 }
 0x7e7   : > { %8854 = vrot.lane.b32.xlu1 %v8850_v21, %s11637_s29 }
 0x7ea   : > { %v8847_v27 = vpop.f32.mrf.mxu0 }
 0x7eb   : > { %v8848_v57 = vadd.f32 %v8847_v27, %v8834_v26  ;;  %v8905_v43 = vpop.f32.mrf.mxu1 }
 0x7ed   : > { %v8851_v63 = vmul.f32 0.037037037, %v8848_v57 }
 0x7ef   : > { %8856 = vrot.lane.b32.xlu2 %v8851_v63, %s11637_s29 }
 0x846   : > { %v8931_v16 = vpop.f32.mrf.mxu0 }
 0x849   : > { %v8857_v56 = vpop.permute.xlu2 %8856 }
 0x84a   : > { %8862 = vst.msk [vmem:[%s15103_s30 + $0x8] sm:$0xff] %vm8860_vm3, %v8857_v56 }
 0x84d   : > { %v8917_v24 = vpop.f32.mrf.mxu3 }
 0x84e   : > { %v8918_v33 = vadd.f32 %v8917_v24, %v8903_v9  ;;  %v8933_v54 = vpop.f32.mrf.mxu0 }
 0x850   : > { %v8932_v2 = vadd.f32 %v8931_v16, %v8918_v33 }
 0x852   : > { %v8936_v41 = vmul.f32 0.037037037, %v8932_v2 }
 0x854   : > { %8940 = vrot.lane.b32.xlu0 %v8936_v41, %s11638_s10 }
 0x855   : > { %v8919_v58 = vpop.f32.mrf.mxu3  ;;  %v8995_v48 = vpop.f32.mrf.mxu2 }
 0x856   : > { %v8920_v30 = vadd.f32 %v8919_v58, %v8905_v43  ;;  %v9009_v55 = vpop.f32.mrf.mxu0 }
 0x857   : > { %v9010_v6 = vadd.f32 %v9009_v55, %v8995_v48  ;;  %v9023_v15 = vpop.f32.mrf.mxu1 }
 0x858   : > { %v8934_v14 = vadd.f32 %v8933_v54, %v8920_v30 }
 0x859   : > { %v9024_v51 = vadd.f32 %v9023_v15, %v9010_v6  ;;  %v8855_v31 = vpop.permute.xlu1 %8854 }
 0x85a   : > { %v8937_v35 = vmul.f32 0.037037037, %v8934_v14  ;;  %8861 = vst.msk [vmem:[%s15103_s30] sm:$0xff] %vm8860_vm3, %v8855_v31 }
 0x85b   : > { %v9028_v5 = vmul.f32 0.037037037, %v9024_v51 }
 0x85c   : > { %8942 = vrot.lane.b32.xlu1 %v8937_v35, %s11638_s10 }
 0x85d   : > { %9032 = vrot.lane.b32.xlu2 %v9028_v5, %s11639_s11  ;;  %v8997_v11 = vpop.f32.mrf.mxu2 }
 0x85e   : > { %v9011_v7 = vpop.f32.mrf.mxu0 }
 0x85f   : > { %v9012_v44 = vadd.f32 %v9011_v7, %v8997_v11  ;;  %v9025_v1 = vpop.f32.mrf.mxu1 }
 0x861   : > { %v9026_v4 = vadd.f32 %v9025_v1, %v9012_v44 }
 0x863   : > { %v9029_v0 = vmul.f32 0.037037037, %v9026_v4 }
 0x865   : > { %9034 = vrot.lane.b32.xlu0 %v9029_v0, %s11639_s11 }
 0x8b7   : > { %v9033_v61 = vpop.permute.xlu2 %9032 }
 0x8c6   : > { %v8941_v36 = vpop.permute.xlu0 %8940 }
 0x8c7   : > { %8947 = vst.msk [vmem:[%s15103_s30] sm:$0xff] %vm8946_vm9, %v8941_v36 }
 0x8c8   : > { %9039 = vst.msk [vmem:[%s15103_s30] sm:$0xff] %vm9038_vm5, %v9033_v61 }
 0x8ce   : > { %v8943_v20 = vpop.permute.xlu1 %8942 }
 0x8cf   : > { %8948 = vst.msk [vmem:[%s15103_s30 + $0x8] sm:$0xff] %vm8946_vm9, %v8943_v20 }
 0x8d7   : > { %v9035_v38 = vpop.permute.xlu0 %9034 }
 0x8d8   : > { %9040 = vst.msk [vmem:[%s15103_s30 + $0x8] sm:$0xff] %vm9038_vm5, %v9035_v38 }
 0x8d9   : > { %11555 = shalt.err (!%p11552_p8)
}
 0x8da   : > { %s11640_s0 = smov 128   ;;  %s11641_s1 = smov 8  }
 0x8db   : > { %11341 = dma.vmem_to_hbm [thread:$0]  (%p11715_p5), %s9055_s20, 256, %s9057_s26, %s9042_s28, %s11640_s0, %s11640_s0, %s11641_s1  }
 0x8dc PF: > { %p11363_p9 = scmp.ge.s32.totalorder %s11598_s24, 2  ;;  %s9071_s3 = sand.u32 1, %s11586_s21  }
 0x8dd   : > { %s9072_s4 = scalar_lea.sflag [#allocation7], %s9071_s3 }
 0x8de   : > { %p11354_p10 = pnand %p11363_p9, %p11719_p6 }
 0x8e0   : > { %p11355_p11 = pneg %p11354_p10 }
 0x8e2   : > { %11581 = dma.done.wait (%p11355_p11), %s9072_s4, 256  }
 0x8e3   : > { %11583 = vsyncadd (%p11355_p11), %s9072_s4, 4294967040  ;;  %s15553_s30 = sld [smem:[#allocation15_spill]]  ;;  %p18_p12 = scmp.ge.s32.totalorder %s11702_s27, 4  }
 0x8e4   : > { %s15554_s21 = smov %s11590_s22  ;;  %s15555_s22 = smov %s11594_s23 }
 0x8e5   : > { %s15557_s24 = smov %s11702_s27  ;;  %20 = sbr.rel (!%p18_p12) target bundleno = 11 (0xb), region = 92 }
 0x8e9   : > { %s15556_s23 = smov %s15553_s30 }
 0x8ea   :  { %9078 = vsyncpa [#allocation6], 1 }
 0x8eb   :  { %9080 = vsyncpa [#allocation6 + $0x1], 1 }
 0x8ec   :  { %9081 = vsyncpa [#allocation9], 1 }
 0x8ed   :  { %9082 = vsyncpa [#allocation7], 1 }
 0x8ee   :  { %9084 = vsyncpa [#allocation7 + $0x1], 1 }

</bundles_post_ra>
